<compile_context>
chip_gen: v6e
topology: v6e:2x2x1
jax: 0.10.0
libtpu: 0.0.40
codegen_flags: <defaults>
</compile_context>

<pallas_src>
from functools import partial

import numpy as np
import jax
import jax.numpy as jnp
from jax.experimental import pallas as pl
from jax.experimental.pallas import tpu as pltpu


_PARALLEL = pltpu.CompilerParams(dimension_semantics=("parallel",))


# ----------------------------- Pallas kernels ------------------------------ #

def _rebnconv_kernel(x_ref, w_ref, s_ref, b_ref, o_ref, *, shifts, hwp):
    # x_ref: (1, Cin_p, L) padded + Wp-stride-flattened input
    # w_ref: (Cout, 9*Cin_p) packed weights, s/b: (Cout, 1), o: (1, Cout, H*Wp)
    x = x_ref[0]
    # 9 dilated taps = 9 constant lane shifts of the same flat buffer.
    taps = jnp.concatenate([x[:, s:s + hwp] for s in shifts], axis=0)
    y = jnp.dot(w_ref[...], taps, preferred_element_type=jnp.float32)
    o_ref[0] = jnp.maximum(y * s_ref[...] + b_ref[...], 0.0)


def _rebnconv_res_kernel(x_ref, w_ref, s_ref, b_ref, r_ref, o_ref, *, shifts, hwp):
    # Same as above plus the residual add (hx1d + hxin) fused after the ReLU.
    x = x_ref[0]
    taps = jnp.concatenate([x[:, s:s + hwp] for s in shifts], axis=0)
    y = jnp.dot(w_ref[...], taps, preferred_element_type=jnp.float32)
    o_ref[0] = jnp.maximum(y * s_ref[...] + b_ref[...], 0.0) + r_ref[0]


def _maxpool_kernel(x_ref, o_ref):
    # x_ref: (1, 4, C, HoWo) -- the 4 positions of each 2x2 window.  o: (1, C, HoWo)
    o_ref[0] = jnp.maximum(jnp.maximum(x_ref[0, 0], x_ref[0, 1]),
                           jnp.maximum(x_ref[0, 2], x_ref[0, 3]))


def _upsample_kernel(mh_ref, mwt_ref, x_ref, o_ref, *, channels):
    # Separable bicubic: out[c] = clamp(Mh @ x[c] @ Mw^T, 0, 255).
    mh = mh_ref[...]     # (Ht, Hs)
    mwt = mwt_ref[...]   # (Ws, Wt)
    for c in range(channels):           # static unroll, tiny matmuls
        t = jnp.dot(mh, x_ref[0, c], preferred_element_type=jnp.float32)
        y = jnp.dot(t, mwt, preferred_element_type=jnp.float32)
        o_ref[0, c] = jnp.clip(y, 0.0, 255.0)


# ------------------------------ Wrappers ----------------------------------- #

def rebnconv(x, w2d, scale, bias, dirate, residual=None):
    """3x3 dilated conv + folded BN + ReLU (+optional residual), fused in Pallas."""
    N, Cin, H, W = x.shape
    d = int(dirate)
    Cout = w2d.shape[0]
    cin_p = w2d.shape[1] // 9            # channels padded to a multiple of 8
    Hp, Wp = H + 2 * d, W + 2 * d
    HWp = H * Wp
    L = (Hp + 1) * Wp                    # +1 spare row so every tap shift is in-bounds

    # Glue: zero-pad channels / spatial borders, flatten with stride Wp.
    xp = jnp.pad(x, ((0, 0), (0, cin_p - Cin), (d, d + 1), (d, d)))
    xf = xp.reshape(N, cin_p, L)
    shifts = tuple(kh * d * Wp + kw * d for kh in range(3) for kw in range(3))

    s2 = scale.reshape(Cout, 1).astype(jnp.float32)
    b2 = bias.reshape(Cout, 1).astype(jnp.float32)

    in_specs = [
        pl.BlockSpec((1, cin_p, L), lambda n: (n, 0, 0)),
        pl.BlockSpec((Cout, 9 * cin_p), lambda n: (0, 0)),
        pl.BlockSpec((Cout, 1), lambda n: (0, 0)),
        pl.BlockSpec((Cout, 1), lambda n: (0, 0)),
    ]
    args = [xf, w2d.astype(jnp.float32), s2, b2]
    kern = partial(_rebnconv_kernel, shifts=shifts, hwp=HWp)
    if residual is not None:
        rf = jnp.pad(residual, ((0, 0), (0, 0), (0, 0), (0, Wp - W)))
        rf = rf.reshape(N, Cout, HWp).astype(jnp.float32)
        in_specs.append(pl.BlockSpec((1, Cout, HWp), lambda n: (n, 0, 0)))
        args.append(rf)
        kern = partial(_rebnconv_res_kernel, shifts=shifts, hwp=HWp)

    y = pl.pallas_call(
        kern,
        out_shape=jax.ShapeDtypeStruct((N, Cout, HWp), jnp.float32),
        grid=(N,),
        in_specs=in_specs,
        out_specs=pl.BlockSpec((1, Cout, HWp), lambda n: (n, 0, 0)),
        compiler_params=_PARALLEL,
    )(*args)
    # Drop the 2*d garbage columns introduced by the Wp-stride flattening.
    return y.reshape(N, Cout, H, Wp)[:, :, :, :W]


def maxpool_2x2_ceil(x):
    """MaxPool2d(2, stride=2, ceil_mode=True); reduction runs in Pallas."""
    N, C, H, W = x.shape
    Ho, Wo = (H + 1) // 2, (W + 1) // 2
    if (H % 2) or (W % 2):  # ceil_mode padding with -inf (no-op for even sizes)
        x = jnp.pad(x, ((0, 0), (0, 0), (0, 2 * Ho - H), (0, 2 * Wo - W)),
                    constant_values=-jnp.inf)
    # Glue: put the 4 elements of each 2x2 window on their own axis, lane = HoWo.
    xw = (x.reshape(N, C, Ho, 2, Wo, 2)
          .transpose(0, 3, 5, 1, 2, 4)
          .reshape(N, 4, C, Ho * Wo))
    out = pl.pallas_call(
        _maxpool_kernel,
        out_shape=jax.ShapeDtypeStruct((N, C, Ho * Wo), jnp.float32),
        grid=(N,),
        in_specs=[pl.BlockSpec((1, 4, C, Ho * Wo), lambda n: (n, 0, 0, 0))],
        out_specs=pl.BlockSpec((1, C, Ho * Wo), lambda n: (n, 0, 0)),
        compiler_params=_PARALLEL,
    )(xw)
    return out.reshape(N, C, Ho, Wo)


def _bicubic_matrix(out_size, in_size):
    """1-D bicubic interpolation matrix matching PyTorch (align_corners=False, A=-0.75)."""
    A = -0.75
    scale = in_size / out_size

    def c1(t):  # |t| <= 1
        return ((A + 2.0) * t - (A + 3.0)) * t * t + 1.0

    def c2(t):  # 1 < |t| < 2
        return ((A * t - 5.0 * A) * t + 8.0 * A) * t - 4.0 * A

    M = np.zeros((out_size, in_size), np.float64)
    for o in range(out_size):
        src = (o + 0.5) * scale - 0.5
        i0 = int(np.floor(src))
        t = src - i0
        wts = (c2(t + 1.0), c1(t), c1(1.0 - t), c2(2.0 - t))
        for k in range(4):
            idx = min(max(i0 - 1 + k, 0), in_size - 1)  # border replication
            M[o, idx] += wts[k]
    return M.astype(np.float32)


def upsample_bicubic_clamp(src, Ht, Wt):
    """_upsample_like: separable bicubic (align_corners=False) resize + clamp(0, 255)."""
    N, C, Hs, Ws = src.shape
    Mh = jnp.asarray(_bicubic_matrix(Ht, Hs))       # (Ht, Hs)
    MwT = jnp.asarray(_bicubic_matrix(Wt, Ws).T)    # (Ws, Wt)
    return pl.pallas_call(
        partial(_upsample_kernel, channels=C),
        out_shape=jax.ShapeDtypeStruct((N, C, Ht, Wt), jnp.float32),
        grid=(N,),
        in_specs=[pl.BlockSpec((Ht, Hs), lambda n: (0, 0)),
                  pl.BlockSpec((Ws, Wt), lambda n: (0, 0)),
                  pl.BlockSpec((1, C, Hs, Ws), lambda n: (n, 0, 0, 0))],
        out_specs=pl.BlockSpec((1, C, Ht, Wt), lambda n: (n, 0, 0, 0)),
        compiler_params=_PARALLEL,
    )(Mh, MwT, src.astype(jnp.float32))


# --------------------------- Parameters (synthetic) ------------------------- #

def init_rebnconv_params(key, in_ch, out_ch):
    k = jax.random.split(key, 6)
    W = jax.random.normal(k[0], (out_ch, in_ch, 3, 3), jnp.float32) * 0.1  # torch layout
    b = jax.random.normal(k[1], (out_ch,), jnp.float32) * 0.05             # conv bias
    gamma = 1.0 + 0.1 * jax.random.normal(k[2], (out_ch,), jnp.float32)
    beta = 0.05 * jax.random.normal(k[3], (out_ch,), jnp.float32)
    rmean = 0.02 * jax.random.normal(k[4], (out_ch,), jnp.float32)
    rvar = 0.5 + jax.random.uniform(k[5], (out_ch,), jnp.float32)
    eps = 1e-5
    scale = gamma / jnp.sqrt(rvar + eps)            # folded BN scale
    bias = beta + scale * (b - rmean)               # folded conv-bias + BN shift
    # Pack to a single 2-D slab (Cout, 9*Cin_p); Cin zero-padded to a multiple of 8
    # so the in-kernel tap concatenation is sublane-aligned.
    cin_p = ((in_ch + 7) // 8) * 8
    w = jnp.transpose(W, (0, 2, 3, 1))                               # (Cout, kh, kw, Cin)
    w = jnp.pad(w, ((0, 0), (0, 0), (0, 0), (0, cin_p - in_ch)))     # zero channels
    w2d = w.reshape(out_ch, 9 * cin_p)                               # k = kh*3+kw major
    return w2d, scale, bias


def init_rsu5_params(key, in_ch=3, mid_ch=12, out_ch=3):
    layers = [("in", in_ch, out_ch), ("1", out_ch, mid_ch), ("2", mid_ch, mid_ch),
              ("3", mid_ch, mid_ch), ("4", mid_ch, mid_ch), ("5", mid_ch, mid_ch),
              ("4d", 2 * mid_ch, mid_ch), ("3d", 2 * mid_ch, mid_ch),
              ("2d", 2 * mid_ch, mid_ch), ("1d", 2 * mid_ch, out_ch)]
    keys = jax.random.split(key, len(layers))
    return {name: init_rebnconv_params(k, ci, co)
            for k, (name, ci, co) in zip(keys, layers)}


# ------------------------------ RSU5 forward -------------------------------- #

def rsu5_forward(x_nchw, params):
    x = x_nchw.astype(jnp.float32)                       # NCHW throughout

    hxin = rebnconv(x, *params["in"], dirate=1)
    hx1 = rebnconv(hxin, *params["1"], dirate=1)
    hx = maxpool_2x2_ceil(hx1)
    hx2 = rebnconv(hx, *params["2"], dirate=1)
    hx = maxpool_2x2_ceil(hx2)
    hx3 = rebnconv(hx, *params["3"], dirate=1)
    hx = maxpool_2x2_ceil(hx3)
    hx4 = rebnconv(hx, *params["4"], dirate=2)
    hx5 = rebnconv(hx4, *params["5"], dirate=2)

    hx4d = rebnconv(jnp.concatenate([hx5, hx4], axis=1), *params["4d"], dirate=1)
    hx4dup = upsample_bicubic_clamp(hx4d, hx3.shape[2], hx3.shape[3])
    hx3d = rebnconv(jnp.concatenate([hx4dup, hx3], axis=1), *params["3d"], dirate=1)
    hx3dup = upsample_bicubic_clamp(hx3d, hx2.shape[2], hx2.shape[3])
    hx2d = rebnconv(jnp.concatenate([hx3dup, hx2], axis=1), *params["2d"], dirate=1)
    hx2dup = upsample_bicubic_clamp(hx2d, hx1.shape[2], hx1.shape[3])
    # last REBNCONV with the residual (hx1d + hxin) fused into the kernel
    hx1d_plus_in = rebnconv(jnp.concatenate([hx2dup, hx1], axis=1), *params["1d"],
                            dirate=1, residual=hxin)
    return hx1d_plus_in                                  # NCHW


# ---------------------------------- Main ------------------------------------ #

if __name__ == "__main__":
    key = jax.random.PRNGKey(0)
    kx, kp = jax.random.split(key)

    N, C, H, W = 2, 3, 16, 16  # RSU5 defaults: in_ch=3, mid_ch=12, out_ch=3
    x = jax.random.normal(kx, (N, C, H, W), jnp.float32)
    params = init_rsu5_params(kp, in_ch=3, mid_ch=12, out_ch=3)

    fwd = jax.jit(rsu5_forward)
    out = fwd(x, params)
    jax.block_until_ready(out)

    assert out.shape == (N, 3, H, W), out.shape
    assert jnp.all(jnp.isfinite(out))
    print("KERNEL_OK")
</pallas_src>

<mosaic_0001>
module attributes {stable_mosaic.version = 11 : i64} {
  func.func @_rebnconv_kernel(%arg0: i32, %arg1: memref<1x8x342xf32, #tpu.memory_space<vmem>>, %arg2: memref<3x72xf32, #tpu.memory_space<vmem>>, %arg3: memref<3x1xf32, #tpu.memory_space<vmem>>, %arg4: memref<3x1xf32, #tpu.memory_space<vmem>>, %arg5: memref<1x3x288xf32, #tpu.memory_space<vmem>>) attributes {dimension_semantics = [#tpu.dimension_semantics<parallel>], iteration_bounds = array<i64: 2>, scalar_prefetch = 0 : i64, scratch_operands = 0 : i64, tpu.core_type = #tpu.core_type<tc>, window_params = [{transform_indices = @transform_0, window_bounds = array<i64: 1, 8, 342>}, {pipeline_mode = #tpu.pipeline_mode<synchronous>, transform_indices = @transform_1, window_bounds = array<i64: 3, 72>}, {pipeline_mode = #tpu.pipeline_mode<synchronous>, transform_indices = @transform_2, window_bounds = array<i64: 3, 1>}, {pipeline_mode = #tpu.pipeline_mode<synchronous>, transform_indices = @transform_3, window_bounds = array<i64: 3, 1>}, {transform_indices = @transform_4, window_bounds = array<i64: 1, 3, 288>}]} {
    %c0 = arith.constant 0 : index
    %c0_0 = arith.constant 0 : index
    %c0_1 = arith.constant 0 : index
    %0 = vector.load %arg1[%c0, %c0_0, %c0_1] : memref<1x8x342xf32, #tpu.memory_space<vmem>>, vector<1x8x342xf32>
    %1 = vector.shape_cast %0 : vector<1x8x342xf32> to vector<8x342xf32>
    %2 = vector.extract_strided_slice %1 {offsets = [0, 0], sizes = [8, 288], strides = [1, 1]} : vector<8x342xf32> to vector<8x288xf32>
    %3 = vector.extract_strided_slice %1 {offsets = [0, 1], sizes = [8, 288], strides = [1, 1]} : vector<8x342xf32> to vector<8x288xf32>
    %4 = vector.extract_strided_slice %1 {offsets = [0, 2], sizes = [8, 288], strides = [1, 1]} : vector<8x342xf32> to vector<8x288xf32>
    %5 = vector.extract_strided_slice %1 {offsets = [0, 18], sizes = [8, 288], strides = [1, 1]} : vector<8x342xf32> to vector<8x288xf32>
    %6 = vector.extract_strided_slice %1 {offsets = [0, 19], sizes = [8, 288], strides = [1, 1]} : vector<8x342xf32> to vector<8x288xf32>
    %7 = vector.extract_strided_slice %1 {offsets = [0, 20], sizes = [8, 288], strides = [1, 1]} : vector<8x342xf32> to vector<8x288xf32>
    %8 = vector.extract_strided_slice %1 {offsets = [0, 36], sizes = [8, 288], strides = [1, 1]} : vector<8x342xf32> to vector<8x288xf32>
    %9 = vector.extract_strided_slice %1 {offsets = [0, 37], sizes = [8, 288], strides = [1, 1]} : vector<8x342xf32> to vector<8x288xf32>
    %10 = vector.extract_strided_slice %1 {offsets = [0, 38], sizes = [8, 288], strides = [1, 1]} : vector<8x342xf32> to vector<8x288xf32>
    %11 = tpu.concatenate %2, %3, %4, %5, %6, %7, %8, %9, %10 in 0 : vector<8x288xf32>, vector<8x288xf32>, vector<8x288xf32>, vector<8x288xf32>, vector<8x288xf32>, vector<8x288xf32>, vector<8x288xf32>, vector<8x288xf32>, vector<8x288xf32> -> vector<72x288xf32>
    %c0_2 = arith.constant 0 : index
    %c0_3 = arith.constant 0 : index
    %12 = vector.load %arg2[%c0_2, %c0_3] : memref<3x72xf32, #tpu.memory_space<vmem>>, vector<3x72xf32>
    %cst = arith.constant dense<0.000000e+00> : vector<3x288xf32>
    %13 = tpu.matmul %12, %11, %cst {dimension_numbers = #tpu.dot_dimension_numbers<[1], [0], [0], [1], [0, 0, 1, 1], [], []>} : vector<3x72xf32>, vector<72x288xf32>, vector<3x288xf32> -> vector<3x288xf32>
    %c0_4 = arith.constant 0 : index
    %c0_5 = arith.constant 0 : index
    %14 = vector.load %arg3[%c0_4, %c0_5] : memref<3x1xf32, #tpu.memory_space<vmem>>, vector<3x1xf32>
    %15 = vector.broadcast %14 : vector<3x1xf32> to vector<3x288xf32>
    %16 = arith.mulf %13, %15 : vector<3x288xf32>
    %c0_6 = arith.constant 0 : index
    %c0_7 = arith.constant 0 : index
    %17 = vector.load %arg4[%c0_6, %c0_7] : memref<3x1xf32, #tpu.memory_space<vmem>>, vector<3x1xf32>
    %18 = vector.broadcast %17 : vector<3x1xf32> to vector<3x288xf32>
    %19 = arith.addf %16, %18 : vector<3x288xf32>
    %cst_8 = arith.constant 0.000000e+00 : f32
    %20 = vector.broadcast %cst_8 : f32 to vector<3x288xf32>
    %21 = arith.maximumf %19, %20 : vector<3x288xf32>
    %c0_9 = arith.constant 0 : index
    %c0_10 = arith.constant 0 : index
    %c0_11 = arith.constant 0 : index
    %22 = vector.load %arg5[%c0_9, %c0_10, %c0_11] : memref<1x3x288xf32, #tpu.memory_space<vmem>>, vector<1x3x288xf32>
    %23 = vector.shape_cast %22 : vector<1x3x288xf32> to vector<3x288xf32>
    %24 = vector.shape_cast %21 : vector<3x288xf32> to vector<1x3x288xf32>
    tpu.vector_store %arg5[%c0_9, %c0_10, %c0_11], %24 {strides = array<i32>} : memref<1x3x288xf32, #tpu.memory_space<vmem>>, vector<1x3x288xf32>,
    return
  }
  func.func @transform_0(%arg0: i32) -> (i32, i32, i32) {
    %c0_i32 = arith.constant 0 : i32
    %c0_i32_0 = arith.constant 0 : i32
    %c0_i32_1 = arith.constant 0 : i32
    return %arg0, %c0_i32, %c0_i32_0 : i32, i32, i32
  }
  func.func @transform_1(%arg0: i32) -> (i32, i32) {
    %c0_i32 = arith.constant 0 : i32
    %c0_i32_0 = arith.constant 0 : i32
    %c0_i32_1 = arith.constant 0 : i32
    return %c0_i32, %c0_i32_0 : i32, i32
  }
  func.func @transform_2(%arg0: i32) -> (i32, i32) {
    %c0_i32 = arith.constant 0 : i32
    %c0_i32_0 = arith.constant 0 : i32
    %c0_i32_1 = arith.constant 0 : i32
    return %c0_i32, %c0_i32_0 : i32, i32
  }
  func.func @transform_3(%arg0: i32) -> (i32, i32) {
    %c0_i32 = arith.constant 0 : i32
    %c0_i32_0 = arith.constant 0 : i32
    %c0_i32_1 = arith.constant 0 : i32
    return %c0_i32, %c0_i32_0 : i32, i32
  }
  func.func @transform_4(%arg0: i32) -> (i32, i32, i32) {
    %c0_i32 = arith.constant 0 : i32
    %c0_i32_0 = arith.constant 0 : i32
    %c0_i32_1 = arith.constant 0 : i32
    return %arg0, %c0_i32, %c0_i32_0 : i32, i32, i32
  }
}

module attributes {stable_mosaic.version = 11 : i64} {
  func.func @_rebnconv_kernel(%arg0: i32, %arg1: memref<1x8x342xf32, #tpu.memory_space<vmem>>, %arg2: memref<12x72xf32, #tpu.memory_space<vmem>>, %arg3: memref<12x1xf32, #tpu.memory_space<vmem>>, %arg4: memref<12x1xf32, #tpu.memory_space<vmem>>, %arg5: memref<1x12x288xf32, #tpu.memory_space<vmem>>) attributes {dimension_semantics = [#tpu.dimension_semantics<parallel>], iteration_bounds = array<i64: 2>, scalar_prefetch = 0 : i64, scratch_operands = 0 : i64, tpu.core_type = #tpu.core_type<tc>, window_params = [{transform_indices = @transform_0, window_bounds = array<i64: 1, 8, 342>}, {pipeline_mode = #tpu.pipeline_mode<synchronous>, transform_indices = @transform_1, window_bounds = array<i64: 12, 72>}, {pipeline_mode = #tpu.pipeline_mode<synchronous>, transform_indices = @transform_2, window_bounds = array<i64: 12, 1>}, {pipeline_mode = #tpu.pipeline_mode<synchronous>, transform_indices = @transform_3, window_bounds = array<i64: 12, 1>}, {transform_indices = @transform_4, window_bounds = array<i64: 1, 12, 288>}]} {
    %c0 = arith.constant 0 : index
    %c0_0 = arith.constant 0 : index
    %c0_1 = arith.constant 0 : index
    %0 = vector.load %arg1[%c0, %c0_0, %c0_1] : memref<1x8x342xf32, #tpu.memory_space<vmem>>, vector<1x8x342xf32>
    %1 = vector.shape_cast %0 : vector<1x8x342xf32> to vector<8x342xf32>
    %2 = vector.extract_strided_slice %1 {offsets = [0, 0], sizes = [8, 288], strides = [1, 1]} : vector<8x342xf32> to vector<8x288xf32>
    %3 = vector.extract_strided_slice %1 {offsets = [0, 1], sizes = [8, 288], strides = [1, 1]} : vector<8x342xf32> to vector<8x288xf32>
    %4 = vector.extract_strided_slice %1 {offsets = [0, 2], sizes = [8, 288], strides = [1, 1]} : vector<8x342xf32> to vector<8x288xf32>
    %5 = vector.extract_strided_slice %1 {offsets = [0, 18], sizes = [8, 288], strides = [1, 1]} : vector<8x342xf32> to vector<8x288xf32>
    %6 = vector.extract_strided_slice %1 {offsets = [0, 19], sizes = [8, 288], strides = [1, 1]} : vector<8x342xf32> to vector<8x288xf32>
    %7 = vector.extract_strided_slice %1 {offsets = [0, 20], sizes = [8, 288], strides = [1, 1]} : vector<8x342xf32> to vector<8x288xf32>
    %8 = vector.extract_strided_slice %1 {offsets = [0, 36], sizes = [8, 288], strides = [1, 1]} : vector<8x342xf32> to vector<8x288xf32>
    %9 = vector.extract_strided_slice %1 {offsets = [0, 37], sizes = [8, 288], strides = [1, 1]} : vector<8x342xf32> to vector<8x288xf32>
    %10 = vector.extract_strided_slice %1 {offsets = [0, 38], sizes = [8, 288], strides = [1, 1]} : vector<8x342xf32> to vector<8x288xf32>
    %11 = tpu.concatenate %2, %3, %4, %5, %6, %7, %8, %9, %10 in 0 : vector<8x288xf32>, vector<8x288xf32>, vector<8x288xf32>, vector<8x288xf32>, vector<8x288xf32>, vector<8x288xf32>, vector<8x288xf32>, vector<8x288xf32>, vector<8x288xf32> -> vector<72x288xf32>
    %c0_2 = arith.constant 0 : index
    %c0_3 = arith.constant 0 : index
    %12 = vector.load %arg2[%c0_2, %c0_3] : memref<12x72xf32, #tpu.memory_space<vmem>>, vector<12x72xf32>
    %cst = arith.constant dense<0.000000e+00> : vector<12x288xf32>
    %13 = tpu.matmul %12, %11, %cst {dimension_numbers = #tpu.dot_dimension_numbers<[1], [0], [0], [1], [0, 0, 1, 1], [], []>} : vector<12x72xf32>, vector<72x288xf32>, vector<12x288xf32> -> vector<12x288xf32>
    %c0_4 = arith.constant 0 : index
    %c0_5 = arith.constant 0 : index
    %14 = vector.load %arg3[%c0_4, %c0_5] : memref<12x1xf32, #tpu.memory_space<vmem>>, vector<12x1xf32>
    %15 = vector.broadcast %14 : vector<12x1xf32> to vector<12x288xf32>
    %16 = arith.mulf %13, %15 : vector<12x288xf32>
    %c0_6 = arith.constant 0 : index
    %c0_7 = arith.constant 0 : index
    %17 = vector.load %arg4[%c0_6, %c0_7] : memref<12x1xf32, #tpu.memory_space<vmem>>, vector<12x1xf32>
    %18 = vector.broadcast %17 : vector<12x1xf32> to vector<12x288xf32>
    %19 = arith.addf %16, %18 : vector<12x288xf32>
    %cst_8 = arith.constant 0.000000e+00 : f32
    %20 = vector.broadcast %cst_8 : f32 to vector<12x288xf32>
    %21 = arith.maximumf %19, %20 : vector<12x288xf32>
    %c0_9 = arith.constant 0 : index
    %c0_10 = arith.constant 0 : index
    %c0_11 = arith.constant 0 : index
    %22 = vector.load %arg5[%c0_9, %c0_10, %c0_11] : memref<1x12x288xf32, #tpu.memory_space<vmem>>, vector<1x12x288xf32>
    %23 = vector.shape_cast %22 : vector<1x12x288xf32> to vector<12x288xf32>
    %24 = vector.shape_cast %21 : vector<12x288xf32> to vector<1x12x288xf32>
    tpu.vector_store %arg5[%c0_9, %c0_10, %c0_11], %24 {strides = array<i32>} : memref<1x12x288xf32, #tpu.memory_space<vmem>>, vector<1x12x288xf32>,
    return
  }
  func.func @transform_0(%arg0: i32) -> (i32, i32, i32) {
    %c0_i32 = arith.constant 0 : i32
    %c0_i32_0 = arith.constant 0 : i32
    %c0_i32_1 = arith.constant 0 : i32
    return %arg0, %c0_i32, %c0_i32_0 : i32, i32, i32
  }
  func.func @transform_1(%arg0: i32) -> (i32, i32) {
    %c0_i32 = arith.constant 0 : i32
    %c0_i32_0 = arith.constant 0 : i32
    %c0_i32_1 = arith.constant 0 : i32
    return %c0_i32, %c0_i32_0 : i32, i32
  }
  func.func @transform_2(%arg0: i32) -> (i32, i32) {
    %c0_i32 = arith.constant 0 : i32
    %c0_i32_0 = arith.constant 0 : i32
    %c0_i32_1 = arith.constant 0 : i32
    return %c0_i32, %c0_i32_0 : i32, i32
  }
  func.func @transform_3(%arg0: i32) -> (i32, i32) {
    %c0_i32 = arith.constant 0 : i32
    %c0_i32_0 = arith.constant 0 : i32
    %c0_i32_1 = arith.constant 0 : i32
    return %c0_i32, %c0_i32_0 : i32, i32
  }
  func.func @transform_4(%arg0: i32) -> (i32, i32, i32) {
    %c0_i32 = arith.constant 0 : i32
    %c0_i32_0 = arith.constant 0 : i32
    %c0_i32_1 = arith.constant 0 : i32
    return %arg0, %c0_i32, %c0_i32_0 : i32, i32, i32
  }
}

module attributes {stable_mosaic.version = 11 : i64} {
  func.func @_maxpool_kernel(%arg0: i32, %arg1: memref<1x4x12x64xf32, #tpu.memory_space<vmem>>, %arg2: memref<1x12x64xf32, #tpu.memory_space<vmem>>) attributes {dimension_semantics = [#tpu.dimension_semantics<parallel>], iteration_bounds = array<i64: 2>, scalar_prefetch = 0 : i64, scratch_operands = 0 : i64, tpu.core_type = #tpu.core_type<tc>, window_params = [{transform_indices = @transform_0, window_bounds = array<i64: 1, 4, 12, 64>}, {transform_indices = @transform_1, window_bounds = array<i64: 1, 12, 64>}]} {
    %c0 = arith.constant 0 : index
    %c0_0 = arith.constant 0 : index
    %c0_1 = arith.constant 0 : index
    %c0_2 = arith.constant 0 : index
    %0 = vector.load %arg1[%c0, %c0_0, %c0_1, %c0_2] : memref<1x4x12x64xf32, #tpu.memory_space<vmem>>, vector<1x1x12x64xf32>
    %1 = vector.shape_cast %0 : vector<1x1x12x64xf32> to vector<12x64xf32>
    %c0_3 = arith.constant 0 : index
    %c1 = arith.constant 1 : index
    %c0_4 = arith.constant 0 : index
    %c0_5 = arith.constant 0 : index
    %2 = vector.load %arg1[%c0_3, %c1, %c0_4, %c0_5] : memref<1x4x12x64xf32, #tpu.memory_space<vmem>>, vector<1x1x12x64xf32>
    %3 = vector.shape_cast %2 : vector<1x1x12x64xf32> to vector<12x64xf32>
    %4 = arith.maximumf %1, %3 : vector<12x64xf32>
    %c0_6 = arith.constant 0 : index
    %c2 = arith.constant 2 : index
    %c0_7 = arith.constant 0 : index
    %c0_8 = arith.constant 0 : index
    %5 = vector.load %arg1[%c0_6, %c2, %c0_7, %c0_8] : memref<1x4x12x64xf32, #tpu.memory_space<vmem>>, vector<1x1x12x64xf32>
    %6 = vector.shape_cast %5 : vector<1x1x12x64xf32> to vector<12x64xf32>
    %c0_9 = arith.constant 0 : index
    %c3 = arith.constant 3 : index
    %c0_10 = arith.constant 0 : index
    %c0_11 = arith.constant 0 : index
    %7 = vector.load %arg1[%c0_9, %c3, %c0_10, %c0_11] : memref<1x4x12x64xf32, #tpu.memory_space<vmem>>, vector<1x1x12x64xf32>
    %8 = vector.shape_cast %7 : vector<1x1x12x64xf32> to vector<12x64xf32>
    %9 = arith.maximumf %6, %8 : vector<12x64xf32>
    %10 = arith.maximumf %4, %9 : vector<12x64xf32>
    %c0_12 = arith.constant 0 : index
    %c0_13 = arith.constant 0 : index
    %c0_14 = arith.constant 0 : index
    %11 = vector.load %arg2[%c0_12, %c0_13, %c0_14] : memref<1x12x64xf32, #tpu.memory_space<vmem>>, vector<1x12x64xf32>
    %12 = vector.shape_cast %11 : vector<1x12x64xf32> to vector<12x64xf32>
    %13 = vector.shape_cast %10 : vector<12x64xf32> to vector<1x12x64xf32>
    tpu.vector_store %arg2[%c0_12, %c0_13, %c0_14], %13 {strides = array<i32>} : memref<1x12x64xf32, #tpu.memory_space<vmem>>, vector<1x12x64xf32>,
    return
  }
  func.func @transform_0(%arg0: i32) -> (i32, i32, i32, i32) {
    %c0_i32 = arith.constant 0 : i32
    %c0_i32_0 = arith.constant 0 : i32
    %c0_i32_1 = arith.constant 0 : i32
    %c0_i32_2 = arith.constant 0 : i32
    return %arg0, %c0_i32, %c0_i32_0, %c0_i32_1 : i32, i32, i32, i32
  }
  func.func @transform_1(%arg0: i32) -> (i32, i32, i32) {
    %c0_i32 = arith.constant 0 : i32
    %c0_i32_0 = arith.constant 0 : i32
    %c0_i32_1 = arith.constant 0 : i32
    return %arg0, %c0_i32, %c0_i32_0 : i32, i32, i32
  }
}

module attributes {stable_mosaic.version = 11 : i64} {
  func.func @_rebnconv_kernel(%arg0: i32, %arg1: memref<1x16x110xf32, #tpu.memory_space<vmem>>, %arg2: memref<12x144xf32, #tpu.memory_space<vmem>>, %arg3: memref<12x1xf32, #tpu.memory_space<vmem>>, %arg4: memref<12x1xf32, #tpu.memory_space<vmem>>, %arg5: memref<1x12x80xf32, #tpu.memory_space<vmem>>) attributes {dimension_semantics = [#tpu.dimension_semantics<parallel>], iteration_bounds = array<i64: 2>, scalar_prefetch = 0 : i64, scratch_operands = 0 : i64, tpu.core_type = #tpu.core_type<tc>, window_params = [{transform_indices = @transform_0, window_bounds = array<i64: 1, 16, 110>}, {pipeline_mode = #tpu.pipeline_mode<synchronous>, transform_indices = @transform_1, window_bounds = array<i64: 12, 144>}, {pipeline_mode = #tpu.pipeline_mode<synchronous>, transform_indices = @transform_2, window_bounds = array<i64: 12, 1>}, {pipeline_mode = #tpu.pipeline_mode<synchronous>, transform_indices = @transform_3, window_bounds = array<i64: 12, 1>}, {transform_indices = @transform_4, window_bounds = array<i64: 1, 12, 80>}]} {
    %c0 = arith.constant 0 : index
    %c0_0 = arith.constant 0 : index
    %c0_1 = arith.constant 0 : index
    %0 = vector.load %arg1[%c0, %c0_0, %c0_1] : memref<1x16x110xf32, #tpu.memory_space<vmem>>, vector<1x16x110xf32>
    %1 = vector.shape_cast %0 : vector<1x16x110xf32> to vector<16x110xf32>
    %2 = vector.extract_strided_slice %1 {offsets = [0, 0], sizes = [16, 80], strides = [1, 1]} : vector<16x110xf32> to vector<16x80xf32>
    %3 = vector.extract_strided_slice %1 {offsets = [0, 1], sizes = [16, 80], strides = [1, 1]} : vector<16x110xf32> to vector<16x80xf32>
    %4 = vector.extract_strided_slice %1 {offsets = [0, 2], sizes = [16, 80], strides = [1, 1]} : vector<16x110xf32> to vector<16x80xf32>
    %5 = vector.extract_strided_slice %1 {offsets = [0, 10], sizes = [16, 80], strides = [1, 1]} : vector<16x110xf32> to vector<16x80xf32>
    %6 = vector.extract_strided_slice %1 {offsets = [0, 11], sizes = [16, 80], strides = [1, 1]} : vector<16x110xf32> to vector<16x80xf32>
    %7 = vector.extract_strided_slice %1 {offsets = [0, 12], sizes = [16, 80], strides = [1, 1]} : vector<16x110xf32> to vector<16x80xf32>
    %8 = vector.extract_strided_slice %1 {offsets = [0, 20], sizes = [16, 80], strides = [1, 1]} : vector<16x110xf32> to vector<16x80xf32>
    %9 = vector.extract_strided_slice %1 {offsets = [0, 21], sizes = [16, 80], strides = [1, 1]} : vector<16x110xf32> to vector<16x80xf32>
    %10 = vector.extract_strided_slice %1 {offsets = [0, 22], sizes = [16, 80], strides = [1, 1]} : vector<16x110xf32> to vector<16x80xf32>
    %11 = tpu.concatenate %2, %3, %4, %5, %6, %7, %8, %9, %10 in 0 : vector<16x80xf32>, vector<16x80xf32>, vector<16x80xf32>, vector<16x80xf32>, vector<16x80xf32>, vector<16x80xf32>, vector<16x80xf32>, vector<16x80xf32>, vector<16x80xf32> -> vector<144x80xf32>
    %c0_2 = arith.constant 0 : index
    %c0_3 = arith.constant 0 : index
    %12 = vector.load %arg2[%c0_2, %c0_3] : memref<12x144xf32, #tpu.memory_space<vmem>>, vector<12x144xf32>
    %cst = arith.constant dense<0.000000e+00> : vector<12x80xf32>
    %13 = tpu.matmul %12, %11, %cst {dimension_numbers = #tpu.dot_dimension_numbers<[1], [0], [0], [1], [0, 0, 1, 1], [], []>} : vector<12x144xf32>, vector<144x80xf32>, vector<12x80xf32> -> vector<12x80xf32>
    %c0_4 = arith.constant 0 : index
    %c0_5 = arith.constant 0 : index
    %14 = vector.load %arg3[%c0_4, %c0_5] : memref<12x1xf32, #tpu.memory_space<vmem>>, vector<12x1xf32>
    %15 = vector.broadcast %14 : vector<12x1xf32> to vector<12x80xf32>
    %16 = arith.mulf %13, %15 : vector<12x80xf32>
    %c0_6 = arith.constant 0 : index
    %c0_7 = arith.constant 0 : index
    %17 = vector.load %arg4[%c0_6, %c0_7] : memref<12x1xf32, #tpu.memory_space<vmem>>, vector<12x1xf32>
    %18 = vector.broadcast %17 : vector<12x1xf32> to vector<12x80xf32>
    %19 = arith.addf %16, %18 : vector<12x80xf32>
    %cst_8 = arith.constant 0.000000e+00 : f32
    %20 = vector.broadcast %cst_8 : f32 to vector<12x80xf32>
    %21 = arith.maximumf %19, %20 : vector<12x80xf32>
    %c0_9 = arith.constant 0 : index
    %c0_10 = arith.constant 0 : index
    %c0_11 = arith.constant 0 : index
    %22 = vector.load %arg5[%c0_9, %c0_10, %c0_11] : memref<1x12x80xf32, #tpu.memory_space<vmem>>, vector<1x12x80xf32>
    %23 = vector.shape_cast %22 : vector<1x12x80xf32> to vector<12x80xf32>
    %24 = vector.shape_cast %21 : vector<12x80xf32> to vector<1x12x80xf32>
    tpu.vector_store %arg5[%c0_9, %c0_10, %c0_11], %24 {strides = array<i32>} : memref<1x12x80xf32, #tpu.memory_space<vmem>>, vector<1x12x80xf32>,
    return
  }
  func.func @transform_0(%arg0: i32) -> (i32, i32, i32) {
    %c0_i32 = arith.constant 0 : i32
    %c0_i32_0 = arith.constant 0 : i32
    %c0_i32_1 = arith.constant 0 : i32
    return %arg0, %c0_i32, %c0_i32_0 : i32, i32, i32
  }
  func.func @transform_1(%arg0: i32) -> (i32, i32) {
    %c0_i32 = arith.constant 0 : i32
    %c0_i32_0 = arith.constant 0 : i32
    %c0_i32_1 = arith.constant 0 : i32
    return %c0_i32, %c0_i32_0 : i32, i32
  }
  func.func @transform_2(%arg0: i32) -> (i32, i32) {
    %c0_i32 = arith.constant 0 : i32
    %c0_i32_0 = arith.constant 0 : i32
    %c0_i32_1 = arith.constant 0 : i32
    return %c0_i32, %c0_i32_0 : i32, i32
  }
  func.func @transform_3(%arg0: i32) -> (i32, i32) {
    %c0_i32 = arith.constant 0 : i32
    %c0_i32_0 = arith.constant 0 : i32
    %c0_i32_1 = arith.constant 0 : i32
    return %c0_i32, %c0_i32_0 : i32, i32
  }
  func.func @transform_4(%arg0: i32) -> (i32, i32, i32) {
    %c0_i32 = arith.constant 0 : i32
    %c0_i32_0 = arith.constant 0 : i32
    %c0_i32_1 = arith.constant 0 : i32
    return %arg0, %c0_i32, %c0_i32_0 : i32, i32, i32
  }
}

module attributes {stable_mosaic.version = 11 : i64} {
  func.func @_maxpool_kernel(%arg0: i32, %arg1: memref<1x4x12x16xf32, #tpu.memory_space<vmem>>, %arg2: memref<1x12x16xf32, #tpu.memory_space<vmem>>) attributes {dimension_semantics = [#tpu.dimension_semantics<parallel>], iteration_bounds = array<i64: 2>, scalar_prefetch = 0 : i64, scratch_operands = 0 : i64, tpu.core_type = #tpu.core_type<tc>, window_params = [{transform_indices = @transform_0, window_bounds = array<i64: 1, 4, 12, 16>}, {transform_indices = @transform_1, window_bounds = array<i64: 1, 12, 16>}]} {
    %c0 = arith.constant 0 : index
    %c0_0 = arith.constant 0 : index
    %c0_1 = arith.constant 0 : index
    %c0_2 = arith.constant 0 : index
    %0 = vector.load %arg1[%c0, %c0_0, %c0_1, %c0_2] : memref<1x4x12x16xf32, #tpu.memory_space<vmem>>, vector<1x1x12x16xf32>
    %1 = vector.shape_cast %0 : vector<1x1x12x16xf32> to vector<12x16xf32>
    %c0_3 = arith.constant 0 : index
    %c1 = arith.constant 1 : index
    %c0_4 = arith.constant 0 : index
    %c0_5 = arith.constant 0 : index
    %2 = vector.load %arg1[%c0_3, %c1, %c0_4, %c0_5] : memref<1x4x12x16xf32, #tpu.memory_space<vmem>>, vector<1x1x12x16xf32>
    %3 = vector.shape_cast %2 : vector<1x1x12x16xf32> to vector<12x16xf32>
    %4 = arith.maximumf %1, %3 : vector<12x16xf32>
    %c0_6 = arith.constant 0 : index
    %c2 = arith.constant 2 : index
    %c0_7 = arith.constant 0 : index
    %c0_8 = arith.constant 0 : index
    %5 = vector.load %arg1[%c0_6, %c2, %c0_7, %c0_8] : memref<1x4x12x16xf32, #tpu.memory_space<vmem>>, vector<1x1x12x16xf32>
    %6 = vector.shape_cast %5 : vector<1x1x12x16xf32> to vector<12x16xf32>
    %c0_9 = arith.constant 0 : index
    %c3 = arith.constant 3 : index
    %c0_10 = arith.constant 0 : index
    %c0_11 = arith.constant 0 : index
    %7 = vector.load %arg1[%c0_9, %c3, %c0_10, %c0_11] : memref<1x4x12x16xf32, #tpu.memory_space<vmem>>, vector<1x1x12x16xf32>
    %8 = vector.shape_cast %7 : vector<1x1x12x16xf32> to vector<12x16xf32>
    %9 = arith.maximumf %6, %8 : vector<12x16xf32>
    %10 = arith.maximumf %4, %9 : vector<12x16xf32>
    %c0_12 = arith.constant 0 : index
    %c0_13 = arith.constant 0 : index
    %c0_14 = arith.constant 0 : index
    %11 = vector.load %arg2[%c0_12, %c0_13, %c0_14] : memref<1x12x16xf32, #tpu.memory_space<vmem>>, vector<1x12x16xf32>
    %12 = vector.shape_cast %11 : vector<1x12x16xf32> to vector<12x16xf32>
    %13 = vector.shape_cast %10 : vector<12x16xf32> to vector<1x12x16xf32>
    tpu.vector_store %arg2[%c0_12, %c0_13, %c0_14], %13 {strides = array<i32>} : memref<1x12x16xf32, #tpu.memory_space<vmem>>, vector<1x12x16xf32>,
    return
  }
  func.func @transform_0(%arg0: i32) -> (i32, i32, i32, i32) {
    %c0_i32 = arith.constant 0 : i32
    %c0_i32_0 = arith.constant 0 : i32
    %c0_i32_1 = arith.constant 0 : i32
    %c0_i32_2 = arith.constant 0 : i32
    return %arg0, %c0_i32, %c0_i32_0, %c0_i32_1 : i32, i32, i32, i32
  }
  func.func @transform_1(%arg0: i32) -> (i32, i32, i32) {
    %c0_i32 = arith.constant 0 : i32
    %c0_i32_0 = arith.constant 0 : i32
    %c0_i32_1 = arith.constant 0 : i32
    return %arg0, %c0_i32, %c0_i32_0 : i32, i32, i32
  }
}

module attributes {stable_mosaic.version = 11 : i64} {
  func.func @_rebnconv_kernel(%arg0: i32, %arg1: memref<1x16x42xf32, #tpu.memory_space<vmem>>, %arg2: memref<12x144xf32, #tpu.memory_space<vmem>>, %arg3: memref<12x1xf32, #tpu.memory_space<vmem>>, %arg4: memref<12x1xf32, #tpu.memory_space<vmem>>, %arg5: memref<1x12x24xf32, #tpu.memory_space<vmem>>) attributes {dimension_semantics = [#tpu.dimension_semantics<parallel>], iteration_bounds = array<i64: 2>, scalar_prefetch = 0 : i64, scratch_operands = 0 : i64, tpu.core_type = #tpu.core_type<tc>, window_params = [{transform_indices = @transform_0, window_bounds = array<i64: 1, 16, 42>}, {pipeline_mode = #tpu.pipeline_mode<synchronous>, transform_indices = @transform_1, window_bounds = array<i64: 12, 144>}, {pipeline_mode = #tpu.pipeline_mode<synchronous>, transform_indices = @transform_2, window_bounds = array<i64: 12, 1>}, {pipeline_mode = #tpu.pipeline_mode<synchronous>, transform_indices = @transform_3, window_bounds = array<i64: 12, 1>}, {transform_indices = @transform_4, window_bounds = array<i64: 1, 12, 24>}]} {
    %c0 = arith.constant 0 : index
    %c0_0 = arith.constant 0 : index
    %c0_1 = arith.constant 0 : index
    %0 = vector.load %arg1[%c0, %c0_0, %c0_1] : memref<1x16x42xf32, #tpu.memory_space<vmem>>, vector<1x16x42xf32>
    %1 = vector.shape_cast %0 : vector<1x16x42xf32> to vector<16x42xf32>
    %2 = vector.extract_strided_slice %1 {offsets = [0, 0], sizes = [16, 24], strides = [1, 1]} : vector<16x42xf32> to vector<16x24xf32>
    %3 = vector.extract_strided_slice %1 {offsets = [0, 1], sizes = [16, 24], strides = [1, 1]} : vector<16x42xf32> to vector<16x24xf32>
    %4 = vector.extract_strided_slice %1 {offsets = [0, 2], sizes = [16, 24], strides = [1, 1]} : vector<16x42xf32> to vector<16x24xf32>
    %5 = vector.extract_strided_slice %1 {offsets = [0, 6], sizes = [16, 24], strides = [1, 1]} : vector<16x42xf32> to vector<16x24xf32>
    %6 = vector.extract_strided_slice %1 {offsets = [0, 7], sizes = [16, 24], strides = [1, 1]} : vector<16x42xf32> to vector<16x24xf32>
    %7 = vector.extract_strided_slice %1 {offsets = [0, 8], sizes = [16, 24], strides = [1, 1]} : vector<16x42xf32> to vector<16x24xf32>
    %8 = vector.extract_strided_slice %1 {offsets = [0, 12], sizes = [16, 24], strides = [1, 1]} : vector<16x42xf32> to vector<16x24xf32>
    %9 = vector.extract_strided_slice %1 {offsets = [0, 13], sizes = [16, 24], strides = [1, 1]} : vector<16x42xf32> to vector<16x24xf32>
    %10 = vector.extract_strided_slice %1 {offsets = [0, 14], sizes = [16, 24], strides = [1, 1]} : vector<16x42xf32> to vector<16x24xf32>
    %11 = tpu.concatenate %2, %3, %4, %5, %6, %7, %8, %9, %10 in 0 : vector<16x24xf32>, vector<16x24xf32>, vector<16x24xf32>, vector<16x24xf32>, vector<16x24xf32>, vector<16x24xf32>, vector<16x24xf32>, vector<16x24xf32>, vector<16x24xf32> -> vector<144x24xf32>
    %c0_2 = arith.constant 0 : index
    %c0_3 = arith.constant 0 : index
    %12 = vector.load %arg2[%c0_2, %c0_3] : memref<12x144xf32, #tpu.memory_space<vmem>>, vector<12x144xf32>
    %cst = arith.constant dense<0.000000e+00> : vector<12x24xf32>
    %13 = tpu.matmul %12, %11, %cst {dimension_numbers = #tpu.dot_dimension_numbers<[1], [0], [0], [1], [0, 0, 1, 1], [], []>} : vector<12x144xf32>, vector<144x24xf32>, vector<12x24xf32> -> vector<12x24xf32>
    %c0_4 = arith.constant 0 : index
    %c0_5 = arith.constant 0 : index
    %14 = vector.load %arg3[%c0_4, %c0_5] : memref<12x1xf32, #tpu.memory_space<vmem>>, vector<12x1xf32>
    %15 = vector.broadcast %14 : vector<12x1xf32> to vector<12x24xf32>
    %16 = arith.mulf %13, %15 : vector<12x24xf32>
    %c0_6 = arith.constant 0 : index
    %c0_7 = arith.constant 0 : index
    %17 = vector.load %arg4[%c0_6, %c0_7] : memref<12x1xf32, #tpu.memory_space<vmem>>, vector<12x1xf32>
    %18 = vector.broadcast %17 : vector<12x1xf32> to vector<12x24xf32>
    %19 = arith.addf %16, %18 : vector<12x24xf32>
    %cst_8 = arith.constant 0.000000e+00 : f32
    %20 = vector.broadcast %cst_8 : f32 to vector<12x24xf32>
    %21 = arith.maximumf %19, %20 : vector<12x24xf32>
    %c0_9 = arith.constant 0 : index
    %c0_10 = arith.constant 0 : index
    %c0_11 = arith.constant 0 : index
    %22 = vector.load %arg5[%c0_9, %c0_10, %c0_11] : memref<1x12x24xf32, #tpu.memory_space<vmem>>, vector<1x12x24xf32>
    %23 = vector.shape_cast %22 : vector<1x12x24xf32> to vector<12x24xf32>
    %24 = vector.shape_cast %21 : vector<12x24xf32> to vector<1x12x24xf32>
    tpu.vector_store %arg5[%c0_9, %c0_10, %c0_11], %24 {strides = array<i32>} : memref<1x12x24xf32, #tpu.memory_space<vmem>>, vector<1x12x24xf32>,
    return
  }
  func.func @transform_0(%arg0: i32) -> (i32, i32, i32) {
    %c0_i32 = arith.constant 0 : i32
    %c0_i32_0 = arith.constant 0 : i32
    %c0_i32_1 = arith.constant 0 : i32
    return %arg0, %c0_i32, %c0_i32_0 : i32, i32, i32
  }
  func.func @transform_1(%arg0: i32) -> (i32, i32) {
    %c0_i32 = arith.constant 0 : i32
    %c0_i32_0 = arith.constant 0 : i32
    %c0_i32_1 = arith.constant 0 : i32
    return %c0_i32, %c0_i32_0 : i32, i32
  }
  func.func @transform_2(%arg0: i32) -> (i32, i32) {
    %c0_i32 = arith.constant 0 : i32
    %c0_i32_0 = arith.constant 0 : i32
    %c0_i32_1 = arith.constant 0 : i32
    return %c0_i32, %c0_i32_0 : i32, i32
  }
  func.func @transform_3(%arg0: i32) -> (i32, i32) {
    %c0_i32 = arith.constant 0 : i32
    %c0_i32_0 = arith.constant 0 : i32
    %c0_i32_1 = arith.constant 0 : i32
    return %c0_i32, %c0_i32_0 : i32, i32
  }
  func.func @transform_4(%arg0: i32) -> (i32, i32, i32) {
    %c0_i32 = arith.constant 0 : i32
    %c0_i32_0 = arith.constant 0 : i32
    %c0_i32_1 = arith.constant 0 : i32
    return %arg0, %c0_i32, %c0_i32_0 : i32, i32, i32
  }
}

module attributes {stable_mosaic.version = 11 : i64} {
  func.func @_maxpool_kernel(%arg0: i32, %arg1: memref<1x4x12x4xf32, #tpu.memory_space<vmem>>, %arg2: memref<1x12x4xf32, #tpu.memory_space<vmem>>) attributes {dimension_semantics = [#tpu.dimension_semantics<parallel>], iteration_bounds = array<i64: 2>, scalar_prefetch = 0 : i64, scratch_operands = 0 : i64, tpu.core_type = #tpu.core_type<tc>, window_params = [{transform_indices = @transform_0, window_bounds = array<i64: 1, 4, 12, 4>}, {transform_indices = @transform_1, window_bounds = array<i64: 1, 12, 4>}]} {
    %c0 = arith.constant 0 : index
    %c0_0 = arith.constant 0 : index
    %c0_1 = arith.constant 0 : index
    %c0_2 = arith.constant 0 : index
    %0 = vector.load %arg1[%c0, %c0_0, %c0_1, %c0_2] : memref<1x4x12x4xf32, #tpu.memory_space<vmem>>, vector<1x1x12x4xf32>
    %1 = vector.shape_cast %0 : vector<1x1x12x4xf32> to vector<12x4xf32>
    %c0_3 = arith.constant 0 : index
    %c1 = arith.constant 1 : index
    %c0_4 = arith.constant 0 : index
    %c0_5 = arith.constant 0 : index
    %2 = vector.load %arg1[%c0_3, %c1, %c0_4, %c0_5] : memref<1x4x12x4xf32, #tpu.memory_space<vmem>>, vector<1x1x12x4xf32>
    %3 = vector.shape_cast %2 : vector<1x1x12x4xf32> to vector<12x4xf32>
    %4 = arith.maximumf %1, %3 : vector<12x4xf32>
    %c0_6 = arith.constant 0 : index
    %c2 = arith.constant 2 : index
    %c0_7 = arith.constant 0 : index
    %c0_8 = arith.constant 0 : index
    %5 = vector.load %arg1[%c0_6, %c2, %c0_7, %c0_8] : memref<1x4x12x4xf32, #tpu.memory_space<vmem>>, vector<1x1x12x4xf32>
    %6 = vector.shape_cast %5 : vector<1x1x12x4xf32> to vector<12x4xf32>
    %c0_9 = arith.constant 0 : index
    %c3 = arith.constant 3 : index
    %c0_10 = arith.constant 0 : index
    %c0_11 = arith.constant 0 : index
    %7 = vector.load %arg1[%c0_9, %c3, %c0_10, %c0_11] : memref<1x4x12x4xf32, #tpu.memory_space<vmem>>, vector<1x1x12x4xf32>
    %8 = vector.shape_cast %7 : vector<1x1x12x4xf32> to vector<12x4xf32>
    %9 = arith.maximumf %6, %8 : vector<12x4xf32>
    %10 = arith.maximumf %4, %9 : vector<12x4xf32>
    %c0_12 = arith.constant 0 : index
    %c0_13 = arith.constant 0 : index
    %c0_14 = arith.constant 0 : index
    %11 = vector.load %arg2[%c0_12, %c0_13, %c0_14] : memref<1x12x4xf32, #tpu.memory_space<vmem>>, vector<1x12x4xf32>
    %12 = vector.shape_cast %11 : vector<1x12x4xf32> to vector<12x4xf32>
    %13 = vector.shape_cast %10 : vector<12x4xf32> to vector<1x12x4xf32>
    tpu.vector_store %arg2[%c0_12, %c0_13, %c0_14], %13 {strides = array<i32>} : memref<1x12x4xf32, #tpu.memory_space<vmem>>, vector<1x12x4xf32>,
    return
  }
  func.func @transform_0(%arg0: i32) -> (i32, i32, i32, i32) {
    %c0_i32 = arith.constant 0 : i32
    %c0_i32_0 = arith.constant 0 : i32
    %c0_i32_1 = arith.constant 0 : i32
    %c0_i32_2 = arith.constant 0 : i32
    return %arg0, %c0_i32, %c0_i32_0, %c0_i32_1 : i32, i32, i32, i32
  }
  func.func @transform_1(%arg0: i32) -> (i32, i32, i32) {
    %c0_i32 = arith.constant 0 : i32
    %c0_i32_0 = arith.constant 0 : i32
    %c0_i32_1 = arith.constant 0 : i32
    return %arg0, %c0_i32, %c0_i32_0 : i32, i32, i32
  }
}

module attributes {stable_mosaic.version = 11 : i64} {
  func.func @_rebnconv_kernel(%arg0: i32, %arg1: memref<1x16x42xf32, #tpu.memory_space<vmem>>, %arg2: memref<12x144xf32, #tpu.memory_space<vmem>>, %arg3: memref<12x1xf32, #tpu.memory_space<vmem>>, %arg4: memref<12x1xf32, #tpu.memory_space<vmem>>, %arg5: memref<1x12x12xf32, #tpu.memory_space<vmem>>) attributes {dimension_semantics = [#tpu.dimension_semantics<parallel>], iteration_bounds = array<i64: 2>, scalar_prefetch = 0 : i64, scratch_operands = 0 : i64, tpu.core_type = #tpu.core_type<tc>, window_params = [{transform_indices = @transform_0, window_bounds = array<i64: 1, 16, 42>}, {pipeline_mode = #tpu.pipeline_mode<synchronous>, transform_indices = @transform_1, window_bounds = array<i64: 12, 144>}, {pipeline_mode = #tpu.pipeline_mode<synchronous>, transform_indices = @transform_2, window_bounds = array<i64: 12, 1>}, {pipeline_mode = #tpu.pipeline_mode<synchronous>, transform_indices = @transform_3, window_bounds = array<i64: 12, 1>}, {transform_indices = @transform_4, window_bounds = array<i64: 1, 12, 12>}]} {
    %c0 = arith.constant 0 : index
    %c0_0 = arith.constant 0 : index
    %c0_1 = arith.constant 0 : index
    %0 = vector.load %arg1[%c0, %c0_0, %c0_1] : memref<1x16x42xf32, #tpu.memory_space<vmem>>, vector<1x16x42xf32>
    %1 = vector.shape_cast %0 : vector<1x16x42xf32> to vector<16x42xf32>
    %2 = vector.extract_strided_slice %1 {offsets = [0, 0], sizes = [16, 12], strides = [1, 1]} : vector<16x42xf32> to vector<16x12xf32>
    %3 = vector.extract_strided_slice %1 {offsets = [0, 2], sizes = [16, 12], strides = [1, 1]} : vector<16x42xf32> to vector<16x12xf32>
    %4 = vector.extract_strided_slice %1 {offsets = [0, 4], sizes = [16, 12], strides = [1, 1]} : vector<16x42xf32> to vector<16x12xf32>
    %5 = vector.extract_strided_slice %1 {offsets = [0, 12], sizes = [16, 12], strides = [1, 1]} : vector<16x42xf32> to vector<16x12xf32>
    %6 = vector.extract_strided_slice %1 {offsets = [0, 14], sizes = [16, 12], strides = [1, 1]} : vector<16x42xf32> to vector<16x12xf32>
    %7 = vector.extract_strided_slice %1 {offsets = [0, 16], sizes = [16, 12], strides = [1, 1]} : vector<16x42xf32> to vector<16x12xf32>
    %8 = vector.extract_strided_slice %1 {offsets = [0, 24], sizes = [16, 12], strides = [1, 1]} : vector<16x42xf32> to vector<16x12xf32>
    %9 = vector.extract_strided_slice %1 {offsets = [0, 26], sizes = [16, 12], strides = [1, 1]} : vector<16x42xf32> to vector<16x12xf32>
    %10 = vector.extract_strided_slice %1 {offsets = [0, 28], sizes = [16, 12], strides = [1, 1]} : vector<16x42xf32> to vector<16x12xf32>
    %11 = tpu.concatenate %2, %3, %4, %5, %6, %7, %8, %9, %10 in 0 : vector<16x12xf32>, vector<16x12xf32>, vector<16x12xf32>, vector<16x12xf32>, vector<16x12xf32>, vector<16x12xf32>, vector<16x12xf32>, vector<16x12xf32>, vector<16x12xf32> -> vector<144x12xf32>
    %c0_2 = arith.constant 0 : index
    %c0_3 = arith.constant 0 : index
    %12 = vector.load %arg2[%c0_2, %c0_3] : memref<12x144xf32, #tpu.memory_space<vmem>>, vector<12x144xf32>
    %cst = arith.constant dense<0.000000e+00> : vector<12x12xf32>
    %13 = tpu.matmul %12, %11, %cst {dimension_numbers = #tpu.dot_dimension_numbers<[1], [0], [0], [1], [0, 0, 1, 1], [], []>} : vector<12x144xf32>, vector<144x12xf32>, vector<12x12xf32> -> vector<12x12xf32>
    %c0_4 = arith.constant 0 : index
    %c0_5 = arith.constant 0 : index
    %14 = vector.load %arg3[%c0_4, %c0_5] : memref<12x1xf32, #tpu.memory_space<vmem>>, vector<12x1xf32>
    %15 = vector.broadcast %14 : vector<12x1xf32> to vector<12x12xf32>
    %16 = arith.mulf %13, %15 : vector<12x12xf32>
    %c0_6 = arith.constant 0 : index
    %c0_7 = arith.constant 0 : index
    %17 = vector.load %arg4[%c0_6, %c0_7] : memref<12x1xf32, #tpu.memory_space<vmem>>, vector<12x1xf32>
    %18 = vector.broadcast %17 : vector<12x1xf32> to vector<12x12xf32>
    %19 = arith.addf %16, %18 : vector<12x12xf32>
    %cst_8 = arith.constant 0.000000e+00 : f32
    %20 = vector.broadcast %cst_8 : f32 to vector<12x12xf32>
    %21 = arith.maximumf %19, %20 : vector<12x12xf32>
    %c0_9 = arith.constant 0 : index
    %c0_10 = arith.constant 0 : index
    %c0_11 = arith.constant 0 : index
    %22 = vector.load %arg5[%c0_9, %c0_10, %c0_11] : memref<1x12x12xf32, #tpu.memory_space<vmem>>, vector<1x12x12xf32>
    %23 = vector.shape_cast %22 : vector<1x12x12xf32> to vector<12x12xf32>
    %24 = vector.shape_cast %21 : vector<12x12xf32> to vector<1x12x12xf32>
    tpu.vector_store %arg5[%c0_9, %c0_10, %c0_11], %24 {strides = array<i32>} : memref<1x12x12xf32, #tpu.memory_space<vmem>>, vector<1x12x12xf32>,
    return
  }
  func.func @transform_0(%arg0: i32) -> (i32, i32, i32) {
    %c0_i32 = arith.constant 0 : i32
    %c0_i32_0 = arith.constant 0 : i32
    %c0_i32_1 = arith.constant 0 : i32
    return %arg0, %c0_i32, %c0_i32_0 : i32, i32, i32
  }
  func.func @transform_1(%arg0: i32) -> (i32, i32) {
    %c0_i32 = arith.constant 0 : i32
    %c0_i32_0 = arith.constant 0 : i32
    %c0_i32_1 = arith.constant 0 : i32
    return %c0_i32, %c0_i32_0 : i32, i32
  }
  func.func @transform_2(%arg0: i32) -> (i32, i32) {
    %c0_i32 = arith.constant 0 : i32
    %c0_i32_0 = arith.constant 0 : i32
    %c0_i32_1 = arith.constant 0 : i32
    return %c0_i32, %c0_i32_0 : i32, i32
  }
  func.func @transform_3(%arg0: i32) -> (i32, i32) {
    %c0_i32 = arith.constant 0 : i32
    %c0_i32_0 = arith.constant 0 : i32
    %c0_i32_1 = arith.constant 0 : i32
    return %c0_i32, %c0_i32_0 : i32, i32
  }
  func.func @transform_4(%arg0: i32) -> (i32, i32, i32) {
    %c0_i32 = arith.constant 0 : i32
    %c0_i32_0 = arith.constant 0 : i32
    %c0_i32_1 = arith.constant 0 : i32
    return %arg0, %c0_i32, %c0_i32_0 : i32, i32, i32
  }
}

module attributes {stable_mosaic.version = 11 : i64} {
  func.func @_rebnconv_kernel(%arg0: i32, %arg1: memref<1x24x20xf32, #tpu.memory_space<vmem>>, %arg2: memref<12x216xf32, #tpu.memory_space<vmem>>, %arg3: memref<12x1xf32, #tpu.memory_space<vmem>>, %arg4: memref<12x1xf32, #tpu.memory_space<vmem>>, %arg5: memref<1x12x8xf32, #tpu.memory_space<vmem>>) attributes {dimension_semantics = [#tpu.dimension_semantics<parallel>], iteration_bounds = array<i64: 2>, scalar_prefetch = 0 : i64, scratch_operands = 0 : i64, tpu.core_type = #tpu.core_type<tc>, window_params = [{transform_indices = @transform_0, window_bounds = array<i64: 1, 24, 20>}, {pipeline_mode = #tpu.pipeline_mode<synchronous>, transform_indices = @transform_1, window_bounds = array<i64: 12, 216>}, {pipeline_mode = #tpu.pipeline_mode<synchronous>, transform_indices = @transform_2, window_bounds = array<i64: 12, 1>}, {pipeline_mode = #tpu.pipeline_mode<synchronous>, transform_indices = @transform_3, window_bounds = array<i64: 12, 1>}, {transform_indices = @transform_4, window_bounds = array<i64: 1, 12, 8>}]} {
    %c0 = arith.constant 0 : index
    %c0_0 = arith.constant 0 : index
    %c0_1 = arith.constant 0 : index
    %0 = vector.load %arg1[%c0, %c0_0, %c0_1] : memref<1x24x20xf32, #tpu.memory_space<vmem>>, vector<1x24x20xf32>
    %1 = vector.shape_cast %0 : vector<1x24x20xf32> to vector<24x20xf32>
    %2 = vector.extract_strided_slice %1 {offsets = [0, 0], sizes = [24, 8], strides = [1, 1]} : vector<24x20xf32> to vector<24x8xf32>
    %3 = vector.extract_strided_slice %1 {offsets = [0, 1], sizes = [24, 8], strides = [1, 1]} : vector<24x20xf32> to vector<24x8xf32>
    %4 = vector.extract_strided_slice %1 {offsets = [0, 2], sizes = [24, 8], strides = [1, 1]} : vector<24x20xf32> to vector<24x8xf32>
    %5 = vector.extract_strided_slice %1 {offsets = [0, 4], sizes = [24, 8], strides = [1, 1]} : vector<24x20xf32> to vector<24x8xf32>
    %6 = vector.extract_strided_slice %1 {offsets = [0, 5], sizes = [24, 8], strides = [1, 1]} : vector<24x20xf32> to vector<24x8xf32>
    %7 = vector.extract_strided_slice %1 {offsets = [0, 6], sizes = [24, 8], strides = [1, 1]} : vector<24x20xf32> to vector<24x8xf32>
    %8 = vector.extract_strided_slice %1 {offsets = [0, 8], sizes = [24, 8], strides = [1, 1]} : vector<24x20xf32> to vector<24x8xf32>
    %9 = vector.extract_strided_slice %1 {offsets = [0, 9], sizes = [24, 8], strides = [1, 1]} : vector<24x20xf32> to vector<24x8xf32>
    %10 = vector.extract_strided_slice %1 {offsets = [0, 10], sizes = [24, 8], strides = [1, 1]} : vector<24x20xf32> to vector<24x8xf32>
    %11 = tpu.concatenate %2, %3, %4, %5, %6, %7, %8, %9, %10 in 0 : vector<24x8xf32>, vector<24x8xf32>, vector<24x8xf32>, vector<24x8xf32>, vector<24x8xf32>, vector<24x8xf32>, vector<24x8xf32>, vector<24x8xf32>, vector<24x8xf32> -> vector<216x8xf32>
    %c0_2 = arith.constant 0 : index
    %c0_3 = arith.constant 0 : index
    %12 = vector.load %arg2[%c0_2, %c0_3] : memref<12x216xf32, #tpu.memory_space<vmem>>, vector<12x216xf32>
    %cst = arith.constant dense<0.000000e+00> : vector<12x8xf32>
    %13 = tpu.matmul %12, %11, %cst {dimension_numbers = #tpu.dot_dimension_numbers<[1], [0], [0], [1], [0, 0, 1, 1], [], []>} : vector<12x216xf32>, vector<216x8xf32>, vector<12x8xf32> -> vector<12x8xf32>
    %c0_4 = arith.constant 0 : index
    %c0_5 = arith.constant 0 : index
    %14 = vector.load %arg3[%c0_4, %c0_5] : memref<12x1xf32, #tpu.memory_space<vmem>>, vector<12x1xf32>
    %15 = vector.broadcast %14 : vector<12x1xf32> to vector<12x8xf32>
    %16 = arith.mulf %13, %15 : vector<12x8xf32>
    %c0_6 = arith.constant 0 : index
    %c0_7 = arith.constant 0 : index
    %17 = vector.load %arg4[%c0_6, %c0_7] : memref<12x1xf32, #tpu.memory_space<vmem>>, vector<12x1xf32>
    %18 = vector.broadcast %17 : vector<12x1xf32> to vector<12x8xf32>
    %19 = arith.addf %16, %18 : vector<12x8xf32>
    %cst_8 = arith.constant 0.000000e+00 : f32
    %20 = vector.broadcast %cst_8 : f32 to vector<12x8xf32>
    %21 = arith.maximumf %19, %20 : vector<12x8xf32>
    %c0_9 = arith.constant 0 : index
    %c0_10 = arith.constant 0 : index
    %c0_11 = arith.constant 0 : index
    %22 = vector.load %arg5[%c0_9, %c0_10, %c0_11] : memref<1x12x8xf32, #tpu.memory_space<vmem>>, vector<1x12x8xf32>
    %23 = vector.shape_cast %22 : vector<1x12x8xf32> to vector<12x8xf32>
    %24 = vector.shape_cast %21 : vector<12x8xf32> to vector<1x12x8xf32>
    tpu.vector_store %arg5[%c0_9, %c0_10, %c0_11], %24 {strides = array<i32>} : memref<1x12x8xf32, #tpu.memory_space<vmem>>, vector<1x12x8xf32>,
    return
  }
  func.func @transform_0(%arg0: i32) -> (i32, i32, i32) {
    %c0_i32 = arith.constant 0 : i32
    %c0_i32_0 = arith.constant 0 : i32
    %c0_i32_1 = arith.constant 0 : i32
    return %arg0, %c0_i32, %c0_i32_0 : i32, i32, i32
  }
  func.func @transform_1(%arg0: i32) -> (i32, i32) {
    %c0_i32 = arith.constant 0 : i32
    %c0_i32_0 = arith.constant 0 : i32
    %c0_i32_1 = arith.constant 0 : i32
    return %c0_i32, %c0_i32_0 : i32, i32
  }
  func.func @transform_2(%arg0: i32) -> (i32, i32) {
    %c0_i32 = arith.constant 0 : i32
    %c0_i32_0 = arith.constant 0 : i32
    %c0_i32_1 = arith.constant 0 : i32
    return %c0_i32, %c0_i32_0 : i32, i32
  }
  func.func @transform_3(%arg0: i32) -> (i32, i32) {
    %c0_i32 = arith.constant 0 : i32
    %c0_i32_0 = arith.constant 0 : i32
    %c0_i32_1 = arith.constant 0 : i32
    return %c0_i32, %c0_i32_0 : i32, i32
  }
  func.func @transform_4(%arg0: i32) -> (i32, i32, i32) {
    %c0_i32 = arith.constant 0 : i32
    %c0_i32_0 = arith.constant 0 : i32
    %c0_i32_1 = arith.constant 0 : i32
    return %arg0, %c0_i32, %c0_i32_0 : i32, i32, i32
  }
}

module attributes {stable_mosaic.version = 11 : i64} {
  func.func @_upsample_kernel(%arg0: i32, %arg1: memref<4x2xf32, #tpu.memory_space<vmem>>, %arg2: memref<2x4xf32, #tpu.memory_space<vmem>>, %arg3: memref<1x12x2x2xf32, #tpu.memory_space<vmem>>, %arg4: memref<1x12x4x4xf32, #tpu.memory_space<vmem>>) attributes {dimension_semantics = [#tpu.dimension_semantics<parallel>], iteration_bounds = array<i64: 2>, scalar_prefetch = 0 : i64, scratch_operands = 0 : i64, tpu.core_type = #tpu.core_type<tc>, window_params = [{pipeline_mode = #tpu.pipeline_mode<synchronous>, transform_indices = @transform_0, window_bounds = array<i64: 4, 2>}, {pipeline_mode = #tpu.pipeline_mode<synchronous>, transform_indices = @transform_1, window_bounds = array<i64: 2, 4>}, {transform_indices = @transform_2, window_bounds = array<i64: 1, 12, 2, 2>}, {transform_indices = @transform_3, window_bounds = array<i64: 1, 12, 4, 4>}]} {
    %c0 = arith.constant 0 : index
    %c0_0 = arith.constant 0 : index
    %0 = vector.load %arg1[%c0, %c0_0] : memref<4x2xf32, #tpu.memory_space<vmem>>, vector<4x2xf32>
    %c0_1 = arith.constant 0 : index
    %c0_2 = arith.constant 0 : index
    %1 = vector.load %arg2[%c0_1, %c0_2] : memref<2x4xf32, #tpu.memory_space<vmem>>, vector<2x4xf32>
    %c0_3 = arith.constant 0 : index
    %c0_4 = arith.constant 0 : index
    %c0_5 = arith.constant 0 : index
    %c0_6 = arith.constant 0 : index
    %2 = vector.load %arg3[%c0_3, %c0_4, %c0_5, %c0_6] : memref<1x12x2x2xf32, #tpu.memory_space<vmem>>, vector<1x1x2x2xf32>
    %3 = vector.shape_cast %2 : vector<1x1x2x2xf32> to vector<2x2xf32>
    %cst = arith.constant dense<0.000000e+00> : vector<4x2xf32>
    %4 = tpu.matmul %0, %3, %cst {dimension_numbers = #tpu.dot_dimension_numbers<[1], [0], [0], [1], [0, 0, 1, 1], [], []>} : vector<4x2xf32>, vector<2x2xf32>, vector<4x2xf32> -> vector<4x2xf32>
    %cst_7 = arith.constant dense<0.000000e+00> : vector<4x4xf32>
    %5 = tpu.matmul %4, %1, %cst_7 {dimension_numbers = #tpu.dot_dimension_numbers<[1], [0], [0], [1], [0, 0, 1, 1], [], []>} : vector<4x2xf32>, vector<2x4xf32>, vector<4x4xf32> -> vector<4x4xf32>
    %cst_8 = arith.constant 0.000000e+00 : f32
    %cst_9 = arith.constant 2.550000e+02 : f32
    %6 = vector.broadcast %cst_8 : f32 to vector<4x4xf32>
    %7 = arith.maximumf %6, %5 : vector<4x4xf32>
    %8 = vector.broadcast %cst_9 : f32 to vector<4x4xf32>
    %9 = arith.minimumf %8, %7 : vector<4x4xf32>
    %c0_10 = arith.constant 0 : index
    %c0_11 = arith.constant 0 : index
    %c0_12 = arith.constant 0 : index
    %c0_13 = arith.constant 0 : index
    %10 = vector.load %arg4[%c0_10, %c0_11, %c0_12, %c0_13] : memref<1x12x4x4xf32, #tpu.memory_space<vmem>>, vector<1x1x4x4xf32>
    %11 = vector.shape_cast %10 : vector<1x1x4x4xf32> to vector<4x4xf32>
    %12 = vector.shape_cast %9 : vector<4x4xf32> to vector<1x1x4x4xf32>
    tpu.vector_store %arg4[%c0_10, %c0_11, %c0_12, %c0_13], %12 {strides = array<i32>} : memref<1x12x4x4xf32, #tpu.memory_space<vmem>>, vector<1x1x4x4xf32>,
    %c0_14 = arith.constant 0 : index
    %c1 = arith.constant 1 : index
    %c0_15 = arith.constant 0 : index
    %c0_16 = arith.constant 0 : index
    %13 = vector.load %arg3[%c0_14, %c1, %c0_15, %c0_16] : memref<1x12x2x2xf32, #tpu.memory_space<vmem>>, vector<1x1x2x2xf32>
    %14 = vector.shape_cast %13 : vector<1x1x2x2xf32> to vector<2x2xf32>
    %cst_17 = arith.constant dense<0.000000e+00> : vector<4x2xf32>
    %15 = tpu.matmul %0, %14, %cst_17 {dimension_numbers = #tpu.dot_dimension_numbers<[1], [0], [0], [1], [0, 0, 1, 1], [], []>} : vector<4x2xf32>, vector<2x2xf32>, vector<4x2xf32> -> vector<4x2xf32>
    %cst_18 = arith.constant dense<0.000000e+00> : vector<4x4xf32>
    %16 = tpu.matmul %15, %1, %cst_18 {dimension_numbers = #tpu.dot_dimension_numbers<[1], [0], [0], [1], [0, 0, 1, 1], [], []>} : vector<4x2xf32>, vector<2x4xf32>, vector<4x4xf32> -> vector<4x4xf32>
    %cst_19 = arith.constant 0.000000e+00 : f32
    %cst_20 = arith.constant 2.550000e+02 : f32
    %17 = vector.broadcast %cst_19 : f32 to vector<4x4xf32>
    %18 = arith.maximumf %17, %16 : vector<4x4xf32>
    %19 = vector.broadcast %cst_20 : f32 to vector<4x4xf32>
    %20 = arith.minimumf %19, %18 : vector<4x4xf32>
    %c0_21 = arith.constant 0 : index
    %c1_22 = arith.constant 1 : index
    %c0_23 = arith.constant 0 : index
    %c0_24 = arith.constant 0 : index
    %21 = vector.load %arg4[%c0_21, %c1_22, %c0_23, %c0_24] : memref<1x12x4x4xf32, #tpu.memory_space<vmem>>, vector<1x1x4x4xf32>
    %22 = vector.shape_cast %21 : vector<1x1x4x4xf32> to vector<4x4xf32>
    %23 = vector.shape_cast %20 : vector<4x4xf32> to vector<1x1x4x4xf32>
    tpu.vector_store %arg4[%c0_21, %c1_22, %c0_23, %c0_24], %23 {strides = array<i32>} : memref<1x12x4x4xf32, #tpu.memory_space<vmem>>, vector<1x1x4x4xf32>,
    %c0_25 = arith.constant 0 : index
    %c2 = arith.constant 2 : index
    %c0_26 = arith.constant 0 : index
    %c0_27 = arith.constant 0 : index
    %24 = vector.load %arg3[%c0_25, %c2, %c0_26, %c0_27] : memref<1x12x2x2xf32, #tpu.memory_space<vmem>>, vector<1x1x2x2xf32>
    %25 = vector.shape_cast %24 : vector<1x1x2x2xf32> to vector<2x2xf32>
    %cst_28 = arith.constant dense<0.000000e+00> : vector<4x2xf32>
    %26 = tpu.matmul %0, %25, %cst_28 {dimension_numbers = #tpu.dot_dimension_numbers<[1], [0], [0], [1], [0, 0, 1, 1], [], []>} : vector<4x2xf32>, vector<2x2xf32>, vector<4x2xf32> -> vector<4x2xf32>
    %cst_29 = arith.constant dense<0.000000e+00> : vector<4x4xf32>
    %27 = tpu.matmul %26, %1, %cst_29 {dimension_numbers = #tpu.dot_dimension_numbers<[1], [0], [0], [1], [0, 0, 1, 1], [], []>} : vector<4x2xf32>, vector<2x4xf32>, vector<4x4xf32> -> vector<4x4xf32>
    %cst_30 = arith.constant 0.000000e+00 : f32
    %cst_31 = arith.constant 2.550000e+02 : f32
    %28 = vector.broadcast %cst_30 : f32 to vector<4x4xf32>
    %29 = arith.maximumf %28, %27 : vector<4x4xf32>
    %30 = vector.broadcast %cst_31 : f32 to vector<4x4xf32>
    %31 = arith.minimumf %30, %29 : vector<4x4xf32>
    %c0_32 = arith.constant 0 : index
    %c2_33 = arith.constant 2 : index
    %c0_34 = arith.constant 0 : index
    %c0_35 = arith.constant 0 : index
    %32 = vector.load %arg4[%c0_32, %c2_33, %c0_34, %c0_35] : memref<1x12x4x4xf32, #tpu.memory_space<vmem>>, vector<1x1x4x4xf32>
    %33 = vector.shape_cast %32 : vector<1x1x4x4xf32> to vector<4x4xf32>
    %34 = vector.shape_cast %31 : vector<4x4xf32> to vector<1x1x4x4xf32>
    tpu.vector_store %arg4[%c0_32, %c2_33, %c0_34, %c0_35], %34 {strides = array<i32>} : memref<1x12x4x4xf32, #tpu.memory_space<vmem>>, vector<1x1x4x4xf32>,
    %c0_36 = arith.constant 0 : index
    %c3 = arith.constant 3 : index
    %c0_37 = arith.constant 0 : index
    %c0_38 = arith.constant 0 : index
    %35 = vector.load %arg3[%c0_36, %c3, %c0_37, %c0_38] : memref<1x12x2x2xf32, #tpu.memory_space<vmem>>, vector<1x1x2x2xf32>
    %36 = vector.shape_cast %35 : vector<1x1x2x2xf32> to vector<2x2xf32>
    %cst_39 = arith.constant dense<0.000000e+00> : vector<4x2xf32>
    %37 = tpu.matmul %0, %36, %cst_39 {dimension_numbers = #tpu.dot_dimension_numbers<[1], [0], [0], [1], [0, 0, 1, 1], [], []>} : vector<4x2xf32>, vector<2x2xf32>, vector<4x2xf32> -> vector<4x2xf32>
    %cst_40 = arith.constant dense<0.000000e+00> : vector<4x4xf32>
    %38 = tpu.matmul %37, %1, %cst_40 {dimension_numbers = #tpu.dot_dimension_numbers<[1], [0], [0], [1], [0, 0, 1, 1], [], []>} : vector<4x2xf32>, vector<2x4xf32>, vector<4x4xf32> -> vector<4x4xf32>
    %cst_41 = arith.constant 0.000000e+00 : f32
    %cst_42 = arith.constant 2.550000e+02 : f32
    %39 = vector.broadcast %cst_41 : f32 to vector<4x4xf32>
    %40 = arith.maximumf %39, %38 : vector<4x4xf32>
    %41 = vector.broadcast %cst_42 : f32 to vector<4x4xf32>
    %42 = arith.minimumf %41, %40 : vector<4x4xf32>
    %c0_43 = arith.constant 0 : index
    %c3_44 = arith.constant 3 : index
    %c0_45 = arith.constant 0 : index
    %c0_46 = arith.constant 0 : index
    %43 = vector.load %arg4[%c0_43, %c3_44, %c0_45, %c0_46] : memref<1x12x4x4xf32, #tpu.memory_space<vmem>>, vector<1x1x4x4xf32>
    %44 = vector.shape_cast %43 : vector<1x1x4x4xf32> to vector<4x4xf32>
    %45 = vector.shape_cast %42 : vector<4x4xf32> to vector<1x1x4x4xf32>
    tpu.vector_store %arg4[%c0_43, %c3_44, %c0_45, %c0_46], %45 {strides = array<i32>} : memref<1x12x4x4xf32, #tpu.memory_space<vmem>>, vector<1x1x4x4xf32>,
    %c0_47 = arith.constant 0 : index
    %c4 = arith.constant 4 : index
    %c0_48 = arith.constant 0 : index
    %c0_49 = arith.constant 0 : index
    %46 = vector.load %arg3[%c0_47, %c4, %c0_48, %c0_49] : memref<1x12x2x2xf32, #tpu.memory_space<vmem>>, vector<1x1x2x2xf32>
    %47 = vector.shape_cast %46 : vector<1x1x2x2xf32> to vector<2x2xf32>
    %cst_50 = arith.constant dense<0.000000e+00> : vector<4x2xf32>
    %48 = tpu.matmul %0, %47, %cst_50 {dimension_numbers = #tpu.dot_dimension_numbers<[1], [0], [0], [1], [0, 0, 1, 1], [], []>} : vector<4x2xf32>, vector<2x2xf32>, vector<4x2xf32> -> vector<4x2xf32>
    %cst_51 = arith.constant dense<0.000000e+00> : vector<4x4xf32>
    %49 = tpu.matmul %48, %1, %cst_51 {dimension_numbers = #tpu.dot_dimension_numbers<[1], [0], [0], [1], [0, 0, 1, 1], [], []>} : vector<4x2xf32>, vector<2x4xf32>, vector<4x4xf32> -> vector<4x4xf32>
    %cst_52 = arith.constant 0.000000e+00 : f32
    %cst_53 = arith.constant 2.550000e+02 : f32
    %50 = vector.broadcast %cst_52 : f32 to vector<4x4xf32>
    %51 = arith.maximumf %50, %49 : vector<4x4xf32>
    %52 = vector.broadcast %cst_53 : f32 to vector<4x4xf32>
    %53 = arith.minimumf %52, %51 : vector<4x4xf32>
    %c0_54 = arith.constant 0 : index
    %c4_55 = arith.constant 4 : index
    %c0_56 = arith.constant 0 : index
    %c0_57 = arith.constant 0 : index
    %54 = vector.load %arg4[%c0_54, %c4_55, %c0_56, %c0_57] : memref<1x12x4x4xf32, #tpu.memory_space<vmem>>, vector<1x1x4x4xf32>
    %55 = vector.shape_cast %54 : vector<1x1x4x4xf32> to vector<4x4xf32>
    %56 = vector.shape_cast %53 : vector<4x4xf32> to vector<1x1x4x4xf32>
    tpu.vector_store %arg4[%c0_54, %c4_55, %c0_56, %c0_57], %56 {strides = array<i32>} : memref<1x12x4x4xf32, #tpu.memory_space<vmem>>, vector<1x1x4x4xf32>,
    %c0_58 = arith.constant 0 : index
    %c5 = arith.constant 5 : index
    %c0_59 = arith.constant 0 : index
    %c0_60 = arith.constant 0 : index
    %57 = vector.load %arg3[%c0_58, %c5, %c0_59, %c0_60] : memref<1x12x2x2xf32, #tpu.memory_space<vmem>>, vector<1x1x2x2xf32>
    %58 = vector.shape_cast %57 : vector<1x1x2x2xf32> to vector<2x2xf32>
    %cst_61 = arith.constant dense<0.000000e+00> : vector<4x2xf32>
    %59 = tpu.matmul %0, %58, %cst_61 {dimension_numbers = #tpu.dot_dimension_numbers<[1], [0], [0], [1], [0, 0, 1, 1], [], []>} : vector<4x2xf32>, vector<2x2xf32>, vector<4x2xf32> -> vector<4x2xf32>
    %cst_62 = arith.constant dense<0.000000e+00> : vector<4x4xf32>
    %60 = tpu.matmul %59, %1, %cst_62 {dimension_numbers = #tpu.dot_dimension_numbers<[1], [0], [0], [1], [0, 0, 1, 1], [], []>} : vector<4x2xf32>, vector<2x4xf32>, vector<4x4xf32> -> vector<4x4xf32>
    %cst_63 = arith.constant 0.000000e+00 : f32
    %cst_64 = arith.constant 2.550000e+02 : f32
    %61 = vector.broadcast %cst_63 : f32 to vector<4x4xf32>
    %62 = arith.maximumf %61, %60 : vector<4x4xf32>
    %63 = vector.broadcast %cst_64 : f32 to vector<4x4xf32>
    %64 = arith.minimumf %63, %62 : vector<4x4xf32>
    %c0_65 = arith.constant 0 : index
    %c5_66 = arith.constant 5 : index
    %c0_67 = arith.constant 0 : index
    %c0_68 = arith.constant 0 : index
    %65 = vector.load %arg4[%c0_65, %c5_66, %c0_67, %c0_68] : memref<1x12x4x4xf32, #tpu.memory_space<vmem>>, vector<1x1x4x4xf32>
    %66 = vector.shape_cast %65 : vector<1x1x4x4xf32> to vector<4x4xf32>
    %67 = vector.shape_cast %64 : vector<4x4xf32> to vector<1x1x4x4xf32>
    tpu.vector_store %arg4[%c0_65, %c5_66, %c0_67, %c0_68], %67 {strides = array<i32>} : memref<1x12x4x4xf32, #tpu.memory_space<vmem>>, vector<1x1x4x4xf32>,
    %c0_69 = arith.constant 0 : index
    %c6 = arith.constant 6 : index
    %c0_70 = arith.constant 0 : index
    %c0_71 = arith.constant 0 : index
    %68 = vector.load %arg3[%c0_69, %c6, %c0_70, %c0_71] : memref<1x12x2x2xf32, #tpu.memory_space<vmem>>, vector<1x1x2x2xf32>
    %69 = vector.shape_cast %68 : vector<1x1x2x2xf32> to vector<2x2xf32>
    %cst_72 = arith.constant dense<0.000000e+00> : vector<4x2xf32>
    %70 = tpu.matmul %0, %69, %cst_72 {dimension_numbers = #tpu.dot_dimension_numbers<[1], [0], [0], [1], [0, 0, 1, 1], [], []>} : vector<4x2xf32>, vector<2x2xf32>, vector<4x2xf32> -> vector<4x2xf32>
    %cst_73 = arith.constant dense<0.000000e+00> : vector<4x4xf32>
    %71 = tpu.matmul %70, %1, %cst_73 {dimension_numbers = #tpu.dot_dimension_numbers<[1], [0], [0], [1], [0, 0, 1, 1], [], []>} : vector<4x2xf32>, vector<2x4xf32>, vector<4x4xf32> -> vector<4x4xf32>
    %cst_74 = arith.constant 0.000000e+00 : f32
    %cst_75 = arith.constant 2.550000e+02 : f32
    %72 = vector.broadcast %cst_74 : f32 to vector<4x4xf32>
    %73 = arith.maximumf %72, %71 : vector<4x4xf32>
    %74 = vector.broadcast %cst_75 : f32 to vector<4x4xf32>
    %75 = arith.minimumf %74, %73 : vector<4x4xf32>
    %c0_76 = arith.constant 0 : index
    %c6_77 = arith.constant 6 : index
    %c0_78 = arith.constant 0 : index
    %c0_79 = arith.constant 0 : index
    %76 = vector.load %arg4[%c0_76, %c6_77, %c0_78, %c0_79] : memref<1x12x4x4xf32, #tpu.memory_space<vmem>>, vector<1x1x4x4xf32>
    %77 = vector.shape_cast %76 : vector<1x1x4x4xf32> to vector<4x4xf32>
    %78 = vector.shape_cast %75 : vector<4x4xf32> to vector<1x1x4x4xf32>
    tpu.vector_store %arg4[%c0_76, %c6_77, %c0_78, %c0_79], %78 {strides = array<i32>} : memref<1x12x4x4xf32, #tpu.memory_space<vmem>>, vector<1x1x4x4xf32>,
    %c0_80 = arith.constant 0 : index
    %c7 = arith.constant 7 : index
    %c0_81 = arith.constant 0 : index
    %c0_82 = arith.constant 0 : index
    %79 = vector.load %arg3[%c0_80, %c7, %c0_81, %c0_82] : memref<1x12x2x2xf32, #tpu.memory_space<vmem>>, vector<1x1x2x2xf32>
    %80 = vector.shape_cast %79 : vector<1x1x2x2xf32> to vector<2x2xf32>
    %cst_83 = arith.constant dense<0.000000e+00> : vector<4x2xf32>
    %81 = tpu.matmul %0, %80, %cst_83 {dimension_numbers = #tpu.dot_dimension_numbers<[1], [0], [0], [1], [0, 0, 1, 1], [], []>} : vector<4x2xf32>, vector<2x2xf32>, vector<4x2xf32> -> vector<4x2xf32>
    %cst_84 = arith.constant dense<0.000000e+00> : vector<4x4xf32>
    %82 = tpu.matmul %81, %1, %cst_84 {dimension_numbers = #tpu.dot_dimension_numbers<[1], [0], [0], [1], [0, 0, 1, 1], [], []>} : vector<4x2xf32>, vector<2x4xf32>, vector<4x4xf32> -> vector<4x4xf32>
    %cst_85 = arith.constant 0.000000e+00 : f32
    %cst_86 = arith.constant 2.550000e+02 : f32
    %83 = vector.broadcast %cst_85 : f32 to vector<4x4xf32>
    %84 = arith.maximumf %83, %82 : vector<4x4xf32>
    %85 = vector.broadcast %cst_86 : f32 to vector<4x4xf32>
    %86 = arith.minimumf %85, %84 : vector<4x4xf32>
    %c0_87 = arith.constant 0 : index
    %c7_88 = arith.constant 7 : index
    %c0_89 = arith.constant 0 : index
    %c0_90 = arith.constant 0 : index
    %87 = vector.load %arg4[%c0_87, %c7_88, %c0_89, %c0_90] : memref<1x12x4x4xf32, #tpu.memory_space<vmem>>, vector<1x1x4x4xf32>
    %88 = vector.shape_cast %87 : vector<1x1x4x4xf32> to vector<4x4xf32>
    %89 = vector.shape_cast %86 : vector<4x4xf32> to vector<1x1x4x4xf32>
    tpu.vector_store %arg4[%c0_87, %c7_88, %c0_89, %c0_90], %89 {strides = array<i32>} : memref<1x12x4x4xf32, #tpu.memory_space<vmem>>, vector<1x1x4x4xf32>,
    %c0_91 = arith.constant 0 : index
    %c8 = arith.constant 8 : index
    %c0_92 = arith.constant 0 : index
    %c0_93 = arith.constant 0 : index
    %90 = vector.load %arg3[%c0_91, %c8, %c0_92, %c0_93] : memref<1x12x2x2xf32, #tpu.memory_space<vmem>>, vector<1x1x2x2xf32>
    %91 = vector.shape_cast %90 : vector<1x1x2x2xf32> to vector<2x2xf32>
    %cst_94 = arith.constant dense<0.000000e+00> : vector<4x2xf32>
    %92 = tpu.matmul %0, %91, %cst_94 {dimension_numbers = #tpu.dot_dimension_numbers<[1], [0], [0], [1], [0, 0, 1, 1], [], []>} : vector<4x2xf32>, vector<2x2xf32>, vector<4x2xf32> -> vector<4x2xf32>
    %cst_95 = arith.constant dense<0.000000e+00> : vector<4x4xf32>
    %93 = tpu.matmul %92, %1, %cst_95 {dimension_numbers = #tpu.dot_dimension_numbers<[1], [0], [0], [1], [0, 0, 1, 1], [], []>} : vector<4x2xf32>, vector<2x4xf32>, vector<4x4xf32> -> vector<4x4xf32>
    %cst_96 = arith.constant 0.000000e+00 : f32
    %cst_97 = arith.constant 2.550000e+02 : f32
    %94 = vector.broadcast %cst_96 : f32 to vector<4x4xf32>
    %95 = arith.maximumf %94, %93 : vector<4x4xf32>
    %96 = vector.broadcast %cst_97 : f32 to vector<4x4xf32>
    %97 = arith.minimumf %96, %95 : vector<4x4xf32>
    %c0_98 = arith.constant 0 : index
    %c8_99 = arith.constant 8 : index
    %c0_100 = arith.constant 0 : index
    %c0_101 = arith.constant 0 : index
    %98 = vector.load %arg4[%c0_98, %c8_99, %c0_100, %c0_101] : memref<1x12x4x4xf32, #tpu.memory_space<vmem>>, vector<1x1x4x4xf32>
    %99 = vector.shape_cast %98 : vector<1x1x4x4xf32> to vector<4x4xf32>
    %100 = vector.shape_cast %97 : vector<4x4xf32> to vector<1x1x4x4xf32>
    tpu.vector_store %arg4[%c0_98, %c8_99, %c0_100, %c0_101], %100 {strides = array<i32>} : memref<1x12x4x4xf32, #tpu.memory_space<vmem>>, vector<1x1x4x4xf32>,
    %c0_102 = arith.constant 0 : index
    %c9 = arith.constant 9 : index
    %c0_103 = arith.constant 0 : index
    %c0_104 = arith.constant 0 : index
    %101 = vector.load %arg3[%c0_102, %c9, %c0_103, %c0_104] : memref<1x12x2x2xf32, #tpu.memory_space<vmem>>, vector<1x1x2x2xf32>
    %102 = vector.shape_cast %101 : vector<1x1x2x2xf32> to vector<2x2xf32>
    %cst_105 = arith.constant dense<0.000000e+00> : vector<4x2xf32>
    %103 = tpu.matmul %0, %102, %cst_105 {dimension_numbers = #tpu.dot_dimension_numbers<[1], [0], [0], [1], [0, 0, 1, 1], [], []>} : vector<4x2xf32>, vector<2x2xf32>, vector<4x2xf32> -> vector<4x2xf32>
    %cst_106 = arith.constant dense<0.000000e+00> : vector<4x4xf32>
    %104 = tpu.matmul %103, %1, %cst_106 {dimension_numbers = #tpu.dot_dimension_numbers<[1], [0], [0], [1], [0, 0, 1, 1], [], []>} : vector<4x2xf32>, vector<2x4xf32>, vector<4x4xf32> -> vector<4x4xf32>
    %cst_107 = arith.constant 0.000000e+00 : f32
    %cst_108 = arith.constant 2.550000e+02 : f32
    %105 = vector.broadcast %cst_107 : f32 to vector<4x4xf32>
    %106 = arith.maximumf %105, %104 : vector<4x4xf32>
    %107 = vector.broadcast %cst_108 : f32 to vector<4x4xf32>
    %108 = arith.minimumf %107, %106 : vector<4x4xf32>
    %c0_109 = arith.constant 0 : index
    %c9_110 = arith.constant 9 : index
    %c0_111 = arith.constant 0 : index
    %c0_112 = arith.constant 0 : index
    %109 = vector.load %arg4[%c0_109, %c9_110, %c0_111, %c0_112] : memref<1x12x4x4xf32, #tpu.memory_space<vmem>>, vector<1x1x4x4xf32>
    %110 = vector.shape_cast %109 : vector<1x1x4x4xf32> to vector<4x4xf32>
    %111 = vector.shape_cast %108 : vector<4x4xf32> to vector<1x1x4x4xf32>
    tpu.vector_store %arg4[%c0_109, %c9_110, %c0_111, %c0_112], %111 {strides = array<i32>} : memref<1x12x4x4xf32, #tpu.memory_space<vmem>>, vector<1x1x4x4xf32>,
    %c0_113 = arith.constant 0 : index
    %c10 = arith.constant 10 : index
    %c0_114 = arith.constant 0 : index
    %c0_115 = arith.constant 0 : index
    %112 = vector.load %arg3[%c0_113, %c10, %c0_114, %c0_115] : memref<1x12x2x2xf32, #tpu.memory_space<vmem>>, vector<1x1x2x2xf32>
    %113 = vector.shape_cast %112 : vector<1x1x2x2xf32> to vector<2x2xf32>
    %cst_116 = arith.constant dense<0.000000e+00> : vector<4x2xf32>
    %114 = tpu.matmul %0, %113, %cst_116 {dimension_numbers = #tpu.dot_dimension_numbers<[1], [0], [0], [1], [0, 0, 1, 1], [], []>} : vector<4x2xf32>, vector<2x2xf32>, vector<4x2xf32> -> vector<4x2xf32>
    %cst_117 = arith.constant dense<0.000000e+00> : vector<4x4xf32>
    %115 = tpu.matmul %114, %1, %cst_117 {dimension_numbers = #tpu.dot_dimension_numbers<[1], [0], [0], [1], [0, 0, 1, 1], [], []>} : vector<4x2xf32>, vector<2x4xf32>, vector<4x4xf32> -> vector<4x4xf32>
    %cst_118 = arith.constant 0.000000e+00 : f32
    %cst_119 = arith.constant 2.550000e+02 : f32
    %116 = vector.broadcast %cst_118 : f32 to vector<4x4xf32>
    %117 = arith.maximumf %116, %115 : vector<4x4xf32>
    %118 = vector.broadcast %cst_119 : f32 to vector<4x4xf32>
    %119 = arith.minimumf %118, %117 : vector<4x4xf32>
    %c0_120 = arith.constant 0 : index
    %c10_121 = arith.constant 10 : index
    %c0_122 = arith.constant 0 : index
    %c0_123 = arith.constant 0 : index
    %120 = vector.load %arg4[%c0_120, %c10_121, %c0_122, %c0_123] : memref<1x12x4x4xf32, #tpu.memory_space<vmem>>, vector<1x1x4x4xf32>
    %121 = vector.shape_cast %120 : vector<1x1x4x4xf32> to vector<4x4xf32>
    %122 = vector.shape_cast %119 : vector<4x4xf32> to vector<1x1x4x4xf32>
    tpu.vector_store %arg4[%c0_120, %c10_121, %c0_122, %c0_123], %122 {strides = array<i32>} : memref<1x12x4x4xf32, #tpu.memory_space<vmem>>, vector<1x1x4x4xf32>,
    %c0_124 = arith.constant 0 : index
    %c11 = arith.constant 11 : index
    %c0_125 = arith.constant 0 : index
    %c0_126 = arith.constant 0 : index
    %123 = vector.load %arg3[%c0_124, %c11, %c0_125, %c0_126] : memref<1x12x2x2xf32, #tpu.memory_space<vmem>>, vector<1x1x2x2xf32>
    %124 = vector.shape_cast %123 : vector<1x1x2x2xf32> to vector<2x2xf32>
    %cst_127 = arith.constant dense<0.000000e+00> : vector<4x2xf32>
    %125 = tpu.matmul %0, %124, %cst_127 {dimension_numbers = #tpu.dot_dimension_numbers<[1], [0], [0], [1], [0, 0, 1, 1], [], []>} : vector<4x2xf32>, vector<2x2xf32>, vector<4x2xf32> -> vector<4x2xf32>
    %cst_128 = arith.constant dense<0.000000e+00> : vector<4x4xf32>
    %126 = tpu.matmul %125, %1, %cst_128 {dimension_numbers = #tpu.dot_dimension_numbers<[1], [0], [0], [1], [0, 0, 1, 1], [], []>} : vector<4x2xf32>, vector<2x4xf32>, vector<4x4xf32> -> vector<4x4xf32>
    %cst_129 = arith.constant 0.000000e+00 : f32
    %cst_130 = arith.constant 2.550000e+02 : f32
    %127 = vector.broadcast %cst_129 : f32 to vector<4x4xf32>
    %128 = arith.maximumf %127, %126 : vector<4x4xf32>
    %129 = vector.broadcast %cst_130 : f32 to vector<4x4xf32>
    %130 = arith.minimumf %129, %128 : vector<4x4xf32>
    %c0_131 = arith.constant 0 : index
    %c11_132 = arith.constant 11 : index
    %c0_133 = arith.constant 0 : index
    %c0_134 = arith.constant 0 : index
    %131 = vector.load %arg4[%c0_131, %c11_132, %c0_133, %c0_134] : memref<1x12x4x4xf32, #tpu.memory_space<vmem>>, vector<1x1x4x4xf32>
    %132 = vector.shape_cast %131 : vector<1x1x4x4xf32> to vector<4x4xf32>
    %133 = vector.shape_cast %130 : vector<4x4xf32> to vector<1x1x4x4xf32>
    tpu.vector_store %arg4[%c0_131, %c11_132, %c0_133, %c0_134], %133 {strides = array<i32>} : memref<1x12x4x4xf32, #tpu.memory_space<vmem>>, vector<1x1x4x4xf32>,
    return
  }
  func.func @transform_0(%arg0: i32) -> (i32, i32) {
    %c0_i32 = arith.constant 0 : i32
    %c0_i32_0 = arith.constant 0 : i32
    %c0_i32_1 = arith.constant 0 : i32
    return %c0_i32, %c0_i32_0 : i32, i32
  }
  func.func @transform_1(%arg0: i32) -> (i32, i32) {
    %c0_i32 = arith.constant 0 : i32
    %c0_i32_0 = arith.constant 0 : i32
    %c0_i32_1 = arith.constant 0 : i32
    return %c0_i32, %c0_i32_0 : i32, i32
  }
  func.func @transform_2(%arg0: i32) -> (i32, i32, i32, i32) {
    %c0_i32 = arith.constant 0 : i32
    %c0_i32_0 = arith.constant 0 : i32
    %c0_i32_1 = arith.constant 0 : i32
    %c0_i32_2 = arith.constant 0 : i32
    return %arg0, %c0_i32, %c0_i32_0, %c0_i32_1 : i32, i32, i32, i32
  }
  func.func @transform_3(%arg0: i32) -> (i32, i32, i32, i32) {
    %c0_i32 = arith.constant 0 : i32
    %c0_i32_0 = arith.constant 0 : i32
    %c0_i32_1 = arith.constant 0 : i32
    %c0_i32_2 = arith.constant 0 : i32
    return %arg0, %c0_i32, %c0_i32_0, %c0_i32_1 : i32, i32, i32, i32
  }
}

module attributes {stable_mosaic.version = 11 : i64} {
  func.func @_rebnconv_kernel(%arg0: i32, %arg1: memref<1x24x42xf32, #tpu.memory_space<vmem>>, %arg2: memref<12x216xf32, #tpu.memory_space<vmem>>, %arg3: memref<12x1xf32, #tpu.memory_space<vmem>>, %arg4: memref<12x1xf32, #tpu.memory_space<vmem>>, %arg5: memref<1x12x24xf32, #tpu.memory_space<vmem>>) attributes {dimension_semantics = [#tpu.dimension_semantics<parallel>], iteration_bounds = array<i64: 2>, scalar_prefetch = 0 : i64, scratch_operands = 0 : i64, tpu.core_type = #tpu.core_type<tc>, window_params = [{transform_indices = @transform_0, window_bounds = array<i64: 1, 24, 42>}, {pipeline_mode = #tpu.pipeline_mode<synchronous>, transform_indices = @transform_1, window_bounds = array<i64: 12, 216>}, {pipeline_mode = #tpu.pipeline_mode<synchronous>, transform_indices = @transform_2, window_bounds = array<i64: 12, 1>}, {pipeline_mode = #tpu.pipeline_mode<synchronous>, transform_indices = @transform_3, window_bounds = array<i64: 12, 1>}, {transform_indices = @transform_4, window_bounds = array<i64: 1, 12, 24>}]} {
    %c0 = arith.constant 0 : index
    %c0_0 = arith.constant 0 : index
    %c0_1 = arith.constant 0 : index
    %0 = vector.load %arg1[%c0, %c0_0, %c0_1] : memref<1x24x42xf32, #tpu.memory_space<vmem>>, vector<1x24x42xf32>
    %1 = vector.shape_cast %0 : vector<1x24x42xf32> to vector<24x42xf32>
    %2 = vector.extract_strided_slice %1 {offsets = [0, 0], sizes = [24, 24], strides = [1, 1]} : vector<24x42xf32> to vector<24x24xf32>
    %3 = vector.extract_strided_slice %1 {offsets = [0, 1], sizes = [24, 24], strides = [1, 1]} : vector<24x42xf32> to vector<24x24xf32>
    %4 = vector.extract_strided_slice %1 {offsets = [0, 2], sizes = [24, 24], strides = [1, 1]} : vector<24x42xf32> to vector<24x24xf32>
    %5 = vector.extract_strided_slice %1 {offsets = [0, 6], sizes = [24, 24], strides = [1, 1]} : vector<24x42xf32> to vector<24x24xf32>
    %6 = vector.extract_strided_slice %1 {offsets = [0, 7], sizes = [24, 24], strides = [1, 1]} : vector<24x42xf32> to vector<24x24xf32>
    %7 = vector.extract_strided_slice %1 {offsets = [0, 8], sizes = [24, 24], strides = [1, 1]} : vector<24x42xf32> to vector<24x24xf32>
    %8 = vector.extract_strided_slice %1 {offsets = [0, 12], sizes = [24, 24], strides = [1, 1]} : vector<24x42xf32> to vector<24x24xf32>
    %9 = vector.extract_strided_slice %1 {offsets = [0, 13], sizes = [24, 24], strides = [1, 1]} : vector<24x42xf32> to vector<24x24xf32>
    %10 = vector.extract_strided_slice %1 {offsets = [0, 14], sizes = [24, 24], strides = [1, 1]} : vector<24x42xf32> to vector<24x24xf32>
    %11 = tpu.concatenate %2, %3, %4, %5, %6, %7, %8, %9, %10 in 0 : vector<24x24xf32>, vector<24x24xf32>, vector<24x24xf32>, vector<24x24xf32>, vector<24x24xf32>, vector<24x24xf32>, vector<24x24xf32>, vector<24x24xf32>, vector<24x24xf32> -> vector<216x24xf32>
    %c0_2 = arith.constant 0 : index
    %c0_3 = arith.constant 0 : index
    %12 = vector.load %arg2[%c0_2, %c0_3] : memref<12x216xf32, #tpu.memory_space<vmem>>, vector<12x216xf32>
    %cst = arith.constant dense<0.000000e+00> : vector<12x24xf32>
    %13 = tpu.matmul %12, %11, %cst {dimension_numbers = #tpu.dot_dimension_numbers<[1], [0], [0], [1], [0, 0, 1, 1], [], []>} : vector<12x216xf32>, vector<216x24xf32>, vector<12x24xf32> -> vector<12x24xf32>
    %c0_4 = arith.constant 0 : index
    %c0_5 = arith.constant 0 : index
    %14 = vector.load %arg3[%c0_4, %c0_5] : memref<12x1xf32, #tpu.memory_space<vmem>>, vector<12x1xf32>
    %15 = vector.broadcast %14 : vector<12x1xf32> to vector<12x24xf32>
    %16 = arith.mulf %13, %15 : vector<12x24xf32>
    %c0_6 = arith.constant 0 : index
    %c0_7 = arith.constant 0 : index
    %17 = vector.load %arg4[%c0_6, %c0_7] : memref<12x1xf32, #tpu.memory_space<vmem>>, vector<12x1xf32>
    %18 = vector.broadcast %17 : vector<12x1xf32> to vector<12x24xf32>
    %19 = arith.addf %16, %18 : vector<12x24xf32>
    %cst_8 = arith.constant 0.000000e+00 : f32
    %20 = vector.broadcast %cst_8 : f32 to vector<12x24xf32>
    %21 = arith.maximumf %19, %20 : vector<12x24xf32>
    %c0_9 = arith.constant 0 : index
    %c0_10 = arith.constant 0 : index
    %c0_11 = arith.constant 0 : index
    %22 = vector.load %arg5[%c0_9, %c0_10, %c0_11] : memref<1x12x24xf32, #tpu.memory_space<vmem>>, vector<1x12x24xf32>
    %23 = vector.shape_cast %22 : vector<1x12x24xf32> to vector<12x24xf32>
    %24 = vector.shape_cast %21 : vector<12x24xf32> to vector<1x12x24xf32>
    tpu.vector_store %arg5[%c0_9, %c0_10, %c0_11], %24 {strides = array<i32>} : memref<1x12x24xf32, #tpu.memory_space<vmem>>, vector<1x12x24xf32>,
    return
  }
  func.func @transform_0(%arg0: i32) -> (i32, i32, i32) {
    %c0_i32 = arith.constant 0 : i32
    %c0_i32_0 = arith.constant 0 : i32
    %c0_i32_1 = arith.constant 0 : i32
    return %arg0, %c0_i32, %c0_i32_0 : i32, i32, i32
  }
  func.func @transform_1(%arg0: i32) -> (i32, i32) {
    %c0_i32 = arith.constant 0 : i32
    %c0_i32_0 = arith.constant 0 : i32
    %c0_i32_1 = arith.constant 0 : i32
    return %c0_i32, %c0_i32_0 : i32, i32
  }
  func.func @transform_2(%arg0: i32) -> (i32, i32) {
    %c0_i32 = arith.constant 0 : i32
    %c0_i32_0 = arith.constant 0 : i32
    %c0_i32_1 = arith.constant 0 : i32
    return %c0_i32, %c0_i32_0 : i32, i32
  }
  func.func @transform_3(%arg0: i32) -> (i32, i32) {
    %c0_i32 = arith.constant 0 : i32
    %c0_i32_0 = arith.constant 0 : i32
    %c0_i32_1 = arith.constant 0 : i32
    return %c0_i32, %c0_i32_0 : i32, i32
  }
  func.func @transform_4(%arg0: i32) -> (i32, i32, i32) {
    %c0_i32 = arith.constant 0 : i32
    %c0_i32_0 = arith.constant 0 : i32
    %c0_i32_1 = arith.constant 0 : i32
    return %arg0, %c0_i32, %c0_i32_0 : i32, i32, i32
  }
}

module attributes {stable_mosaic.version = 11 : i64} {
  func.func @_upsample_kernel(%arg0: i32, %arg1: memref<8x4xf32, #tpu.memory_space<vmem>>, %arg2: memref<4x8xf32, #tpu.memory_space<vmem>>, %arg3: memref<1x12x4x4xf32, #tpu.memory_space<vmem>>, %arg4: memref<1x12x8x8xf32, #tpu.memory_space<vmem>>) attributes {dimension_semantics = [#tpu.dimension_semantics<parallel>], iteration_bounds = array<i64: 2>, scalar_prefetch = 0 : i64, scratch_operands = 0 : i64, tpu.core_type = #tpu.core_type<tc>, window_params = [{pipeline_mode = #tpu.pipeline_mode<synchronous>, transform_indices = @transform_0, window_bounds = array<i64: 8, 4>}, {pipeline_mode = #tpu.pipeline_mode<synchronous>, transform_indices = @transform_1, window_bounds = array<i64: 4, 8>}, {transform_indices = @transform_2, window_bounds = array<i64: 1, 12, 4, 4>}, {transform_indices = @transform_3, window_bounds = array<i64: 1, 12, 8, 8>}]} {
    %c0 = arith.constant 0 : index
    %c0_0 = arith.constant 0 : index
    %0 = vector.load %arg1[%c0, %c0_0] : memref<8x4xf32, #tpu.memory_space<vmem>>, vector<8x4xf32>
    %c0_1 = arith.constant 0 : index
    %c0_2 = arith.constant 0 : index
    %1 = vector.load %arg2[%c0_1, %c0_2] : memref<4x8xf32, #tpu.memory_space<vmem>>, vector<4x8xf32>
    %c0_3 = arith.constant 0 : index
    %c0_4 = arith.constant 0 : index
    %c0_5 = arith.constant 0 : index
    %c0_6 = arith.constant 0 : index
    %2 = vector.load %arg3[%c0_3, %c0_4, %c0_5, %c0_6] : memref<1x12x4x4xf32, #tpu.memory_space<vmem>>, vector<1x1x4x4xf32>
    %3 = vector.shape_cast %2 : vector<1x1x4x4xf32> to vector<4x4xf32>
    %cst = arith.constant dense<0.000000e+00> : vector<8x4xf32>
    %4 = tpu.matmul %0, %3, %cst {dimension_numbers = #tpu.dot_dimension_numbers<[1], [0], [0], [1], [0, 0, 1, 1], [], []>} : vector<8x4xf32>, vector<4x4xf32>, vector<8x4xf32> -> vector<8x4xf32>
    %cst_7 = arith.constant dense<0.000000e+00> : vector<8x8xf32>
    %5 = tpu.matmul %4, %1, %cst_7 {dimension_numbers = #tpu.dot_dimension_numbers<[1], [0], [0], [1], [0, 0, 1, 1], [], []>} : vector<8x4xf32>, vector<4x8xf32>, vector<8x8xf32> -> vector<8x8xf32>
    %cst_8 = arith.constant 0.000000e+00 : f32
    %cst_9 = arith.constant 2.550000e+02 : f32
    %6 = vector.broadcast %cst_8 : f32 to vector<8x8xf32>
    %7 = arith.maximumf %6, %5 : vector<8x8xf32>
    %8 = vector.broadcast %cst_9 : f32 to vector<8x8xf32>
    %9 = arith.minimumf %8, %7 : vector<8x8xf32>
    %c0_10 = arith.constant 0 : index
    %c0_11 = arith.constant 0 : index
    %c0_12 = arith.constant 0 : index
    %c0_13 = arith.constant 0 : index
    %10 = vector.load %arg4[%c0_10, %c0_11, %c0_12, %c0_13] : memref<1x12x8x8xf32, #tpu.memory_space<vmem>>, vector<1x1x8x8xf32>
    %11 = vector.shape_cast %10 : vector<1x1x8x8xf32> to vector<8x8xf32>
    %12 = vector.shape_cast %9 : vector<8x8xf32> to vector<1x1x8x8xf32>
    tpu.vector_store %arg4[%c0_10, %c0_11, %c0_12, %c0_13], %12 {strides = array<i32>} : memref<1x12x8x8xf32, #tpu.memory_space<vmem>>, vector<1x1x8x8xf32>,
    %c0_14 = arith.constant 0 : index
    %c1 = arith.constant 1 : index
    %c0_15 = arith.constant 0 : index
    %c0_16 = arith.constant 0 : index
    %13 = vector.load %arg3[%c0_14, %c1, %c0_15, %c0_16] : memref<1x12x4x4xf32, #tpu.memory_space<vmem>>, vector<1x1x4x4xf32>
    %14 = vector.shape_cast %13 : vector<1x1x4x4xf32> to vector<4x4xf32>
    %cst_17 = arith.constant dense<0.000000e+00> : vector<8x4xf32>
    %15 = tpu.matmul %0, %14, %cst_17 {dimension_numbers = #tpu.dot_dimension_numbers<[1], [0], [0], [1], [0, 0, 1, 1], [], []>} : vector<8x4xf32>, vector<4x4xf32>, vector<8x4xf32> -> vector<8x4xf32>
    %cst_18 = arith.constant dense<0.000000e+00> : vector<8x8xf32>
    %16 = tpu.matmul %15, %1, %cst_18 {dimension_numbers = #tpu.dot_dimension_numbers<[1], [0], [0], [1], [0, 0, 1, 1], [], []>} : vector<8x4xf32>, vector<4x8xf32>, vector<8x8xf32> -> vector<8x8xf32>
    %cst_19 = arith.constant 0.000000e+00 : f32
    %cst_20 = arith.constant 2.550000e+02 : f32
    %17 = vector.broadcast %cst_19 : f32 to vector<8x8xf32>
    %18 = arith.maximumf %17, %16 : vector<8x8xf32>
    %19 = vector.broadcast %cst_20 : f32 to vector<8x8xf32>
    %20 = arith.minimumf %19, %18 : vector<8x8xf32>
    %c0_21 = arith.constant 0 : index
    %c1_22 = arith.constant 1 : index
    %c0_23 = arith.constant 0 : index
    %c0_24 = arith.constant 0 : index
    %21 = vector.load %arg4[%c0_21, %c1_22, %c0_23, %c0_24] : memref<1x12x8x8xf32, #tpu.memory_space<vmem>>, vector<1x1x8x8xf32>
    %22 = vector.shape_cast %21 : vector<1x1x8x8xf32> to vector<8x8xf32>
    %23 = vector.shape_cast %20 : vector<8x8xf32> to vector<1x1x8x8xf32>
    tpu.vector_store %arg4[%c0_21, %c1_22, %c0_23, %c0_24], %23 {strides = array<i32>} : memref<1x12x8x8xf32, #tpu.memory_space<vmem>>, vector<1x1x8x8xf32>,
    %c0_25 = arith.constant 0 : index
    %c2 = arith.constant 2 : index
    %c0_26 = arith.constant 0 : index
    %c0_27 = arith.constant 0 : index
    %24 = vector.load %arg3[%c0_25, %c2, %c0_26, %c0_27] : memref<1x12x4x4xf32, #tpu.memory_space<vmem>>, vector<1x1x4x4xf32>
    %25 = vector.shape_cast %24 : vector<1x1x4x4xf32> to vector<4x4xf32>
    %cst_28 = arith.constant dense<0.000000e+00> : vector<8x4xf32>
    %26 = tpu.matmul %0, %25, %cst_28 {dimension_numbers = #tpu.dot_dimension_numbers<[1], [0], [0], [1], [0, 0, 1, 1], [], []>} : vector<8x4xf32>, vector<4x4xf32>, vector<8x4xf32> -> vector<8x4xf32>
    %cst_29 = arith.constant dense<0.000000e+00> : vector<8x8xf32>
    %27 = tpu.matmul %26, %1, %cst_29 {dimension_numbers = #tpu.dot_dimension_numbers<[1], [0], [0], [1], [0, 0, 1, 1], [], []>} : vector<8x4xf32>, vector<4x8xf32>, vector<8x8xf32> -> vector<8x8xf32>
    %cst_30 = arith.constant 0.000000e+00 : f32
    %cst_31 = arith.constant 2.550000e+02 : f32
    %28 = vector.broadcast %cst_30 : f32 to vector<8x8xf32>
    %29 = arith.maximumf %28, %27 : vector<8x8xf32>
    %30 = vector.broadcast %cst_31 : f32 to vector<8x8xf32>
    %31 = arith.minimumf %30, %29 : vector<8x8xf32>
    %c0_32 = arith.constant 0 : index
    %c2_33 = arith.constant 2 : index
    %c0_34 = arith.constant 0 : index
    %c0_35 = arith.constant 0 : index
    %32 = vector.load %arg4[%c0_32, %c2_33, %c0_34, %c0_35] : memref<1x12x8x8xf32, #tpu.memory_space<vmem>>, vector<1x1x8x8xf32>
    %33 = vector.shape_cast %32 : vector<1x1x8x8xf32> to vector<8x8xf32>
    %34 = vector.shape_cast %31 : vector<8x8xf32> to vector<1x1x8x8xf32>
    tpu.vector_store %arg4[%c0_32, %c2_33, %c0_34, %c0_35], %34 {strides = array<i32>} : memref<1x12x8x8xf32, #tpu.memory_space<vmem>>, vector<1x1x8x8xf32>,
    %c0_36 = arith.constant 0 : index
    %c3 = arith.constant 3 : index
    %c0_37 = arith.constant 0 : index
    %c0_38 = arith.constant 0 : index
    %35 = vector.load %arg3[%c0_36, %c3, %c0_37, %c0_38] : memref<1x12x4x4xf32, #tpu.memory_space<vmem>>, vector<1x1x4x4xf32>
    %36 = vector.shape_cast %35 : vector<1x1x4x4xf32> to vector<4x4xf32>
    %cst_39 = arith.constant dense<0.000000e+00> : vector<8x4xf32>
    %37 = tpu.matmul %0, %36, %cst_39 {dimension_numbers = #tpu.dot_dimension_numbers<[1], [0], [0], [1], [0, 0, 1, 1], [], []>} : vector<8x4xf32>, vector<4x4xf32>, vector<8x4xf32> -> vector<8x4xf32>
    %cst_40 = arith.constant dense<0.000000e+00> : vector<8x8xf32>
    %38 = tpu.matmul %37, %1, %cst_40 {dimension_numbers = #tpu.dot_dimension_numbers<[1], [0], [0], [1], [0, 0, 1, 1], [], []>} : vector<8x4xf32>, vector<4x8xf32>, vector<8x8xf32> -> vector<8x8xf32>
    %cst_41 = arith.constant 0.000000e+00 : f32
    %cst_42 = arith.constant 2.550000e+02 : f32
    %39 = vector.broadcast %cst_41 : f32 to vector<8x8xf32>
    %40 = arith.maximumf %39, %38 : vector<8x8xf32>
    %41 = vector.broadcast %cst_42 : f32 to vector<8x8xf32>
    %42 = arith.minimumf %41, %40 : vector<8x8xf32>
    %c0_43 = arith.constant 0 : index
    %c3_44 = arith.constant 3 : index
    %c0_45 = arith.constant 0 : index
    %c0_46 = arith.constant 0 : index
    %43 = vector.load %arg4[%c0_43, %c3_44, %c0_45, %c0_46] : memref<1x12x8x8xf32, #tpu.memory_space<vmem>>, vector<1x1x8x8xf32>
    %44 = vector.shape_cast %43 : vector<1x1x8x8xf32> to vector<8x8xf32>
    %45 = vector.shape_cast %42 : vector<8x8xf32> to vector<1x1x8x8xf32>
    tpu.vector_store %arg4[%c0_43, %c3_44, %c0_45, %c0_46], %45 {strides = array<i32>} : memref<1x12x8x8xf32, #tpu.memory_space<vmem>>, vector<1x1x8x8xf32>,
    %c0_47 = arith.constant 0 : index
    %c4 = arith.constant 4 : index
    %c0_48 = arith.constant 0 : index
    %c0_49 = arith.constant 0 : index
    %46 = vector.load %arg3[%c0_47, %c4, %c0_48, %c0_49] : memref<1x12x4x4xf32, #tpu.memory_space<vmem>>, vector<1x1x4x4xf32>
    %47 = vector.shape_cast %46 : vector<1x1x4x4xf32> to vector<4x4xf32>
    %cst_50 = arith.constant dense<0.000000e+00> : vector<8x4xf32>
    %48 = tpu.matmul %0, %47, %cst_50 {dimension_numbers = #tpu.dot_dimension_numbers<[1], [0], [0], [1], [0, 0, 1, 1], [], []>} : vector<8x4xf32>, vector<4x4xf32>, vector<8x4xf32> -> vector<8x4xf32>
    %cst_51 = arith.constant dense<0.000000e+00> : vector<8x8xf32>
    %49 = tpu.matmul %48, %1, %cst_51 {dimension_numbers = #tpu.dot_dimension_numbers<[1], [0], [0], [1], [0, 0, 1, 1], [], []>} : vector<8x4xf32>, vector<4x8xf32>, vector<8x8xf32> -> vector<8x8xf32>
    %cst_52 = arith.constant 0.000000e+00 : f32
    %cst_53 = arith.constant 2.550000e+02 : f32
    %50 = vector.broadcast %cst_52 : f32 to vector<8x8xf32>
    %51 = arith.maximumf %50, %49 : vector<8x8xf32>
    %52 = vector.broadcast %cst_53 : f32 to vector<8x8xf32>
    %53 = arith.minimumf %52, %51 : vector<8x8xf32>
    %c0_54 = arith.constant 0 : index
    %c4_55 = arith.constant 4 : index
    %c0_56 = arith.constant 0 : index
    %c0_57 = arith.constant 0 : index
    %54 = vector.load %arg4[%c0_54, %c4_55, %c0_56, %c0_57] : memref<1x12x8x8xf32, #tpu.memory_space<vmem>>, vector<1x1x8x8xf32>
    %55 = vector.shape_cast %54 : vector<1x1x8x8xf32> to vector<8x8xf32>
    %56 = vector.shape_cast %53 : vector<8x8xf32> to vector<1x1x8x8xf32>
    tpu.vector_store %arg4[%c0_54, %c4_55, %c0_56, %c0_57], %56 {strides = array<i32>} : memref<1x12x8x8xf32, #tpu.memory_space<vmem>>, vector<1x1x8x8xf32>,
    %c0_58 = arith.constant 0 : index
    %c5 = arith.constant 5 : index
    %c0_59 = arith.constant 0 : index
    %c0_60 = arith.constant 0 : index
    %57 = vector.load %arg3[%c0_58, %c5, %c0_59, %c0_60] : memref<1x12x4x4xf32, #tpu.memory_space<vmem>>, vector<1x1x4x4xf32>
    %58 = vector.shape_cast %57 : vector<1x1x4x4xf32> to vector<4x4xf32>
    %cst_61 = arith.constant dense<0.000000e+00> : vector<8x4xf32>
    %59 = tpu.matmul %0, %58, %cst_61 {dimension_numbers = #tpu.dot_dimension_numbers<[1], [0], [0], [1], [0, 0, 1, 1], [], []>} : vector<8x4xf32>, vector<4x4xf32>, vector<8x4xf32> -> vector<8x4xf32>
    %cst_62 = arith.constant dense<0.000000e+00> : vector<8x8xf32>
    %60 = tpu.matmul %59, %1, %cst_62 {dimension_numbers = #tpu.dot_dimension_numbers<[1], [0], [0], [1], [0, 0, 1, 1], [], []>} : vector<8x4xf32>, vector<4x8xf32>, vector<8x8xf32> -> vector<8x8xf32>
    %cst_63 = arith.constant 0.000000e+00 : f32
    %cst_64 = arith.constant 2.550000e+02 : f32
    %61 = vector.broadcast %cst_63 : f32 to vector<8x8xf32>
    %62 = arith.maximumf %61, %60 : vector<8x8xf32>
    %63 = vector.broadcast %cst_64 : f32 to vector<8x8xf32>
    %64 = arith.minimumf %63, %62 : vector<8x8xf32>
    %c0_65 = arith.constant 0 : index
    %c5_66 = arith.constant 5 : index
    %c0_67 = arith.constant 0 : index
    %c0_68 = arith.constant 0 : index
    %65 = vector.load %arg4[%c0_65, %c5_66, %c0_67, %c0_68] : memref<1x12x8x8xf32, #tpu.memory_space<vmem>>, vector<1x1x8x8xf32>
    %66 = vector.shape_cast %65 : vector<1x1x8x8xf32> to vector<8x8xf32>
    %67 = vector.shape_cast %64 : vector<8x8xf32> to vector<1x1x8x8xf32>
    tpu.vector_store %arg4[%c0_65, %c5_66, %c0_67, %c0_68], %67 {strides = array<i32>} : memref<1x12x8x8xf32, #tpu.memory_space<vmem>>, vector<1x1x8x8xf32>,
    %c0_69 = arith.constant 0 : index
    %c6 = arith.constant 6 : index
    %c0_70 = arith.constant 0 : index
    %c0_71 = arith.constant 0 : index
    %68 = vector.load %arg3[%c0_69, %c6, %c0_70, %c0_71] : memref<1x12x4x4xf32, #tpu.memory_space<vmem>>, vector<1x1x4x4xf32>
    %69 = vector.shape_cast %68 : vector<1x1x4x4xf32> to vector<4x4xf32>
    %cst_72 = arith.constant dense<0.000000e+00> : vector<8x4xf32>
    %70 = tpu.matmul %0, %69, %cst_72 {dimension_numbers = #tpu.dot_dimension_numbers<[1], [0], [0], [1], [0, 0, 1, 1], [], []>} : vector<8x4xf32>, vector<4x4xf32>, vector<8x4xf32> -> vector<8x4xf32>
    %cst_73 = arith.constant dense<0.000000e+00> : vector<8x8xf32>
    %71 = tpu.matmul %70, %1, %cst_73 {dimension_numbers = #tpu.dot_dimension_numbers<[1], [0], [0], [1], [0, 0, 1, 1], [], []>} : vector<8x4xf32>, vector<4x8xf32>, vector<8x8xf32> -> vector<8x8xf32>
    %cst_74 = arith.constant 0.000000e+00 : f32
    %cst_75 = arith.constant 2.550000e+02 : f32
    %72 = vector.broadcast %cst_74 : f32 to vector<8x8xf32>
    %73 = arith.maximumf %72, %71 : vector<8x8xf32>
    %74 = vector.broadcast %cst_75 : f32 to vector<8x8xf32>
    %75 = arith.minimumf %74, %73 : vector<8x8xf32>
    %c0_76 = arith.constant 0 : index
    %c6_77 = arith.constant 6 : index
    %c0_78 = arith.constant 0 : index
    %c0_79 = arith.constant 0 : index
    %76 = vector.load %arg4[%c0_76, %c6_77, %c0_78, %c0_79] : memref<1x12x8x8xf32, #tpu.memory_space<vmem>>, vector<1x1x8x8xf32>
    %77 = vector.shape_cast %76 : vector<1x1x8x8xf32> to vector<8x8xf32>
    %78 = vector.shape_cast %75 : vector<8x8xf32> to vector<1x1x8x8xf32>
    tpu.vector_store %arg4[%c0_76, %c6_77, %c0_78, %c0_79], %78 {strides = array<i32>} : memref<1x12x8x8xf32, #tpu.memory_space<vmem>>, vector<1x1x8x8xf32>,
    %c0_80 = arith.constant 0 : index
    %c7 = arith.constant 7 : index
    %c0_81 = arith.constant 0 : index
    %c0_82 = arith.constant 0 : index
    %79 = vector.load %arg3[%c0_80, %c7, %c0_81, %c0_82] : memref<1x12x4x4xf32, #tpu.memory_space<vmem>>, vector<1x1x4x4xf32>
    %80 = vector.shape_cast %79 : vector<1x1x4x4xf32> to vector<4x4xf32>
    %cst_83 = arith.constant dense<0.000000e+00> : vector<8x4xf32>
    %81 = tpu.matmul %0, %80, %cst_83 {dimension_numbers = #tpu.dot_dimension_numbers<[1], [0], [0], [1], [0, 0, 1, 1], [], []>} : vector<8x4xf32>, vector<4x4xf32>, vector<8x4xf32> -> vector<8x4xf32>
    %cst_84 = arith.constant dense<0.000000e+00> : vector<8x8xf32>
    %82 = tpu.matmul %81, %1, %cst_84 {dimension_numbers = #tpu.dot_dimension_numbers<[1], [0], [0], [1], [0, 0, 1, 1], [], []>} : vector<8x4xf32>, vector<4x8xf32>, vector<8x8xf32> -> vector<8x8xf32>
    %cst_85 = arith.constant 0.000000e+00 : f32
    %cst_86 = arith.constant 2.550000e+02 : f32
    %83 = vector.broadcast %cst_85 : f32 to vector<8x8xf32>
    %84 = arith.maximumf %83, %82 : vector<8x8xf32>
    %85 = vector.broadcast %cst_86 : f32 to vector<8x8xf32>
    %86 = arith.minimumf %85, %84 : vector<8x8xf32>
    %c0_87 = arith.constant 0 : index
    %c7_88 = arith.constant 7 : index
    %c0_89 = arith.constant 0 : index
    %c0_90 = arith.constant 0 : index
    %87 = vector.load %arg4[%c0_87, %c7_88, %c0_89, %c0_90] : memref<1x12x8x8xf32, #tpu.memory_space<vmem>>, vector<1x1x8x8xf32>
    %88 = vector.shape_cast %87 : vector<1x1x8x8xf32> to vector<8x8xf32>
    %89 = vector.shape_cast %86 : vector<8x8xf32> to vector<1x1x8x8xf32>
    tpu.vector_store %arg4[%c0_87, %c7_88, %c0_89, %c0_90], %89 {strides = array<i32>} : memref<1x12x8x8xf32, #tpu.memory_space<vmem>>, vector<1x1x8x8xf32>,
    %c0_91 = arith.constant 0 : index
    %c8 = arith.constant 8 : index
    %c0_92 = arith.constant 0 : index
    %c0_93 = arith.constant 0 : index
    %90 = vector.load %arg3[%c0_91, %c8, %c0_92, %c0_93] : memref<1x12x4x4xf32, #tpu.memory_space<vmem>>, vector<1x1x4x4xf32>
    %91 = vector.shape_cast %90 : vector<1x1x4x4xf32> to vector<4x4xf32>
    %cst_94 = arith.constant dense<0.000000e+00> : vector<8x4xf32>
    %92 = tpu.matmul %0, %91, %cst_94 {dimension_numbers = #tpu.dot_dimension_numbers<[1], [0], [0], [1], [0, 0, 1, 1], [], []>} : vector<8x4xf32>, vector<4x4xf32>, vector<8x4xf32> -> vector<8x4xf32>
    %cst_95 = arith.constant dense<0.000000e+00> : vector<8x8xf32>
    %93 = tpu.matmul %92, %1, %cst_95 {dimension_numbers = #tpu.dot_dimension_numbers<[1], [0], [0], [1], [0, 0, 1, 1], [], []>} : vector<8x4xf32>, vector<4x8xf32>, vector<8x8xf32> -> vector<8x8xf32>
    %cst_96 = arith.constant 0.000000e+00 : f32
    %cst_97 = arith.constant 2.550000e+02 : f32
    %94 = vector.broadcast %cst_96 : f32 to vector<8x8xf32>
    %95 = arith.maximumf %94, %93 : vector<8x8xf32>
    %96 = vector.broadcast %cst_97 : f32 to vector<8x8xf32>
    %97 = arith.minimumf %96, %95 : vector<8x8xf32>
    %c0_98 = arith.constant 0 : index
    %c8_99 = arith.constant 8 : index
    %c0_100 = arith.constant 0 : index
    %c0_101 = arith.constant 0 : index
    %98 = vector.load %arg4[%c0_98, %c8_99, %c0_100, %c0_101] : memref<1x12x8x8xf32, #tpu.memory_space<vmem>>, vector<1x1x8x8xf32>
    %99 = vector.shape_cast %98 : vector<1x1x8x8xf32> to vector<8x8xf32>
    %100 = vector.shape_cast %97 : vector<8x8xf32> to vector<1x1x8x8xf32>
    tpu.vector_store %arg4[%c0_98, %c8_99, %c0_100, %c0_101], %100 {strides = array<i32>} : memref<1x12x8x8xf32, #tpu.memory_space<vmem>>, vector<1x1x8x8xf32>,
    %c0_102 = arith.constant 0 : index
    %c9 = arith.constant 9 : index
    %c0_103 = arith.constant 0 : index
    %c0_104 = arith.constant 0 : index
    %101 = vector.load %arg3[%c0_102, %c9, %c0_103, %c0_104] : memref<1x12x4x4xf32, #tpu.memory_space<vmem>>, vector<1x1x4x4xf32>
    %102 = vector.shape_cast %101 : vector<1x1x4x4xf32> to vector<4x4xf32>
    %cst_105 = arith.constant dense<0.000000e+00> : vector<8x4xf32>
    %103 = tpu.matmul %0, %102, %cst_105 {dimension_numbers = #tpu.dot_dimension_numbers<[1], [0], [0], [1], [0, 0, 1, 1], [], []>} : vector<8x4xf32>, vector<4x4xf32>, vector<8x4xf32> -> vector<8x4xf32>
    %cst_106 = arith.constant dense<0.000000e+00> : vector<8x8xf32>
    %104 = tpu.matmul %103, %1, %cst_106 {dimension_numbers = #tpu.dot_dimension_numbers<[1], [0], [0], [1], [0, 0, 1, 1], [], []>} : vector<8x4xf32>, vector<4x8xf32>, vector<8x8xf32> -> vector<8x8xf32>
    %cst_107 = arith.constant 0.000000e+00 : f32
    %cst_108 = arith.constant 2.550000e+02 : f32
    %105 = vector.broadcast %cst_107 : f32 to vector<8x8xf32>
    %106 = arith.maximumf %105, %104 : vector<8x8xf32>
    %107 = vector.broadcast %cst_108 : f32 to vector<8x8xf32>
    %108 = arith.minimumf %107, %106 : vector<8x8xf32>
    %c0_109 = arith.constant 0 : index
    %c9_110 = arith.constant 9 : index
    %c0_111 = arith.constant 0 : index
    %c0_112 = arith.constant 0 : index
    %109 = vector.load %arg4[%c0_109, %c9_110, %c0_111, %c0_112] : memref<1x12x8x8xf32, #tpu.memory_space<vmem>>, vector<1x1x8x8xf32>
    %110 = vector.shape_cast %109 : vector<1x1x8x8xf32> to vector<8x8xf32>
    %111 = vector.shape_cast %108 : vector<8x8xf32> to vector<1x1x8x8xf32>
    tpu.vector_store %arg4[%c0_109, %c9_110, %c0_111, %c0_112], %111 {strides = array<i32>} : memref<1x12x8x8xf32, #tpu.memory_space<vmem>>, vector<1x1x8x8xf32>,
    %c0_113 = arith.constant 0 : index
    %c10 = arith.constant 10 : index
    %c0_114 = arith.constant 0 : index
    %c0_115 = arith.constant 0 : index
    %112 = vector.load %arg3[%c0_113, %c10, %c0_114, %c0_115] : memref<1x12x4x4xf32, #tpu.memory_space<vmem>>, vector<1x1x4x4xf32>
    %113 = vector.shape_cast %112 : vector<1x1x4x4xf32> to vector<4x4xf32>
    %cst_116 = arith.constant dense<0.000000e+00> : vector<8x4xf32>
    %114 = tpu.matmul %0, %113, %cst_116 {dimension_numbers = #tpu.dot_dimension_numbers<[1], [0], [0], [1], [0, 0, 1, 1], [], []>} : vector<8x4xf32>, vector<4x4xf32>, vector<8x4xf32> -> vector<8x4xf32>
    %cst_117 = arith.constant dense<0.000000e+00> : vector<8x8xf32>
    %115 = tpu.matmul %114, %1, %cst_117 {dimension_numbers = #tpu.dot_dimension_numbers<[1], [0], [0], [1], [0, 0, 1, 1], [], []>} : vector<8x4xf32>, vector<4x8xf32>, vector<8x8xf32> -> vector<8x8xf32>
    %cst_118 = arith.constant 0.000000e+00 : f32
    %cst_119 = arith.constant 2.550000e+02 : f32
    %116 = vector.broadcast %cst_118 : f32 to vector<8x8xf32>
    %117 = arith.maximumf %116, %115 : vector<8x8xf32>
    %118 = vector.broadcast %cst_119 : f32 to vector<8x8xf32>
    %119 = arith.minimumf %118, %117 : vector<8x8xf32>
    %c0_120 = arith.constant 0 : index
    %c10_121 = arith.constant 10 : index
    %c0_122 = arith.constant 0 : index
    %c0_123 = arith.constant 0 : index
    %120 = vector.load %arg4[%c0_120, %c10_121, %c0_122, %c0_123] : memref<1x12x8x8xf32, #tpu.memory_space<vmem>>, vector<1x1x8x8xf32>
    %121 = vector.shape_cast %120 : vector<1x1x8x8xf32> to vector<8x8xf32>
    %122 = vector.shape_cast %119 : vector<8x8xf32> to vector<1x1x8x8xf32>
    tpu.vector_store %arg4[%c0_120, %c10_121, %c0_122, %c0_123], %122 {strides = array<i32>} : memref<1x12x8x8xf32, #tpu.memory_space<vmem>>, vector<1x1x8x8xf32>,
    %c0_124 = arith.constant 0 : index
    %c11 = arith.constant 11 : index
    %c0_125 = arith.constant 0 : index
    %c0_126 = arith.constant 0 : index
    %123 = vector.load %arg3[%c0_124, %c11, %c0_125, %c0_126] : memref<1x12x4x4xf32, #tpu.memory_space<vmem>>, vector<1x1x4x4xf32>
    %124 = vector.shape_cast %123 : vector<1x1x4x4xf32> to vector<4x4xf32>
    %cst_127 = arith.constant dense<0.000000e+00> : vector<8x4xf32>
    %125 = tpu.matmul %0, %124, %cst_127 {dimension_numbers = #tpu.dot_dimension_numbers<[1], [0], [0], [1], [0, 0, 1, 1], [], []>} : vector<8x4xf32>, vector<4x4xf32>, vector<8x4xf32> -> vector<8x4xf32>
    %cst_128 = arith.constant dense<0.000000e+00> : vector<8x8xf32>
    %126 = tpu.matmul %125, %1, %cst_128 {dimension_numbers = #tpu.dot_dimension_numbers<[1], [0], [0], [1], [0, 0, 1, 1], [], []>} : vector<8x4xf32>, vector<4x8xf32>, vector<8x8xf32> -> vector<8x8xf32>
    %cst_129 = arith.constant 0.000000e+00 : f32
    %cst_130 = arith.constant 2.550000e+02 : f32
    %127 = vector.broadcast %cst_129 : f32 to vector<8x8xf32>
    %128 = arith.maximumf %127, %126 : vector<8x8xf32>
    %129 = vector.broadcast %cst_130 : f32 to vector<8x8xf32>
    %130 = arith.minimumf %129, %128 : vector<8x8xf32>
    %c0_131 = arith.constant 0 : index
    %c11_132 = arith.constant 11 : index
    %c0_133 = arith.constant 0 : index
    %c0_134 = arith.constant 0 : index
    %131 = vector.load %arg4[%c0_131, %c11_132, %c0_133, %c0_134] : memref<1x12x8x8xf32, #tpu.memory_space<vmem>>, vector<1x1x8x8xf32>
    %132 = vector.shape_cast %131 : vector<1x1x8x8xf32> to vector<8x8xf32>
    %133 = vector.shape_cast %130 : vector<8x8xf32> to vector<1x1x8x8xf32>
    tpu.vector_store %arg4[%c0_131, %c11_132, %c0_133, %c0_134], %133 {strides = array<i32>} : memref<1x12x8x8xf32, #tpu.memory_space<vmem>>, vector<1x1x8x8xf32>,
    return
  }
  func.func @transform_0(%arg0: i32) -> (i32, i32) {
    %c0_i32 = arith.constant 0 : i32
    %c0_i32_0 = arith.constant 0 : i32
    %c0_i32_1 = arith.constant 0 : i32
    return %c0_i32, %c0_i32_0 : i32, i32
  }
  func.func @transform_1(%arg0: i32) -> (i32, i32) {
    %c0_i32 = arith.constant 0 : i32
    %c0_i32_0 = arith.constant 0 : i32
    %c0_i32_1 = arith.constant 0 : i32
    return %c0_i32, %c0_i32_0 : i32, i32
  }
  func.func @transform_2(%arg0: i32) -> (i32, i32, i32, i32) {
    %c0_i32 = arith.constant 0 : i32
    %c0_i32_0 = arith.constant 0 : i32
    %c0_i32_1 = arith.constant 0 : i32
    %c0_i32_2 = arith.constant 0 : i32
    return %arg0, %c0_i32, %c0_i32_0, %c0_i32_1 : i32, i32, i32, i32
  }
  func.func @transform_3(%arg0: i32) -> (i32, i32, i32, i32) {
    %c0_i32 = arith.constant 0 : i32
    %c0_i32_0 = arith.constant 0 : i32
    %c0_i32_1 = arith.constant 0 : i32
    %c0_i32_2 = arith.constant 0 : i32
    return %arg0, %c0_i32, %c0_i32_0, %c0_i32_1 : i32, i32, i32, i32
  }
}

module attributes {stable_mosaic.version = 11 : i64} {
  func.func @_rebnconv_kernel(%arg0: i32, %arg1: memref<1x24x110xf32, #tpu.memory_space<vmem>>, %arg2: memref<12x216xf32, #tpu.memory_space<vmem>>, %arg3: memref<12x1xf32, #tpu.memory_space<vmem>>, %arg4: memref<12x1xf32, #tpu.memory_space<vmem>>, %arg5: memref<1x12x80xf32, #tpu.memory_space<vmem>>) attributes {dimension_semantics = [#tpu.dimension_semantics<parallel>], iteration_bounds = array<i64: 2>, scalar_prefetch = 0 : i64, scratch_operands = 0 : i64, tpu.core_type = #tpu.core_type<tc>, window_params = [{transform_indices = @transform_0, window_bounds = array<i64: 1, 24, 110>}, {pipeline_mode = #tpu.pipeline_mode<synchronous>, transform_indices = @transform_1, window_bounds = array<i64: 12, 216>}, {pipeline_mode = #tpu.pipeline_mode<synchronous>, transform_indices = @transform_2, window_bounds = array<i64: 12, 1>}, {pipeline_mode = #tpu.pipeline_mode<synchronous>, transform_indices = @transform_3, window_bounds = array<i64: 12, 1>}, {transform_indices = @transform_4, window_bounds = array<i64: 1, 12, 80>}]} {
    %c0 = arith.constant 0 : index
    %c0_0 = arith.constant 0 : index
    %c0_1 = arith.constant 0 : index
    %0 = vector.load %arg1[%c0, %c0_0, %c0_1] : memref<1x24x110xf32, #tpu.memory_space<vmem>>, vector<1x24x110xf32>
    %1 = vector.shape_cast %0 : vector<1x24x110xf32> to vector<24x110xf32>
    %2 = vector.extract_strided_slice %1 {offsets = [0, 0], sizes = [24, 80], strides = [1, 1]} : vector<24x110xf32> to vector<24x80xf32>
    %3 = vector.extract_strided_slice %1 {offsets = [0, 1], sizes = [24, 80], strides = [1, 1]} : vector<24x110xf32> to vector<24x80xf32>
    %4 = vector.extract_strided_slice %1 {offsets = [0, 2], sizes = [24, 80], strides = [1, 1]} : vector<24x110xf32> to vector<24x80xf32>
    %5 = vector.extract_strided_slice %1 {offsets = [0, 10], sizes = [24, 80], strides = [1, 1]} : vector<24x110xf32> to vector<24x80xf32>
    %6 = vector.extract_strided_slice %1 {offsets = [0, 11], sizes = [24, 80], strides = [1, 1]} : vector<24x110xf32> to vector<24x80xf32>
    %7 = vector.extract_strided_slice %1 {offsets = [0, 12], sizes = [24, 80], strides = [1, 1]} : vector<24x110xf32> to vector<24x80xf32>
    %8 = vector.extract_strided_slice %1 {offsets = [0, 20], sizes = [24, 80], strides = [1, 1]} : vector<24x110xf32> to vector<24x80xf32>
    %9 = vector.extract_strided_slice %1 {offsets = [0, 21], sizes = [24, 80], strides = [1, 1]} : vector<24x110xf32> to vector<24x80xf32>
    %10 = vector.extract_strided_slice %1 {offsets = [0, 22], sizes = [24, 80], strides = [1, 1]} : vector<24x110xf32> to vector<24x80xf32>
    %11 = tpu.concatenate %2, %3, %4, %5, %6, %7, %8, %9, %10 in 0 : vector<24x80xf32>, vector<24x80xf32>, vector<24x80xf32>, vector<24x80xf32>, vector<24x80xf32>, vector<24x80xf32>, vector<24x80xf32>, vector<24x80xf32>, vector<24x80xf32> -> vector<216x80xf32>
    %c0_2 = arith.constant 0 : index
    %c0_3 = arith.constant 0 : index
    %12 = vector.load %arg2[%c0_2, %c0_3] : memref<12x216xf32, #tpu.memory_space<vmem>>, vector<12x216xf32>
    %cst = arith.constant dense<0.000000e+00> : vector<12x80xf32>
    %13 = tpu.matmul %12, %11, %cst {dimension_numbers = #tpu.dot_dimension_numbers<[1], [0], [0], [1], [0, 0, 1, 1], [], []>} : vector<12x216xf32>, vector<216x80xf32>, vector<12x80xf32> -> vector<12x80xf32>
    %c0_4 = arith.constant 0 : index
    %c0_5 = arith.constant 0 : index
    %14 = vector.load %arg3[%c0_4, %c0_5] : memref<12x1xf32, #tpu.memory_space<vmem>>, vector<12x1xf32>
    %15 = vector.broadcast %14 : vector<12x1xf32> to vector<12x80xf32>
    %16 = arith.mulf %13, %15 : vector<12x80xf32>
    %c0_6 = arith.constant 0 : index
    %c0_7 = arith.constant 0 : index
    %17 = vector.load %arg4[%c0_6, %c0_7] : memref<12x1xf32, #tpu.memory_space<vmem>>, vector<12x1xf32>
    %18 = vector.broadcast %17 : vector<12x1xf32> to vector<12x80xf32>
    %19 = arith.addf %16, %18 : vector<12x80xf32>
    %cst_8 = arith.constant 0.000000e+00 : f32
    %20 = vector.broadcast %cst_8 : f32 to vector<12x80xf32>
    %21 = arith.maximumf %19, %20 : vector<12x80xf32>
    %c0_9 = arith.constant 0 : index
    %c0_10 = arith.constant 0 : index
    %c0_11 = arith.constant 0 : index
    %22 = vector.load %arg5[%c0_9, %c0_10, %c0_11] : memref<1x12x80xf32, #tpu.memory_space<vmem>>, vector<1x12x80xf32>
    %23 = vector.shape_cast %22 : vector<1x12x80xf32> to vector<12x80xf32>
    %24 = vector.shape_cast %21 : vector<12x80xf32> to vector<1x12x80xf32>
    tpu.vector_store %arg5[%c0_9, %c0_10, %c0_11], %24 {strides = array<i32>} : memref<1x12x80xf32, #tpu.memory_space<vmem>>, vector<1x12x80xf32>,
    return
  }
  func.func @transform_0(%arg0: i32) -> (i32, i32, i32) {
    %c0_i32 = arith.constant 0 : i32
    %c0_i32_0 = arith.constant 0 : i32
    %c0_i32_1 = arith.constant 0 : i32
    return %arg0, %c0_i32, %c0_i32_0 : i32, i32, i32
  }
  func.func @transform_1(%arg0: i32) -> (i32, i32) {
    %c0_i32 = arith.constant 0 : i32
    %c0_i32_0 = arith.constant 0 : i32
    %c0_i32_1 = arith.constant 0 : i32
    return %c0_i32, %c0_i32_0 : i32, i32
  }
  func.func @transform_2(%arg0: i32) -> (i32, i32) {
    %c0_i32 = arith.constant 0 : i32
    %c0_i32_0 = arith.constant 0 : i32
    %c0_i32_1 = arith.constant 0 : i32
    return %c0_i32, %c0_i32_0 : i32, i32
  }
  func.func @transform_3(%arg0: i32) -> (i32, i32) {
    %c0_i32 = arith.constant 0 : i32
    %c0_i32_0 = arith.constant 0 : i32
    %c0_i32_1 = arith.constant 0 : i32
    return %c0_i32, %c0_i32_0 : i32, i32
  }
  func.func @transform_4(%arg0: i32) -> (i32, i32, i32) {
    %c0_i32 = arith.constant 0 : i32
    %c0_i32_0 = arith.constant 0 : i32
    %c0_i32_1 = arith.constant 0 : i32
    return %arg0, %c0_i32, %c0_i32_0 : i32, i32, i32
  }
}

module attributes {stable_mosaic.version = 11 : i64} {
  func.func @_upsample_kernel(%arg0: i32, %arg1: memref<16x8xf32, #tpu.memory_space<vmem>>, %arg2: memref<8x16xf32, #tpu.memory_space<vmem>>, %arg3: memref<1x12x8x8xf32, #tpu.memory_space<vmem>>, %arg4: memref<1x12x16x16xf32, #tpu.memory_space<vmem>>) attributes {dimension_semantics = [#tpu.dimension_semantics<parallel>], iteration_bounds = array<i64: 2>, scalar_prefetch = 0 : i64, scratch_operands = 0 : i64, tpu.core_type = #tpu.core_type<tc>, window_params = [{pipeline_mode = #tpu.pipeline_mode<synchronous>, transform_indices = @transform_0, window_bounds = array<i64: 16, 8>}, {pipeline_mode = #tpu.pipeline_mode<synchronous>, transform_indices = @transform_1, window_bounds = array<i64: 8, 16>}, {transform_indices = @transform_2, window_bounds = array<i64: 1, 12, 8, 8>}, {transform_indices = @transform_3, window_bounds = array<i64: 1, 12, 16, 16>}]} {
    %c0 = arith.constant 0 : index
    %c0_0 = arith.constant 0 : index
    %0 = vector.load %arg1[%c0, %c0_0] : memref<16x8xf32, #tpu.memory_space<vmem>>, vector<16x8xf32>
    %c0_1 = arith.constant 0 : index
    %c0_2 = arith.constant 0 : index
    %1 = vector.load %arg2[%c0_1, %c0_2] : memref<8x16xf32, #tpu.memory_space<vmem>>, vector<8x16xf32>
    %c0_3 = arith.constant 0 : index
    %c0_4 = arith.constant 0 : index
    %c0_5 = arith.constant 0 : index
    %c0_6 = arith.constant 0 : index
    %2 = vector.load %arg3[%c0_3, %c0_4, %c0_5, %c0_6] : memref<1x12x8x8xf32, #tpu.memory_space<vmem>>, vector<1x1x8x8xf32>
    %3 = vector.shape_cast %2 : vector<1x1x8x8xf32> to vector<8x8xf32>
    %cst = arith.constant dense<0.000000e+00> : vector<16x8xf32>
    %4 = tpu.matmul %0, %3, %cst {dimension_numbers = #tpu.dot_dimension_numbers<[1], [0], [0], [1], [0, 0, 1, 1], [], []>} : vector<16x8xf32>, vector<8x8xf32>, vector<16x8xf32> -> vector<16x8xf32>
    %cst_7 = arith.constant dense<0.000000e+00> : vector<16x16xf32>
    %5 = tpu.matmul %4, %1, %cst_7 {dimension_numbers = #tpu.dot_dimension_numbers<[1], [0], [0], [1], [0, 0, 1, 1], [], []>} : vector<16x8xf32>, vector<8x16xf32>, vector<16x16xf32> -> vector<16x16xf32>
    %cst_8 = arith.constant 0.000000e+00 : f32
    %cst_9 = arith.constant 2.550000e+02 : f32
    %6 = vector.broadcast %cst_8 : f32 to vector<16x16xf32>
    %7 = arith.maximumf %6, %5 : vector<16x16xf32>
    %8 = vector.broadcast %cst_9 : f32 to vector<16x16xf32>
    %9 = arith.minimumf %8, %7 : vector<16x16xf32>
    %c0_10 = arith.constant 0 : index
    %c0_11 = arith.constant 0 : index
    %c0_12 = arith.constant 0 : index
    %c0_13 = arith.constant 0 : index
    %10 = vector.load %arg4[%c0_10, %c0_11, %c0_12, %c0_13] : memref<1x12x16x16xf32, #tpu.memory_space<vmem>>, vector<1x1x16x16xf32>
    %11 = vector.shape_cast %10 : vector<1x1x16x16xf32> to vector<16x16xf32>
    %12 = vector.shape_cast %9 : vector<16x16xf32> to vector<1x1x16x16xf32>
    tpu.vector_store %arg4[%c0_10, %c0_11, %c0_12, %c0_13], %12 {strides = array<i32>} : memref<1x12x16x16xf32, #tpu.memory_space<vmem>>, vector<1x1x16x16xf32>,
    %c0_14 = arith.constant 0 : index
    %c1 = arith.constant 1 : index
    %c0_15 = arith.constant 0 : index
    %c0_16 = arith.constant 0 : index
    %13 = vector.load %arg3[%c0_14, %c1, %c0_15, %c0_16] : memref<1x12x8x8xf32, #tpu.memory_space<vmem>>, vector<1x1x8x8xf32>
    %14 = vector.shape_cast %13 : vector<1x1x8x8xf32> to vector<8x8xf32>
    %cst_17 = arith.constant dense<0.000000e+00> : vector<16x8xf32>
    %15 = tpu.matmul %0, %14, %cst_17 {dimension_numbers = #tpu.dot_dimension_numbers<[1], [0], [0], [1], [0, 0, 1, 1], [], []>} : vector<16x8xf32>, vector<8x8xf32>, vector<16x8xf32> -> vector<16x8xf32>
    %cst_18 = arith.constant dense<0.000000e+00> : vector<16x16xf32>
    %16 = tpu.matmul %15, %1, %cst_18 {dimension_numbers = #tpu.dot_dimension_numbers<[1], [0], [0], [1], [0, 0, 1, 1], [], []>} : vector<16x8xf32>, vector<8x16xf32>, vector<16x16xf32> -> vector<16x16xf32>
    %cst_19 = arith.constant 0.000000e+00 : f32
    %cst_20 = arith.constant 2.550000e+02 : f32
    %17 = vector.broadcast %cst_19 : f32 to vector<16x16xf32>
    %18 = arith.maximumf %17, %16 : vector<16x16xf32>
    %19 = vector.broadcast %cst_20 : f32 to vector<16x16xf32>
    %20 = arith.minimumf %19, %18 : vector<16x16xf32>
    %c0_21 = arith.constant 0 : index
    %c1_22 = arith.constant 1 : index
    %c0_23 = arith.constant 0 : index
    %c0_24 = arith.constant 0 : index
    %21 = vector.load %arg4[%c0_21, %c1_22, %c0_23, %c0_24] : memref<1x12x16x16xf32, #tpu.memory_space<vmem>>, vector<1x1x16x16xf32>
    %22 = vector.shape_cast %21 : vector<1x1x16x16xf32> to vector<16x16xf32>
    %23 = vector.shape_cast %20 : vector<16x16xf32> to vector<1x1x16x16xf32>
    tpu.vector_store %arg4[%c0_21, %c1_22, %c0_23, %c0_24], %23 {strides = array<i32>} : memref<1x12x16x16xf32, #tpu.memory_space<vmem>>, vector<1x1x16x16xf32>,
    %c0_25 = arith.constant 0 : index
    %c2 = arith.constant 2 : index
    %c0_26 = arith.constant 0 : index
    %c0_27 = arith.constant 0 : index
    %24 = vector.load %arg3[%c0_25, %c2, %c0_26, %c0_27] : memref<1x12x8x8xf32, #tpu.memory_space<vmem>>, vector<1x1x8x8xf32>
    %25 = vector.shape_cast %24 : vector<1x1x8x8xf32> to vector<8x8xf32>
    %cst_28 = arith.constant dense<0.000000e+00> : vector<16x8xf32>
    %26 = tpu.matmul %0, %25, %cst_28 {dimension_numbers = #tpu.dot_dimension_numbers<[1], [0], [0], [1], [0, 0, 1, 1], [], []>} : vector<16x8xf32>, vector<8x8xf32>, vector<16x8xf32> -> vector<16x8xf32>
    %cst_29 = arith.constant dense<0.000000e+00> : vector<16x16xf32>
    %27 = tpu.matmul %26, %1, %cst_29 {dimension_numbers = #tpu.dot_dimension_numbers<[1], [0], [0], [1], [0, 0, 1, 1], [], []>} : vector<16x8xf32>, vector<8x16xf32>, vector<16x16xf32> -> vector<16x16xf32>
    %cst_30 = arith.constant 0.000000e+00 : f32
    %cst_31 = arith.constant 2.550000e+02 : f32
    %28 = vector.broadcast %cst_30 : f32 to vector<16x16xf32>
    %29 = arith.maximumf %28, %27 : vector<16x16xf32>
    %30 = vector.broadcast %cst_31 : f32 to vector<16x16xf32>
    %31 = arith.minimumf %30, %29 : vector<16x16xf32>
    %c0_32 = arith.constant 0 : index
    %c2_33 = arith.constant 2 : index
    %c0_34 = arith.constant 0 : index
    %c0_35 = arith.constant 0 : index
    %32 = vector.load %arg4[%c0_32, %c2_33, %c0_34, %c0_35] : memref<1x12x16x16xf32, #tpu.memory_space<vmem>>, vector<1x1x16x16xf32>
    %33 = vector.shape_cast %32 : vector<1x1x16x16xf32> to vector<16x16xf32>
    %34 = vector.shape_cast %31 : vector<16x16xf32> to vector<1x1x16x16xf32>
    tpu.vector_store %arg4[%c0_32, %c2_33, %c0_34, %c0_35], %34 {strides = array<i32>} : memref<1x12x16x16xf32, #tpu.memory_space<vmem>>, vector<1x1x16x16xf32>,
    %c0_36 = arith.constant 0 : index
    %c3 = arith.constant 3 : index
    %c0_37 = arith.constant 0 : index
    %c0_38 = arith.constant 0 : index
    %35 = vector.load %arg3[%c0_36, %c3, %c0_37, %c0_38] : memref<1x12x8x8xf32, #tpu.memory_space<vmem>>, vector<1x1x8x8xf32>
    %36 = vector.shape_cast %35 : vector<1x1x8x8xf32> to vector<8x8xf32>
    %cst_39 = arith.constant dense<0.000000e+00> : vector<16x8xf32>
    %37 = tpu.matmul %0, %36, %cst_39 {dimension_numbers = #tpu.dot_dimension_numbers<[1], [0], [0], [1], [0, 0, 1, 1], [], []>} : vector<16x8xf32>, vector<8x8xf32>, vector<16x8xf32> -> vector<16x8xf32>
    %cst_40 = arith.constant dense<0.000000e+00> : vector<16x16xf32>
    %38 = tpu.matmul %37, %1, %cst_40 {dimension_numbers = #tpu.dot_dimension_numbers<[1], [0], [0], [1], [0, 0, 1, 1], [], []>} : vector<16x8xf32>, vector<8x16xf32>, vector<16x16xf32> -> vector<16x16xf32>
    %cst_41 = arith.constant 0.000000e+00 : f32
    %cst_42 = arith.constant 2.550000e+02 : f32
    %39 = vector.broadcast %cst_41 : f32 to vector<16x16xf32>
    %40 = arith.maximumf %39, %38 : vector<16x16xf32>
    %41 = vector.broadcast %cst_42 : f32 to vector<16x16xf32>
    %42 = arith.minimumf %41, %40 : vector<16x16xf32>
    %c0_43 = arith.constant 0 : index
    %c3_44 = arith.constant 3 : index
    %c0_45 = arith.constant 0 : index
    %c0_46 = arith.constant 0 : index
    %43 = vector.load %arg4[%c0_43, %c3_44, %c0_45, %c0_46] : memref<1x12x16x16xf32, #tpu.memory_space<vmem>>, vector<1x1x16x16xf32>
    %44 = vector.shape_cast %43 : vector<1x1x16x16xf32> to vector<16x16xf32>
    %45 = vector.shape_cast %42 : vector<16x16xf32> to vector<1x1x16x16xf32>
    tpu.vector_store %arg4[%c0_43, %c3_44, %c0_45, %c0_46], %45 {strides = array<i32>} : memref<1x12x16x16xf32, #tpu.memory_space<vmem>>, vector<1x1x16x16xf32>,
    %c0_47 = arith.constant 0 : index
    %c4 = arith.constant 4 : index
    %c0_48 = arith.constant 0 : index
    %c0_49 = arith.constant 0 : index
    %46 = vector.load %arg3[%c0_47, %c4, %c0_48, %c0_49] : memref<1x12x8x8xf32, #tpu.memory_space<vmem>>, vector<1x1x8x8xf32>
    %47 = vector.shape_cast %46 : vector<1x1x8x8xf32> to vector<8x8xf32>
    %cst_50 = arith.constant dense<0.000000e+00> : vector<16x8xf32>
    %48 = tpu.matmul %0, %47, %cst_50 {dimension_numbers = #tpu.dot_dimension_numbers<[1], [0], [0], [1], [0, 0, 1, 1], [], []>} : vector<16x8xf32>, vector<8x8xf32>, vector<16x8xf32> -> vector<16x8xf32>
    %cst_51 = arith.constant dense<0.000000e+00> : vector<16x16xf32>
    %49 = tpu.matmul %48, %1, %cst_51 {dimension_numbers = #tpu.dot_dimension_numbers<[1], [0], [0], [1], [0, 0, 1, 1], [], []>} : vector<16x8xf32>, vector<8x16xf32>, vector<16x16xf32> -> vector<16x16xf32>
    %cst_52 = arith.constant 0.000000e+00 : f32
    %cst_53 = arith.constant 2.550000e+02 : f32
    %50 = vector.broadcast %cst_52 : f32 to vector<16x16xf32>
    %51 = arith.maximumf %50, %49 : vector<16x16xf32>
    %52 = vector.broadcast %cst_53 : f32 to vector<16x16xf32>
    %53 = arith.minimumf %52, %51 : vector<16x16xf32>
    %c0_54 = arith.constant 0 : index
    %c4_55 = arith.constant 4 : index
    %c0_56 = arith.constant 0 : index
    %c0_57 = arith.constant 0 : index
    %54 = vector.load %arg4[%c0_54, %c4_55, %c0_56, %c0_57] : memref<1x12x16x16xf32, #tpu.memory_space<vmem>>, vector<1x1x16x16xf32>
    %55 = vector.shape_cast %54 : vector<1x1x16x16xf32> to vector<16x16xf32>
    %56 = vector.shape_cast %53 : vector<16x16xf32> to vector<1x1x16x16xf32>
    tpu.vector_store %arg4[%c0_54, %c4_55, %c0_56, %c0_57], %56 {strides = array<i32>} : memref<1x12x16x16xf32, #tpu.memory_space<vmem>>, vector<1x1x16x16xf32>,
    %c0_58 = arith.constant 0 : index
    %c5 = arith.constant 5 : index
    %c0_59 = arith.constant 0 : index
    %c0_60 = arith.constant 0 : index
    %57 = vector.load %arg3[%c0_58, %c5, %c0_59, %c0_60] : memref<1x12x8x8xf32, #tpu.memory_space<vmem>>, vector<1x1x8x8xf32>
    %58 = vector.shape_cast %57 : vector<1x1x8x8xf32> to vector<8x8xf32>
    %cst_61 = arith.constant dense<0.000000e+00> : vector<16x8xf32>
    %59 = tpu.matmul %0, %58, %cst_61 {dimension_numbers = #tpu.dot_dimension_numbers<[1], [0], [0], [1], [0, 0, 1, 1], [], []>} : vector<16x8xf32>, vector<8x8xf32>, vector<16x8xf32> -> vector<16x8xf32>
    %cst_62 = arith.constant dense<0.000000e+00> : vector<16x16xf32>
    %60 = tpu.matmul %59, %1, %cst_62 {dimension_numbers = #tpu.dot_dimension_numbers<[1], [0], [0], [1], [0, 0, 1, 1], [], []>} : vector<16x8xf32>, vector<8x16xf32>, vector<16x16xf32> -> vector<16x16xf32>
    %cst_63 = arith.constant 0.000000e+00 : f32
    %cst_64 = arith.constant 2.550000e+02 : f32
    %61 = vector.broadcast %cst_63 : f32 to vector<16x16xf32>
    %62 = arith.maximumf %61, %60 : vector<16x16xf32>
    %63 = vector.broadcast %cst_64 : f32 to vector<16x16xf32>
    %64 = arith.minimumf %63, %62 : vector<16x16xf32>
    %c0_65 = arith.constant 0 : index
    %c5_66 = arith.constant 5 : index
    %c0_67 = arith.constant 0 : index
    %c0_68 = arith.constant 0 : index
    %65 = vector.load %arg4[%c0_65, %c5_66, %c0_67, %c0_68] : memref<1x12x16x16xf32, #tpu.memory_space<vmem>>, vector<1x1x16x16xf32>
    %66 = vector.shape_cast %65 : vector<1x1x16x16xf32> to vector<16x16xf32>
    %67 = vector.shape_cast %64 : vector<16x16xf32> to vector<1x1x16x16xf32>
    tpu.vector_store %arg4[%c0_65, %c5_66, %c0_67, %c0_68], %67 {strides = array<i32>} : memref<1x12x16x16xf32, #tpu.memory_space<vmem>>, vector<1x1x16x16xf32>,
    %c0_69 = arith.constant 0 : index
    %c6 = arith.constant 6 : index
    %c0_70 = arith.constant 0 : index
    %c0_71 = arith.constant 0 : index
    %68 = vector.load %arg3[%c0_69, %c6, %c0_70, %c0_71] : memref<1x12x8x8xf32, #tpu.memory_space<vmem>>, vector<1x1x8x8xf32>
    %69 = vector.shape_cast %68 : vector<1x1x8x8xf32> to vector<8x8xf32>
    %cst_72 = arith.constant dense<0.000000e+00> : vector<16x8xf32>
    %70 = tpu.matmul %0, %69, %cst_72 {dimension_numbers = #tpu.dot_dimension_numbers<[1], [0], [0], [1], [0, 0, 1, 1], [], []>} : vector<16x8xf32>, vector<8x8xf32>, vector<16x8xf32> -> vector<16x8xf32>
    %cst_73 = arith.constant dense<0.000000e+00> : vector<16x16xf32>
    %71 = tpu.matmul %70, %1, %cst_73 {dimension_numbers = #tpu.dot_dimension_numbers<[1], [0], [0], [1], [0, 0, 1, 1], [], []>} : vector<16x8xf32>, vector<8x16xf32>, vector<16x16xf32> -> vector<16x16xf32>
    %cst_74 = arith.constant 0.000000e+00 : f32
    %cst_75 = arith.constant 2.550000e+02 : f32
    %72 = vector.broadcast %cst_74 : f32 to vector<16x16xf32>
    %73 = arith.maximumf %72, %71 : vector<16x16xf32>
    %74 = vector.broadcast %cst_75 : f32 to vector<16x16xf32>
    %75 = arith.minimumf %74, %73 : vector<16x16xf32>
    %c0_76 = arith.constant 0 : index
    %c6_77 = arith.constant 6 : index
    %c0_78 = arith.constant 0 : index
    %c0_79 = arith.constant 0 : index
    %76 = vector.load %arg4[%c0_76, %c6_77, %c0_78, %c0_79] : memref<1x12x16x16xf32, #tpu.memory_space<vmem>>, vector<1x1x16x16xf32>
    %77 = vector.shape_cast %76 : vector<1x1x16x16xf32> to vector<16x16xf32>
    %78 = vector.shape_cast %75 : vector<16x16xf32> to vector<1x1x16x16xf32>
    tpu.vector_store %arg4[%c0_76, %c6_77, %c0_78, %c0_79], %78 {strides = array<i32>} : memref<1x12x16x16xf32, #tpu.memory_space<vmem>>, vector<1x1x16x16xf32>,
    %c0_80 = arith.constant 0 : index
    %c7 = arith.constant 7 : index
    %c0_81 = arith.constant 0 : index
    %c0_82 = arith.constant 0 : index
    %79 = vector.load %arg3[%c0_80, %c7, %c0_81, %c0_82] : memref<1x12x8x8xf32, #tpu.memory_space<vmem>>, vector<1x1x8x8xf32>
    %80 = vector.shape_cast %79 : vector<1x1x8x8xf32> to vector<8x8xf32>
    %cst_83 = arith.constant dense<0.000000e+00> : vector<16x8xf32>
    %81 = tpu.matmul %0, %80, %cst_83 {dimension_numbers = #tpu.dot_dimension_numbers<[1], [0], [0], [1], [0, 0, 1, 1], [], []>} : vector<16x8xf32>, vector<8x8xf32>, vector<16x8xf32> -> vector<16x8xf32>
    %cst_84 = arith.constant dense<0.000000e+00> : vector<16x16xf32>
    %82 = tpu.matmul %81, %1, %cst_84 {dimension_numbers = #tpu.dot_dimension_numbers<[1], [0], [0], [1], [0, 0, 1, 1], [], []>} : vector<16x8xf32>, vector<8x16xf32>, vector<16x16xf32> -> vector<16x16xf32>
    %cst_85 = arith.constant 0.000000e+00 : f32
    %cst_86 = arith.constant 2.550000e+02 : f32
    %83 = vector.broadcast %cst_85 : f32 to vector<16x16xf32>
    %84 = arith.maximumf %83, %82 : vector<16x16xf32>
    %85 = vector.broadcast %cst_86 : f32 to vector<16x16xf32>
    %86 = arith.minimumf %85, %84 : vector<16x16xf32>
    %c0_87 = arith.constant 0 : index
    %c7_88 = arith.constant 7 : index
    %c0_89 = arith.constant 0 : index
    %c0_90 = arith.constant 0 : index
    %87 = vector.load %arg4[%c0_87, %c7_88, %c0_89, %c0_90] : memref<1x12x16x16xf32, #tpu.memory_space<vmem>>, vector<1x1x16x16xf32>
    %88 = vector.shape_cast %87 : vector<1x1x16x16xf32> to vector<16x16xf32>
    %89 = vector.shape_cast %86 : vector<16x16xf32> to vector<1x1x16x16xf32>
    tpu.vector_store %arg4[%c0_87, %c7_88, %c0_89, %c0_90], %89 {strides = array<i32>} : memref<1x12x16x16xf32, #tpu.memory_space<vmem>>, vector<1x1x16x16xf32>,
    %c0_91 = arith.constant 0 : index
    %c8 = arith.constant 8 : index
    %c0_92 = arith.constant 0 : index
    %c0_93 = arith.constant 0 : index
    %90 = vector.load %arg3[%c0_91, %c8, %c0_92, %c0_93] : memref<1x12x8x8xf32, #tpu.memory_space<vmem>>, vector<1x1x8x8xf32>
    %91 = vector.shape_cast %90 : vector<1x1x8x8xf32> to vector<8x8xf32>
    %cst_94 = arith.constant dense<0.000000e+00> : vector<16x8xf32>
    %92 = tpu.matmul %0, %91, %cst_94 {dimension_numbers = #tpu.dot_dimension_numbers<[1], [0], [0], [1], [0, 0, 1, 1], [], []>} : vector<16x8xf32>, vector<8x8xf32>, vector<16x8xf32> -> vector<16x8xf32>
    %cst_95 = arith.constant dense<0.000000e+00> : vector<16x16xf32>
    %93 = tpu.matmul %92, %1, %cst_95 {dimension_numbers = #tpu.dot_dimension_numbers<[1], [0], [0], [1], [0, 0, 1, 1], [], []>} : vector<16x8xf32>, vector<8x16xf32>, vector<16x16xf32> -> vector<16x16xf32>
    %cst_96 = arith.constant 0.000000e+00 : f32
    %cst_97 = arith.constant 2.550000e+02 : f32
    %94 = vector.broadcast %cst_96 : f32 to vector<16x16xf32>
    %95 = arith.maximumf %94, %93 : vector<16x16xf32>
    %96 = vector.broadcast %cst_97 : f32 to vector<16x16xf32>
    %97 = arith.minimumf %96, %95 : vector<16x16xf32>
    %c0_98 = arith.constant 0 : index
    %c8_99 = arith.constant 8 : index
    %c0_100 = arith.constant 0 : index
    %c0_101 = arith.constant 0 : index
    %98 = vector.load %arg4[%c0_98, %c8_99, %c0_100, %c0_101] : memref<1x12x16x16xf32, #tpu.memory_space<vmem>>, vector<1x1x16x16xf32>
    %99 = vector.shape_cast %98 : vector<1x1x16x16xf32> to vector<16x16xf32>
    %100 = vector.shape_cast %97 : vector<16x16xf32> to vector<1x1x16x16xf32>
    tpu.vector_store %arg4[%c0_98, %c8_99, %c0_100, %c0_101], %100 {strides = array<i32>} : memref<1x12x16x16xf32, #tpu.memory_space<vmem>>, vector<1x1x16x16xf32>,
    %c0_102 = arith.constant 0 : index
    %c9 = arith.constant 9 : index
    %c0_103 = arith.constant 0 : index
    %c0_104 = arith.constant 0 : index
    %101 = vector.load %arg3[%c0_102, %c9, %c0_103, %c0_104] : memref<1x12x8x8xf32, #tpu.memory_space<vmem>>, vector<1x1x8x8xf32>
    %102 = vector.shape_cast %101 : vector<1x1x8x8xf32> to vector<8x8xf32>
    %cst_105 = arith.constant dense<0.000000e+00> : vector<16x8xf32>
    %103 = tpu.matmul %0, %102, %cst_105 {dimension_numbers = #tpu.dot_dimension_numbers<[1], [0], [0], [1], [0, 0, 1, 1], [], []>} : vector<16x8xf32>, vector<8x8xf32>, vector<16x8xf32> -> vector<16x8xf32>
    %cst_106 = arith.constant dense<0.000000e+00> : vector<16x16xf32>
    %104 = tpu.matmul %103, %1, %cst_106 {dimension_numbers = #tpu.dot_dimension_numbers<[1], [0], [0], [1], [0, 0, 1, 1], [], []>} : vector<16x8xf32>, vector<8x16xf32>, vector<16x16xf32> -> vector<16x16xf32>
    %cst_107 = arith.constant 0.000000e+00 : f32
    %cst_108 = arith.constant 2.550000e+02 : f32
    %105 = vector.broadcast %cst_107 : f32 to vector<16x16xf32>
    %106 = arith.maximumf %105, %104 : vector<16x16xf32>
    %107 = vector.broadcast %cst_108 : f32 to vector<16x16xf32>
    %108 = arith.minimumf %107, %106 : vector<16x16xf32>
    %c0_109 = arith.constant 0 : index
    %c9_110 = arith.constant 9 : index
    %c0_111 = arith.constant 0 : index
    %c0_112 = arith.constant 0 : index
    %109 = vector.load %arg4[%c0_109, %c9_110, %c0_111, %c0_112] : memref<1x12x16x16xf32, #tpu.memory_space<vmem>>, vector<1x1x16x16xf32>
    %110 = vector.shape_cast %109 : vector<1x1x16x16xf32> to vector<16x16xf32>
    %111 = vector.shape_cast %108 : vector<16x16xf32> to vector<1x1x16x16xf32>
    tpu.vector_store %arg4[%c0_109, %c9_110, %c0_111, %c0_112], %111 {strides = array<i32>} : memref<1x12x16x16xf32, #tpu.memory_space<vmem>>, vector<1x1x16x16xf32>,
    %c0_113 = arith.constant 0 : index
    %c10 = arith.constant 10 : index
    %c0_114 = arith.constant 0 : index
    %c0_115 = arith.constant 0 : index
    %112 = vector.load %arg3[%c0_113, %c10, %c0_114, %c0_115] : memref<1x12x8x8xf32, #tpu.memory_space<vmem>>, vector<1x1x8x8xf32>
    %113 = vector.shape_cast %112 : vector<1x1x8x8xf32> to vector<8x8xf32>
    %cst_116 = arith.constant dense<0.000000e+00> : vector<16x8xf32>
    %114 = tpu.matmul %0, %113, %cst_116 {dimension_numbers = #tpu.dot_dimension_numbers<[1], [0], [0], [1], [0, 0, 1, 1], [], []>} : vector<16x8xf32>, vector<8x8xf32>, vector<16x8xf32> -> vector<16x8xf32>
    %cst_117 = arith.constant dense<0.000000e+00> : vector<16x16xf32>
    %115 = tpu.matmul %114, %1, %cst_117 {dimension_numbers = #tpu.dot_dimension_numbers<[1], [0], [0], [1], [0, 0, 1, 1], [], []>} : vector<16x8xf32>, vector<8x16xf32>, vector<16x16xf32> -> vector<16x16xf32>
    %cst_118 = arith.constant 0.000000e+00 : f32
    %cst_119 = arith.constant 2.550000e+02 : f32
    %116 = vector.broadcast %cst_118 : f32 to vector<16x16xf32>
    %117 = arith.maximumf %116, %115 : vector<16x16xf32>
    %118 = vector.broadcast %cst_119 : f32 to vector<16x16xf32>
    %119 = arith.minimumf %118, %117 : vector<16x16xf32>
    %c0_120 = arith.constant 0 : index
    %c10_121 = arith.constant 10 : index
    %c0_122 = arith.constant 0 : index
    %c0_123 = arith.constant 0 : index
    %120 = vector.load %arg4[%c0_120, %c10_121, %c0_122, %c0_123] : memref<1x12x16x16xf32, #tpu.memory_space<vmem>>, vector<1x1x16x16xf32>
    %121 = vector.shape_cast %120 : vector<1x1x16x16xf32> to vector<16x16xf32>
    %122 = vector.shape_cast %119 : vector<16x16xf32> to vector<1x1x16x16xf32>
    tpu.vector_store %arg4[%c0_120, %c10_121, %c0_122, %c0_123], %122 {strides = array<i32>} : memref<1x12x16x16xf32, #tpu.memory_space<vmem>>, vector<1x1x16x16xf32>,
    %c0_124 = arith.constant 0 : index
    %c11 = arith.constant 11 : index
    %c0_125 = arith.constant 0 : index
    %c0_126 = arith.constant 0 : index
    %123 = vector.load %arg3[%c0_124, %c11, %c0_125, %c0_126] : memref<1x12x8x8xf32, #tpu.memory_space<vmem>>, vector<1x1x8x8xf32>
    %124 = vector.shape_cast %123 : vector<1x1x8x8xf32> to vector<8x8xf32>
    %cst_127 = arith.constant dense<0.000000e+00> : vector<16x8xf32>
    %125 = tpu.matmul %0, %124, %cst_127 {dimension_numbers = #tpu.dot_dimension_numbers<[1], [0], [0], [1], [0, 0, 1, 1], [], []>} : vector<16x8xf32>, vector<8x8xf32>, vector<16x8xf32> -> vector<16x8xf32>
    %cst_128 = arith.constant dense<0.000000e+00> : vector<16x16xf32>
    %126 = tpu.matmul %125, %1, %cst_128 {dimension_numbers = #tpu.dot_dimension_numbers<[1], [0], [0], [1], [0, 0, 1, 1], [], []>} : vector<16x8xf32>, vector<8x16xf32>, vector<16x16xf32> -> vector<16x16xf32>
    %cst_129 = arith.constant 0.000000e+00 : f32
    %cst_130 = arith.constant 2.550000e+02 : f32
    %127 = vector.broadcast %cst_129 : f32 to vector<16x16xf32>
    %128 = arith.maximumf %127, %126 : vector<16x16xf32>
    %129 = vector.broadcast %cst_130 : f32 to vector<16x16xf32>
    %130 = arith.minimumf %129, %128 : vector<16x16xf32>
    %c0_131 = arith.constant 0 : index
    %c11_132 = arith.constant 11 : index
    %c0_133 = arith.constant 0 : index
    %c0_134 = arith.constant 0 : index
    %131 = vector.load %arg4[%c0_131, %c11_132, %c0_133, %c0_134] : memref<1x12x16x16xf32, #tpu.memory_space<vmem>>, vector<1x1x16x16xf32>
    %132 = vector.shape_cast %131 : vector<1x1x16x16xf32> to vector<16x16xf32>
    %133 = vector.shape_cast %130 : vector<16x16xf32> to vector<1x1x16x16xf32>
    tpu.vector_store %arg4[%c0_131, %c11_132, %c0_133, %c0_134], %133 {strides = array<i32>} : memref<1x12x16x16xf32, #tpu.memory_space<vmem>>, vector<1x1x16x16xf32>,
    return
  }
  func.func @transform_0(%arg0: i32) -> (i32, i32) {
    %c0_i32 = arith.constant 0 : i32
    %c0_i32_0 = arith.constant 0 : i32
    %c0_i32_1 = arith.constant 0 : i32
    return %c0_i32, %c0_i32_0 : i32, i32
  }
  func.func @transform_1(%arg0: i32) -> (i32, i32) {
    %c0_i32 = arith.constant 0 : i32
    %c0_i32_0 = arith.constant 0 : i32
    %c0_i32_1 = arith.constant 0 : i32
    return %c0_i32, %c0_i32_0 : i32, i32
  }
  func.func @transform_2(%arg0: i32) -> (i32, i32, i32, i32) {
    %c0_i32 = arith.constant 0 : i32
    %c0_i32_0 = arith.constant 0 : i32
    %c0_i32_1 = arith.constant 0 : i32
    %c0_i32_2 = arith.constant 0 : i32
    return %arg0, %c0_i32, %c0_i32_0, %c0_i32_1 : i32, i32, i32, i32
  }
  func.func @transform_3(%arg0: i32) -> (i32, i32, i32, i32) {
    %c0_i32 = arith.constant 0 : i32
    %c0_i32_0 = arith.constant 0 : i32
    %c0_i32_1 = arith.constant 0 : i32
    %c0_i32_2 = arith.constant 0 : i32
    return %arg0, %c0_i32, %c0_i32_0, %c0_i32_1 : i32, i32, i32, i32
  }
}

module attributes {stable_mosaic.version = 11 : i64} {
  func.func @_rebnconv_res_kernel(%arg0: i32, %arg1: memref<1x24x342xf32, #tpu.memory_space<vmem>>, %arg2: memref<3x216xf32, #tpu.memory_space<vmem>>, %arg3: memref<3x1xf32, #tpu.memory_space<vmem>>, %arg4: memref<3x1xf32, #tpu.memory_space<vmem>>, %arg5: memref<1x3x288xf32, #tpu.memory_space<vmem>>, %arg6: memref<1x3x288xf32, #tpu.memory_space<vmem>>) attributes {dimension_semantics = [#tpu.dimension_semantics<parallel>], iteration_bounds = array<i64: 2>, scalar_prefetch = 0 : i64, scratch_operands = 0 : i64, tpu.core_type = #tpu.core_type<tc>, window_params = [{transform_indices = @transform_0, window_bounds = array<i64: 1, 24, 342>}, {pipeline_mode = #tpu.pipeline_mode<synchronous>, transform_indices = @transform_1, window_bounds = array<i64: 3, 216>}, {pipeline_mode = #tpu.pipeline_mode<synchronous>, transform_indices = @transform_2, window_bounds = array<i64: 3, 1>}, {pipeline_mode = #tpu.pipeline_mode<synchronous>, transform_indices = @transform_3, window_bounds = array<i64: 3, 1>}, {transform_indices = @transform_4, window_bounds = array<i64: 1, 3, 288>}, {transform_indices = @transform_5, window_bounds = array<i64: 1, 3, 288>}]} {
    %c0 = arith.constant 0 : index
    %c0_0 = arith.constant 0 : index
    %c0_1 = arith.constant 0 : index
    %0 = vector.load %arg1[%c0, %c0_0, %c0_1] : memref<1x24x342xf32, #tpu.memory_space<vmem>>, vector<1x24x342xf32>
    %1 = vector.shape_cast %0 : vector<1x24x342xf32> to vector<24x342xf32>
    %2 = vector.extract_strided_slice %1 {offsets = [0, 0], sizes = [24, 288], strides = [1, 1]} : vector<24x342xf32> to vector<24x288xf32>
    %3 = vector.extract_strided_slice %1 {offsets = [0, 1], sizes = [24, 288], strides = [1, 1]} : vector<24x342xf32> to vector<24x288xf32>
    %4 = vector.extract_strided_slice %1 {offsets = [0, 2], sizes = [24, 288], strides = [1, 1]} : vector<24x342xf32> to vector<24x288xf32>
    %5 = vector.extract_strided_slice %1 {offsets = [0, 18], sizes = [24, 288], strides = [1, 1]} : vector<24x342xf32> to vector<24x288xf32>
    %6 = vector.extract_strided_slice %1 {offsets = [0, 19], sizes = [24, 288], strides = [1, 1]} : vector<24x342xf32> to vector<24x288xf32>
    %7 = vector.extract_strided_slice %1 {offsets = [0, 20], sizes = [24, 288], strides = [1, 1]} : vector<24x342xf32> to vector<24x288xf32>
    %8 = vector.extract_strided_slice %1 {offsets = [0, 36], sizes = [24, 288], strides = [1, 1]} : vector<24x342xf32> to vector<24x288xf32>
    %9 = vector.extract_strided_slice %1 {offsets = [0, 37], sizes = [24, 288], strides = [1, 1]} : vector<24x342xf32> to vector<24x288xf32>
    %10 = vector.extract_strided_slice %1 {offsets = [0, 38], sizes = [24, 288], strides = [1, 1]} : vector<24x342xf32> to vector<24x288xf32>
    %11 = tpu.concatenate %2, %3, %4, %5, %6, %7, %8, %9, %10 in 0 : vector<24x288xf32>, vector<24x288xf32>, vector<24x288xf32>, vector<24x288xf32>, vector<24x288xf32>, vector<24x288xf32>, vector<24x288xf32>, vector<24x288xf32>, vector<24x288xf32> -> vector<216x288xf32>
    %c0_2 = arith.constant 0 : index
    %c0_3 = arith.constant 0 : index
    %12 = vector.load %arg2[%c0_2, %c0_3] : memref<3x216xf32, #tpu.memory_space<vmem>>, vector<3x216xf32>
    %cst = arith.constant dense<0.000000e+00> : vector<3x288xf32>
    %13 = tpu.matmul %12, %11, %cst {dimension_numbers = #tpu.dot_dimension_numbers<[1], [0], [0], [1], [0, 0, 1, 1], [], []>} : vector<3x216xf32>, vector<216x288xf32>, vector<3x288xf32> -> vector<3x288xf32>
    %c0_4 = arith.constant 0 : index
    %c0_5 = arith.constant 0 : index
    %14 = vector.load %arg3[%c0_4, %c0_5] : memref<3x1xf32, #tpu.memory_space<vmem>>, vector<3x1xf32>
    %15 = vector.broadcast %14 : vector<3x1xf32> to vector<3x288xf32>
    %16 = arith.mulf %13, %15 : vector<3x288xf32>
    %c0_6 = arith.constant 0 : index
    %c0_7 = arith.constant 0 : index
    %17 = vector.load %arg4[%c0_6, %c0_7] : memref<3x1xf32, #tpu.memory_space<vmem>>, vector<3x1xf32>
    %18 = vector.broadcast %17 : vector<3x1xf32> to vector<3x288xf32>
    %19 = arith.addf %16, %18 : vector<3x288xf32>
    %cst_8 = arith.constant 0.000000e+00 : f32
    %20 = vector.broadcast %cst_8 : f32 to vector<3x288xf32>
    %21 = arith.maximumf %19, %20 : vector<3x288xf32>
    %c0_9 = arith.constant 0 : index
    %c0_10 = arith.constant 0 : index
    %c0_11 = arith.constant 0 : index
    %22 = vector.load %arg5[%c0_9, %c0_10, %c0_11] : memref<1x3x288xf32, #tpu.memory_space<vmem>>, vector<1x3x288xf32>
    %23 = vector.shape_cast %22 : vector<1x3x288xf32> to vector<3x288xf32>
    %24 = arith.addf %21, %23 : vector<3x288xf32>
    %c0_12 = arith.constant 0 : index
    %c0_13 = arith.constant 0 : index
    %c0_14 = arith.constant 0 : index
    %25 = vector.load %arg6[%c0_12, %c0_13, %c0_14] : memref<1x3x288xf32, #tpu.memory_space<vmem>>, vector<1x3x288xf32>
    %26 = vector.shape_cast %25 : vector<1x3x288xf32> to vector<3x288xf32>
    %27 = vector.shape_cast %24 : vector<3x288xf32> to vector<1x3x288xf32>
    tpu.vector_store %arg6[%c0_12, %c0_13, %c0_14], %27 {strides = array<i32>} : memref<1x3x288xf32, #tpu.memory_space<vmem>>, vector<1x3x288xf32>,
    return
  }
  func.func @transform_0(%arg0: i32) -> (i32, i32, i32) {
    %c0_i32 = arith.constant 0 : i32
    %c0_i32_0 = arith.constant 0 : i32
    %c0_i32_1 = arith.constant 0 : i32
    return %arg0, %c0_i32, %c0_i32_0 : i32, i32, i32
  }
  func.func @transform_1(%arg0: i32) -> (i32, i32) {
    %c0_i32 = arith.constant 0 : i32
    %c0_i32_0 = arith.constant 0 : i32
    %c0_i32_1 = arith.constant 0 : i32
    return %c0_i32, %c0_i32_0 : i32, i32
  }
  func.func @transform_2(%arg0: i32) -> (i32, i32) {
    %c0_i32 = arith.constant 0 : i32
    %c0_i32_0 = arith.constant 0 : i32
    %c0_i32_1 = arith.constant 0 : i32
    return %c0_i32, %c0_i32_0 : i32, i32
  }
  func.func @transform_3(%arg0: i32) -> (i32, i32) {
    %c0_i32 = arith.constant 0 : i32
    %c0_i32_0 = arith.constant 0 : i32
    %c0_i32_1 = arith.constant 0 : i32
    return %c0_i32, %c0_i32_0 : i32, i32
  }
  func.func @transform_4(%arg0: i32) -> (i32, i32, i32) {
    %c0_i32 = arith.constant 0 : i32
    %c0_i32_0 = arith.constant 0 : i32
    %c0_i32_1 = arith.constant 0 : i32
    return %arg0, %c0_i32, %c0_i32_0 : i32, i32, i32
  }
  func.func @transform_5(%arg0: i32) -> (i32, i32, i32) {
    %c0_i32 = arith.constant 0 : i32
    %c0_i32_0 = arith.constant 0 : i32
    %c0_i32_1 = arith.constant 0 : i32
    return %arg0, %c0_i32, %c0_i32_0 : i32, i32, i32
  }
}

</mosaic_0001>

<bundles_post_ra>
// kernel: rsu5_forward.16
= control target key start
LH: loop header
LB: loop body
LE: loop exit
PB: predicated region body
PF: predicated region fallthrough
CT: control target
= control target key end

     0   :  { %s638_s15 = smov 0   ;;  %s712_s0 = inlined_call_operand.vmem [shape: f32[2,8,342], index: 0, kind: input, shape index: {}]   ;;  %s713_s1 = inlined_call_operand.vmem [shape: f32[3,72], index: 1, kind: input, shape index: {}]   ;;  %s714_s2 = inlined_call_operand.vmem [shape: f32[3,1], index: 2, kind: input, shape index: {}]   ;;  %s715_s3 = inlined_call_operand.vmem [shape: f32[3,1], index: 3, kind: input, shape index: {}]   ;;  %s716_s4 = inlined_call_operand.vmem [shape: f32[2,3,288], index: 4, kind: output, shape index: {}]  }
   0x1 LB: > { %s529_s16 = sadd.s32 4294967295, %s600_s15   ;;  %p533_p0 = scmp.ge.s32.totalorder %s600_s15, 1  ;;  %s600_s15 = sphi %s638_s15, %s14_s15  }
   0x2   : > { %p162_p1 = scmp.lt.s32.totalorder %s600_s15, 3 }
   0x4   : > { %p163_p2 = pnand %p533_p0, %p162_p1 }
   0x5   : > { %p188_p3 = scmp.lt.s32.totalorder (!%p163_p2), %s529_s16, 1  ;;  %s603_s21 = smov (!%p163_p2), 90  }
   0x6   : > { %166 = sbr.rel (%p163_p2) target bundleno = 384 (0x180), region = 36  ;;  %s604_s22 = smov (!%p163_p2), 91  }
   0x7   : > { %s605_s23 = smov (!%p163_p2), 92   ;;  %s606_s24 = smov (!%p163_p2), 108  }
   0x8   : > { %s607_s25 = smov (!%p163_p2), 109   ;;  %s608_s26 = smov (!%p163_p2), 110  }
   0x9   : > { %s609_s27 = smov (!%p163_p2), 126   ;;  %s612_s28 = smov (!%p163_p2), 127  }
   0xb   : > { %v602_v0 = vmov 0.0   ;;  %s718_s16 = smov (!%p188_p3, %s529_s16), 1  ;;  %vm610_vm0 = vmmov 0   ;;  %v611_v4 = vmov 0   ;;  %v446_v5 = vld [vmem:[%s714_s2] sm:$0x7] }
   0xc   : > { %550 = vmatprep.subr.mxu1 %v602_v0  ;;  %369 = vmatprep.mubr.f32.mxu0 %v602_v0  ;;  %s571_s17 = smul.u32 24, %s718_s16  ;;  %v455_v6 = vld [vmem:[%s715_s3] sm:$0x7]  ;;  %vm294_vm1 = vcmask 736256   ;;  %vm282_vm2 = vcmask 744448   ;;  %vm270_vm3 = vcmask 752640  }
   0xd   : > { %568 = vmatprep.mubr.msk.f32.mxu1 %vm610_vm0, %v602_v0  ;;  %592 = vset.pattern.permute.xlu0 %v611_v4  ;;  %vm258_vm4 = vcmask 883712   ;;  %vm246_vm5 = vcmask 891904   ;;  %vm234_vm6 = vcmask 900096   ;;  %vm222_vm7 = vcmask 1031168   ;;  %v300_v47 = vld [vmem:[%s713_s1] sm:$0x7] }
   0xe   : > { %s192_s20 = scalar_lea.vmem %s712_s0, %s571_s17  ;;  %593 = vset.pattern.permute.xlu1 %v611_v4  ;;  %vm210_vm8 = vcmask 1039360   ;;  %vm301_vm9 = vcmask 588800   ;;  %s572_s9 = smul.u32 12, %s718_s16  ;;  %vm472_vm10 = vcmask 256000  }
   0xf   : > { %v654_v1 = vld [vmem:[%s192_s20 + $0x8] sm:$0xff]  ;;  %v656_v2 = vld [vmem:[%s192_s20] sm:$0xff]  ;;  %v660_v3 = vld [vmem:[%s192_s20 + $0x10] sm:$0xff] }
  0x10   : > { %290 = vrot.lane.b32.xlu0 %v654_v1, %s603_s21  ;;  %288 = vrot.lane.b32.xlu1 %v656_v2, %s603_s21  ;;  %s197_s12 = scalar_lea.vmem %s716_s4, %s572_s9 }
  0x14   : > { %292 = vrot.lane.b32.xlu0 %v660_v3, %s603_s21  ;;  %278 = vrot.lane.b32.xlu1 %v654_v1, %s604_s22 }
  0x18   : > { %280 = vrot.lane.b32.xlu0 %v660_v3, %s604_s22  ;;  %276 = vrot.lane.b32.xlu1 %v656_v2, %s604_s22 }
  0x1c   : > { %266 = vrot.lane.b32.xlu0 %v654_v1, %s605_s23  ;;  %268 = vrot.lane.b32.xlu1 %v660_v3, %s605_s23 }
  0x20   : > { %264 = vrot.lane.b32.xlu0 %v656_v2, %s605_s23  ;;  %254 = vrot.lane.b32.xlu1 %v654_v1, %s606_s24 }
  0x24   : > { %256 = vrot.lane.b32.xlu0 %v660_v3, %s606_s24  ;;  %252 = vrot.lane.b32.xlu1 %v656_v2, %s606_s24 }
  0x28   : > { %242 = vrot.lane.b32.xlu0 %v654_v1, %s607_s25  ;;  %244 = vrot.lane.b32.xlu1 %v660_v3, %s607_s25 }
  0x2c   : > { %240 = vrot.lane.b32.xlu0 %v656_v2, %s607_s25  ;;  %230 = vrot.lane.b32.xlu1 %v654_v1, %s608_s26 }
  0x30   : > { %232 = vrot.lane.b32.xlu0 %v660_v3, %s608_s26  ;;  %228 = vrot.lane.b32.xlu1 %v656_v2, %s608_s26 }
  0x34   : > { %218 = vrot.lane.b32.xlu0 %v654_v1, %s609_s27  ;;  %220 = vrot.lane.b32.xlu1 %v660_v3, %s609_s27 }
  0x38   : > { %216 = vrot.lane.b32.xlu0 %v656_v2, %s609_s27  ;;  %206 = vrot.lane.b32.xlu1 %v654_v1, %s612_s28 }
  0x3c   : > { %208 = vrot.lane.b32.xlu0 %v660_v3, %s612_s28  ;;  %204 = vrot.lane.b32.xlu1 %v656_v2, %s612_s28 }
  0x40   : > { %449 = vperm.xlu0 %592, %v446_v5   ;;  %458 = vperm.xlu1 %593, %v455_v6  }
  0x82   : > { %v291_v7 = vpop.permute.xlu0 %290  ;;  %v289_v8 = vpop.permute.xlu1 %288 }
  0x83   : > { %v295_v12 = vsel %vm294_vm1, %v289_v8, %v291_v7 }
  0x86   : > { %v293_v9 = vpop.permute.xlu0 %292  ;;  %v279_v10 = vpop.permute.xlu1 %278 }
  0x87   : > { %551 = vmatpush3.msra.mxu1 %v293_v9  ;;  %v296_v11 = vsel %vm294_vm1, %v291_v7, %v293_v9 }
  0x88   : > { %319 = vmatprep.subr.mxu0 %v296_v11  ;;  %552 = vmatprep.subr.mxu1 %v602_v0 }
  0x89   : > { %320 = vmatpush1.msra.mxu0 %v295_v12 }
  0x8a   : > { %v281_v13 = vpop.permute.xlu0 %280  ;;  %v277_v14 = vpop.permute.xlu1 %276 }
  0x8b   : > { %553 = vmatpush3.msra.mxu1 %v281_v13  ;;  %v284_v15 = vsel %vm282_vm2, %v279_v10, %v281_v13  ;;  %v283_v16 = vsel %vm282_vm2, %v277_v14, %v279_v10 }
  0x8c   : > { %321 = vmatprep.subr.mxu0 %v284_v15  ;;  %554 = vmatprep.subr.mxu1 %v602_v0 }
  0x8d   : > { %322 = vmatpush1.msra.mxu0 %v283_v16 }
  0x8e   : > { %v267_v17 = vpop.permute.xlu0 %266  ;;  %v269_v18 = vpop.permute.xlu1 %268 }
  0x8f   : > { %v272_v19 = vsel %vm270_vm3, %v267_v17, %v269_v18  ;;  %555 = vmatpush3.msra.mxu1 %v269_v18 }
  0x90   : > { %323 = vmatprep.subr.mxu0 %v272_v19  ;;  %556 = vmatprep.subr.mxu1 %v602_v0 }
  0x92   : > { %v265_v20 = vpop.permute.xlu0 %264  ;;  %v255_v21 = vpop.permute.xlu1 %254 }
  0x93   : > { %v271_v22 = vsel %vm270_vm3, %v265_v20, %v267_v17 }
  0x94   : > { %324 = vmatpush1.msra.mxu0 %v271_v22 }
  0x96   : > { %v257_v23 = vpop.permute.xlu0 %256  ;;  %v253_v24 = vpop.permute.xlu1 %252 }
  0x97   : > { %557 = vmatpush3.msra.mxu1 %v257_v23  ;;  %v260_v25 = vsel %vm258_vm4, %v255_v21, %v257_v23  ;;  %v259_v26 = vsel %vm258_vm4, %v253_v24, %v255_v21 }
  0x98   : > { %325 = vmatprep.subr.mxu0 %v260_v25  ;;  %558 = vmatprep.subr.mxu1 %v602_v0 }
  0x99   : > { %326 = vmatpush1.msra.mxu0 %v259_v26 }
  0x9a   : > { %v243_v27 = vpop.permute.xlu0 %242  ;;  %v245_v28 = vpop.permute.xlu1 %244 }
  0x9b   : > { %v248_v29 = vsel %vm246_vm5, %v243_v27, %v245_v28  ;;  %559 = vmatpush3.msra.mxu1 %v245_v28 }
  0x9c   : > { %327 = vmatprep.subr.mxu0 %v248_v29  ;;  %560 = vmatprep.subr.mxu1 %v602_v0 }
  0x9e   : > { %v241_v30 = vpop.permute.xlu0 %240  ;;  %v231_v31 = vpop.permute.xlu1 %230 }
  0x9f   : > { %v247_v32 = vsel %vm246_vm5, %v241_v30, %v243_v27 }
  0xa0   : > { %328 = vmatpush1.msra.mxu0 %v247_v32 }
  0xa2   : > { %v233_v33 = vpop.permute.xlu0 %232  ;;  %v229_v34 = vpop.permute.xlu1 %228 }
  0xa3   : > { %561 = vmatpush3.msra.mxu1 %v233_v33  ;;  %v236_v35 = vsel %vm234_vm6, %v231_v31, %v233_v33  ;;  %v235_v36 = vsel %vm234_vm6, %v229_v34, %v231_v31 }
  0xa4   : > { %329 = vmatprep.subr.mxu0 %v236_v35  ;;  %562 = vmatprep.subr.mxu1 %v602_v0 }
  0xa5   : > { %330 = vmatpush1.msra.mxu0 %v235_v36 }
  0xa6   : > { %v219_v37 = vpop.permute.xlu0 %218  ;;  %v221_v38 = vpop.permute.xlu1 %220 }
  0xa7   : > { %v224_v39 = vsel %vm222_vm7, %v219_v37, %v221_v38  ;;  %563 = vmatpush3.msra.mxu1 %v221_v38 }
  0xa8   : > { %331 = vmatprep.subr.mxu0 %v224_v39  ;;  %564 = vmatprep.subr.mxu1 %v602_v0 }
  0xaa   : > { %v217_v40 = vpop.permute.xlu0 %216  ;;  %v207_v41 = vpop.permute.xlu1 %206 }
  0xab   : > { %v223_v42 = vsel %vm222_vm7, %v217_v40, %v219_v37 }
  0xac   : > { %332 = vmatpush1.msra.mxu0 %v223_v42 }
  0xae   : > { %v209_v43 = vpop.permute.xlu0 %208  ;;  %v205_v44 = vpop.permute.xlu1 %204 }
  0xaf   : > { %565 = vmatpush3.msra.mxu1 %v209_v43  ;;  %v212_v45 = vsel %vm210_vm8, %v207_v41, %v209_v43  ;;  %v211_v46 = vsel %vm210_vm8, %v205_v44, %v207_v41 }
  0xb0   : > { %333 = vmatprep.subr.mxu0 %v212_v45  ;;  %566 = vmatprep.subr.mxu1 %v602_v0 }
  0xb1   : > { %334 = vmatpush1.msra.mxu0 %v211_v46  ;;  %567 = vmatpush3.msra.mxu1 %v660_v3 }
  0xb2   : > { %335 = vmatprep.subr.mxu0 %v654_v1  ;;  %569 = vmatmul.mubr.msk.f32.vlgmr.msra.gmra.mxu1 %vm301_vm9, %v300_v47 }
  0xb3   : > { %336 = vmatpush1.msra.mxu0 %v656_v2 }
  0xb4   : > { %536 = vmatmul.mubr.msk.f32.vlgmr.msra.gmra.mxu0 %vm301_vm9, %v300_v47 }
  0xbb   : > { %v450_v48 = vpop.permute.xlu0 %449  ;;  %v459_v51 = vpop.permute.xlu1 %458 }
 0x172   : > { %v442_v49 = vpop.f32.mrf.mxu1 }
 0x173   : > { %v454_v50 = vmul.f32 %v450_v48, %v442_v49 }
 0x174   : > { %v371_v52 = vpop.f32.mrf.mxu0  ;;  %v570_v53 = vpop.f32.mrf.mxu1 }
 0x175   : > { %v452_v54 = vmul.f32 %v450_v48, %v371_v52  ;;  %v463_v55 = vadd.f32 %v459_v51, %v454_v50 }
 0x176   : > { %v373_v56 = vpop.f32.mrf.mxu0 }
 0x177   : > { %v453_v57 = vmul.f32 %v450_v48, %v373_v56  ;;  %v461_v58 = vadd.f32 %v459_v51, %v452_v54  ;;  %v466_v59 = vmax.f32 %v463_v55, 0.0 }
 0x179   : > { %v462_v60 = vadd.f32 %v459_v51, %v453_v57  ;;  %473 = vst.msk [vmem:[%s197_s12 + $0x8] sm:$0x7] %vm472_vm10, %v466_v59  ;;  %v464_v61 = vmax.f32 %v461_v58, 0.0 }
 0x17b   : > { %v465_v62 = vmax.f32 %v462_v60, 0.0 }
 0x17d   : > { %v469_v63 = vcombine.low %v464_v61, %v465_v62 }
 0x17f   : > { %471 = vst [vmem:[%s197_s12] sm:$0x77] %v469_v63 }
 0x180 PF: > { %s14_s15 = sadd.s32 1, %s600_s15  }
 0x181   : > { %p11_p4 = scmp.ge.s32.totalorder %s14_s15, 4  }
 0x183   :  { %13 = sbr.rel (!%p11_p4) target bundleno = 1 (0x1), region = 66 }

// kernel: rsu5_forward.17
= control target key start
LH: loop header
LB: loop body
LE: loop exit
PB: predicated region body
PF: predicated region fallthrough
CT: control target
= control target key end

     0   :  { %s676_s15 = smov 0   ;;  %s759_s0 = inlined_call_operand.vmem [shape: f32[2,8,342], index: 0, kind: input, shape index: {}]   ;;  %s760_s1 = inlined_call_operand.vmem [shape: f32[12,72], index: 1, kind: input, shape index: {}]   ;;  %s761_s2 = inlined_call_operand.vmem [shape: f32[12,1], index: 2, kind: input, shape index: {}]   ;;  %s762_s3 = inlined_call_operand.vmem [shape: f32[12,1], index: 3, kind: input, shape index: {}]   ;;  %s763_s4 = inlined_call_operand.vmem [shape: f32[2,12,288], index: 4, kind: output, shape index: {}]  }
   0x1 LB: > { %s566_s16 = sadd.s32 4294967295, %s639_s15   ;;  %p570_p0 = scmp.ge.s32.totalorder %s639_s15, 1  ;;  %s639_s15 = sphi %s676_s15, %s14_s15  }
   0x2   : > { %p162_p1 = scmp.lt.s32.totalorder %s639_s15, 3 }
   0x4   : > { %p163_p2 = pnand %p570_p0, %p162_p1 }
   0x5   : > { %p188_p3 = scmp.lt.s32.totalorder (!%p163_p2), %s566_s16, 1  ;;  %s641_s21 = smov (!%p163_p2), 90  }
   0x6   : > { %166 = sbr.rel (%p163_p2) target bundleno = 386 (0x182), region = 36  ;;  %s642_s22 = smov (!%p163_p2), 91  }
   0x7   : > { %s643_s23 = smov (!%p163_p2), 92   ;;  %s644_s24 = smov (!%p163_p2), 108  }
   0x8   : > { %s645_s25 = smov (!%p163_p2), 109   ;;  %s646_s26 = smov (!%p163_p2), 110  }
   0x9   : > { %s648_s29 = smov (!%p163_p2), 126   ;;  %s649_s30 = smov (!%p163_p2), 127  }
   0xb   : > { %s765_s16 = smov (!%p188_p3, %s566_s16), 1  ;;  %v717_v3 = vld [vmem:[%s760_s1] sm:$0xff]  ;;  %vm302_vm0 = vcmask 588800   ;;  %v647_v4 = vmov 0.0   ;;  %v650_v5 = vmov 0   ;;  %vm294_vm1 = vcmask 736256  }
   0xc   : > { %s611_s17 = smul.u32 24, %s765_s16  ;;  %373 = vmatprep.mubr.f32.mxu0 %v647_v4  ;;  %608 = vmatprep.mubr.msk.f32.mxu1 %vm302_vm0, %v717_v3  ;;  %v462_v6 = vld [vmem:[%s761_s2 + $0x8] sm:$0xf]  ;;  %v461_v7 = vld [vmem:[%s761_s2] sm:$0xff]  ;;  %vm282_vm2 = vcmask 744448   ;;  %vm270_vm3 = vcmask 752640  }
   0xd   : > { %632 = vset.pattern.permute.xlu1 %v650_v5  ;;  %631 = vset.pattern.permute.xlu0 %v650_v5  ;;  %v479_v8 = vld [vmem:[%s762_s3] sm:$0xff]  ;;  %v480_v9 = vld [vmem:[%s762_s3 + $0x8] sm:$0xf]  ;;  %vm258_vm4 = vcmask 883712   ;;  %vm246_vm5 = vcmask 891904   ;;  %vm234_vm6 = vcmask 900096  }
   0xe   : > { %s192_s20 = scalar_lea.vmem %s759_s0, %s611_s17  ;;  %vm222_vm7 = vcmask 1031168   ;;  %vm210_vm8 = vcmask 1039360   ;;  %v301_v50 = vld [vmem:[%s760_s1 + $0x8] sm:$0xf]  ;;  %s612_s17 = smul.u32 48, %s765_s16  ;;  %vm509_vm9 = vcmask 257024  }
   0xf   : > { %v690_v0 = vld [vmem:[%s192_s20 + $0x8] sm:$0xff]  ;;  %v692_v1 = vld [vmem:[%s192_s20] sm:$0xff]  ;;  %v696_v2 = vld [vmem:[%s192_s20 + $0x10] sm:$0xff]  ;;  %vm505_vm10 = vcmask 261120  }
  0x10   : > { %290 = vrot.lane.b32.xlu0 %v690_v0, %s641_s21  ;;  %288 = vrot.lane.b32.xlu1 %v692_v1, %s641_s21  ;;  %s197_s20 = scalar_lea.vmem %s763_s4, %s612_s17 }
  0x14   : > { %292 = vrot.lane.b32.xlu0 %v696_v2, %s641_s21  ;;  %278 = vrot.lane.b32.xlu1 %v690_v0, %s642_s22 }
  0x18   : > { %280 = vrot.lane.b32.xlu0 %v696_v2, %s642_s22  ;;  %276 = vrot.lane.b32.xlu1 %v692_v1, %s642_s22 }
  0x1c   : > { %266 = vrot.lane.b32.xlu0 %v690_v0, %s643_s23  ;;  %268 = vrot.lane.b32.xlu1 %v696_v2, %s643_s23 }
  0x20   : > { %264 = vrot.lane.b32.xlu0 %v692_v1, %s643_s23  ;;  %254 = vrot.lane.b32.xlu1 %v690_v0, %s644_s24 }
  0x24   : > { %256 = vrot.lane.b32.xlu0 %v696_v2, %s644_s24  ;;  %252 = vrot.lane.b32.xlu1 %v692_v1, %s644_s24 }
  0x28   : > { %242 = vrot.lane.b32.xlu0 %v690_v0, %s645_s25  ;;  %244 = vrot.lane.b32.xlu1 %v696_v2, %s645_s25 }
  0x2c   : > { %240 = vrot.lane.b32.xlu0 %v692_v1, %s645_s25  ;;  %230 = vrot.lane.b32.xlu1 %v690_v0, %s646_s26 }
  0x30   : > { %232 = vrot.lane.b32.xlu0 %v696_v2, %s646_s26  ;;  %228 = vrot.lane.b32.xlu1 %v692_v1, %s646_s26 }
  0x34   : > { %218 = vrot.lane.b32.xlu0 %v690_v0, %s648_s29  ;;  %220 = vrot.lane.b32.xlu1 %v696_v2, %s648_s29 }
  0x38   : > { %216 = vrot.lane.b32.xlu0 %v692_v1, %s648_s29  ;;  %206 = vrot.lane.b32.xlu1 %v690_v0, %s649_s30 }
  0x3c   : > { %208 = vrot.lane.b32.xlu0 %v696_v2, %s649_s30  ;;  %204 = vrot.lane.b32.xlu1 %v692_v1, %s649_s30 }
  0x40   : > { %470 = vperm.xlu1 %632, %v462_v6   ;;  %465 = vperm.xlu0 %631, %v461_v7  }
  0x44   : > { %483 = vperm.xlu1 %632, %v479_v8   ;;  %488 = vperm.xlu0 %631, %v480_v9  }
  0x82   : > { %v291_v10 = vpop.permute.xlu0 %290  ;;  %v289_v11 = vpop.permute.xlu1 %288 }
  0x83   : > { %v295_v15 = vsel %vm294_vm1, %v289_v11, %v291_v10 }
  0x86   : > { %v293_v12 = vpop.permute.xlu0 %292  ;;  %v279_v13 = vpop.permute.xlu1 %278 }
  0x87   : > { %590 = vmatprep.subr.mxu1 %v293_v12  ;;  %v296_v14 = vsel %vm294_vm1, %v291_v10, %v293_v12 }
  0x88   : > { %323 = vmatprep.subr.mxu0 %v296_v14  ;;  %591 = vmatpush3.msra.mxu1 %v293_v12 }
  0x89   : > { %324 = vmatpush1.msra.mxu0 %v295_v15 }
  0x8a   : > { %v281_v16 = vpop.permute.xlu0 %280  ;;  %v277_v17 = vpop.permute.xlu1 %276 }
  0x8b   : > { %592 = vmatprep.subr.mxu1 %v281_v16  ;;  %v284_v18 = vsel %vm282_vm2, %v279_v13, %v281_v16  ;;  %v283_v19 = vsel %vm282_vm2, %v277_v17, %v279_v13 }
  0x8c   : > { %325 = vmatprep.subr.mxu0 %v284_v18  ;;  %593 = vmatpush3.msra.mxu1 %v281_v16 }
  0x8d   : > { %326 = vmatpush1.msra.mxu0 %v283_v19 }
  0x8e   : > { %v267_v20 = vpop.permute.xlu0 %266  ;;  %v269_v21 = vpop.permute.xlu1 %268 }
  0x8f   : > { %594 = vmatprep.subr.mxu1 %v269_v21  ;;  %v272_v22 = vsel %vm270_vm3, %v267_v20, %v269_v21 }
  0x90   : > { %327 = vmatprep.subr.mxu0 %v272_v22  ;;  %595 = vmatpush3.msra.mxu1 %v269_v21 }
  0x92   : > { %v265_v23 = vpop.permute.xlu0 %264  ;;  %v255_v24 = vpop.permute.xlu1 %254 }
  0x93   : > { %v271_v25 = vsel %vm270_vm3, %v265_v23, %v267_v20 }
  0x94   : > { %328 = vmatpush1.msra.mxu0 %v271_v25 }
  0x96   : > { %v257_v26 = vpop.permute.xlu0 %256  ;;  %v253_v27 = vpop.permute.xlu1 %252 }
  0x97   : > { %596 = vmatprep.subr.mxu1 %v257_v26  ;;  %v260_v28 = vsel %vm258_vm4, %v255_v24, %v257_v26  ;;  %v259_v29 = vsel %vm258_vm4, %v253_v27, %v255_v24 }
  0x98   : > { %329 = vmatprep.subr.mxu0 %v260_v28  ;;  %597 = vmatpush3.msra.mxu1 %v257_v26 }
  0x99   : > { %330 = vmatpush1.msra.mxu0 %v259_v29 }
  0x9a   : > { %v243_v30 = vpop.permute.xlu0 %242  ;;  %v245_v31 = vpop.permute.xlu1 %244 }
  0x9b   : > { %598 = vmatprep.subr.mxu1 %v245_v31  ;;  %v248_v32 = vsel %vm246_vm5, %v243_v30, %v245_v31 }
  0x9c   : > { %331 = vmatprep.subr.mxu0 %v248_v32  ;;  %599 = vmatpush3.msra.mxu1 %v245_v31 }
  0x9e   : > { %v241_v33 = vpop.permute.xlu0 %240  ;;  %v231_v34 = vpop.permute.xlu1 %230 }
  0x9f   : > { %v247_v35 = vsel %vm246_vm5, %v241_v33, %v243_v30 }
  0xa0   : > { %332 = vmatpush1.msra.mxu0 %v247_v35 }
  0xa2   : > { %v233_v36 = vpop.permute.xlu0 %232  ;;  %v229_v37 = vpop.permute.xlu1 %228 }
  0xa3   : > { %600 = vmatprep.subr.mxu1 %v233_v36  ;;  %v236_v38 = vsel %vm234_vm6, %v231_v34, %v233_v36  ;;  %v235_v39 = vsel %vm234_vm6, %v229_v37, %v231_v34 }
  0xa4   : > { %333 = vmatprep.subr.mxu0 %v236_v38  ;;  %601 = vmatpush3.msra.mxu1 %v233_v36 }
  0xa5   : > { %334 = vmatpush1.msra.mxu0 %v235_v39 }
  0xa6   : > { %v219_v40 = vpop.permute.xlu0 %218  ;;  %v221_v41 = vpop.permute.xlu1 %220 }
  0xa7   : > { %602 = vmatprep.subr.mxu1 %v221_v41  ;;  %v224_v42 = vsel %vm222_vm7, %v219_v40, %v221_v41 }
  0xa8   : > { %335 = vmatprep.subr.mxu0 %v224_v42  ;;  %603 = vmatpush3.msra.mxu1 %v221_v41 }
  0xaa   : > { %v217_v43 = vpop.permute.xlu0 %216  ;;  %v207_v44 = vpop.permute.xlu1 %206 }
  0xab   : > { %v223_v45 = vsel %vm222_vm7, %v217_v43, %v219_v40 }
  0xac   : > { %336 = vmatpush1.msra.mxu0 %v223_v45 }
  0xae   : > { %v209_v46 = vpop.permute.xlu0 %208  ;;  %v205_v47 = vpop.permute.xlu1 %204 }
  0xaf   : > { %604 = vmatprep.subr.mxu1 %v209_v46  ;;  %v212_v48 = vsel %vm210_vm8, %v207_v44, %v209_v46  ;;  %v211_v49 = vsel %vm210_vm8, %v205_v47, %v207_v44 }
  0xb0   : > { %337 = vmatprep.subr.mxu0 %v212_v48  ;;  %605 = vmatpush3.msra.mxu1 %v209_v46 }
  0xb1   : > { %338 = vmatpush1.msra.mxu0 %v211_v49  ;;  %606 = vmatprep.subr.mxu1 %v696_v2 }
  0xb2   : > { %339 = vmatprep.subr.mxu0 %v690_v0  ;;  %607 = vmatpush3.msra.mxu1 %v696_v2 }
  0xb3   : > { %340 = vmatpush1.msra.mxu0 %v692_v1  ;;  %609 = vmatmul.mubr.msk.f32.vlgmr.msra.gmra.mxu1 %vm302_vm0, %v301_v50 }
  0xb4   : > { %573 = vmatmul.mubr.msk.f32.vlgmr.msra.gmra.mxu0 %vm302_vm0, %v717_v3 }
  0xb5   : > { %379 = vmatprep.mubr.f32.mxu0 %v647_v4 }
  0xb8   : > { %574 = vmatmul.mubr.msk.f32.gmra.mxu0 %vm302_vm0, %v301_v50 }
  0xbb   : > { %v466_v51 = vpop.permute.xlu0 %465  ;;  %v471_v52 = vpop.permute.xlu1 %470 }
  0xbf   : > { %v489_v54 = vpop.permute.xlu0 %488  ;;  %v484_v57 = vpop.permute.xlu1 %483 }
 0x173   : > { %v610_v53 = vpop.f32.mrf.mxu1 }
 0x174   : > { %v375_v55 = vpop.f32.mrf.mxu0  ;;  %v478_v56 = vmul.f32 %v610_v53, %v471_v52 }
 0x175   : > { %v473_v58 = vmul.f32 %v466_v51, %v375_v55  ;;  %v452_v59 = vpop.f32.mrf.mxu1 }
 0x176   : > { %v377_v60 = vpop.f32.mrf.mxu0  ;;  %v475_v61 = vmul.f32 %v466_v51, %v452_v59  ;;  %v496_v62 = vadd.f32 %v489_v54, %v478_v56 }
 0x177   : > { %v474_v63 = vmul.f32 %v466_v51, %v377_v60  ;;  %v491_v0 = vadd.f32 %v484_v57, %v473_v58 }
 0x178   : > { %v493_v1 = vadd.f32 %v484_v57, %v475_v61  ;;  %v502_v2 = vmax.f32 %v496_v62, 0.0  ;;  %v381_v3 = vpop.f32.mrf.mxu0 }
 0x179   : > { %v492_v4 = vadd.f32 %v484_v57, %v474_v63  ;;  %v497_v5 = vmax.f32 %v491_v0, 0.0  ;;  %v476_v6 = vmul.f32 %v471_v52, %v381_v3 }
 0x17a   : > { %v499_v7 = vmax.f32 %v493_v1, 0.0  ;;  %510 = vst.msk [vmem:[%s197_s20 + $0x28] sm:$0xf] %vm509_vm9, %v502_v2  ;;  %v383_v8 = vpop.f32.mrf.mxu0 }
 0x17b   : > { %v498_v9 = vmax.f32 %v492_v4, 0.0  ;;  %503 = vst [vmem:[%s197_s20] sm:$0xff] %v497_v5  ;;  %v494_v10 = vadd.f32 %v489_v54, %v476_v6  ;;  %v477_v11 = vmul.f32 %v471_v52, %v383_v8 }
 0x17c   : > { %506 = vst.msk [vmem:[%s197_s20 + $0x10] sm:$0xff] %vm505_vm10, %v499_v7 }
 0x17d   : > { %504 = vst [vmem:[%s197_s20 + $0x8] sm:$0xff] %v498_v9  ;;  %v500_v12 = vmax.f32 %v494_v10, 0.0  ;;  %v495_v13 = vadd.f32 %v489_v54, %v477_v11 }
 0x17f   : > { %507 = vst [vmem:[%s197_s20 + $0x18] sm:$0xf] %v500_v12  ;;  %v501_v14 = vmax.f32 %v495_v13, 0.0 }
 0x181   : > { %508 = vst [vmem:[%s197_s20 + $0x20] sm:$0xf] %v501_v14 }
 0x182 PF: > { %s14_s15 = sadd.s32 1, %s639_s15  }
 0x183   : > { %p11_p4 = scmp.ge.s32.totalorder %s14_s15, 4  }
 0x185   :  { %13 = sbr.rel (!%p11_p4) target bundleno = 1 (0x1), region = 66 }

// kernel: rsu5_forward.18
= control target key start
LH: loop header
LB: loop body
LE: loop exit
PB: predicated region body
PF: predicated region fallthrough
CT: control target
= control target key end

     0   :  { %s238_s6 = smov 0   ;;  %s255_s0 = inlined_call_operand.vmem [shape: f32[2,4,12,64], index: 0, kind: input, shape index: {}]   ;;  %s256_s1 = inlined_call_operand.vmem [shape: f32[2,12,64], index: 1, kind: output, shape index: {}]  }
   0x1 LB: > { %s193_s7 = sadd.s32 4294967295, %s226_s6   ;;  %p197_p0 = scmp.ge.s32.totalorder %s226_s6, 1  ;;  %s226_s6 = sphi %s238_s6, %s11_s6  }
   0x2   : > { %p87_p1 = scmp.lt.s32.totalorder %s226_s6, 3 }
   0x4   : > { %p88_p2 = pnand %p197_p0, %p87_p1 }
   0x5   : > { %p107_p3 = scmp.lt.s32.totalorder (!%p88_p2), %s193_s7, 1 }
   0x6   : > { %91 = sbr.rel (%p88_p2) target bundleno = 22 (0x16), region = 24 }
   0xb   : > { %s258_s7 = smov (!%p107_p3, %s193_s7), 1  ;;  %vm134_vm0 = vcmask 523264   ;;  %vm136_vm1 = vcmask 519168  }
   0xc   : > { %s210_s8 = sshll.u32 %s258_s7, 6  ;;  %s211_s12 = sshll.u32 %s258_s7, 4 }
   0xd   : > { %s111_s11 = scalar_lea.vmem %s255_s0, %s210_s8  ;;  %s116_s15 = scalar_lea.vmem %s256_s1, %s211_s12 }
   0xe   : > { %v117_v0 = vld [vmem:[%s111_s11] sm:$0xff]  ;;  %v202_v1 = vld [vmem:[%s111_s11 + $0x10] sm:$0xff]  ;;  %v118_v5 = vld [vmem:[%s111_s11 + $0x8] sm:$0xf] }
   0xf   : > { %v204_v2 = vld [vmem:[%s111_s11 + $0x20] sm:$0xff]  ;;  %v122_v3 = vmax.f32 %v117_v0, %v202_v1  ;;  %v206_v4 = vld [vmem:[%s111_s11 + $0x30] sm:$0xff]  ;;  %v203_v6 = vld [vmem:[%s111_s11 + $0x18] sm:$0xf] }
  0x10   : > { %v130_v7 = vmax.f32 %v204_v2, %v206_v4  ;;  %v123_v8 = vmax.f32 %v118_v5, %v203_v6  ;;  %v205_v9 = vld [vmem:[%s111_s11 + $0x28] sm:$0xf]  ;;  %v207_v10 = vld [vmem:[%s111_s11 + $0x38] sm:$0xf] }
  0x11   : > { %v131_v11 = vmax.f32 %v205_v9, %v207_v10 }
  0x12   : > { %v132_v12 = vmax.f32 %v122_v3, %v130_v7 }
  0x13   : > { %v133_v13 = vmax.f32 %v123_v8, %v131_v11 }
  0x14   : > { %135 = vst.msk [vmem:[%s116_s15] sm:$0xff] %vm134_vm0, %v132_v12 }
  0x15   : > { %137 = vst.msk [vmem:[%s116_s15 + $0x8] sm:$0xf] %vm136_vm1, %v133_v13 }
  0x16 PF: > { %s11_s6 = sadd.s32 1, %s226_s6  }
  0x17   : > { %p8_p4 = scmp.ge.s32.totalorder %s11_s6, 4  }
  0x19   :  { %10 = sbr.rel (!%p8_p4) target bundleno = 1 (0x1), region = 57 }

// kernel: rsu5_forward.19
= control target key start
LH: loop header
LB: loop body
LE: loop exit
PB: predicated region body
PF: predicated region fallthrough
CT: control target
= control target key end

     0   :  { %s539_s15 = smov 0   ;;  %s647_s0 = inlined_call_operand.vmem [shape: f32[2,16,110], index: 0, kind: input, shape index: {}]   ;;  %s648_s1 = inlined_call_operand.vmem [shape: f32[12,144], index: 1, kind: input, shape index: {}]   ;;  %s649_s2 = inlined_call_operand.vmem [shape: f32[12,1], index: 2, kind: input, shape index: {}]   ;;  %s650_s3 = inlined_call_operand.vmem [shape: f32[12,1], index: 3, kind: input, shape index: {}]   ;;  %s651_s4 = inlined_call_operand.vmem [shape: f32[2,12,80], index: 4, kind: output, shape index: {}]  }
   0x1 LB: > { %s425_s16 = sadd.s32 4294967295, %s502_s15   ;;  %p429_p0 = scmp.ge.s32.totalorder %s502_s15, 1  ;;  %s502_s15 = sphi %s539_s15, %s14_s15  }
   0x2   : > { %p162_p1 = scmp.lt.s32.totalorder %s502_s15, 3 }
   0x4   : > { %p163_p2 = pnand %p429_p0, %p162_p1 }
   0x5   : > { %p188_p3 = scmp.lt.s32.totalorder (!%p163_p2), %s425_s16, 1  ;;  %s505_s21 = smov (!%p163_p2), 107  }
   0x6   : > { %166 = sbr.rel (%p163_p2) target bundleno = 368 (0x170), region = 36  ;;  %s506_s22 = smov (!%p163_p2), 108  }
   0x7   : > { %s507_s23 = smov (!%p163_p2), 116   ;;  %s508_s24 = smov (!%p163_p2), 117  }
   0x8   : > { %s509_s25 = smov (!%p163_p2), 118   ;;  %s510_s26 = smov (!%p163_p2), 126  }
   0x9   : > { %s511_s5 = smov (!%p163_p2), 127   ;;  %s513_s6 = smov (!%p163_p2), 106  }
   0xb   : > { %v504_v0 = vmov 0.0   ;;  %s653_s16 = smov (!%p188_p3, %s425_s16), 1  ;;  %v251_v3 = vld [vmem:[%s648_s1 + $0x8] sm:$0xff]  ;;  %vm254_vm0 = vcmask 130048   ;;  %v253_v4 = vld [vmem:[%s648_s1 + $0x18] sm:$0xf] }
   0xc   : > { %261 = vmatprep.subr.mxu0 %v504_v0  ;;  %440 = vmatprep.subr.mxu1 %v504_v0  ;;  %s438_s17 = sshll.u32 %s653_s16, 4  ;;  %v512_v5 = vmov 0   ;;  %v337_v6 = vld [vmem:[%s649_s2 + $0x8] sm:$0xf]  ;;  %v336_v7 = vld [vmem:[%s649_s2] sm:$0xff]  ;;  %vm366_vm1 = vcmask 654336  }
   0xd   : > { %s192_s20 = scalar_lea.vmem %s647_s0, %s438_s17  ;;  %434 = vmatprep.mubr.msk.f32.mxu0 %vm254_vm0, %v251_v3  ;;  %435 = vmatprep.mubr.msk.f32.mxu1 %vm254_vm0, %v253_v4  ;;  %v350_v8 = vld [vmem:[%s650_s3] sm:$0xff]  ;;  %v351_v9 = vld [vmem:[%s650_s3 + $0x8] sm:$0xf]  ;;  %v252_v27 = vld [vmem:[%s648_s1 + $0x10] sm:$0xf]  ;;  %vm368_vm2 = vcmask 650240  }
   0xe   : > { %v557_v1 = vld [vmem:[%s192_s20 + $0x8] sm:$0xff]  ;;  %v561_v2 = vld [vmem:[%s192_s20] sm:$0xff]  ;;  %495 = vset.pattern.permute.xlu1 %v512_v5  ;;  %494 = vset.pattern.permute.xlu0 %v512_v5 }
   0xf   : > { %240 = vrot.lane.b32.xlu0 %v557_v1, %s505_s21  ;;  %234 = vrot.lane.b32.xlu1 %v557_v1, %s506_s22  ;;  %v250_v26 = vld [vmem:[%s648_s1] sm:$0xff] }
  0x13   : > { %238 = vrot.lane.b32.xlu0 %v561_v2, %s505_s21  ;;  %232 = vrot.lane.b32.xlu1 %v561_v2, %s506_s22 }
  0x17   : > { %228 = vrot.lane.b32.xlu0 %v557_v1, %s507_s23  ;;  %226 = vrot.lane.b32.xlu1 %v561_v2, %s507_s23 }
  0x1b   : > { %222 = vrot.lane.b32.xlu0 %v557_v1, %s508_s24  ;;  %220 = vrot.lane.b32.xlu1 %v561_v2, %s508_s24  ;;  %s197_s24 = scalar_lea.vmem %s651_s4, %s438_s17 }
  0x1f   : > { %216 = vrot.lane.b32.xlu0 %v557_v1, %s509_s25  ;;  %214 = vrot.lane.b32.xlu1 %v561_v2, %s509_s25 }
  0x23   : > { %210 = vrot.lane.b32.xlu0 %v557_v1, %s510_s26  ;;  %208 = vrot.lane.b32.xlu1 %v561_v2, %s510_s26 }
  0x27   : > { %204 = vrot.lane.b32.xlu0 %v557_v1, %s511_s5  ;;  %202 = vrot.lane.b32.xlu1 %v561_v2, %s511_s5 }
  0x2b   : > { %246 = vrot.lane.b32.xlu0 %v557_v1, %s513_s6  ;;  %244 = vrot.lane.b32.xlu1 %v561_v2, %s513_s6 }
  0x2f   : > { %345 = vperm.xlu1 %495, %v337_v6   ;;  %340 = vperm.xlu0 %494, %v336_v7  }
  0x33   : > { %354 = vperm.xlu1 %495, %v350_v8   ;;  %359 = vperm.xlu0 %494, %v351_v9  }
  0x81   : > { %v241_v10 = vpop.permute.xlu0 %240  ;;  %v235_v11 = vpop.permute.xlu1 %234 }
  0x82   : > { %262 = vmatpush1.msra.mxu0 %v241_v10  ;;  %458 = vmatpush1.msra.mxu1 %v241_v10 }
  0x83   : > { %263 = vmatprep.subr.mxu0 %v504_v0  ;;  %441 = vmatprep.subr.mxu1 %v504_v0 }
  0x85   : > { %v239_v12 = vpop.permute.xlu0 %238  ;;  %v233_v13 = vpop.permute.xlu1 %232 }
  0x86   : > { %264 = vmatpush1.msra.mxu0 %v239_v12  ;;  %459 = vmatpush1.msra.mxu1 %v239_v12 }
  0x87   : > { %265 = vmatprep.subr.mxu0 %v504_v0  ;;  %442 = vmatprep.subr.mxu1 %v504_v0 }
  0x88   : > { %266 = vmatpush1.msra.mxu0 %v235_v11  ;;  %460 = vmatpush1.msra.mxu1 %v235_v11 }
  0x89   : > { %267 = vmatprep.subr.mxu0 %v504_v0  ;;  %443 = vmatprep.subr.mxu1 %v504_v0  ;;  %v229_v14 = vpop.permute.xlu0 %228  ;;  %v227_v15 = vpop.permute.xlu1 %226 }
  0x8a   : > { %268 = vmatpush1.msra.mxu0 %v233_v13  ;;  %461 = vmatpush1.msra.mxu1 %v233_v13 }
  0x8b   : > { %269 = vmatprep.subr.mxu0 %v504_v0  ;;  %444 = vmatprep.subr.mxu1 %v504_v0 }
  0x8c   : > { %270 = vmatpush1.msra.mxu0 %v229_v14  ;;  %462 = vmatpush1.msra.mxu1 %v229_v14 }
  0x8d   : > { %271 = vmatprep.subr.mxu0 %v504_v0  ;;  %445 = vmatprep.subr.mxu1 %v504_v0  ;;  %v223_v16 = vpop.permute.xlu0 %222  ;;  %v221_v17 = vpop.permute.xlu1 %220 }
  0x8e   : > { %272 = vmatpush1.msra.mxu0 %v227_v15  ;;  %463 = vmatpush1.msra.mxu1 %v227_v15 }
  0x8f   : > { %273 = vmatprep.subr.mxu0 %v504_v0  ;;  %446 = vmatprep.subr.mxu1 %v504_v0 }
  0x90   : > { %274 = vmatpush1.msra.mxu0 %v223_v16  ;;  %464 = vmatpush1.msra.mxu1 %v223_v16 }
  0x91   : > { %275 = vmatprep.subr.mxu0 %v504_v0  ;;  %447 = vmatprep.subr.mxu1 %v504_v0  ;;  %v217_v18 = vpop.permute.xlu0 %216  ;;  %v215_v19 = vpop.permute.xlu1 %214 }
  0x92   : > { %276 = vmatpush1.msra.mxu0 %v221_v17  ;;  %465 = vmatpush1.msra.mxu1 %v221_v17 }
  0x93   : > { %277 = vmatprep.subr.mxu0 %v504_v0  ;;  %448 = vmatprep.subr.mxu1 %v504_v0 }
  0x94   : > { %278 = vmatpush1.msra.mxu0 %v217_v18  ;;  %466 = vmatpush1.msra.mxu1 %v217_v18 }
  0x95   : > { %279 = vmatprep.subr.mxu0 %v504_v0  ;;  %449 = vmatprep.subr.mxu1 %v504_v0  ;;  %v211_v20 = vpop.permute.xlu0 %210  ;;  %v209_v21 = vpop.permute.xlu1 %208 }
  0x96   : > { %280 = vmatpush1.msra.mxu0 %v215_v19  ;;  %467 = vmatpush1.msra.mxu1 %v215_v19 }
  0x97   : > { %281 = vmatprep.subr.mxu0 %v504_v0  ;;  %450 = vmatprep.subr.mxu1 %v504_v0 }
  0x98   : > { %282 = vmatpush1.msra.mxu0 %v211_v20  ;;  %468 = vmatpush1.msra.mxu1 %v211_v20 }
  0x99   : > { %283 = vmatprep.subr.mxu0 %v504_v0  ;;  %451 = vmatprep.subr.mxu1 %v504_v0  ;;  %v205_v22 = vpop.permute.xlu0 %204  ;;  %v203_v23 = vpop.permute.xlu1 %202 }
  0x9a   : > { %284 = vmatpush1.msra.mxu0 %v209_v21  ;;  %469 = vmatpush1.msra.mxu1 %v209_v21 }
  0x9b   : > { %285 = vmatprep.subr.mxu0 %v504_v0  ;;  %452 = vmatprep.subr.mxu1 %v504_v0 }
  0x9c   : > { %286 = vmatpush1.msra.mxu0 %v205_v22  ;;  %470 = vmatpush1.msra.mxu1 %v205_v22 }
  0x9d   : > { %287 = vmatprep.subr.mxu0 %v504_v0  ;;  %453 = vmatprep.subr.mxu1 %v504_v0  ;;  %v247_v24 = vpop.permute.xlu0 %246  ;;  %v245_v25 = vpop.permute.xlu1 %244 }
  0x9e   : > { %288 = vmatpush1.msra.mxu0 %v203_v23  ;;  %471 = vmatpush1.msra.mxu1 %v203_v23 }
  0x9f   : > { %289 = vmatprep.subr.mxu0 %v504_v0  ;;  %454 = vmatprep.subr.mxu1 %v504_v0 }
  0xa0   : > { %290 = vmatpush1.msra.mxu0 %v557_v1  ;;  %472 = vmatpush1.msra.mxu1 %v557_v1 }
  0xa1   : > { %291 = vmatprep.subr.mxu0 %v504_v0  ;;  %455 = vmatprep.subr.mxu1 %v504_v0 }
  0xa2   : > { %292 = vmatpush1.msra.mxu0 %v561_v2  ;;  %473 = vmatpush1.msra.mxu1 %v561_v2 }
  0xa3   : > { %321 = vmatprep.subr.mxu0 %v504_v0  ;;  %456 = vmatprep.subr.mxu1 %v504_v0 }
  0xa4   : > { %322 = vmatpush2.msra.mxu0 %v247_v24  ;;  %474 = vmatpush2.msra.mxu1 %v247_v24 }
  0xa5   : > { %323 = vmatprep.subr.mxu0 %v504_v0  ;;  %457 = vmatprep.subr.mxu1 %v504_v0 }
  0xa6   : > { %324 = vmatpush2.msra.mxu0 %v245_v25  ;;  %475 = vmatpush2.msra.mxu1 %v245_v25 }
  0xa7   : > { %326 = vmatmul.mubr.f32.vlgmr.msra.gmra.mxu0 %v250_v26  ;;  %331 = vmatmul.mubr.f32.vlgmr.msra.gmra.mxu1 %v252_v27 }
  0xaa   : > { %v346_v28 = vpop.permute.xlu1 %345  ;;  %v341_v29 = vpop.permute.xlu0 %340 }
  0xae   : > { %v355_v32 = vpop.permute.xlu1 %354  ;;  %v360_v33 = vpop.permute.xlu0 %359 }
 0x167   : > { %v327_v30 = vpop.f32.mrf.mxu0  ;;  %v332_v31 = vpop.f32.mrf.mxu1 }
 0x168   : > { %v348_v34 = vmul.f32 %v341_v29, %v327_v30  ;;  %v349_v35 = vmul.f32 %v346_v28, %v332_v31 }
 0x169   : > { %v329_v36 = vpop.f32.mrf.mxu0  ;;  %v334_v37 = vpop.f32.mrf.mxu1 }
 0x16a   : > { %v362_v38 = vadd.f32 %v355_v32, %v348_v34  ;;  %v363_v39 = vadd.f32 %v360_v33, %v349_v35 }
 0x16c   : > { %v364_v40 = vmax.f32 %v362_v38, 0.0  ;;  %v365_v41 = vmax.f32 %v363_v39, 0.0 }
 0x16e   : > { %367 = vst.msk [vmem:[%s197_s24] sm:$0xff] %vm366_vm1, %v364_v40 }
 0x16f   : > { %369 = vst.msk [vmem:[%s197_s24 + $0x8] sm:$0xf] %vm368_vm2, %v365_v41 }
 0x170 PF: > { %s14_s15 = sadd.s32 1, %s502_s15  }
 0x171   : > { %p11_p4 = scmp.ge.s32.totalorder %s14_s15, 4  }
 0x173   :  { %13 = sbr.rel (!%p11_p4) target bundleno = 1 (0x1), region = 66 }

// kernel: rsu5_forward.20
= control target key start
LH: loop header
LB: loop body
LE: loop exit
PB: predicated region body
PF: predicated region fallthrough
CT: control target
= control target key end

     0   :  { %s238_s6 = smov 0   ;;  %s255_s0 = inlined_call_operand.vmem [shape: f32[2,4,12,16], index: 0, kind: input, shape index: {}]   ;;  %s256_s1 = inlined_call_operand.vmem [shape: f32[2,12,16], index: 1, kind: output, shape index: {}]  }
   0x1 LB: > { %s193_s7 = sadd.s32 4294967295, %s226_s6   ;;  %p197_p0 = scmp.ge.s32.totalorder %s226_s6, 1  ;;  %s226_s6 = sphi %s238_s6, %s11_s6  }
   0x2   : > { %p87_p1 = scmp.lt.s32.totalorder %s226_s6, 3 }
   0x4   : > { %p88_p2 = pnand %p197_p0, %p87_p1 }
   0x5   : > { %p107_p3 = scmp.lt.s32.totalorder (!%p88_p2), %s193_s7, 1 }
   0x6   : > { %91 = sbr.rel (%p88_p2) target bundleno = 22 (0x16), region = 24 }
   0xb   : > { %s258_s7 = smov (!%p107_p3, %s193_s7), 1  ;;  %vm134_vm0 = vcmask 130048   ;;  %vm136_vm1 = vcmask 125952  }
   0xc   : > { %s210_s8 = sshll.u32 %s258_s7, 6  ;;  %s211_s12 = sshll.u32 %s258_s7, 4 }
   0xd   : > { %s111_s11 = scalar_lea.vmem %s255_s0, %s210_s8  ;;  %s116_s15 = scalar_lea.vmem %s256_s1, %s211_s12 }
   0xe   : > { %v117_v0 = vld [vmem:[%s111_s11] sm:$0xff]  ;;  %v202_v1 = vld [vmem:[%s111_s11 + $0x10] sm:$0xff]  ;;  %v118_v5 = vld [vmem:[%s111_s11 + $0x8] sm:$0xf] }
   0xf   : > { %v204_v2 = vld [vmem:[%s111_s11 + $0x20] sm:$0xff]  ;;  %v122_v3 = vmax.f32 %v117_v0, %v202_v1  ;;  %v206_v4 = vld [vmem:[%s111_s11 + $0x30] sm:$0xff]  ;;  %v203_v6 = vld [vmem:[%s111_s11 + $0x18] sm:$0xf] }
  0x10   : > { %v130_v7 = vmax.f32 %v204_v2, %v206_v4  ;;  %v123_v8 = vmax.f32 %v118_v5, %v203_v6  ;;  %v205_v9 = vld [vmem:[%s111_s11 + $0x28] sm:$0xf]  ;;  %v207_v10 = vld [vmem:[%s111_s11 + $0x38] sm:$0xf] }
  0x11   : > { %v131_v11 = vmax.f32 %v205_v9, %v207_v10 }
  0x12   : > { %v132_v12 = vmax.f32 %v122_v3, %v130_v7 }
  0x13   : > { %v133_v13 = vmax.f32 %v123_v8, %v131_v11 }
  0x14   : > { %135 = vst.msk [vmem:[%s116_s15] sm:$0xff] %vm134_vm0, %v132_v12 }
  0x15   : > { %137 = vst.msk [vmem:[%s116_s15 + $0x8] sm:$0xf] %vm136_vm1, %v133_v13 }
  0x16 PF: > { %s11_s6 = sadd.s32 1, %s226_s6  }
  0x17   : > { %p8_p4 = scmp.ge.s32.totalorder %s11_s6, 4  }
  0x19   :  { %10 = sbr.rel (!%p8_p4) target bundleno = 1 (0x1), region = 57 }

// kernel: rsu5_forward.21
= control target key start
LH: loop header
LB: loop body
LE: loop exit
PB: predicated region body
PF: predicated region fallthrough
CT: control target
= control target key end

     0   :  { %s539_s15 = smov 0   ;;  %s647_s0 = inlined_call_operand.vmem [shape: f32[2,16,42], index: 0, kind: input, shape index: {}]   ;;  %s648_s1 = inlined_call_operand.vmem [shape: f32[12,144], index: 1, kind: input, shape index: {}]   ;;  %s649_s2 = inlined_call_operand.vmem [shape: f32[12,1], index: 2, kind: input, shape index: {}]   ;;  %s650_s3 = inlined_call_operand.vmem [shape: f32[12,1], index: 3, kind: input, shape index: {}]   ;;  %s651_s4 = inlined_call_operand.vmem [shape: f32[2,12,24], index: 4, kind: output, shape index: {}]  }
   0x1 LB: > { %s425_s16 = sadd.s32 4294967295, %s502_s15   ;;  %p429_p0 = scmp.ge.s32.totalorder %s502_s15, 1  ;;  %s502_s15 = sphi %s539_s15, %s14_s15  }
   0x2   : > { %p162_p1 = scmp.lt.s32.totalorder %s502_s15, 3 }
   0x4   : > { %p163_p2 = pnand %p429_p0, %p162_p1 }
   0x5   : > { %p188_p3 = scmp.lt.s32.totalorder (!%p163_p2), %s425_s16, 1  ;;  %s505_s21 = smov (!%p163_p2), 115  }
   0x6   : > { %166 = sbr.rel (%p163_p2) target bundleno = 368 (0x170), region = 36  ;;  %s506_s22 = smov (!%p163_p2), 116  }
   0x7   : > { %s507_s23 = smov (!%p163_p2), 120   ;;  %s508_s24 = smov (!%p163_p2), 121  }
   0x8   : > { %s509_s25 = smov (!%p163_p2), 122   ;;  %s510_s26 = smov (!%p163_p2), 126  }
   0x9   : > { %s511_s5 = smov (!%p163_p2), 127   ;;  %s513_s6 = smov (!%p163_p2), 114  }
   0xb   : > { %v504_v0 = vmov 0.0   ;;  %s653_s16 = smov (!%p188_p3, %s425_s16), 1  ;;  %v251_v3 = vld [vmem:[%s648_s1 + $0x8] sm:$0xff]  ;;  %vm254_vm0 = vcmask 130048   ;;  %v253_v4 = vld [vmem:[%s648_s1 + $0x18] sm:$0xf] }
   0xc   : > { %261 = vmatprep.subr.mxu0 %v504_v0  ;;  %440 = vmatprep.subr.mxu1 %v504_v0  ;;  %s438_s17 = sshll.u32 %s653_s16, 4  ;;  %v512_v5 = vmov 0   ;;  %v337_v6 = vld [vmem:[%s649_s2 + $0x8] sm:$0xf]  ;;  %v336_v7 = vld [vmem:[%s649_s2] sm:$0xff]  ;;  %vm366_vm1 = vcmask 195584  }
   0xd   : > { %s192_s20 = scalar_lea.vmem %s647_s0, %s438_s17  ;;  %434 = vmatprep.mubr.msk.f32.mxu0 %vm254_vm0, %v251_v3  ;;  %435 = vmatprep.mubr.msk.f32.mxu1 %vm254_vm0, %v253_v4  ;;  %v350_v8 = vld [vmem:[%s650_s3] sm:$0xff]  ;;  %v351_v9 = vld [vmem:[%s650_s3 + $0x8] sm:$0xf]  ;;  %v252_v27 = vld [vmem:[%s648_s1 + $0x10] sm:$0xf]  ;;  %vm368_vm2 = vcmask 191488  }
   0xe   : > { %v557_v1 = vld [vmem:[%s192_s20 + $0x8] sm:$0xff]  ;;  %v561_v2 = vld [vmem:[%s192_s20] sm:$0xff]  ;;  %495 = vset.pattern.permute.xlu1 %v512_v5  ;;  %494 = vset.pattern.permute.xlu0 %v512_v5 }
   0xf   : > { %240 = vrot.lane.b32.xlu0 %v557_v1, %s505_s21  ;;  %234 = vrot.lane.b32.xlu1 %v557_v1, %s506_s22  ;;  %v250_v26 = vld [vmem:[%s648_s1] sm:$0xff] }
  0x13   : > { %238 = vrot.lane.b32.xlu0 %v561_v2, %s505_s21  ;;  %232 = vrot.lane.b32.xlu1 %v561_v2, %s506_s22 }
  0x17   : > { %228 = vrot.lane.b32.xlu0 %v557_v1, %s507_s23  ;;  %226 = vrot.lane.b32.xlu1 %v561_v2, %s507_s23 }
  0x1b   : > { %222 = vrot.lane.b32.xlu0 %v557_v1, %s508_s24  ;;  %220 = vrot.lane.b32.xlu1 %v561_v2, %s508_s24  ;;  %s197_s24 = scalar_lea.vmem %s651_s4, %s438_s17 }
  0x1f   : > { %216 = vrot.lane.b32.xlu0 %v557_v1, %s509_s25  ;;  %214 = vrot.lane.b32.xlu1 %v561_v2, %s509_s25 }
  0x23   : > { %210 = vrot.lane.b32.xlu0 %v557_v1, %s510_s26  ;;  %208 = vrot.lane.b32.xlu1 %v561_v2, %s510_s26 }
  0x27   : > { %204 = vrot.lane.b32.xlu0 %v557_v1, %s511_s5  ;;  %202 = vrot.lane.b32.xlu1 %v561_v2, %s511_s5 }
  0x2b   : > { %246 = vrot.lane.b32.xlu0 %v557_v1, %s513_s6  ;;  %244 = vrot.lane.b32.xlu1 %v561_v2, %s513_s6 }
  0x2f   : > { %345 = vperm.xlu1 %495, %v337_v6   ;;  %340 = vperm.xlu0 %494, %v336_v7  }
  0x33   : > { %354 = vperm.xlu1 %495, %v350_v8   ;;  %359 = vperm.xlu0 %494, %v351_v9  }
  0x81   : > { %v241_v10 = vpop.permute.xlu0 %240  ;;  %v235_v11 = vpop.permute.xlu1 %234 }
  0x82   : > { %262 = vmatpush1.msra.mxu0 %v241_v10  ;;  %458 = vmatpush1.msra.mxu1 %v241_v10 }
  0x83   : > { %263 = vmatprep.subr.mxu0 %v504_v0  ;;  %441 = vmatprep.subr.mxu1 %v504_v0 }
  0x85   : > { %v239_v12 = vpop.permute.xlu0 %238  ;;  %v233_v13 = vpop.permute.xlu1 %232 }
  0x86   : > { %264 = vmatpush1.msra.mxu0 %v239_v12  ;;  %459 = vmatpush1.msra.mxu1 %v239_v12 }
  0x87   : > { %265 = vmatprep.subr.mxu0 %v504_v0  ;;  %442 = vmatprep.subr.mxu1 %v504_v0 }
  0x88   : > { %266 = vmatpush1.msra.mxu0 %v235_v11  ;;  %460 = vmatpush1.msra.mxu1 %v235_v11 }
  0x89   : > { %267 = vmatprep.subr.mxu0 %v504_v0  ;;  %443 = vmatprep.subr.mxu1 %v504_v0  ;;  %v229_v14 = vpop.permute.xlu0 %228  ;;  %v227_v15 = vpop.permute.xlu1 %226 }
  0x8a   : > { %268 = vmatpush1.msra.mxu0 %v233_v13  ;;  %461 = vmatpush1.msra.mxu1 %v233_v13 }
  0x8b   : > { %269 = vmatprep.subr.mxu0 %v504_v0  ;;  %444 = vmatprep.subr.mxu1 %v504_v0 }
  0x8c   : > { %270 = vmatpush1.msra.mxu0 %v229_v14  ;;  %462 = vmatpush1.msra.mxu1 %v229_v14 }
  0x8d   : > { %271 = vmatprep.subr.mxu0 %v504_v0  ;;  %445 = vmatprep.subr.mxu1 %v504_v0  ;;  %v223_v16 = vpop.permute.xlu0 %222  ;;  %v221_v17 = vpop.permute.xlu1 %220 }
  0x8e   : > { %272 = vmatpush1.msra.mxu0 %v227_v15  ;;  %463 = vmatpush1.msra.mxu1 %v227_v15 }
  0x8f   : > { %273 = vmatprep.subr.mxu0 %v504_v0  ;;  %446 = vmatprep.subr.mxu1 %v504_v0 }
  0x90   : > { %274 = vmatpush1.msra.mxu0 %v223_v16  ;;  %464 = vmatpush1.msra.mxu1 %v223_v16 }
  0x91   : > { %275 = vmatprep.subr.mxu0 %v504_v0  ;;  %447 = vmatprep.subr.mxu1 %v504_v0  ;;  %v217_v18 = vpop.permute.xlu0 %216  ;;  %v215_v19 = vpop.permute.xlu1 %214 }
  0x92   : > { %276 = vmatpush1.msra.mxu0 %v221_v17  ;;  %465 = vmatpush1.msra.mxu1 %v221_v17 }
  0x93   : > { %277 = vmatprep.subr.mxu0 %v504_v0  ;;  %448 = vmatprep.subr.mxu1 %v504_v0 }
  0x94   : > { %278 = vmatpush1.msra.mxu0 %v217_v18  ;;  %466 = vmatpush1.msra.mxu1 %v217_v18 }
  0x95   : > { %279 = vmatprep.subr.mxu0 %v504_v0  ;;  %449 = vmatprep.subr.mxu1 %v504_v0  ;;  %v211_v20 = vpop.permute.xlu0 %210  ;;  %v209_v21 = vpop.permute.xlu1 %208 }
  0x96   : > { %280 = vmatpush1.msra.mxu0 %v215_v19  ;;  %467 = vmatpush1.msra.mxu1 %v215_v19 }
  0x97   : > { %281 = vmatprep.subr.mxu0 %v504_v0  ;;  %450 = vmatprep.subr.mxu1 %v504_v0 }
  0x98   : > { %282 = vmatpush1.msra.mxu0 %v211_v20  ;;  %468 = vmatpush1.msra.mxu1 %v211_v20 }
  0x99   : > { %283 = vmatprep.subr.mxu0 %v504_v0  ;;  %451 = vmatprep.subr.mxu1 %v504_v0  ;;  %v205_v22 = vpop.permute.xlu0 %204  ;;  %v203_v23 = vpop.permute.xlu1 %202 }
  0x9a   : > { %284 = vmatpush1.msra.mxu0 %v209_v21  ;;  %469 = vmatpush1.msra.mxu1 %v209_v21 }
  0x9b   : > { %285 = vmatprep.subr.mxu0 %v504_v0  ;;  %452 = vmatprep.subr.mxu1 %v504_v0 }
  0x9c   : > { %286 = vmatpush1.msra.mxu0 %v205_v22  ;;  %470 = vmatpush1.msra.mxu1 %v205_v22 }
  0x9d   : > { %287 = vmatprep.subr.mxu0 %v504_v0  ;;  %453 = vmatprep.subr.mxu1 %v504_v0  ;;  %v247_v24 = vpop.permute.xlu0 %246  ;;  %v245_v25 = vpop.permute.xlu1 %244 }
  0x9e   : > { %288 = vmatpush1.msra.mxu0 %v203_v23  ;;  %471 = vmatpush1.msra.mxu1 %v203_v23 }
  0x9f   : > { %289 = vmatprep.subr.mxu0 %v504_v0  ;;  %454 = vmatprep.subr.mxu1 %v504_v0 }
  0xa0   : > { %290 = vmatpush1.msra.mxu0 %v557_v1  ;;  %472 = vmatpush1.msra.mxu1 %v557_v1 }
  0xa1   : > { %291 = vmatprep.subr.mxu0 %v504_v0  ;;  %455 = vmatprep.subr.mxu1 %v504_v0 }
  0xa2   : > { %292 = vmatpush1.msra.mxu0 %v561_v2  ;;  %473 = vmatpush1.msra.mxu1 %v561_v2 }
  0xa3   : > { %321 = vmatprep.subr.mxu0 %v504_v0  ;;  %456 = vmatprep.subr.mxu1 %v504_v0 }
  0xa4   : > { %322 = vmatpush2.msra.mxu0 %v247_v24  ;;  %474 = vmatpush2.msra.mxu1 %v247_v24 }
  0xa5   : > { %323 = vmatprep.subr.mxu0 %v504_v0  ;;  %457 = vmatprep.subr.mxu1 %v504_v0 }
  0xa6   : > { %324 = vmatpush2.msra.mxu0 %v245_v25  ;;  %475 = vmatpush2.msra.mxu1 %v245_v25 }
  0xa7   : > { %326 = vmatmul.mubr.f32.vlgmr.msra.gmra.mxu0 %v250_v26  ;;  %331 = vmatmul.mubr.f32.vlgmr.msra.gmra.mxu1 %v252_v27 }
  0xaa   : > { %v346_v28 = vpop.permute.xlu1 %345  ;;  %v341_v29 = vpop.permute.xlu0 %340 }
  0xae   : > { %v355_v32 = vpop.permute.xlu1 %354  ;;  %v360_v33 = vpop.permute.xlu0 %359 }
 0x167   : > { %v327_v30 = vpop.f32.mrf.mxu0  ;;  %v332_v31 = vpop.f32.mrf.mxu1 }
 0x168   : > { %v348_v34 = vmul.f32 %v341_v29, %v327_v30  ;;  %v349_v35 = vmul.f32 %v346_v28, %v332_v31 }
 0x169   : > { %v329_v36 = vpop.f32.mrf.mxu0  ;;  %v334_v37 = vpop.f32.mrf.mxu1 }
 0x16a   : > { %v362_v38 = vadd.f32 %v355_v32, %v348_v34  ;;  %v363_v39 = vadd.f32 %v360_v33, %v349_v35 }
 0x16c   : > { %v364_v40 = vmax.f32 %v362_v38, 0.0  ;;  %v365_v41 = vmax.f32 %v363_v39, 0.0 }
 0x16e   : > { %367 = vst.msk [vmem:[%s197_s24] sm:$0xff] %vm366_vm1, %v364_v40 }
 0x16f   : > { %369 = vst.msk [vmem:[%s197_s24 + $0x8] sm:$0xf] %vm368_vm2, %v365_v41 }
 0x170 PF: > { %s14_s15 = sadd.s32 1, %s502_s15  }
 0x171   : > { %p11_p4 = scmp.ge.s32.totalorder %s14_s15, 4  }
 0x173   :  { %13 = sbr.rel (!%p11_p4) target bundleno = 1 (0x1), region = 66 }

// kernel: rsu5_forward.22
= control target key start
LH: loop header
LB: loop body
LE: loop exit
PB: predicated region body
PF: predicated region fallthrough
CT: control target
= control target key end

     0   :  { %s238_s6 = smov 0   ;;  %s255_s0 = inlined_call_operand.vmem [shape: f32[2,4,12,4], index: 0, kind: input, shape index: {}]   ;;  %s256_s1 = inlined_call_operand.vmem [shape: f32[2,12,4], index: 1, kind: output, shape index: {}]  }
   0x1 LB: > { %s193_s7 = sadd.s32 4294967295, %s226_s6   ;;  %p197_p0 = scmp.ge.s32.totalorder %s226_s6, 1  ;;  %s226_s6 = sphi %s238_s6, %s11_s6  }
   0x2   : > { %p87_p1 = scmp.lt.s32.totalorder %s226_s6, 3 }
   0x4   : > { %p88_p2 = pnand %p197_p0, %p87_p1 }
   0x5   : > { %p107_p3 = scmp.lt.s32.totalorder (!%p88_p2), %s193_s7, 1 }
   0x6   : > { %91 = sbr.rel (%p88_p2) target bundleno = 22 (0x16), region = 24 }
   0xb   : > { %s258_s7 = smov (!%p107_p3, %s193_s7), 1  ;;  %vm134_vm0 = vcmask 31744   ;;  %vm136_vm1 = vcmask 27648  }
   0xc   : > { %s210_s8 = sshll.u32 %s258_s7, 6  ;;  %s211_s12 = sshll.u32 %s258_s7, 4 }
   0xd   : > { %s111_s11 = scalar_lea.vmem %s255_s0, %s210_s8  ;;  %s116_s15 = scalar_lea.vmem %s256_s1, %s211_s12 }
   0xe   : > { %v117_v0 = vld [vmem:[%s111_s11] sm:$0xff]  ;;  %v202_v1 = vld [vmem:[%s111_s11 + $0x10] sm:$0xff]  ;;  %v118_v5 = vld [vmem:[%s111_s11 + $0x8] sm:$0xf] }
   0xf   : > { %v204_v2 = vld [vmem:[%s111_s11 + $0x20] sm:$0xff]  ;;  %v122_v3 = vmax.f32 %v117_v0, %v202_v1  ;;  %v206_v4 = vld [vmem:[%s111_s11 + $0x30] sm:$0xff]  ;;  %v203_v6 = vld [vmem:[%s111_s11 + $0x18] sm:$0xf] }
  0x10   : > { %v130_v7 = vmax.f32 %v204_v2, %v206_v4  ;;  %v123_v8 = vmax.f32 %v118_v5, %v203_v6  ;;  %v205_v9 = vld [vmem:[%s111_s11 + $0x28] sm:$0xf]  ;;  %v207_v10 = vld [vmem:[%s111_s11 + $0x38] sm:$0xf] }
  0x11   : > { %v131_v11 = vmax.f32 %v205_v9, %v207_v10 }
  0x12   : > { %v132_v12 = vmax.f32 %v122_v3, %v130_v7 }
  0x13   : > { %v133_v13 = vmax.f32 %v123_v8, %v131_v11 }
  0x14   : > { %135 = vst.msk [vmem:[%s116_s15] sm:$0xff] %vm134_vm0, %v132_v12 }
  0x15   : > { %137 = vst.msk [vmem:[%s116_s15 + $0x8] sm:$0xf] %vm136_vm1, %v133_v13 }
  0x16 PF: > { %s11_s6 = sadd.s32 1, %s226_s6  }
  0x17   : > { %p8_p4 = scmp.ge.s32.totalorder %s11_s6, 4  }
  0x19   :  { %10 = sbr.rel (!%p8_p4) target bundleno = 1 (0x1), region = 57 }

// kernel: rsu5_forward.23
= control target key start
LH: loop header
LB: loop body
LE: loop exit
PB: predicated region body
PF: predicated region fallthrough
CT: control target
= control target key end

     0   :  { %s539_s15 = smov 0   ;;  %s647_s0 = inlined_call_operand.vmem [shape: f32[2,16,42], index: 0, kind: input, shape index: {}]   ;;  %s648_s1 = inlined_call_operand.vmem [shape: f32[12,144], index: 1, kind: input, shape index: {}]   ;;  %s649_s2 = inlined_call_operand.vmem [shape: f32[12,1], index: 2, kind: input, shape index: {}]   ;;  %s650_s3 = inlined_call_operand.vmem [shape: f32[12,1], index: 3, kind: input, shape index: {}]   ;;  %s651_s4 = inlined_call_operand.vmem [shape: f32[2,12,12], index: 4, kind: output, shape index: {}]  }
   0x1 LB: > { %s425_s16 = sadd.s32 4294967295, %s502_s15   ;;  %p429_p0 = scmp.ge.s32.totalorder %s502_s15, 1  ;;  %s502_s15 = sphi %s539_s15, %s14_s15  }
   0x2   : > { %p162_p1 = scmp.lt.s32.totalorder %s502_s15, 3 }
   0x4   : > { %p163_p2 = pnand %p429_p0, %p162_p1 }
   0x5   : > { %p188_p3 = scmp.lt.s32.totalorder (!%p163_p2), %s425_s16, 1  ;;  %s505_s21 = smov (!%p163_p2), 102  }
   0x6   : > { %166 = sbr.rel (%p163_p2) target bundleno = 368 (0x170), region = 36  ;;  %s506_s22 = smov (!%p163_p2), 104  }
   0x7   : > { %s507_s23 = smov (!%p163_p2), 112   ;;  %s508_s24 = smov (!%p163_p2), 114  }
   0x8   : > { %s509_s25 = smov (!%p163_p2), 116   ;;  %s510_s26 = smov (!%p163_p2), 124  }
   0x9   : > { %s511_s5 = smov (!%p163_p2), 126   ;;  %s513_s6 = smov (!%p163_p2), 100  }
   0xb   : > { %v504_v0 = vmov 0.0   ;;  %s653_s16 = smov (!%p188_p3, %s425_s16), 1  ;;  %v251_v3 = vld [vmem:[%s648_s1 + $0x8] sm:$0xff]  ;;  %vm254_vm0 = vcmask 130048   ;;  %v253_v4 = vld [vmem:[%s648_s1 + $0x18] sm:$0xf] }
   0xc   : > { %261 = vmatprep.subr.mxu0 %v504_v0  ;;  %440 = vmatprep.subr.mxu1 %v504_v0  ;;  %s438_s17 = sshll.u32 %s653_s16, 4  ;;  %v512_v5 = vmov 0   ;;  %v337_v6 = vld [vmem:[%s649_s2 + $0x8] sm:$0xf]  ;;  %v336_v7 = vld [vmem:[%s649_s2] sm:$0xff]  ;;  %vm366_vm1 = vcmask 97280  }
   0xd   : > { %s192_s20 = scalar_lea.vmem %s647_s0, %s438_s17  ;;  %434 = vmatprep.mubr.msk.f32.mxu0 %vm254_vm0, %v251_v3  ;;  %435 = vmatprep.mubr.msk.f32.mxu1 %vm254_vm0, %v253_v4  ;;  %v350_v8 = vld [vmem:[%s650_s3] sm:$0xff]  ;;  %v351_v9 = vld [vmem:[%s650_s3 + $0x8] sm:$0xf]  ;;  %v252_v27 = vld [vmem:[%s648_s1 + $0x10] sm:$0xf]  ;;  %vm368_vm2 = vcmask 93184  }
   0xe   : > { %v557_v1 = vld [vmem:[%s192_s20 + $0x8] sm:$0xff]  ;;  %v561_v2 = vld [vmem:[%s192_s20] sm:$0xff]  ;;  %495 = vset.pattern.permute.xlu1 %v512_v5  ;;  %494 = vset.pattern.permute.xlu0 %v512_v5 }
   0xf   : > { %240 = vrot.lane.b32.xlu0 %v557_v1, %s505_s21  ;;  %234 = vrot.lane.b32.xlu1 %v557_v1, %s506_s22  ;;  %v250_v26 = vld [vmem:[%s648_s1] sm:$0xff] }
  0x13   : > { %238 = vrot.lane.b32.xlu0 %v561_v2, %s505_s21  ;;  %232 = vrot.lane.b32.xlu1 %v561_v2, %s506_s22 }
  0x17   : > { %228 = vrot.lane.b32.xlu0 %v557_v1, %s507_s23  ;;  %226 = vrot.lane.b32.xlu1 %v561_v2, %s507_s23 }
  0x1b   : > { %222 = vrot.lane.b32.xlu0 %v557_v1, %s508_s24  ;;  %220 = vrot.lane.b32.xlu1 %v561_v2, %s508_s24  ;;  %s197_s24 = scalar_lea.vmem %s651_s4, %s438_s17 }
  0x1f   : > { %216 = vrot.lane.b32.xlu0 %v557_v1, %s509_s25  ;;  %214 = vrot.lane.b32.xlu1 %v561_v2, %s509_s25 }
  0x23   : > { %210 = vrot.lane.b32.xlu0 %v557_v1, %s510_s26  ;;  %208 = vrot.lane.b32.xlu1 %v561_v2, %s510_s26 }
  0x27   : > { %204 = vrot.lane.b32.xlu0 %v557_v1, %s511_s5  ;;  %202 = vrot.lane.b32.xlu1 %v561_v2, %s511_s5 }
  0x2b   : > { %246 = vrot.lane.b32.xlu0 %v557_v1, %s513_s6  ;;  %244 = vrot.lane.b32.xlu1 %v561_v2, %s513_s6 }
  0x2f   : > { %345 = vperm.xlu1 %495, %v337_v6   ;;  %340 = vperm.xlu0 %494, %v336_v7  }
  0x33   : > { %354 = vperm.xlu1 %495, %v350_v8   ;;  %359 = vperm.xlu0 %494, %v351_v9  }
  0x81   : > { %v241_v10 = vpop.permute.xlu0 %240  ;;  %v235_v11 = vpop.permute.xlu1 %234 }
  0x82   : > { %262 = vmatpush1.msra.mxu0 %v241_v10  ;;  %458 = vmatpush1.msra.mxu1 %v241_v10 }
  0x83   : > { %263 = vmatprep.subr.mxu0 %v504_v0  ;;  %441 = vmatprep.subr.mxu1 %v504_v0 }
  0x85   : > { %v239_v12 = vpop.permute.xlu0 %238  ;;  %v233_v13 = vpop.permute.xlu1 %232 }
  0x86   : > { %264 = vmatpush1.msra.mxu0 %v239_v12  ;;  %459 = vmatpush1.msra.mxu1 %v239_v12 }
  0x87   : > { %265 = vmatprep.subr.mxu0 %v504_v0  ;;  %442 = vmatprep.subr.mxu1 %v504_v0 }
  0x88   : > { %266 = vmatpush1.msra.mxu0 %v235_v11  ;;  %460 = vmatpush1.msra.mxu1 %v235_v11 }
  0x89   : > { %267 = vmatprep.subr.mxu0 %v504_v0  ;;  %443 = vmatprep.subr.mxu1 %v504_v0  ;;  %v229_v14 = vpop.permute.xlu0 %228  ;;  %v227_v15 = vpop.permute.xlu1 %226 }
  0x8a   : > { %268 = vmatpush1.msra.mxu0 %v233_v13  ;;  %461 = vmatpush1.msra.mxu1 %v233_v13 }
  0x8b   : > { %269 = vmatprep.subr.mxu0 %v504_v0  ;;  %444 = vmatprep.subr.mxu1 %v504_v0 }
  0x8c   : > { %270 = vmatpush1.msra.mxu0 %v229_v14  ;;  %462 = vmatpush1.msra.mxu1 %v229_v14 }
  0x8d   : > { %271 = vmatprep.subr.mxu0 %v504_v0  ;;  %445 = vmatprep.subr.mxu1 %v504_v0  ;;  %v223_v16 = vpop.permute.xlu0 %222  ;;  %v221_v17 = vpop.permute.xlu1 %220 }
  0x8e   : > { %272 = vmatpush1.msra.mxu0 %v227_v15  ;;  %463 = vmatpush1.msra.mxu1 %v227_v15 }
  0x8f   : > { %273 = vmatprep.subr.mxu0 %v504_v0  ;;  %446 = vmatprep.subr.mxu1 %v504_v0 }
  0x90   : > { %274 = vmatpush1.msra.mxu0 %v223_v16  ;;  %464 = vmatpush1.msra.mxu1 %v223_v16 }
  0x91   : > { %275 = vmatprep.subr.mxu0 %v504_v0  ;;  %447 = vmatprep.subr.mxu1 %v504_v0  ;;  %v217_v18 = vpop.permute.xlu0 %216  ;;  %v215_v19 = vpop.permute.xlu1 %214 }
  0x92   : > { %276 = vmatpush1.msra.mxu0 %v221_v17  ;;  %465 = vmatpush1.msra.mxu1 %v221_v17 }
  0x93   : > { %277 = vmatprep.subr.mxu0 %v504_v0  ;;  %448 = vmatprep.subr.mxu1 %v504_v0 }
  0x94   : > { %278 = vmatpush1.msra.mxu0 %v217_v18  ;;  %466 = vmatpush1.msra.mxu1 %v217_v18 }
  0x95   : > { %279 = vmatprep.subr.mxu0 %v504_v0  ;;  %449 = vmatprep.subr.mxu1 %v504_v0  ;;  %v211_v20 = vpop.permute.xlu0 %210  ;;  %v209_v21 = vpop.permute.xlu1 %208 }
  0x96   : > { %280 = vmatpush1.msra.mxu0 %v215_v19  ;;  %467 = vmatpush1.msra.mxu1 %v215_v19 }
  0x97   : > { %281 = vmatprep.subr.mxu0 %v504_v0  ;;  %450 = vmatprep.subr.mxu1 %v504_v0 }
  0x98   : > { %282 = vmatpush1.msra.mxu0 %v211_v20  ;;  %468 = vmatpush1.msra.mxu1 %v211_v20 }
  0x99   : > { %283 = vmatprep.subr.mxu0 %v504_v0  ;;  %451 = vmatprep.subr.mxu1 %v504_v0  ;;  %v205_v22 = vpop.permute.xlu0 %204  ;;  %v203_v23 = vpop.permute.xlu1 %202 }
  0x9a   : > { %284 = vmatpush1.msra.mxu0 %v209_v21  ;;  %469 = vmatpush1.msra.mxu1 %v209_v21 }
  0x9b   : > { %285 = vmatprep.subr.mxu0 %v504_v0  ;;  %452 = vmatprep.subr.mxu1 %v504_v0 }
  0x9c   : > { %286 = vmatpush1.msra.mxu0 %v205_v22  ;;  %470 = vmatpush1.msra.mxu1 %v205_v22 }
  0x9d   : > { %287 = vmatprep.subr.mxu0 %v504_v0  ;;  %453 = vmatprep.subr.mxu1 %v504_v0  ;;  %v247_v24 = vpop.permute.xlu0 %246  ;;  %v245_v25 = vpop.permute.xlu1 %244 }
  0x9e   : > { %288 = vmatpush1.msra.mxu0 %v203_v23  ;;  %471 = vmatpush1.msra.mxu1 %v203_v23 }
  0x9f   : > { %289 = vmatprep.subr.mxu0 %v504_v0  ;;  %454 = vmatprep.subr.mxu1 %v504_v0 }
  0xa0   : > { %290 = vmatpush1.msra.mxu0 %v557_v1  ;;  %472 = vmatpush1.msra.mxu1 %v557_v1 }
  0xa1   : > { %291 = vmatprep.subr.mxu0 %v504_v0  ;;  %455 = vmatprep.subr.mxu1 %v504_v0 }
  0xa2   : > { %292 = vmatpush1.msra.mxu0 %v561_v2  ;;  %473 = vmatpush1.msra.mxu1 %v561_v2 }
  0xa3   : > { %321 = vmatprep.subr.mxu0 %v504_v0  ;;  %456 = vmatprep.subr.mxu1 %v504_v0 }
  0xa4   : > { %322 = vmatpush2.msra.mxu0 %v247_v24  ;;  %474 = vmatpush2.msra.mxu1 %v247_v24 }
  0xa5   : > { %323 = vmatprep.subr.mxu0 %v504_v0  ;;  %457 = vmatprep.subr.mxu1 %v504_v0 }
  0xa6   : > { %324 = vmatpush2.msra.mxu0 %v245_v25  ;;  %475 = vmatpush2.msra.mxu1 %v245_v25 }
  0xa7   : > { %326 = vmatmul.mubr.f32.vlgmr.msra.gmra.mxu0 %v250_v26  ;;  %331 = vmatmul.mubr.f32.vlgmr.msra.gmra.mxu1 %v252_v27 }
  0xaa   : > { %v346_v28 = vpop.permute.xlu1 %345  ;;  %v341_v29 = vpop.permute.xlu0 %340 }
  0xae   : > { %v355_v32 = vpop.permute.xlu1 %354  ;;  %v360_v33 = vpop.permute.xlu0 %359 }
 0x167   : > { %v327_v30 = vpop.f32.mrf.mxu0  ;;  %v332_v31 = vpop.f32.mrf.mxu1 }
 0x168   : > { %v348_v34 = vmul.f32 %v341_v29, %v327_v30  ;;  %v349_v35 = vmul.f32 %v346_v28, %v332_v31 }
 0x169   : > { %v329_v36 = vpop.f32.mrf.mxu0  ;;  %v334_v37 = vpop.f32.mrf.mxu1 }
 0x16a   : > { %v362_v38 = vadd.f32 %v355_v32, %v348_v34  ;;  %v363_v39 = vadd.f32 %v360_v33, %v349_v35 }
 0x16c   : > { %v364_v40 = vmax.f32 %v362_v38, 0.0  ;;  %v365_v41 = vmax.f32 %v363_v39, 0.0 }
 0x16e   : > { %367 = vst.msk [vmem:[%s197_s24] sm:$0xff] %vm366_vm1, %v364_v40 }
 0x16f   : > { %369 = vst.msk [vmem:[%s197_s24 + $0x8] sm:$0xf] %vm368_vm2, %v365_v41 }
 0x170 PF: > { %s14_s15 = sadd.s32 1, %s502_s15  }
 0x171   : > { %p11_p4 = scmp.ge.s32.totalorder %s14_s15, 4  }
 0x173   :  { %13 = sbr.rel (!%p11_p4) target bundleno = 1 (0x1), region = 66 }

// kernel: rsu5_forward.25
= control target key start
LH: loop header
LB: loop body
LE: loop exit
PB: predicated region body
PF: predicated region fallthrough
CT: control target
= control target key end

     0   :  { %s582_s15 = smov 0   ;;  %s720_s0 = inlined_call_operand.vmem [shape: f32[2,24,20], index: 0, kind: input, shape index: {}]   ;;  %s721_s1 = inlined_call_operand.vmem [shape: f32[12,216], index: 1, kind: input, shape index: {}]   ;;  %s722_s2 = inlined_call_operand.vmem [shape: f32[12,1], index: 2, kind: input, shape index: {}]   ;;  %s723_s3 = inlined_call_operand.vmem [shape: f32[12,1], index: 3, kind: input, shape index: {}]   ;;  %s724_s4 = inlined_call_operand.vmem [shape: f32[2,12,8], index: 4, kind: output, shape index: {}]  }
   0x1 LB: > { %s451_s16 = sadd.s32 4294967295, %s545_s15   ;;  %p455_p0 = scmp.ge.s32.totalorder %s545_s15, 1  ;;  %s545_s15 = sphi %s582_s15, %s14_s15  }
   0x2   : > { %p162_p1 = scmp.lt.s32.totalorder %s545_s15, 3 }
   0x4   : > { %p163_p2 = pnand %p455_p0, %p162_p1 }
   0x5   : > { %p188_p3 = scmp.lt.s32.totalorder (!%p163_p2), %s451_s16, 1  ;;  %s548_s21 = smov (!%p163_p2), 122  }
   0x6   : > { %166 = sbr.rel (%p163_p2) target bundleno = 387 (0x183), region = 36  ;;  %s549_s22 = smov (!%p163_p2), 123  }
   0x7   : > { %s550_s23 = smov (!%p163_p2), 124   ;;  %s551_s24 = smov (!%p163_p2), 126  }
   0x8   : > { %s552_s25 = smov (!%p163_p2), 127   ;;  %s553_s26 = smov (!%p163_p2), 118  }
   0x9   : > { %s554_s27 = smov (!%p163_p2), 119   ;;  %s555_s28 = smov (!%p163_p2), 120  }
   0xb   : > { %v547_v0 = vmov 0.0   ;;  %s726_s16 = smov (!%p188_p3, %s451_s16), 1  ;;  %v277_v4 = vld [vmem:[%s721_s1 + $0x8] sm:$0xff]  ;;  %vm280_vm0 = vcmask 719872   ;;  %v279_v5 = vld [vmem:[%s721_s1 + $0x18] sm:$0xf] }
   0xc   : > { %287 = vmatprep.subr.mxu0 %v547_v0  ;;  %464 = vmatprep.subr.mxu1 %v547_v0  ;;  %s518_s17 = smul.u32 24, %s726_s16  ;;  %v556_v6 = vmov 0   ;;  %v363_v7 = vld [vmem:[%s722_s2 + $0x8] sm:$0xf]  ;;  %v362_v8 = vld [vmem:[%s722_s2] sm:$0xff]  ;;  %vm392_vm1 = vcmask 64512  }
   0xd   : > { %459 = vmatprep.mubr.msk.f32.mxu0 %vm280_vm0, %v277_v4  ;;  %460 = vmatprep.mubr.msk.f32.mxu1 %vm280_vm0, %v279_v5  ;;  %v376_v9 = vld [vmem:[%s723_s3] sm:$0xff]  ;;  %v377_v10 = vld [vmem:[%s723_s3 + $0x8] sm:$0xf]  ;;  %v278_v36 = vld [vmem:[%s721_s1 + $0x10] sm:$0xf]  ;;  %vm394_vm2 = vcmask 60416  }
   0xe   : > { %s192_s20 = scalar_lea.vmem %s720_s0, %s518_s17  ;;  %538 = vset.pattern.permute.xlu1 %v556_v6  ;;  %537 = vset.pattern.permute.xlu0 %v556_v6  ;;  %v276_v35 = vld [vmem:[%s721_s1] sm:$0xff] }
   0xf   : > { %v598_v1 = vld [vmem:[%s192_s20] sm:$0xff]  ;;  %v600_v2 = vld [vmem:[%s192_s20 + $0x8] sm:$0xff]  ;;  %v605_v3 = vld [vmem:[%s192_s20 + $0x10] sm:$0xff] }
  0x10   : > { %240 = vrot.lane.b32.xlu0 %v598_v1, %s548_s21  ;;  %233 = vrot.lane.b32.xlu1 %v600_v2, %s549_s22 }
  0x14   : > { %235 = vrot.lane.b32.xlu0 %v605_v3, %s549_s22  ;;  %231 = vrot.lane.b32.xlu1 %v598_v1, %s549_s22 }
  0x18   : > { %226 = vrot.lane.b32.xlu0 %v605_v3, %s550_s23  ;;  %224 = vrot.lane.b32.xlu1 %v600_v2, %s550_s23 }
  0x1c   : > { %222 = vrot.lane.b32.xlu0 %v598_v1, %s550_s23  ;;  %217 = vrot.lane.b32.xlu1 %v605_v3, %s551_s24 }
  0x20   : > { %215 = vrot.lane.b32.xlu0 %v600_v2, %s551_s24  ;;  %213 = vrot.lane.b32.xlu1 %v598_v1, %s551_s24 }
  0x24   : > { %208 = vrot.lane.b32.xlu0 %v605_v3, %s552_s25  ;;  %206 = vrot.lane.b32.xlu1 %v600_v2, %s552_s25 }
  0x28   : > { %204 = vrot.lane.b32.xlu0 %v598_v1, %s552_s25  ;;  %271 = vrot.lane.b32.xlu1 %v605_v3, %s553_s26 }
  0x2c   : > { %269 = vrot.lane.b32.xlu0 %v600_v2, %s553_s26  ;;  %267 = vrot.lane.b32.xlu1 %v598_v1, %s553_s26 }
  0x30   : > { %262 = vrot.lane.b32.xlu0 %v605_v3, %s554_s27  ;;  %260 = vrot.lane.b32.xlu1 %v600_v2, %s554_s27 }
  0x34   : > { %258 = vrot.lane.b32.xlu0 %v598_v1, %s554_s27  ;;  %253 = vrot.lane.b32.xlu1 %v605_v3, %s555_s28 }
  0x38   : > { %251 = vrot.lane.b32.xlu0 %v600_v2, %s555_s28  ;;  %249 = vrot.lane.b32.xlu1 %v598_v1, %s555_s28 }
  0x3c   : > { %244 = vrot.lane.b32.xlu0 %v605_v3, %s548_s21  ;;  %242 = vrot.lane.b32.xlu1 %v600_v2, %s548_s21  ;;  %s463_s21 = sshll.u32 %s726_s16, 4 }
  0x3d   : > { %s197_s24 = scalar_lea.vmem %s724_s4, %s463_s21 }
  0x40   : > { %371 = vperm.xlu1 %538, %v363_v7   ;;  %366 = vperm.xlu0 %537, %v362_v8  }
  0x44   : > { %380 = vperm.xlu1 %538, %v376_v9   ;;  %385 = vperm.xlu0 %537, %v377_v10  }
  0x82   : > { %v241_v11 = vpop.permute.xlu0 %240  ;;  %v234_v12 = vpop.permute.xlu1 %233 }
  0x83   : > { %288 = vmatpush1.msra.mxu0 %v241_v11  ;;  %491 = vmatpush1.msra.mxu1 %v241_v11 }
  0x84   : > { %289 = vmatprep.subr.mxu0 %v547_v0  ;;  %465 = vmatprep.subr.mxu1 %v547_v0 }
  0x86   : > { %v236_v13 = vpop.permute.xlu0 %235  ;;  %v232_v14 = vpop.permute.xlu1 %231 }
  0x87   : > { %290 = vmatpush1.msra.mxu0 %v236_v13  ;;  %492 = vmatpush1.msra.mxu1 %v236_v13 }
  0x88   : > { %291 = vmatprep.subr.mxu0 %v547_v0  ;;  %466 = vmatprep.subr.mxu1 %v547_v0 }
  0x89   : > { %292 = vmatpush1.msra.mxu0 %v234_v12  ;;  %493 = vmatpush1.msra.mxu1 %v234_v12 }
  0x8a   : > { %293 = vmatprep.subr.mxu0 %v547_v0  ;;  %467 = vmatprep.subr.mxu1 %v547_v0  ;;  %v227_v15 = vpop.permute.xlu0 %226  ;;  %v225_v16 = vpop.permute.xlu1 %224 }
  0x8b   : > { %294 = vmatpush1.msra.mxu0 %v232_v14  ;;  %494 = vmatpush1.msra.mxu1 %v232_v14 }
  0x8c   : > { %295 = vmatprep.subr.mxu0 %v547_v0  ;;  %468 = vmatprep.subr.mxu1 %v547_v0 }
  0x8d   : > { %296 = vmatpush1.msra.mxu0 %v227_v15  ;;  %495 = vmatpush1.msra.mxu1 %v227_v15 }
  0x8e   : > { %297 = vmatprep.subr.mxu0 %v547_v0  ;;  %469 = vmatprep.subr.mxu1 %v547_v0  ;;  %v223_v17 = vpop.permute.xlu0 %222  ;;  %v218_v18 = vpop.permute.xlu1 %217 }
  0x8f   : > { %298 = vmatpush1.msra.mxu0 %v225_v16  ;;  %496 = vmatpush1.msra.mxu1 %v225_v16 }
  0x90   : > { %299 = vmatprep.subr.mxu0 %v547_v0  ;;  %470 = vmatprep.subr.mxu1 %v547_v0 }
  0x91   : > { %300 = vmatpush1.msra.mxu0 %v223_v17  ;;  %497 = vmatpush1.msra.mxu1 %v223_v17 }
  0x92   : > { %301 = vmatprep.subr.mxu0 %v547_v0  ;;  %471 = vmatprep.subr.mxu1 %v547_v0  ;;  %v216_v19 = vpop.permute.xlu0 %215  ;;  %v214_v20 = vpop.permute.xlu1 %213 }
  0x93   : > { %302 = vmatpush1.msra.mxu0 %v218_v18  ;;  %498 = vmatpush1.msra.mxu1 %v218_v18 }
  0x94   : > { %303 = vmatprep.subr.mxu0 %v547_v0  ;;  %472 = vmatprep.subr.mxu1 %v547_v0 }
  0x95   : > { %304 = vmatpush1.msra.mxu0 %v216_v19  ;;  %499 = vmatpush1.msra.mxu1 %v216_v19 }
  0x96   : > { %305 = vmatprep.subr.mxu0 %v547_v0  ;;  %473 = vmatprep.subr.mxu1 %v547_v0  ;;  %v209_v21 = vpop.permute.xlu0 %208  ;;  %v207_v22 = vpop.permute.xlu1 %206 }
  0x97   : > { %306 = vmatpush1.msra.mxu0 %v214_v20  ;;  %500 = vmatpush1.msra.mxu1 %v214_v20 }
  0x98   : > { %307 = vmatprep.subr.mxu0 %v547_v0  ;;  %474 = vmatprep.subr.mxu1 %v547_v0 }
  0x99   : > { %308 = vmatpush1.msra.mxu0 %v209_v21  ;;  %501 = vmatpush1.msra.mxu1 %v209_v21 }
  0x9a   : > { %309 = vmatprep.subr.mxu0 %v547_v0  ;;  %475 = vmatprep.subr.mxu1 %v547_v0  ;;  %v205_v23 = vpop.permute.xlu0 %204  ;;  %v272_v24 = vpop.permute.xlu1 %271 }
  0x9b   : > { %310 = vmatpush1.msra.mxu0 %v207_v22  ;;  %502 = vmatpush1.msra.mxu1 %v207_v22 }
  0x9c   : > { %311 = vmatprep.subr.mxu0 %v547_v0  ;;  %476 = vmatprep.subr.mxu1 %v547_v0 }
  0x9d   : > { %312 = vmatpush1.msra.mxu0 %v205_v23  ;;  %503 = vmatpush1.msra.mxu1 %v205_v23 }
  0x9e   : > { %313 = vmatprep.subr.mxu0 %v547_v0  ;;  %477 = vmatprep.subr.mxu1 %v547_v0  ;;  %v270_v25 = vpop.permute.xlu0 %269  ;;  %v268_v26 = vpop.permute.xlu1 %267 }
  0x9f   : > { %314 = vmatpush1.msra.mxu0 %v605_v3  ;;  %504 = vmatpush1.msra.mxu1 %v605_v3 }
  0xa0   : > { %315 = vmatprep.subr.mxu0 %v547_v0  ;;  %478 = vmatprep.subr.mxu1 %v547_v0 }
  0xa1   : > { %316 = vmatpush1.msra.mxu0 %v600_v2  ;;  %505 = vmatpush1.msra.mxu1 %v600_v2 }
  0xa2   : > { %317 = vmatprep.subr.mxu0 %v547_v0  ;;  %479 = vmatprep.subr.mxu1 %v547_v0  ;;  %v263_v27 = vpop.permute.xlu0 %262  ;;  %v261_v28 = vpop.permute.xlu1 %260 }
  0xa3   : > { %318 = vmatpush1.msra.mxu0 %v598_v1  ;;  %506 = vmatpush1.msra.mxu1 %v598_v1 }
  0xa4   : > { %329 = vmatprep.subr.mxu0 %v547_v0  ;;  %480 = vmatprep.subr.mxu1 %v547_v0 }
  0xa5   : > { %330 = vmatpush2.msra.mxu0 %v272_v24  ;;  %507 = vmatpush2.msra.mxu1 %v272_v24 }
  0xa6   : > { %331 = vmatprep.subr.mxu0 %v547_v0  ;;  %481 = vmatprep.subr.mxu1 %v547_v0  ;;  %v259_v29 = vpop.permute.xlu0 %258  ;;  %v254_v30 = vpop.permute.xlu1 %253 }
  0xa7   : > { %332 = vmatpush2.msra.mxu0 %v270_v25  ;;  %508 = vmatpush2.msra.mxu1 %v270_v25 }
  0xa8   : > { %333 = vmatprep.subr.mxu0 %v547_v0  ;;  %482 = vmatprep.subr.mxu1 %v547_v0 }
  0xa9   : > { %334 = vmatpush2.msra.mxu0 %v268_v26  ;;  %509 = vmatpush2.msra.mxu1 %v268_v26 }
  0xaa   : > { %335 = vmatprep.subr.mxu0 %v547_v0  ;;  %483 = vmatprep.subr.mxu1 %v547_v0  ;;  %v252_v31 = vpop.permute.xlu0 %251  ;;  %v250_v32 = vpop.permute.xlu1 %249 }
  0xab   : > { %336 = vmatpush2.msra.mxu0 %v263_v27  ;;  %510 = vmatpush2.msra.mxu1 %v263_v27 }
  0xac   : > { %337 = vmatprep.subr.mxu0 %v547_v0  ;;  %484 = vmatprep.subr.mxu1 %v547_v0 }
  0xad   : > { %338 = vmatpush2.msra.mxu0 %v261_v28  ;;  %511 = vmatpush2.msra.mxu1 %v261_v28 }
  0xae   : > { %339 = vmatprep.subr.mxu0 %v547_v0  ;;  %485 = vmatprep.subr.mxu1 %v547_v0  ;;  %v245_v33 = vpop.permute.xlu0 %244  ;;  %v243_v34 = vpop.permute.xlu1 %242 }
  0xaf   : > { %340 = vmatpush2.msra.mxu0 %v259_v29  ;;  %512 = vmatpush2.msra.mxu1 %v259_v29 }
  0xb0   : > { %341 = vmatprep.subr.mxu0 %v547_v0  ;;  %486 = vmatprep.subr.mxu1 %v547_v0 }
  0xb1   : > { %342 = vmatpush2.msra.mxu0 %v254_v30  ;;  %513 = vmatpush2.msra.mxu1 %v254_v30 }
  0xb2   : > { %343 = vmatprep.subr.mxu0 %v547_v0  ;;  %487 = vmatprep.subr.mxu1 %v547_v0 }
  0xb3   : > { %344 = vmatpush2.msra.mxu0 %v252_v31  ;;  %514 = vmatpush2.msra.mxu1 %v252_v31 }
  0xb4   : > { %345 = vmatprep.subr.mxu0 %v547_v0  ;;  %488 = vmatprep.subr.mxu1 %v547_v0 }
  0xb5   : > { %346 = vmatpush2.msra.mxu0 %v250_v32  ;;  %515 = vmatpush2.msra.mxu1 %v250_v32 }
  0xb6   : > { %347 = vmatprep.subr.mxu0 %v547_v0  ;;  %489 = vmatprep.subr.mxu1 %v547_v0 }
  0xb7   : > { %348 = vmatpush2.msra.mxu0 %v245_v33  ;;  %516 = vmatpush2.msra.mxu1 %v245_v33 }
  0xb8   : > { %349 = vmatprep.subr.mxu0 %v547_v0  ;;  %490 = vmatprep.subr.mxu1 %v547_v0 }
  0xb9   : > { %350 = vmatpush2.msra.mxu0 %v243_v34  ;;  %517 = vmatpush2.msra.mxu1 %v243_v34 }
  0xba   : > { %352 = vmatmul.mubr.f32.vlgmr.msra.gmra.mxu0 %v276_v35  ;;  %357 = vmatmul.mubr.f32.vlgmr.msra.gmra.mxu1 %v278_v36 }
  0xbb   : > { %v372_v37 = vpop.permute.xlu1 %371  ;;  %v367_v38 = vpop.permute.xlu0 %366 }
  0xbf   : > { %v381_v41 = vpop.permute.xlu1 %380  ;;  %v386_v42 = vpop.permute.xlu0 %385 }
 0x17a   : > { %v353_v39 = vpop.f32.mrf.mxu0  ;;  %v358_v40 = vpop.f32.mrf.mxu1 }
 0x17b   : > { %v374_v43 = vmul.f32 %v367_v38, %v353_v39  ;;  %v375_v44 = vmul.f32 %v372_v37, %v358_v40 }
 0x17c   : > { %v355_v45 = vpop.f32.mrf.mxu0  ;;  %v360_v46 = vpop.f32.mrf.mxu1 }
 0x17d   : > { %v388_v47 = vadd.f32 %v381_v41, %v374_v43  ;;  %v389_v48 = vadd.f32 %v386_v42, %v375_v44 }
 0x17f   : > { %v390_v49 = vmax.f32 %v388_v47, 0.0  ;;  %v391_v50 = vmax.f32 %v389_v48, 0.0 }
 0x181   : > { %393 = vst.msk [vmem:[%s197_s24] sm:$0xff] %vm392_vm1, %v390_v49 }
 0x182   : > { %395 = vst.msk [vmem:[%s197_s24 + $0x8] sm:$0xf] %vm394_vm2, %v391_v50 }
 0x183 PF: > { %s14_s15 = sadd.s32 1, %s545_s15  }
 0x184   : > { %p11_p4 = scmp.ge.s32.totalorder %s14_s15, 4  }
 0x186   :  { %13 = sbr.rel (!%p11_p4) target bundleno = 1 (0x1), region = 66 }

// kernel: rsu5_forward.27
= control target key start
LH: loop header
LB: loop body
LE: loop exit
PB: predicated region body
PF: predicated region fallthrough
CT: control target
= control target key end

     0   :  { %s582_s15 = smov 0   ;;  %s720_s0 = inlined_call_operand.vmem [shape: f32[2,24,42], index: 0, kind: input, shape index: {}]   ;;  %s721_s1 = inlined_call_operand.vmem [shape: f32[12,216], index: 1, kind: input, shape index: {}]   ;;  %s722_s2 = inlined_call_operand.vmem [shape: f32[12,1], index: 2, kind: input, shape index: {}]   ;;  %s723_s3 = inlined_call_operand.vmem [shape: f32[12,1], index: 3, kind: input, shape index: {}]   ;;  %s724_s4 = inlined_call_operand.vmem [shape: f32[2,12,24], index: 4, kind: output, shape index: {}]  }
   0x1 LB: > { %s451_s16 = sadd.s32 4294967295, %s545_s15   ;;  %p455_p0 = scmp.ge.s32.totalorder %s545_s15, 1  ;;  %s545_s15 = sphi %s582_s15, %s14_s15  }
   0x2   : > { %p162_p1 = scmp.lt.s32.totalorder %s545_s15, 3 }
   0x4   : > { %p163_p2 = pnand %p455_p0, %p162_p1 }
   0x5   : > { %p188_p3 = scmp.lt.s32.totalorder (!%p163_p2), %s451_s16, 1  ;;  %s548_s21 = smov (!%p163_p2), 120  }
   0x6   : > { %166 = sbr.rel (%p163_p2) target bundleno = 387 (0x183), region = 36  ;;  %s549_s22 = smov (!%p163_p2), 121  }
   0x7   : > { %s550_s23 = smov (!%p163_p2), 122   ;;  %s551_s24 = smov (!%p163_p2), 126  }
   0x8   : > { %s552_s25 = smov (!%p163_p2), 127   ;;  %s553_s26 = smov (!%p163_p2), 114  }
   0x9   : > { %s554_s27 = smov (!%p163_p2), 115   ;;  %s555_s28 = smov (!%p163_p2), 116  }
   0xb   : > { %v547_v0 = vmov 0.0   ;;  %s726_s16 = smov (!%p188_p3, %s451_s16), 1  ;;  %v277_v4 = vld [vmem:[%s721_s1 + $0x8] sm:$0xff]  ;;  %vm280_vm0 = vcmask 719872   ;;  %v279_v5 = vld [vmem:[%s721_s1 + $0x18] sm:$0xf] }
   0xc   : > { %287 = vmatprep.subr.mxu0 %v547_v0  ;;  %464 = vmatprep.subr.mxu1 %v547_v0  ;;  %s518_s17 = smul.u32 24, %s726_s16  ;;  %v556_v6 = vmov 0   ;;  %v363_v7 = vld [vmem:[%s722_s2 + $0x8] sm:$0xf]  ;;  %v362_v8 = vld [vmem:[%s722_s2] sm:$0xff]  ;;  %vm392_vm1 = vcmask 195584  }
   0xd   : > { %459 = vmatprep.mubr.msk.f32.mxu0 %vm280_vm0, %v277_v4  ;;  %460 = vmatprep.mubr.msk.f32.mxu1 %vm280_vm0, %v279_v5  ;;  %v376_v9 = vld [vmem:[%s723_s3] sm:$0xff]  ;;  %v377_v10 = vld [vmem:[%s723_s3 + $0x8] sm:$0xf]  ;;  %v278_v36 = vld [vmem:[%s721_s1 + $0x10] sm:$0xf]  ;;  %vm394_vm2 = vcmask 191488  }
   0xe   : > { %s192_s20 = scalar_lea.vmem %s720_s0, %s518_s17  ;;  %538 = vset.pattern.permute.xlu1 %v556_v6  ;;  %537 = vset.pattern.permute.xlu0 %v556_v6  ;;  %v276_v35 = vld [vmem:[%s721_s1] sm:$0xff] }
   0xf   : > { %v598_v1 = vld [vmem:[%s192_s20] sm:$0xff]  ;;  %v600_v2 = vld [vmem:[%s192_s20 + $0x8] sm:$0xff]  ;;  %v605_v3 = vld [vmem:[%s192_s20 + $0x10] sm:$0xff] }
  0x10   : > { %240 = vrot.lane.b32.xlu0 %v598_v1, %s548_s21  ;;  %233 = vrot.lane.b32.xlu1 %v600_v2, %s549_s22 }
  0x14   : > { %235 = vrot.lane.b32.xlu0 %v605_v3, %s549_s22  ;;  %231 = vrot.lane.b32.xlu1 %v598_v1, %s549_s22 }
  0x18   : > { %226 = vrot.lane.b32.xlu0 %v605_v3, %s550_s23  ;;  %224 = vrot.lane.b32.xlu1 %v600_v2, %s550_s23 }
  0x1c   : > { %222 = vrot.lane.b32.xlu0 %v598_v1, %s550_s23  ;;  %217 = vrot.lane.b32.xlu1 %v605_v3, %s551_s24 }
  0x20   : > { %215 = vrot.lane.b32.xlu0 %v600_v2, %s551_s24  ;;  %213 = vrot.lane.b32.xlu1 %v598_v1, %s551_s24 }
  0x24   : > { %208 = vrot.lane.b32.xlu0 %v605_v3, %s552_s25  ;;  %206 = vrot.lane.b32.xlu1 %v600_v2, %s552_s25 }
  0x28   : > { %204 = vrot.lane.b32.xlu0 %v598_v1, %s552_s25  ;;  %271 = vrot.lane.b32.xlu1 %v605_v3, %s553_s26 }
  0x2c   : > { %269 = vrot.lane.b32.xlu0 %v600_v2, %s553_s26  ;;  %267 = vrot.lane.b32.xlu1 %v598_v1, %s553_s26 }
  0x30   : > { %262 = vrot.lane.b32.xlu0 %v605_v3, %s554_s27  ;;  %260 = vrot.lane.b32.xlu1 %v600_v2, %s554_s27 }
  0x34   : > { %258 = vrot.lane.b32.xlu0 %v598_v1, %s554_s27  ;;  %253 = vrot.lane.b32.xlu1 %v605_v3, %s555_s28 }
  0x38   : > { %251 = vrot.lane.b32.xlu0 %v600_v2, %s555_s28  ;;  %249 = vrot.lane.b32.xlu1 %v598_v1, %s555_s28 }
  0x3c   : > { %244 = vrot.lane.b32.xlu0 %v605_v3, %s548_s21  ;;  %242 = vrot.lane.b32.xlu1 %v600_v2, %s548_s21  ;;  %s463_s21 = sshll.u32 %s726_s16, 4 }
  0x3d   : > { %s197_s24 = scalar_lea.vmem %s724_s4, %s463_s21 }
  0x40   : > { %371 = vperm.xlu1 %538, %v363_v7   ;;  %366 = vperm.xlu0 %537, %v362_v8  }
  0x44   : > { %380 = vperm.xlu1 %538, %v376_v9   ;;  %385 = vperm.xlu0 %537, %v377_v10  }
  0x82   : > { %v241_v11 = vpop.permute.xlu0 %240  ;;  %v234_v12 = vpop.permute.xlu1 %233 }
  0x83   : > { %288 = vmatpush1.msra.mxu0 %v241_v11  ;;  %491 = vmatpush1.msra.mxu1 %v241_v11 }
  0x84   : > { %289 = vmatprep.subr.mxu0 %v547_v0  ;;  %465 = vmatprep.subr.mxu1 %v547_v0 }
  0x86   : > { %v236_v13 = vpop.permute.xlu0 %235  ;;  %v232_v14 = vpop.permute.xlu1 %231 }
  0x87   : > { %290 = vmatpush1.msra.mxu0 %v236_v13  ;;  %492 = vmatpush1.msra.mxu1 %v236_v13 }
  0x88   : > { %291 = vmatprep.subr.mxu0 %v547_v0  ;;  %466 = vmatprep.subr.mxu1 %v547_v0 }
  0x89   : > { %292 = vmatpush1.msra.mxu0 %v234_v12  ;;  %493 = vmatpush1.msra.mxu1 %v234_v12 }
  0x8a   : > { %293 = vmatprep.subr.mxu0 %v547_v0  ;;  %467 = vmatprep.subr.mxu1 %v547_v0  ;;  %v227_v15 = vpop.permute.xlu0 %226  ;;  %v225_v16 = vpop.permute.xlu1 %224 }
  0x8b   : > { %294 = vmatpush1.msra.mxu0 %v232_v14  ;;  %494 = vmatpush1.msra.mxu1 %v232_v14 }
  0x8c   : > { %295 = vmatprep.subr.mxu0 %v547_v0  ;;  %468 = vmatprep.subr.mxu1 %v547_v0 }
  0x8d   : > { %296 = vmatpush1.msra.mxu0 %v227_v15  ;;  %495 = vmatpush1.msra.mxu1 %v227_v15 }
  0x8e   : > { %297 = vmatprep.subr.mxu0 %v547_v0  ;;  %469 = vmatprep.subr.mxu1 %v547_v0  ;;  %v223_v17 = vpop.permute.xlu0 %222  ;;  %v218_v18 = vpop.permute.xlu1 %217 }
  0x8f   : > { %298 = vmatpush1.msra.mxu0 %v225_v16  ;;  %496 = vmatpush1.msra.mxu1 %v225_v16 }
  0x90   : > { %299 = vmatprep.subr.mxu0 %v547_v0  ;;  %470 = vmatprep.subr.mxu1 %v547_v0 }
  0x91   : > { %300 = vmatpush1.msra.mxu0 %v223_v17  ;;  %497 = vmatpush1.msra.mxu1 %v223_v17 }
  0x92   : > { %301 = vmatprep.subr.mxu0 %v547_v0  ;;  %471 = vmatprep.subr.mxu1 %v547_v0  ;;  %v216_v19 = vpop.permute.xlu0 %215  ;;  %v214_v20 = vpop.permute.xlu1 %213 }
  0x93   : > { %302 = vmatpush1.msra.mxu0 %v218_v18  ;;  %498 = vmatpush1.msra.mxu1 %v218_v18 }
  0x94   : > { %303 = vmatprep.subr.mxu0 %v547_v0  ;;  %472 = vmatprep.subr.mxu1 %v547_v0 }
  0x95   : > { %304 = vmatpush1.msra.mxu0 %v216_v19  ;;  %499 = vmatpush1.msra.mxu1 %v216_v19 }
  0x96   : > { %305 = vmatprep.subr.mxu0 %v547_v0  ;;  %473 = vmatprep.subr.mxu1 %v547_v0  ;;  %v209_v21 = vpop.permute.xlu0 %208  ;;  %v207_v22 = vpop.permute.xlu1 %206 }
  0x97   : > { %306 = vmatpush1.msra.mxu0 %v214_v20  ;;  %500 = vmatpush1.msra.mxu1 %v214_v20 }
  0x98   : > { %307 = vmatprep.subr.mxu0 %v547_v0  ;;  %474 = vmatprep.subr.mxu1 %v547_v0 }
  0x99   : > { %308 = vmatpush1.msra.mxu0 %v209_v21  ;;  %501 = vmatpush1.msra.mxu1 %v209_v21 }
  0x9a   : > { %309 = vmatprep.subr.mxu0 %v547_v0  ;;  %475 = vmatprep.subr.mxu1 %v547_v0  ;;  %v205_v23 = vpop.permute.xlu0 %204  ;;  %v272_v24 = vpop.permute.xlu1 %271 }
  0x9b   : > { %310 = vmatpush1.msra.mxu0 %v207_v22  ;;  %502 = vmatpush1.msra.mxu1 %v207_v22 }
  0x9c   : > { %311 = vmatprep.subr.mxu0 %v547_v0  ;;  %476 = vmatprep.subr.mxu1 %v547_v0 }
  0x9d   : > { %312 = vmatpush1.msra.mxu0 %v205_v23  ;;  %503 = vmatpush1.msra.mxu1 %v205_v23 }
  0x9e   : > { %313 = vmatprep.subr.mxu0 %v547_v0  ;;  %477 = vmatprep.subr.mxu1 %v547_v0  ;;  %v270_v25 = vpop.permute.xlu0 %269  ;;  %v268_v26 = vpop.permute.xlu1 %267 }
  0x9f   : > { %314 = vmatpush1.msra.mxu0 %v605_v3  ;;  %504 = vmatpush1.msra.mxu1 %v605_v3 }
  0xa0   : > { %315 = vmatprep.subr.mxu0 %v547_v0  ;;  %478 = vmatprep.subr.mxu1 %v547_v0 }
  0xa1   : > { %316 = vmatpush1.msra.mxu0 %v600_v2  ;;  %505 = vmatpush1.msra.mxu1 %v600_v2 }
  0xa2   : > { %317 = vmatprep.subr.mxu0 %v547_v0  ;;  %479 = vmatprep.subr.mxu1 %v547_v0  ;;  %v263_v27 = vpop.permute.xlu0 %262  ;;  %v261_v28 = vpop.permute.xlu1 %260 }
  0xa3   : > { %318 = vmatpush1.msra.mxu0 %v598_v1  ;;  %506 = vmatpush1.msra.mxu1 %v598_v1 }
  0xa4   : > { %329 = vmatprep.subr.mxu0 %v547_v0  ;;  %480 = vmatprep.subr.mxu1 %v547_v0 }
  0xa5   : > { %330 = vmatpush2.msra.mxu0 %v272_v24  ;;  %507 = vmatpush2.msra.mxu1 %v272_v24 }
  0xa6   : > { %331 = vmatprep.subr.mxu0 %v547_v0  ;;  %481 = vmatprep.subr.mxu1 %v547_v0  ;;  %v259_v29 = vpop.permute.xlu0 %258  ;;  %v254_v30 = vpop.permute.xlu1 %253 }
  0xa7   : > { %332 = vmatpush2.msra.mxu0 %v270_v25  ;;  %508 = vmatpush2.msra.mxu1 %v270_v25 }
  0xa8   : > { %333 = vmatprep.subr.mxu0 %v547_v0  ;;  %482 = vmatprep.subr.mxu1 %v547_v0 }
  0xa9   : > { %334 = vmatpush2.msra.mxu0 %v268_v26  ;;  %509 = vmatpush2.msra.mxu1 %v268_v26 }
  0xaa   : > { %335 = vmatprep.subr.mxu0 %v547_v0  ;;  %483 = vmatprep.subr.mxu1 %v547_v0  ;;  %v252_v31 = vpop.permute.xlu0 %251  ;;  %v250_v32 = vpop.permute.xlu1 %249 }
  0xab   : > { %336 = vmatpush2.msra.mxu0 %v263_v27  ;;  %510 = vmatpush2.msra.mxu1 %v263_v27 }
  0xac   : > { %337 = vmatprep.subr.mxu0 %v547_v0  ;;  %484 = vmatprep.subr.mxu1 %v547_v0 }
  0xad   : > { %338 = vmatpush2.msra.mxu0 %v261_v28  ;;  %511 = vmatpush2.msra.mxu1 %v261_v28 }
  0xae   : > { %339 = vmatprep.subr.mxu0 %v547_v0  ;;  %485 = vmatprep.subr.mxu1 %v547_v0  ;;  %v245_v33 = vpop.permute.xlu0 %244  ;;  %v243_v34 = vpop.permute.xlu1 %242 }
  0xaf   : > { %340 = vmatpush2.msra.mxu0 %v259_v29  ;;  %512 = vmatpush2.msra.mxu1 %v259_v29 }
  0xb0   : > { %341 = vmatprep.subr.mxu0 %v547_v0  ;;  %486 = vmatprep.subr.mxu1 %v547_v0 }
  0xb1   : > { %342 = vmatpush2.msra.mxu0 %v254_v30  ;;  %513 = vmatpush2.msra.mxu1 %v254_v30 }
  0xb2   : > { %343 = vmatprep.subr.mxu0 %v547_v0  ;;  %487 = vmatprep.subr.mxu1 %v547_v0 }
  0xb3   : > { %344 = vmatpush2.msra.mxu0 %v252_v31  ;;  %514 = vmatpush2.msra.mxu1 %v252_v31 }
  0xb4   : > { %345 = vmatprep.subr.mxu0 %v547_v0  ;;  %488 = vmatprep.subr.mxu1 %v547_v0 }
  0xb5   : > { %346 = vmatpush2.msra.mxu0 %v250_v32  ;;  %515 = vmatpush2.msra.mxu1 %v250_v32 }
  0xb6   : > { %347 = vmatprep.subr.mxu0 %v547_v0  ;;  %489 = vmatprep.subr.mxu1 %v547_v0 }
  0xb7   : > { %348 = vmatpush2.msra.mxu0 %v245_v33  ;;  %516 = vmatpush2.msra.mxu1 %v245_v33 }
  0xb8   : > { %349 = vmatprep.subr.mxu0 %v547_v0  ;;  %490 = vmatprep.subr.mxu1 %v547_v0 }
  0xb9   : > { %350 = vmatpush2.msra.mxu0 %v243_v34  ;;  %517 = vmatpush2.msra.mxu1 %v243_v34 }
  0xba   : > { %352 = vmatmul.mubr.f32.vlgmr.msra.gmra.mxu0 %v276_v35  ;;  %357 = vmatmul.mubr.f32.vlgmr.msra.gmra.mxu1 %v278_v36 }
  0xbb   : > { %v372_v37 = vpop.permute.xlu1 %371  ;;  %v367_v38 = vpop.permute.xlu0 %366 }
  0xbf   : > { %v381_v41 = vpop.permute.xlu1 %380  ;;  %v386_v42 = vpop.permute.xlu0 %385 }
 0x17a   : > { %v353_v39 = vpop.f32.mrf.mxu0  ;;  %v358_v40 = vpop.f32.mrf.mxu1 }
 0x17b   : > { %v374_v43 = vmul.f32 %v367_v38, %v353_v39  ;;  %v375_v44 = vmul.f32 %v372_v37, %v358_v40 }
 0x17c   : > { %v355_v45 = vpop.f32.mrf.mxu0  ;;  %v360_v46 = vpop.f32.mrf.mxu1 }
 0x17d   : > { %v388_v47 = vadd.f32 %v381_v41, %v374_v43  ;;  %v389_v48 = vadd.f32 %v386_v42, %v375_v44 }
 0x17f   : > { %v390_v49 = vmax.f32 %v388_v47, 0.0  ;;  %v391_v50 = vmax.f32 %v389_v48, 0.0 }
 0x181   : > { %393 = vst.msk [vmem:[%s197_s24] sm:$0xff] %vm392_vm1, %v390_v49 }
 0x182   : > { %395 = vst.msk [vmem:[%s197_s24 + $0x8] sm:$0xf] %vm394_vm2, %v391_v50 }
 0x183 PF: > { %s14_s15 = sadd.s32 1, %s545_s15  }
 0x184   : > { %p11_p4 = scmp.ge.s32.totalorder %s14_s15, 4  }
 0x186   :  { %13 = sbr.rel (!%p11_p4) target bundleno = 1 (0x1), region = 66 }

// kernel: rsu5_forward.26
= control target key start
LH: loop header
LB: loop body
LE: loop exit
PB: predicated region body
PF: predicated region fallthrough
CT: control target
= control target key end

     0   :  { %s2348_s12 = smov 0   ;;  %s2549_s0 = inlined_call_operand.vmem [shape: f32[4,2], index: 0, kind: input, shape index: {}]   ;;  %s2550_s1 = inlined_call_operand.vmem [shape: f32[2,4], index: 1, kind: input, shape index: {}]   ;;  %s2551_s2 = inlined_call_operand.vmem [shape: f32[2,12,2,2], index: 2, kind: input, shape index: {}]   ;;  %s2552_s3 = inlined_call_operand.vmem [shape: f32[2,12,4,4], index: 3, kind: output, shape index: {}]  }
   0x1 LB: > { %s2059_s13 = sadd.s32 4294967295, %s2324_s12   ;;  %p2063_p0 = scmp.ge.s32.totalorder %s2324_s12, 1  ;;  %s2324_s12 = sphi %s2348_s12, %s13_s12  }
   0x2   : > { %p137_p1 = scmp.lt.s32.totalorder %s2324_s12, 3 }
   0x4   : > { %p138_p2 = pnand %p2063_p0, %p137_p1 }
   0x5   : > { %p161_p3 = scmp.lt.s32.totalorder (!%p138_p2), %s2059_s13, 1 }
   0x6   : > { %141 = sbr.rel (%p138_p2) target bundleno = 452 (0x1c4), region = 32 }
   0xb   : > { %v2326_v0 = vmov 0.0   ;;  %vm2327_vm0 = vmmov 0   ;;  %s2554_s13 = smov (!%p161_p3, %s2059_s13), 1  ;;  %vm178_vm1 = vcmask 1041408   ;;  %v171_v1 = vld [vmem:[%s2549_s0] sm:$0xf] }
   0xc   : > { %2186 = vmatprep.subr.mxu0 %v2326_v0  ;;  %2188 = vmatprep.mubr.msk.f32.mxu0 %vm2327_vm0, %v2326_v0  ;;  %s2306_s14 = smul.u32 24, %s2554_s13  ;;  %vm174_vm2 = vcmask 15360   ;;  %v2445_v14 = vld [vmem:[%s2550_s1] sm:$0x3]  ;;  %vm330_vm3 = vcmask 27648  }
   0xd   : > { %2191 = vmatprep.subr.mxu1 %v2326_v0  ;;  %2193 = vmatprep.mubr.msk.f32.mxu1 %vm2327_vm0, %v2326_v0  ;;  %s2307_s22 = smul.u32 48, %s2554_s13 }
   0xe   : > { %s2368_s17 = scalar_lea.vmem %s2551_s2, %s2306_s14  ;;  %2192 = vmatpush3.msk.msra.mxu1 %vm178_vm1, %v2445_v14 }
   0xf   : > { %v173_v2 = vld [vmem:[%s2368_s17] sm:$0x3]  ;;  %v2070_v3 = vld [vmem:[%s2368_s17 + $0x2] sm:$0x3]  ;;  %v2076_v4 = vld [vmem:[%s2368_s17 + $0x4] sm:$0x3]  ;;  %2201 = vmatprep.subr.mxu1 %v2326_v0  ;;  %s2520_s25 = scalar_lea.vmem %s2552_s3, %s2307_s22 }
  0x10   : > { %2187 = vmatpush3.msk.msra.mxu0 %vm178_vm1, %v173_v2  ;;  %v2082_v5 = vld [vmem:[%s2368_s17 + $0x6] sm:$0x3]  ;;  %v2088_v6 = vld [vmem:[%s2368_s17 + $0x8] sm:$0x3]  ;;  %v2094_v7 = vld [vmem:[%s2368_s17 + $0xa] sm:$0x3] }
  0x11   : > { %2189 = vmatmul.mubr.msk.f32.vlgmr.msra.gmra.mxu0 %vm174_vm2, %v171_v1  ;;  %2196 = vmatprep.subr.mxu0 %v2326_v0  ;;  %v2100_v8 = vld [vmem:[%s2368_s17 + $0xc] sm:$0x3]  ;;  %v2106_v9 = vld [vmem:[%s2368_s17 + $0xe] sm:$0x3]  ;;  %v2112_v10 = vld [vmem:[%s2368_s17 + $0x10] sm:$0x3] }
  0x12   : > { %2197 = vmatpush3.msk.msra.mxu0 %vm178_vm1, %v2070_v3  ;;  %2198 = vmatprep.mubr.msk.f32.mxu0 %vm2327_vm0, %v2326_v0  ;;  %v2118_v11 = vld [vmem:[%s2368_s17 + $0x12] sm:$0x3]  ;;  %v2124_v12 = vld [vmem:[%s2368_s17 + $0x14] sm:$0x3]  ;;  %v2130_v13 = vld [vmem:[%s2368_s17 + $0x16] sm:$0x3] }
  0x13   : > { %2206 = vmatprep.subr.mxu0 %v2326_v0 }
  0x15   : > { %2199 = vmatmul.mubr.msk.f32.vlgmr.msra.gmra.mxu0 %vm174_vm2, %v171_v1 }
  0x16   : > { %2207 = vmatpush3.msk.msra.mxu0 %vm178_vm1, %v2076_v4  ;;  %2208 = vmatprep.mubr.msk.f32.mxu0 %vm2327_vm0, %v2326_v0 }
  0x17   : > { %2216 = vmatprep.subr.mxu0 %v2326_v0 }
  0x19   : > { %2209 = vmatmul.mubr.msk.f32.vlgmr.msra.gmra.mxu0 %vm174_vm2, %v171_v1 }
  0x1a   : > { %2217 = vmatpush3.msk.msra.mxu0 %vm178_vm1, %v2082_v5  ;;  %2218 = vmatprep.mubr.msk.f32.mxu0 %vm2327_vm0, %v2326_v0 }
  0x1b   : > { %2226 = vmatprep.subr.mxu0 %v2326_v0 }
  0x1d   : > { %2219 = vmatmul.mubr.msk.f32.vlgmr.msra.gmra.mxu0 %vm174_vm2, %v171_v1 }
  0x1e   : > { %2227 = vmatpush3.msk.msra.mxu0 %vm178_vm1, %v2088_v6  ;;  %2228 = vmatprep.mubr.msk.f32.mxu0 %vm2327_vm0, %v2326_v0 }
  0x1f   : > { %2236 = vmatprep.subr.mxu0 %v2326_v0 }
  0x21   : > { %2229 = vmatmul.mubr.msk.f32.vlgmr.msra.gmra.mxu0 %vm174_vm2, %v171_v1 }
  0x22   : > { %2237 = vmatpush3.msk.msra.mxu0 %vm178_vm1, %v2094_v7  ;;  %2238 = vmatprep.mubr.msk.f32.mxu0 %vm2327_vm0, %v2326_v0 }
  0x23   : > { %2246 = vmatprep.subr.mxu0 %v2326_v0 }
  0x25   : > { %2239 = vmatmul.mubr.msk.f32.vlgmr.msra.gmra.mxu0 %vm174_vm2, %v171_v1 }
  0x26   : > { %2247 = vmatpush3.msk.msra.mxu0 %vm178_vm1, %v2100_v8  ;;  %2248 = vmatprep.mubr.msk.f32.mxu0 %vm2327_vm0, %v2326_v0 }
  0x27   : > { %2256 = vmatprep.subr.mxu0 %v2326_v0 }
  0x29   : > { %2249 = vmatmul.mubr.msk.f32.vlgmr.msra.gmra.mxu0 %vm174_vm2, %v171_v1 }
  0x2a   : > { %2257 = vmatpush3.msk.msra.mxu0 %vm178_vm1, %v2106_v9  ;;  %2258 = vmatprep.mubr.msk.f32.mxu0 %vm2327_vm0, %v2326_v0 }
  0x2b   : > { %2266 = vmatprep.subr.mxu0 %v2326_v0 }
  0x2d   : > { %2259 = vmatmul.mubr.msk.f32.vlgmr.msra.gmra.mxu0 %vm174_vm2, %v171_v1 }
  0x2e   : > { %2267 = vmatpush3.msk.msra.mxu0 %vm178_vm1, %v2112_v10  ;;  %2268 = vmatprep.mubr.msk.f32.mxu0 %vm2327_vm0, %v2326_v0 }
  0x2f   : > { %2276 = vmatprep.subr.mxu0 %v2326_v0 }
  0x31   : > { %2269 = vmatmul.mubr.msk.f32.vlgmr.msra.gmra.mxu0 %vm174_vm2, %v171_v1 }
  0x32   : > { %2277 = vmatpush3.msk.msra.mxu0 %vm178_vm1, %v2118_v11  ;;  %2278 = vmatprep.mubr.msk.f32.mxu0 %vm2327_vm0, %v2326_v0 }
  0x33   : > { %2286 = vmatprep.subr.mxu0 %v2326_v0 }
  0x35   : > { %2279 = vmatmul.mubr.msk.f32.vlgmr.msra.gmra.mxu0 %vm174_vm2, %v171_v1 }
  0x36   : > { %2287 = vmatpush3.msk.msra.mxu0 %vm178_vm1, %v2124_v12  ;;  %2288 = vmatprep.mubr.msk.f32.mxu0 %vm2327_vm0, %v2326_v0 }
  0x37   : > { %2296 = vmatprep.subr.mxu0 %v2326_v0 }
  0x39   : > { %2289 = vmatmul.mubr.msk.f32.vlgmr.msra.gmra.mxu0 %vm174_vm2, %v171_v1 }
  0x3a   : > { %2297 = vmatpush3.msk.msra.mxu0 %vm178_vm1, %v2130_v13  ;;  %2298 = vmatprep.mubr.msk.f32.mxu0 %vm2327_vm0, %v2326_v0 }
  0x3d   : > { %2299 = vmatmul.mubr.msk.f32.vlgmr.msra.gmra.mxu0 %vm174_vm2, %v171_v1 }
  0xd1   : > { %v248_v15 = vpop.f32.mrf.mxu0 }
  0xd2   : > { %2194 = vmatmul.mubr.msk.f32.vlgmr.msra.gmra.mxu1 %vm174_vm2, %v248_v15 }
  0xd3   : > { %v2190_v16 = vpop.f32.mrf.mxu0  ;;  %2202 = vmatpush3.msk.msra.mxu1 %vm178_vm1, %v2445_v14  ;;  %2203 = vmatprep.mubr.msk.f32.mxu1 %vm2327_vm0, %v2326_v0 }
  0xd4   : > { %2211 = vmatprep.subr.mxu1 %v2326_v0 }
  0xd5   : > { %v403_v17 = vpop.f32.mrf.mxu0 }
  0xd6   : > { %2204 = vmatmul.mubr.msk.f32.vlgmr.msra.gmra.mxu1 %vm174_vm2, %v403_v17 }
  0xd7   : > { %v2200_v18 = vpop.f32.mrf.mxu0  ;;  %2212 = vmatpush3.msk.msra.mxu1 %vm178_vm1, %v2445_v14  ;;  %2213 = vmatprep.mubr.msk.f32.mxu1 %vm2327_vm0, %v2326_v0 }
  0xd8   : > { %2221 = vmatprep.subr.mxu1 %v2326_v0 }
  0xd9   : > { %v555_v19 = vpop.f32.mrf.mxu0 }
  0xda   : > { %2214 = vmatmul.mubr.msk.f32.vlgmr.msra.gmra.mxu1 %vm174_vm2, %v555_v19 }
  0xdb   : > { %v2210_v20 = vpop.f32.mrf.mxu0  ;;  %2222 = vmatpush3.msk.msra.mxu1 %vm178_vm1, %v2445_v14  ;;  %2223 = vmatprep.mubr.msk.f32.mxu1 %vm2327_vm0, %v2326_v0 }
  0xdc   : > { %2231 = vmatprep.subr.mxu1 %v2326_v0 }
  0xdd   : > { %v707_v21 = vpop.f32.mrf.mxu0 }
  0xde   : > { %2224 = vmatmul.mubr.msk.f32.vlgmr.msra.gmra.mxu1 %vm174_vm2, %v707_v21 }
  0xdf   : > { %v2220_v22 = vpop.f32.mrf.mxu0  ;;  %2232 = vmatpush3.msk.msra.mxu1 %vm178_vm1, %v2445_v14  ;;  %2233 = vmatprep.mubr.msk.f32.mxu1 %vm2327_vm0, %v2326_v0 }
  0xe0   : > { %2241 = vmatprep.subr.mxu1 %v2326_v0 }
  0xe1   : > { %v859_v23 = vpop.f32.mrf.mxu0 }
  0xe2   : > { %2234 = vmatmul.mubr.msk.f32.vlgmr.msra.gmra.mxu1 %vm174_vm2, %v859_v23 }
  0xe3   : > { %v2230_v24 = vpop.f32.mrf.mxu0  ;;  %2242 = vmatpush3.msk.msra.mxu1 %vm178_vm1, %v2445_v14  ;;  %2243 = vmatprep.mubr.msk.f32.mxu1 %vm2327_vm0, %v2326_v0 }
  0xe4   : > { %2251 = vmatprep.subr.mxu1 %v2326_v0 }
  0xe5   : > { %v1011_v25 = vpop.f32.mrf.mxu0 }
  0xe6   : > { %2244 = vmatmul.mubr.msk.f32.vlgmr.msra.gmra.mxu1 %vm174_vm2, %v1011_v25 }
  0xe7   : > { %v2240_v26 = vpop.f32.mrf.mxu0  ;;  %2252 = vmatpush3.msk.msra.mxu1 %vm178_vm1, %v2445_v14  ;;  %2253 = vmatprep.mubr.msk.f32.mxu1 %vm2327_vm0, %v2326_v0 }
  0xe8   : > { %2261 = vmatprep.subr.mxu1 %v2326_v0 }
  0xe9   : > { %v1163_v27 = vpop.f32.mrf.mxu0 }
  0xea   : > { %2254 = vmatmul.mubr.msk.f32.vlgmr.msra.gmra.mxu1 %vm174_vm2, %v1163_v27 }
  0xeb   : > { %v2250_v28 = vpop.f32.mrf.mxu0  ;;  %2262 = vmatpush3.msk.msra.mxu1 %vm178_vm1, %v2445_v14  ;;  %2263 = vmatprep.mubr.msk.f32.mxu1 %vm2327_vm0, %v2326_v0 }
  0xec   : > { %2271 = vmatprep.subr.mxu1 %v2326_v0 }
  0xed   : > { %v1315_v29 = vpop.f32.mrf.mxu0 }
  0xee   : > { %2264 = vmatmul.mubr.msk.f32.vlgmr.msra.gmra.mxu1 %vm174_vm2, %v1315_v29 }
  0xef   : > { %v2260_v30 = vpop.f32.mrf.mxu0  ;;  %2272 = vmatpush3.msk.msra.mxu1 %vm178_vm1, %v2445_v14  ;;  %2273 = vmatprep.mubr.msk.f32.mxu1 %vm2327_vm0, %v2326_v0 }
  0xf0   : > { %2281 = vmatprep.subr.mxu1 %v2326_v0 }
  0xf1   : > { %v1467_v31 = vpop.f32.mrf.mxu0 }
  0xf2   : > { %2274 = vmatmul.mubr.msk.f32.vlgmr.msra.gmra.mxu1 %vm174_vm2, %v1467_v31 }
  0xf3   : > { %v2270_v32 = vpop.f32.mrf.mxu0  ;;  %2282 = vmatpush3.msk.msra.mxu1 %vm178_vm1, %v2445_v14  ;;  %2283 = vmatprep.mubr.msk.f32.mxu1 %vm2327_vm0, %v2326_v0 }
  0xf4   : > { %2291 = vmatprep.subr.mxu1 %v2326_v0 }
  0xf5   : > { %v1619_v33 = vpop.f32.mrf.mxu0 }
  0xf6   : > { %2284 = vmatmul.mubr.msk.f32.vlgmr.msra.gmra.mxu1 %vm174_vm2, %v1619_v33 }
  0xf7   : > { %v2280_v34 = vpop.f32.mrf.mxu0  ;;  %2292 = vmatpush3.msk.msra.mxu1 %vm178_vm1, %v2445_v14  ;;  %2293 = vmatprep.mubr.msk.f32.mxu1 %vm2327_vm0, %v2326_v0 }
  0xf8   : > { %2301 = vmatprep.subr.mxu1 %v2326_v0 }
  0xf9   : > { %v1771_v35 = vpop.f32.mrf.mxu0 }
  0xfa   : > { %2294 = vmatmul.mubr.msk.f32.vlgmr.msra.gmra.mxu1 %vm174_vm2, %v1771_v35 }
  0xfb   : > { %v2290_v36 = vpop.f32.mrf.mxu0  ;;  %2302 = vmatpush3.msk.msra.mxu1 %vm178_vm1, %v2445_v14  ;;  %2303 = vmatprep.mubr.msk.f32.mxu1 %vm2327_vm0, %v2326_v0 }
  0xfd   : > { %v1923_v37 = vpop.f32.mrf.mxu0 }
  0xfe   : > { %2304 = vmatmul.mubr.msk.f32.vlgmr.msra.gmra.mxu1 %vm174_vm2, %v1923_v37 }
  0xff   : > { %v2300_v38 = vpop.f32.mrf.mxu0 }
 0x192   : > { %v324_v39 = vpop.f32.mrf.mxu1 }
 0x193   : > { %v328_v40 = vmax.f32 %v324_v39, 0.0 }
 0x194   : > { %v2195_v41 = vpop.f32.mrf.mxu1 }
 0x195   : > { %v329_v42 = vmin.f32 %v328_v40, 255.0 }
 0x196   : > { %v476_v43 = vpop.f32.mrf.mxu1 }
 0x197   : > { %331 = vst.msk [vmem:[%s2520_s25] sm:$0xf] %vm330_vm3, %v329_v42  ;;  %v480_v44 = vmax.f32 %v476_v43, 0.0 }
 0x198   : > { %v2205_v45 = vpop.f32.mrf.mxu1 }
 0x199   : > { %v481_v46 = vmin.f32 %v480_v44, 255.0 }
 0x19a   : > { %v628_v47 = vpop.f32.mrf.mxu1 }
 0x19b   : > { %2075 = vst.msk [vmem:[%s2520_s25 + $0x4] sm:$0xf] %vm330_vm3, %v481_v46  ;;  %v632_v48 = vmax.f32 %v628_v47, 0.0 }
 0x19c   : > { %v2215_v49 = vpop.f32.mrf.mxu1 }
 0x19d   : > { %v633_v50 = vmin.f32 %v632_v48, 255.0 }
 0x19e   : > { %v780_v51 = vpop.f32.mrf.mxu1 }
 0x19f   : > { %2081 = vst.msk [vmem:[%s2520_s25 + $0x8] sm:$0xf] %vm330_vm3, %v633_v50  ;;  %v784_v52 = vmax.f32 %v780_v51, 0.0 }
 0x1a0   : > { %v2225_v53 = vpop.f32.mrf.mxu1 }
 0x1a1   : > { %v785_v54 = vmin.f32 %v784_v52, 255.0 }
 0x1a2   : > { %v932_v55 = vpop.f32.mrf.mxu1 }
 0x1a3   : > { %2087 = vst.msk [vmem:[%s2520_s25 + $0xc] sm:$0xf] %vm330_vm3, %v785_v54  ;;  %v936_v56 = vmax.f32 %v932_v55, 0.0 }
 0x1a4   : > { %v2235_v57 = vpop.f32.mrf.mxu1 }
 0x1a5   : > { %v937_v58 = vmin.f32 %v936_v56, 255.0 }
 0x1a6   : > { %v1084_v59 = vpop.f32.mrf.mxu1 }
 0x1a7   : > { %2093 = vst.msk [vmem:[%s2520_s25 + $0x10] sm:$0xf] %vm330_vm3, %v937_v58  ;;  %v1088_v60 = vmax.f32 %v1084_v59, 0.0 }
 0x1a8   : > { %v2245_v61 = vpop.f32.mrf.mxu1 }
 0x1a9   : > { %v1089_v62 = vmin.f32 %v1088_v60, 255.0 }
 0x1aa   : > { %v1236_v63 = vpop.f32.mrf.mxu1 }
 0x1ab   : > { %2099 = vst.msk [vmem:[%s2520_s25 + $0x14] sm:$0xf] %vm330_vm3, %v1089_v62  ;;  %v1240_v0 = vmax.f32 %v1236_v63, 0.0 }
 0x1ac   : > { %v2255_v1 = vpop.f32.mrf.mxu1 }
 0x1ad   : > { %v1241_v2 = vmin.f32 %v1240_v0, 255.0 }
 0x1ae   : > { %v1388_v3 = vpop.f32.mrf.mxu1 }
 0x1af   : > { %2105 = vst.msk [vmem:[%s2520_s25 + $0x18] sm:$0xf] %vm330_vm3, %v1241_v2  ;;  %v1392_v4 = vmax.f32 %v1388_v3, 0.0 }
 0x1b0   : > { %v2265_v5 = vpop.f32.mrf.mxu1 }
 0x1b1   : > { %v1393_v6 = vmin.f32 %v1392_v4, 255.0 }
 0x1b2   : > { %v1540_v7 = vpop.f32.mrf.mxu1 }
 0x1b3   : > { %2111 = vst.msk [vmem:[%s2520_s25 + $0x1c] sm:$0xf] %vm330_vm3, %v1393_v6  ;;  %v1544_v8 = vmax.f32 %v1540_v7, 0.0 }
 0x1b4   : > { %v2275_v9 = vpop.f32.mrf.mxu1 }
 0x1b5   : > { %v1545_v10 = vmin.f32 %v1544_v8, 255.0 }
 0x1b6   : > { %v1692_v11 = vpop.f32.mrf.mxu1 }
 0x1b7   : > { %2117 = vst.msk [vmem:[%s2520_s25 + $0x20] sm:$0xf] %vm330_vm3, %v1545_v10  ;;  %v1696_v12 = vmax.f32 %v1692_v11, 0.0 }
 0x1b8   : > { %v2285_v13 = vpop.f32.mrf.mxu1 }
 0x1b9   : > { %v1697_v14 = vmin.f32 %v1696_v12, 255.0 }
 0x1ba   : > { %v1844_v15 = vpop.f32.mrf.mxu1 }
 0x1bb   : > { %2123 = vst.msk [vmem:[%s2520_s25 + $0x24] sm:$0xf] %vm330_vm3, %v1697_v14  ;;  %v1848_v16 = vmax.f32 %v1844_v15, 0.0 }
 0x1bc   : > { %v2295_v17 = vpop.f32.mrf.mxu1 }
 0x1bd   : > { %v1849_v18 = vmin.f32 %v1848_v16, 255.0 }
 0x1be   : > { %v1996_v19 = vpop.f32.mrf.mxu1 }
 0x1bf   : > { %2129 = vst.msk [vmem:[%s2520_s25 + $0x28] sm:$0xf] %vm330_vm3, %v1849_v18  ;;  %v2000_v20 = vmax.f32 %v1996_v19, 0.0 }
 0x1c0   : > { %v2305_v21 = vpop.f32.mrf.mxu1 }
 0x1c1   : > { %v2001_v22 = vmin.f32 %v2000_v20, 255.0 }
 0x1c3   : > { %2135 = vst.msk [vmem:[%s2520_s25 + $0x2c] sm:$0xf] %vm330_vm3, %v2001_v22 }
 0x1c4 PF: > { %s13_s12 = sadd.s32 1, %s2324_s12  }
 0x1c5   : > { %p10_p4 = scmp.ge.s32.totalorder %s13_s12, 4  }
 0x1c7   :  { %12 = sbr.rel (!%p10_p4) target bundleno = 1 (0x1), region = 84 }

// kernel: rsu5_forward.28
= control target key start
LH: loop header
LB: loop body
LE: loop exit
PB: predicated region body
PF: predicated region fallthrough
CT: control target
= control target key end

     0   :  { %s2348_s12 = smov 0   ;;  %s2549_s0 = inlined_call_operand.vmem [shape: f32[8,4], index: 0, kind: input, shape index: {}]   ;;  %s2550_s1 = inlined_call_operand.vmem [shape: f32[4,8], index: 1, kind: input, shape index: {}]   ;;  %s2551_s2 = inlined_call_operand.vmem [shape: f32[2,12,4,4], index: 2, kind: input, shape index: {}]   ;;  %s2552_s3 = inlined_call_operand.vmem [shape: f32[2,12,8,8], index: 3, kind: output, shape index: {}]  }
   0x1 LB: > { %s2059_s13 = sadd.s32 4294967295, %s2324_s12   ;;  %p2063_p0 = scmp.ge.s32.totalorder %s2324_s12, 1  ;;  %s2324_s12 = sphi %s2348_s12, %s13_s12  }
   0x2   : > { %p137_p1 = scmp.lt.s32.totalorder %s2324_s12, 3 }
   0x4   : > { %p138_p2 = pnand %p2063_p0, %p137_p1 }
   0x5   : > { %p161_p3 = scmp.lt.s32.totalorder (!%p138_p2), %s2059_s13, 1 }
   0x6   : > { %141 = sbr.rel (%p138_p2) target bundleno = 452 (0x1c4), region = 32 }
   0xb   : > { %v2326_v0 = vmov 0.0   ;;  %vm2327_vm0 = vmmov 0   ;;  %s2554_s13 = smov (!%p161_p3, %s2059_s13), 1  ;;  %vm178_vm1 = vcmask 1043456   ;;  %v171_v1 = vld [vmem:[%s2549_s0] sm:$0xff]  ;;  %vm174_vm2 = vcmask 31744  }
   0xc   : > { %2186 = vmatprep.subr.mxu0 %v2326_v0  ;;  %2188 = vmatprep.mubr.msk.f32.mxu0 %vm2327_vm0, %v2326_v0  ;;  %s2306_s14 = smul.u32 48, %s2554_s13  ;;  %v2445_v14 = vld [vmem:[%s2550_s1] sm:$0xf]  ;;  %vm330_vm3 = vcmask 64512  }
   0xd   : > { %2191 = vmatprep.subr.mxu1 %v2326_v0  ;;  %2193 = vmatprep.mubr.msk.f32.mxu1 %vm2327_vm0, %v2326_v0  ;;  %s2307_s22 = smul.u32 96, %s2554_s13 }
   0xe   : > { %s2368_s17 = scalar_lea.vmem %s2551_s2, %s2306_s14  ;;  %2192 = vmatpush3.msk.msra.mxu1 %vm178_vm1, %v2445_v14 }
   0xf   : > { %v173_v2 = vld [vmem:[%s2368_s17] sm:$0xf]  ;;  %v2070_v3 = vld [vmem:[%s2368_s17 + $0x4] sm:$0xf]  ;;  %v2076_v4 = vld [vmem:[%s2368_s17 + $0x8] sm:$0xf]  ;;  %2201 = vmatprep.subr.mxu1 %v2326_v0  ;;  %s2520_s25 = scalar_lea.vmem %s2552_s3, %s2307_s22 }
  0x10   : > { %2187 = vmatpush3.msk.msra.mxu0 %vm178_vm1, %v173_v2  ;;  %v2082_v5 = vld [vmem:[%s2368_s17 + $0xc] sm:$0xf]  ;;  %v2088_v6 = vld [vmem:[%s2368_s17 + $0x10] sm:$0xf]  ;;  %v2094_v7 = vld [vmem:[%s2368_s17 + $0x14] sm:$0xf] }
  0x11   : > { %2189 = vmatmul.mubr.msk.f32.vlgmr.msra.gmra.mxu0 %vm174_vm2, %v171_v1  ;;  %2196 = vmatprep.subr.mxu0 %v2326_v0  ;;  %v2100_v8 = vld [vmem:[%s2368_s17 + $0x18] sm:$0xf]  ;;  %v2106_v9 = vld [vmem:[%s2368_s17 + $0x1c] sm:$0xf]  ;;  %v2112_v10 = vld [vmem:[%s2368_s17 + $0x20] sm:$0xf] }
  0x12   : > { %2197 = vmatpush3.msk.msra.mxu0 %vm178_vm1, %v2070_v3  ;;  %2198 = vmatprep.mubr.msk.f32.mxu0 %vm2327_vm0, %v2326_v0  ;;  %v2118_v11 = vld [vmem:[%s2368_s17 + $0x24] sm:$0xf]  ;;  %v2124_v12 = vld [vmem:[%s2368_s17 + $0x28] sm:$0xf]  ;;  %v2130_v13 = vld [vmem:[%s2368_s17 + $0x2c] sm:$0xf] }
  0x13   : > { %2206 = vmatprep.subr.mxu0 %v2326_v0 }
  0x15   : > { %2199 = vmatmul.mubr.msk.f32.vlgmr.msra.gmra.mxu0 %vm174_vm2, %v171_v1 }
  0x16   : > { %2207 = vmatpush3.msk.msra.mxu0 %vm178_vm1, %v2076_v4  ;;  %2208 = vmatprep.mubr.msk.f32.mxu0 %vm2327_vm0, %v2326_v0 }
  0x17   : > { %2216 = vmatprep.subr.mxu0 %v2326_v0 }
  0x19   : > { %2209 = vmatmul.mubr.msk.f32.vlgmr.msra.gmra.mxu0 %vm174_vm2, %v171_v1 }
  0x1a   : > { %2217 = vmatpush3.msk.msra.mxu0 %vm178_vm1, %v2082_v5  ;;  %2218 = vmatprep.mubr.msk.f32.mxu0 %vm2327_vm0, %v2326_v0 }
  0x1b   : > { %2226 = vmatprep.subr.mxu0 %v2326_v0 }
  0x1d   : > { %2219 = vmatmul.mubr.msk.f32.vlgmr.msra.gmra.mxu0 %vm174_vm2, %v171_v1 }
  0x1e   : > { %2227 = vmatpush3.msk.msra.mxu0 %vm178_vm1, %v2088_v6  ;;  %2228 = vmatprep.mubr.msk.f32.mxu0 %vm2327_vm0, %v2326_v0 }
  0x1f   : > { %2236 = vmatprep.subr.mxu0 %v2326_v0 }
  0x21   : > { %2229 = vmatmul.mubr.msk.f32.vlgmr.msra.gmra.mxu0 %vm174_vm2, %v171_v1 }
  0x22   : > { %2237 = vmatpush3.msk.msra.mxu0 %vm178_vm1, %v2094_v7  ;;  %2238 = vmatprep.mubr.msk.f32.mxu0 %vm2327_vm0, %v2326_v0 }
  0x23   : > { %2246 = vmatprep.subr.mxu0 %v2326_v0 }
  0x25   : > { %2239 = vmatmul.mubr.msk.f32.vlgmr.msra.gmra.mxu0 %vm174_vm2, %v171_v1 }
  0x26   : > { %2247 = vmatpush3.msk.msra.mxu0 %vm178_vm1, %v2100_v8  ;;  %2248 = vmatprep.mubr.msk.f32.mxu0 %vm2327_vm0, %v2326_v0 }
  0x27   : > { %2256 = vmatprep.subr.mxu0 %v2326_v0 }
  0x29   : > { %2249 = vmatmul.mubr.msk.f32.vlgmr.msra.gmra.mxu0 %vm174_vm2, %v171_v1 }
  0x2a   : > { %2257 = vmatpush3.msk.msra.mxu0 %vm178_vm1, %v2106_v9  ;;  %2258 = vmatprep.mubr.msk.f32.mxu0 %vm2327_vm0, %v2326_v0 }
  0x2b   : > { %2266 = vmatprep.subr.mxu0 %v2326_v0 }
  0x2d   : > { %2259 = vmatmul.mubr.msk.f32.vlgmr.msra.gmra.mxu0 %vm174_vm2, %v171_v1 }
  0x2e   : > { %2267 = vmatpush3.msk.msra.mxu0 %vm178_vm1, %v2112_v10  ;;  %2268 = vmatprep.mubr.msk.f32.mxu0 %vm2327_vm0, %v2326_v0 }
  0x2f   : > { %2276 = vmatprep.subr.mxu0 %v2326_v0 }
  0x31   : > { %2269 = vmatmul.mubr.msk.f32.vlgmr.msra.gmra.mxu0 %vm174_vm2, %v171_v1 }
  0x32   : > { %2277 = vmatpush3.msk.msra.mxu0 %vm178_vm1, %v2118_v11  ;;  %2278 = vmatprep.mubr.msk.f32.mxu0 %vm2327_vm0, %v2326_v0 }
  0x33   : > { %2286 = vmatprep.subr.mxu0 %v2326_v0 }
  0x35   : > { %2279 = vmatmul.mubr.msk.f32.vlgmr.msra.gmra.mxu0 %vm174_vm2, %v171_v1 }
  0x36   : > { %2287 = vmatpush3.msk.msra.mxu0 %vm178_vm1, %v2124_v12  ;;  %2288 = vmatprep.mubr.msk.f32.mxu0 %vm2327_vm0, %v2326_v0 }
  0x37   : > { %2296 = vmatprep.subr.mxu0 %v2326_v0 }
  0x39   : > { %2289 = vmatmul.mubr.msk.f32.vlgmr.msra.gmra.mxu0 %vm174_vm2, %v171_v1 }
  0x3a   : > { %2297 = vmatpush3.msk.msra.mxu0 %vm178_vm1, %v2130_v13  ;;  %2298 = vmatprep.mubr.msk.f32.mxu0 %vm2327_vm0, %v2326_v0 }
  0x3d   : > { %2299 = vmatmul.mubr.msk.f32.vlgmr.msra.gmra.mxu0 %vm174_vm2, %v171_v1 }
  0xd1   : > { %v248_v15 = vpop.f32.mrf.mxu0 }
  0xd2   : > { %2194 = vmatmul.mubr.msk.f32.vlgmr.msra.gmra.mxu1 %vm174_vm2, %v248_v15 }
  0xd3   : > { %v2190_v16 = vpop.f32.mrf.mxu0  ;;  %2202 = vmatpush3.msk.msra.mxu1 %vm178_vm1, %v2445_v14  ;;  %2203 = vmatprep.mubr.msk.f32.mxu1 %vm2327_vm0, %v2326_v0 }
  0xd4   : > { %2211 = vmatprep.subr.mxu1 %v2326_v0 }
  0xd5   : > { %v403_v17 = vpop.f32.mrf.mxu0 }
  0xd6   : > { %2204 = vmatmul.mubr.msk.f32.vlgmr.msra.gmra.mxu1 %vm174_vm2, %v403_v17 }
  0xd7   : > { %v2200_v18 = vpop.f32.mrf.mxu0  ;;  %2212 = vmatpush3.msk.msra.mxu1 %vm178_vm1, %v2445_v14  ;;  %2213 = vmatprep.mubr.msk.f32.mxu1 %vm2327_vm0, %v2326_v0 }
  0xd8   : > { %2221 = vmatprep.subr.mxu1 %v2326_v0 }
  0xd9   : > { %v555_v19 = vpop.f32.mrf.mxu0 }
  0xda   : > { %2214 = vmatmul.mubr.msk.f32.vlgmr.msra.gmra.mxu1 %vm174_vm2, %v555_v19 }
  0xdb   : > { %v2210_v20 = vpop.f32.mrf.mxu0  ;;  %2222 = vmatpush3.msk.msra.mxu1 %vm178_vm1, %v2445_v14  ;;  %2223 = vmatprep.mubr.msk.f32.mxu1 %vm2327_vm0, %v2326_v0 }
  0xdc   : > { %2231 = vmatprep.subr.mxu1 %v2326_v0 }
  0xdd   : > { %v707_v21 = vpop.f32.mrf.mxu0 }
  0xde   : > { %2224 = vmatmul.mubr.msk.f32.vlgmr.msra.gmra.mxu1 %vm174_vm2, %v707_v21 }
  0xdf   : > { %v2220_v22 = vpop.f32.mrf.mxu0  ;;  %2232 = vmatpush3.msk.msra.mxu1 %vm178_vm1, %v2445_v14  ;;  %2233 = vmatprep.mubr.msk.f32.mxu1 %vm2327_vm0, %v2326_v0 }
  0xe0   : > { %2241 = vmatprep.subr.mxu1 %v2326_v0 }
  0xe1   : > { %v859_v23 = vpop.f32.mrf.mxu0 }
  0xe2   : > { %2234 = vmatmul.mubr.msk.f32.vlgmr.msra.gmra.mxu1 %vm174_vm2, %v859_v23 }
  0xe3   : > { %v2230_v24 = vpop.f32.mrf.mxu0  ;;  %2242 = vmatpush3.msk.msra.mxu1 %vm178_vm1, %v2445_v14  ;;  %2243 = vmatprep.mubr.msk.f32.mxu1 %vm2327_vm0, %v2326_v0 }
  0xe4   : > { %2251 = vmatprep.subr.mxu1 %v2326_v0 }
  0xe5   : > { %v1011_v25 = vpop.f32.mrf.mxu0 }
  0xe6   : > { %2244 = vmatmul.mubr.msk.f32.vlgmr.msra.gmra.mxu1 %vm174_vm2, %v1011_v25 }
  0xe7   : > { %v2240_v26 = vpop.f32.mrf.mxu0  ;;  %2252 = vmatpush3.msk.msra.mxu1 %vm178_vm1, %v2445_v14  ;;  %2253 = vmatprep.mubr.msk.f32.mxu1 %vm2327_vm0, %v2326_v0 }
  0xe8   : > { %2261 = vmatprep.subr.mxu1 %v2326_v0 }
  0xe9   : > { %v1163_v27 = vpop.f32.mrf.mxu0 }
  0xea   : > { %2254 = vmatmul.mubr.msk.f32.vlgmr.msra.gmra.mxu1 %vm174_vm2, %v1163_v27 }
  0xeb   : > { %v2250_v28 = vpop.f32.mrf.mxu0  ;;  %2262 = vmatpush3.msk.msra.mxu1 %vm178_vm1, %v2445_v14  ;;  %2263 = vmatprep.mubr.msk.f32.mxu1 %vm2327_vm0, %v2326_v0 }
  0xec   : > { %2271 = vmatprep.subr.mxu1 %v2326_v0 }
  0xed   : > { %v1315_v29 = vpop.f32.mrf.mxu0 }
  0xee   : > { %2264 = vmatmul.mubr.msk.f32.vlgmr.msra.gmra.mxu1 %vm174_vm2, %v1315_v29 }
  0xef   : > { %v2260_v30 = vpop.f32.mrf.mxu0  ;;  %2272 = vmatpush3.msk.msra.mxu1 %vm178_vm1, %v2445_v14  ;;  %2273 = vmatprep.mubr.msk.f32.mxu1 %vm2327_vm0, %v2326_v0 }
  0xf0   : > { %2281 = vmatprep.subr.mxu1 %v2326_v0 }
  0xf1   : > { %v1467_v31 = vpop.f32.mrf.mxu0 }
  0xf2   : > { %2274 = vmatmul.mubr.msk.f32.vlgmr.msra.gmra.mxu1 %vm174_vm2, %v1467_v31 }
  0xf3   : > { %v2270_v32 = vpop.f32.mrf.mxu0  ;;  %2282 = vmatpush3.msk.msra.mxu1 %vm178_vm1, %v2445_v14  ;;  %2283 = vmatprep.mubr.msk.f32.mxu1 %vm2327_vm0, %v2326_v0 }
  0xf4   : > { %2291 = vmatprep.subr.mxu1 %v2326_v0 }
  0xf5   : > { %v1619_v33 = vpop.f32.mrf.mxu0 }
  0xf6   : > { %2284 = vmatmul.mubr.msk.f32.vlgmr.msra.gmra.mxu1 %vm174_vm2, %v1619_v33 }
  0xf7   : > { %v2280_v34 = vpop.f32.mrf.mxu0  ;;  %2292 = vmatpush3.msk.msra.mxu1 %vm178_vm1, %v2445_v14  ;;  %2293 = vmatprep.mubr.msk.f32.mxu1 %vm2327_vm0, %v2326_v0 }
  0xf8   : > { %2301 = vmatprep.subr.mxu1 %v2326_v0 }
  0xf9   : > { %v1771_v35 = vpop.f32.mrf.mxu0 }
  0xfa   : > { %2294 = vmatmul.mubr.msk.f32.vlgmr.msra.gmra.mxu1 %vm174_vm2, %v1771_v35 }
  0xfb   : > { %v2290_v36 = vpop.f32.mrf.mxu0  ;;  %2302 = vmatpush3.msk.msra.mxu1 %vm178_vm1, %v2445_v14  ;;  %2303 = vmatprep.mubr.msk.f32.mxu1 %vm2327_vm0, %v2326_v0 }
  0xfd   : > { %v1923_v37 = vpop.f32.mrf.mxu0 }
  0xfe   : > { %2304 = vmatmul.mubr.msk.f32.vlgmr.msra.gmra.mxu1 %vm174_vm2, %v1923_v37 }
  0xff   : > { %v2300_v38 = vpop.f32.mrf.mxu0 }
 0x192   : > { %v324_v39 = vpop.f32.mrf.mxu1 }
 0x193   : > { %v328_v40 = vmax.f32 %v324_v39, 0.0 }
 0x194   : > { %v2195_v41 = vpop.f32.mrf.mxu1 }
 0x195   : > { %v329_v42 = vmin.f32 %v328_v40, 255.0 }
 0x196   : > { %v476_v43 = vpop.f32.mrf.mxu1 }
 0x197   : > { %331 = vst.msk [vmem:[%s2520_s25] sm:$0xff] %vm330_vm3, %v329_v42  ;;  %v480_v44 = vmax.f32 %v476_v43, 0.0 }
 0x198   : > { %v2205_v45 = vpop.f32.mrf.mxu1 }
 0x199   : > { %v481_v46 = vmin.f32 %v480_v44, 255.0 }
 0x19a   : > { %v628_v47 = vpop.f32.mrf.mxu1 }
 0x19b   : > { %2075 = vst.msk [vmem:[%s2520_s25 + $0x8] sm:$0xff] %vm330_vm3, %v481_v46  ;;  %v632_v48 = vmax.f32 %v628_v47, 0.0 }
 0x19c   : > { %v2215_v49 = vpop.f32.mrf.mxu1 }
 0x19d   : > { %v633_v50 = vmin.f32 %v632_v48, 255.0 }
 0x19e   : > { %v780_v51 = vpop.f32.mrf.mxu1 }
 0x19f   : > { %2081 = vst.msk [vmem:[%s2520_s25 + $0x10] sm:$0xff] %vm330_vm3, %v633_v50  ;;  %v784_v52 = vmax.f32 %v780_v51, 0.0 }
 0x1a0   : > { %v2225_v53 = vpop.f32.mrf.mxu1 }
 0x1a1   : > { %v785_v54 = vmin.f32 %v784_v52, 255.0 }
 0x1a2   : > { %v932_v55 = vpop.f32.mrf.mxu1 }
 0x1a3   : > { %2087 = vst.msk [vmem:[%s2520_s25 + $0x18] sm:$0xff] %vm330_vm3, %v785_v54  ;;  %v936_v56 = vmax.f32 %v932_v55, 0.0 }
 0x1a4   : > { %v2235_v57 = vpop.f32.mrf.mxu1 }
 0x1a5   : > { %v937_v58 = vmin.f32 %v936_v56, 255.0 }
 0x1a6   : > { %v1084_v59 = vpop.f32.mrf.mxu1 }
 0x1a7   : > { %2093 = vst.msk [vmem:[%s2520_s25 + $0x20] sm:$0xff] %vm330_vm3, %v937_v58  ;;  %v1088_v60 = vmax.f32 %v1084_v59, 0.0 }
 0x1a8   : > { %v2245_v61 = vpop.f32.mrf.mxu1 }
 0x1a9   : > { %v1089_v62 = vmin.f32 %v1088_v60, 255.0 }
 0x1aa   : > { %v1236_v63 = vpop.f32.mrf.mxu1 }
 0x1ab   : > { %2099 = vst.msk [vmem:[%s2520_s25 + $0x28] sm:$0xff] %vm330_vm3, %v1089_v62  ;;  %v1240_v0 = vmax.f32 %v1236_v63, 0.0 }
 0x1ac   : > { %v2255_v1 = vpop.f32.mrf.mxu1 }
 0x1ad   : > { %v1241_v2 = vmin.f32 %v1240_v0, 255.0 }
 0x1ae   : > { %v1388_v3 = vpop.f32.mrf.mxu1 }
 0x1af   : > { %2105 = vst.msk [vmem:[%s2520_s25 + $0x30] sm:$0xff] %vm330_vm3, %v1241_v2  ;;  %v1392_v4 = vmax.f32 %v1388_v3, 0.0 }
 0x1b0   : > { %v2265_v5 = vpop.f32.mrf.mxu1 }
 0x1b1   : > { %v1393_v6 = vmin.f32 %v1392_v4, 255.0 }
 0x1b2   : > { %v1540_v7 = vpop.f32.mrf.mxu1 }
 0x1b3   : > { %2111 = vst.msk [vmem:[%s2520_s25 + $0x38] sm:$0xff] %vm330_vm3, %v1393_v6  ;;  %v1544_v8 = vmax.f32 %v1540_v7, 0.0 }
 0x1b4   : > { %v2275_v9 = vpop.f32.mrf.mxu1 }
 0x1b5   : > { %v1545_v10 = vmin.f32 %v1544_v8, 255.0 }
 0x1b6   : > { %v1692_v11 = vpop.f32.mrf.mxu1 }
 0x1b7   : > { %2117 = vst.msk [vmem:[%s2520_s25 + $0x40] sm:$0xff] %vm330_vm3, %v1545_v10  ;;  %v1696_v12 = vmax.f32 %v1692_v11, 0.0 }
 0x1b8   : > { %v2285_v13 = vpop.f32.mrf.mxu1 }
 0x1b9   : > { %v1697_v14 = vmin.f32 %v1696_v12, 255.0 }
 0x1ba   : > { %v1844_v15 = vpop.f32.mrf.mxu1 }
 0x1bb   : > { %2123 = vst.msk [vmem:[%s2520_s25 + $0x48] sm:$0xff] %vm330_vm3, %v1697_v14  ;;  %v1848_v16 = vmax.f32 %v1844_v15, 0.0 }
 0x1bc   : > { %v2295_v17 = vpop.f32.mrf.mxu1 }
 0x1bd   : > { %v1849_v18 = vmin.f32 %v1848_v16, 255.0 }
 0x1be   : > { %v1996_v19 = vpop.f32.mrf.mxu1 }
 0x1bf   : > { %2129 = vst.msk [vmem:[%s2520_s25 + $0x50] sm:$0xff] %vm330_vm3, %v1849_v18  ;;  %v2000_v20 = vmax.f32 %v1996_v19, 0.0 }
 0x1c0   : > { %v2305_v21 = vpop.f32.mrf.mxu1 }
 0x1c1   : > { %v2001_v22 = vmin.f32 %v2000_v20, 255.0 }
 0x1c3   : > { %2135 = vst.msk [vmem:[%s2520_s25 + $0x58] sm:$0xff] %vm330_vm3, %v2001_v22 }
 0x1c4 PF: > { %s13_s12 = sadd.s32 1, %s2324_s12  }
 0x1c5   : > { %p10_p4 = scmp.ge.s32.totalorder %s13_s12, 4  }
 0x1c7   :  { %12 = sbr.rel (!%p10_p4) target bundleno = 1 (0x1), region = 84 }

// kernel: rsu5_forward.29
= control target key start
LH: loop header
LB: loop body
LE: loop exit
PB: predicated region body
PF: predicated region fallthrough
CT: control target
= control target key end

     0   :  { %s582_s15 = smov 0   ;;  %s720_s0 = inlined_call_operand.vmem [shape: f32[2,24,110], index: 0, kind: input, shape index: {}]   ;;  %s721_s1 = inlined_call_operand.vmem [shape: f32[12,216], index: 1, kind: input, shape index: {}]   ;;  %s722_s2 = inlined_call_operand.vmem [shape: f32[12,1], index: 2, kind: input, shape index: {}]   ;;  %s723_s3 = inlined_call_operand.vmem [shape: f32[12,1], index: 3, kind: input, shape index: {}]   ;;  %s724_s4 = inlined_call_operand.vmem [shape: f32[2,12,80], index: 4, kind: output, shape index: {}]  }
   0x1 LB: > { %s451_s16 = sadd.s32 4294967295, %s545_s15   ;;  %p455_p0 = scmp.ge.s32.totalorder %s545_s15, 1  ;;  %s545_s15 = sphi %s582_s15, %s14_s15  }
   0x2   : > { %p162_p1 = scmp.lt.s32.totalorder %s545_s15, 3 }
   0x4   : > { %p163_p2 = pnand %p455_p0, %p162_p1 }
   0x5   : > { %p188_p3 = scmp.lt.s32.totalorder (!%p163_p2), %s451_s16, 1  ;;  %s548_s21 = smov (!%p163_p2), 116  }
   0x6   : > { %166 = sbr.rel (%p163_p2) target bundleno = 387 (0x183), region = 36  ;;  %s549_s22 = smov (!%p163_p2), 117  }
   0x7   : > { %s550_s23 = smov (!%p163_p2), 118   ;;  %s551_s24 = smov (!%p163_p2), 126  }
   0x8   : > { %s552_s25 = smov (!%p163_p2), 127   ;;  %s553_s26 = smov (!%p163_p2), 106  }
   0x9   : > { %s554_s27 = smov (!%p163_p2), 107   ;;  %s555_s28 = smov (!%p163_p2), 108  }
   0xb   : > { %v547_v0 = vmov 0.0   ;;  %s726_s16 = smov (!%p188_p3, %s451_s16), 1  ;;  %v277_v4 = vld [vmem:[%s721_s1 + $0x8] sm:$0xff]  ;;  %vm280_vm0 = vcmask 719872   ;;  %v279_v5 = vld [vmem:[%s721_s1 + $0x18] sm:$0xf] }
   0xc   : > { %287 = vmatprep.subr.mxu0 %v547_v0  ;;  %464 = vmatprep.subr.mxu1 %v547_v0  ;;  %s518_s17 = smul.u32 24, %s726_s16  ;;  %v556_v6 = vmov 0   ;;  %v363_v7 = vld [vmem:[%s722_s2 + $0x8] sm:$0xf]  ;;  %v362_v8 = vld [vmem:[%s722_s2] sm:$0xff]  ;;  %vm392_vm1 = vcmask 654336  }
   0xd   : > { %459 = vmatprep.mubr.msk.f32.mxu0 %vm280_vm0, %v277_v4  ;;  %460 = vmatprep.mubr.msk.f32.mxu1 %vm280_vm0, %v279_v5  ;;  %v376_v9 = vld [vmem:[%s723_s3] sm:$0xff]  ;;  %v377_v10 = vld [vmem:[%s723_s3 + $0x8] sm:$0xf]  ;;  %v278_v36 = vld [vmem:[%s721_s1 + $0x10] sm:$0xf]  ;;  %vm394_vm2 = vcmask 650240  }
   0xe   : > { %s192_s20 = scalar_lea.vmem %s720_s0, %s518_s17  ;;  %538 = vset.pattern.permute.xlu1 %v556_v6  ;;  %537 = vset.pattern.permute.xlu0 %v556_v6  ;;  %v276_v35 = vld [vmem:[%s721_s1] sm:$0xff] }
   0xf   : > { %v598_v1 = vld [vmem:[%s192_s20] sm:$0xff]  ;;  %v600_v2 = vld [vmem:[%s192_s20 + $0x8] sm:$0xff]  ;;  %v605_v3 = vld [vmem:[%s192_s20 + $0x10] sm:$0xff] }
  0x10   : > { %240 = vrot.lane.b32.xlu0 %v598_v1, %s548_s21  ;;  %233 = vrot.lane.b32.xlu1 %v600_v2, %s549_s22 }
  0x14   : > { %235 = vrot.lane.b32.xlu0 %v605_v3, %s549_s22  ;;  %231 = vrot.lane.b32.xlu1 %v598_v1, %s549_s22 }
  0x18   : > { %226 = vrot.lane.b32.xlu0 %v605_v3, %s550_s23  ;;  %224 = vrot.lane.b32.xlu1 %v600_v2, %s550_s23 }
  0x1c   : > { %222 = vrot.lane.b32.xlu0 %v598_v1, %s550_s23  ;;  %217 = vrot.lane.b32.xlu1 %v605_v3, %s551_s24 }
  0x20   : > { %215 = vrot.lane.b32.xlu0 %v600_v2, %s551_s24  ;;  %213 = vrot.lane.b32.xlu1 %v598_v1, %s551_s24 }
  0x24   : > { %208 = vrot.lane.b32.xlu0 %v605_v3, %s552_s25  ;;  %206 = vrot.lane.b32.xlu1 %v600_v2, %s552_s25 }
  0x28   : > { %204 = vrot.lane.b32.xlu0 %v598_v1, %s552_s25  ;;  %271 = vrot.lane.b32.xlu1 %v605_v3, %s553_s26 }
  0x2c   : > { %269 = vrot.lane.b32.xlu0 %v600_v2, %s553_s26  ;;  %267 = vrot.lane.b32.xlu1 %v598_v1, %s553_s26 }
  0x30   : > { %262 = vrot.lane.b32.xlu0 %v605_v3, %s554_s27  ;;  %260 = vrot.lane.b32.xlu1 %v600_v2, %s554_s27 }
  0x34   : > { %258 = vrot.lane.b32.xlu0 %v598_v1, %s554_s27  ;;  %253 = vrot.lane.b32.xlu1 %v605_v3, %s555_s28 }
  0x38   : > { %251 = vrot.lane.b32.xlu0 %v600_v2, %s555_s28  ;;  %249 = vrot.lane.b32.xlu1 %v598_v1, %s555_s28 }
  0x3c   : > { %244 = vrot.lane.b32.xlu0 %v605_v3, %s548_s21  ;;  %242 = vrot.lane.b32.xlu1 %v600_v2, %s548_s21  ;;  %s463_s21 = sshll.u32 %s726_s16, 4 }
  0x3d   : > { %s197_s24 = scalar_lea.vmem %s724_s4, %s463_s21 }
  0x40   : > { %371 = vperm.xlu1 %538, %v363_v7   ;;  %366 = vperm.xlu0 %537, %v362_v8  }
  0x44   : > { %380 = vperm.xlu1 %538, %v376_v9   ;;  %385 = vperm.xlu0 %537, %v377_v10  }
  0x82   : > { %v241_v11 = vpop.permute.xlu0 %240  ;;  %v234_v12 = vpop.permute.xlu1 %233 }
  0x83   : > { %288 = vmatpush1.msra.mxu0 %v241_v11  ;;  %491 = vmatpush1.msra.mxu1 %v241_v11 }
  0x84   : > { %289 = vmatprep.subr.mxu0 %v547_v0  ;;  %465 = vmatprep.subr.mxu1 %v547_v0 }
  0x86   : > { %v236_v13 = vpop.permute.xlu0 %235  ;;  %v232_v14 = vpop.permute.xlu1 %231 }
  0x87   : > { %290 = vmatpush1.msra.mxu0 %v236_v13  ;;  %492 = vmatpush1.msra.mxu1 %v236_v13 }
  0x88   : > { %291 = vmatprep.subr.mxu0 %v547_v0  ;;  %466 = vmatprep.subr.mxu1 %v547_v0 }
  0x89   : > { %292 = vmatpush1.msra.mxu0 %v234_v12  ;;  %493 = vmatpush1.msra.mxu1 %v234_v12 }
  0x8a   : > { %293 = vmatprep.subr.mxu0 %v547_v0  ;;  %467 = vmatprep.subr.mxu1 %v547_v0  ;;  %v227_v15 = vpop.permute.xlu0 %226  ;;  %v225_v16 = vpop.permute.xlu1 %224 }
  0x8b   : > { %294 = vmatpush1.msra.mxu0 %v232_v14  ;;  %494 = vmatpush1.msra.mxu1 %v232_v14 }
  0x8c   : > { %295 = vmatprep.subr.mxu0 %v547_v0  ;;  %468 = vmatprep.subr.mxu1 %v547_v0 }
  0x8d   : > { %296 = vmatpush1.msra.mxu0 %v227_v15  ;;  %495 = vmatpush1.msra.mxu1 %v227_v15 }
  0x8e   : > { %297 = vmatprep.subr.mxu0 %v547_v0  ;;  %469 = vmatprep.subr.mxu1 %v547_v0  ;;  %v223_v17 = vpop.permute.xlu0 %222  ;;  %v218_v18 = vpop.permute.xlu1 %217 }
  0x8f   : > { %298 = vmatpush1.msra.mxu0 %v225_v16  ;;  %496 = vmatpush1.msra.mxu1 %v225_v16 }
  0x90   : > { %299 = vmatprep.subr.mxu0 %v547_v0  ;;  %470 = vmatprep.subr.mxu1 %v547_v0 }
  0x91   : > { %300 = vmatpush1.msra.mxu0 %v223_v17  ;;  %497 = vmatpush1.msra.mxu1 %v223_v17 }
  0x92   : > { %301 = vmatprep.subr.mxu0 %v547_v0  ;;  %471 = vmatprep.subr.mxu1 %v547_v0  ;;  %v216_v19 = vpop.permute.xlu0 %215  ;;  %v214_v20 = vpop.permute.xlu1 %213 }
  0x93   : > { %302 = vmatpush1.msra.mxu0 %v218_v18  ;;  %498 = vmatpush1.msra.mxu1 %v218_v18 }
  0x94   : > { %303 = vmatprep.subr.mxu0 %v547_v0  ;;  %472 = vmatprep.subr.mxu1 %v547_v0 }
  0x95   : > { %304 = vmatpush1.msra.mxu0 %v216_v19  ;;  %499 = vmatpush1.msra.mxu1 %v216_v19 }
  0x96   : > { %305 = vmatprep.subr.mxu0 %v547_v0  ;;  %473 = vmatprep.subr.mxu1 %v547_v0  ;;  %v209_v21 = vpop.permute.xlu0 %208  ;;  %v207_v22 = vpop.permute.xlu1 %206 }
  0x97   : > { %306 = vmatpush1.msra.mxu0 %v214_v20  ;;  %500 = vmatpush1.msra.mxu1 %v214_v20 }
  0x98   : > { %307 = vmatprep.subr.mxu0 %v547_v0  ;;  %474 = vmatprep.subr.mxu1 %v547_v0 }
  0x99   : > { %308 = vmatpush1.msra.mxu0 %v209_v21  ;;  %501 = vmatpush1.msra.mxu1 %v209_v21 }
  0x9a   : > { %309 = vmatprep.subr.mxu0 %v547_v0  ;;  %475 = vmatprep.subr.mxu1 %v547_v0  ;;  %v205_v23 = vpop.permute.xlu0 %204  ;;  %v272_v24 = vpop.permute.xlu1 %271 }
  0x9b   : > { %310 = vmatpush1.msra.mxu0 %v207_v22  ;;  %502 = vmatpush1.msra.mxu1 %v207_v22 }
  0x9c   : > { %311 = vmatprep.subr.mxu0 %v547_v0  ;;  %476 = vmatprep.subr.mxu1 %v547_v0 }
  0x9d   : > { %312 = vmatpush1.msra.mxu0 %v205_v23  ;;  %503 = vmatpush1.msra.mxu1 %v205_v23 }
  0x9e   : > { %313 = vmatprep.subr.mxu0 %v547_v0  ;;  %477 = vmatprep.subr.mxu1 %v547_v0  ;;  %v270_v25 = vpop.permute.xlu0 %269  ;;  %v268_v26 = vpop.permute.xlu1 %267 }
  0x9f   : > { %314 = vmatpush1.msra.mxu0 %v605_v3  ;;  %504 = vmatpush1.msra.mxu1 %v605_v3 }
  0xa0   : > { %315 = vmatprep.subr.mxu0 %v547_v0  ;;  %478 = vmatprep.subr.mxu1 %v547_v0 }
  0xa1   : > { %316 = vmatpush1.msra.mxu0 %v600_v2  ;;  %505 = vmatpush1.msra.mxu1 %v600_v2 }
  0xa2   : > { %317 = vmatprep.subr.mxu0 %v547_v0  ;;  %479 = vmatprep.subr.mxu1 %v547_v0  ;;  %v263_v27 = vpop.permute.xlu0 %262  ;;  %v261_v28 = vpop.permute.xlu1 %260 }
  0xa3   : > { %318 = vmatpush1.msra.mxu0 %v598_v1  ;;  %506 = vmatpush1.msra.mxu1 %v598_v1 }
  0xa4   : > { %329 = vmatprep.subr.mxu0 %v547_v0  ;;  %480 = vmatprep.subr.mxu1 %v547_v0 }
  0xa5   : > { %330 = vmatpush2.msra.mxu0 %v272_v24  ;;  %507 = vmatpush2.msra.mxu1 %v272_v24 }
  0xa6   : > { %331 = vmatprep.subr.mxu0 %v547_v0  ;;  %481 = vmatprep.subr.mxu1 %v547_v0  ;;  %v259_v29 = vpop.permute.xlu0 %258  ;;  %v254_v30 = vpop.permute.xlu1 %253 }
  0xa7   : > { %332 = vmatpush2.msra.mxu0 %v270_v25  ;;  %508 = vmatpush2.msra.mxu1 %v270_v25 }
  0xa8   : > { %333 = vmatprep.subr.mxu0 %v547_v0  ;;  %482 = vmatprep.subr.mxu1 %v547_v0 }
  0xa9   : > { %334 = vmatpush2.msra.mxu0 %v268_v26  ;;  %509 = vmatpush2.msra.mxu1 %v268_v26 }
  0xaa   : > { %335 = vmatprep.subr.mxu0 %v547_v0  ;;  %483 = vmatprep.subr.mxu1 %v547_v0  ;;  %v252_v31 = vpop.permute.xlu0 %251  ;;  %v250_v32 = vpop.permute.xlu1 %249 }
  0xab   : > { %336 = vmatpush2.msra.mxu0 %v263_v27  ;;  %510 = vmatpush2.msra.mxu1 %v263_v27 }
  0xac   : > { %337 = vmatprep.subr.mxu0 %v547_v0  ;;  %484 = vmatprep.subr.mxu1 %v547_v0 }
  0xad   : > { %338 = vmatpush2.msra.mxu0 %v261_v28  ;;  %511 = vmatpush2.msra.mxu1 %v261_v28 }
  0xae   : > { %339 = vmatprep.subr.mxu0 %v547_v0  ;;  %485 = vmatprep.subr.mxu1 %v547_v0  ;;  %v245_v33 = vpop.permute.xlu0 %244  ;;  %v243_v34 = vpop.permute.xlu1 %242 }
  0xaf   : > { %340 = vmatpush2.msra.mxu0 %v259_v29  ;;  %512 = vmatpush2.msra.mxu1 %v259_v29 }
  0xb0   : > { %341 = vmatprep.subr.mxu0 %v547_v0  ;;  %486 = vmatprep.subr.mxu1 %v547_v0 }
  0xb1   : > { %342 = vmatpush2.msra.mxu0 %v254_v30  ;;  %513 = vmatpush2.msra.mxu1 %v254_v30 }
  0xb2   : > { %343 = vmatprep.subr.mxu0 %v547_v0  ;;  %487 = vmatprep.subr.mxu1 %v547_v0 }
  0xb3   : > { %344 = vmatpush2.msra.mxu0 %v252_v31  ;;  %514 = vmatpush2.msra.mxu1 %v252_v31 }
  0xb4   : > { %345 = vmatprep.subr.mxu0 %v547_v0  ;;  %488 = vmatprep.subr.mxu1 %v547_v0 }
  0xb5   : > { %346 = vmatpush2.msra.mxu0 %v250_v32  ;;  %515 = vmatpush2.msra.mxu1 %v250_v32 }
  0xb6   : > { %347 = vmatprep.subr.mxu0 %v547_v0  ;;  %489 = vmatprep.subr.mxu1 %v547_v0 }
  0xb7   : > { %348 = vmatpush2.msra.mxu0 %v245_v33  ;;  %516 = vmatpush2.msra.mxu1 %v245_v33 }
  0xb8   : > { %349 = vmatprep.subr.mxu0 %v547_v0  ;;  %490 = vmatprep.subr.mxu1 %v547_v0 }
  0xb9   : > { %350 = vmatpush2.msra.mxu0 %v243_v34  ;;  %517 = vmatpush2.msra.mxu1 %v243_v34 }
  0xba   : > { %352 = vmatmul.mubr.f32.vlgmr.msra.gmra.mxu0 %v276_v35  ;;  %357 = vmatmul.mubr.f32.vlgmr.msra.gmra.mxu1 %v278_v36 }
  0xbb   : > { %v372_v37 = vpop.permute.xlu1 %371  ;;  %v367_v38 = vpop.permute.xlu0 %366 }
  0xbf   : > { %v381_v41 = vpop.permute.xlu1 %380  ;;  %v386_v42 = vpop.permute.xlu0 %385 }
 0x17a   : > { %v353_v39 = vpop.f32.mrf.mxu0  ;;  %v358_v40 = vpop.f32.mrf.mxu1 }
 0x17b   : > { %v374_v43 = vmul.f32 %v367_v38, %v353_v39  ;;  %v375_v44 = vmul.f32 %v372_v37, %v358_v40 }
 0x17c   : > { %v355_v45 = vpop.f32.mrf.mxu0  ;;  %v360_v46 = vpop.f32.mrf.mxu1 }
 0x17d   : > { %v388_v47 = vadd.f32 %v381_v41, %v374_v43  ;;  %v389_v48 = vadd.f32 %v386_v42, %v375_v44 }
 0x17f   : > { %v390_v49 = vmax.f32 %v388_v47, 0.0  ;;  %v391_v50 = vmax.f32 %v389_v48, 0.0 }
 0x181   : > { %393 = vst.msk [vmem:[%s197_s24] sm:$0xff] %vm392_vm1, %v390_v49 }
 0x182   : > { %395 = vst.msk [vmem:[%s197_s24 + $0x8] sm:$0xf] %vm394_vm2, %v391_v50 }
 0x183 PF: > { %s14_s15 = sadd.s32 1, %s545_s15  }
 0x184   : > { %p11_p4 = scmp.ge.s32.totalorder %s14_s15, 4  }
 0x186   :  { %13 = sbr.rel (!%p11_p4) target bundleno = 1 (0x1), region = 66 }

// kernel: rsu5_forward.31
= control target key start
LH: loop header
LB: loop body
LE: loop exit
PB: predicated region body
PF: predicated region fallthrough
CT: control target
= control target key end

     0   :  { %s869_s18 = smov 0   ;;  %s1100_s0 = inlined_call_operand.vmem [shape: f32[2,24,342], index: 0, kind: input, shape index: {}]   ;;  %s1101_s1 = inlined_call_operand.vmem [shape: f32[3,216], index: 1, kind: input, shape index: {}]   ;;  %s1102_s2 = inlined_call_operand.vmem [shape: f32[3,1], index: 2, kind: input, shape index: {}]   ;;  %s1103_s3 = inlined_call_operand.vmem [shape: f32[3,1], index: 3, kind: input, shape index: {}]   ;;  %s1104_s4 = inlined_call_operand.vmem [shape: f32[2,3,288], index: 4, kind: input, shape index: {}]   ;;  %s1105_s5 = inlined_call_operand.vmem [shape: f32[2,3,288], index: 5, kind: output, shape index: {}]  }
   0x1 LB: > { %s785_s19 = sadd.s32 4294967295, %s827_s18   ;;  %p789_p0 = scmp.ge.s32.totalorder %s827_s18, 1  ;;  %s827_s18 = sphi %s869_s18, %s15_s18  }
   0x2   : > { %p197_p1 = scmp.lt.s32.totalorder %s827_s18, 3 }
   0x4   : > { %p198_p2 = pnand %p789_p0, %p197_p1 }
   0x5   : > { %p230_p3 = scmp.lt.s32.totalorder (!%p198_p2), %s785_s19, 1  ;;  %s830_s24 = smov (!%p198_p2), 108  }
   0x6   : > { %201 = sbr.rel (%p198_p2) target bundleno = 480 (0x1e0), region = 40  ;;  %s831_s25 = smov (!%p198_p2), 109  }
   0x7   : > { %s832_s26 = smov (!%p198_p2), 110   ;;  %s833_s27 = smov (!%p198_p2), 126  }
   0x8   : > { %s834_s28 = smov (!%p198_p2), 127   ;;  %s835_s29 = smov (!%p198_p2), 90  }
   0x9   : > { %s836_s30 = smov (!%p198_p2), 91   ;;  %s837_s6 = smov (!%p198_p2), 92  }
   0xb   : > { %v829_v0 = vmov 0.0   ;;  %s1107_s19 = smov (!%p230_p3, %s785_s19), 1  ;;  %vm417_vm0 = vcmask 883712   ;;  %vm383_vm1 = vcmask 891904   ;;  %v986_v23 = vld [vmem:[%s1101_s1] sm:$0x77] }
   0xc   : > { %612 = vmatprep.subr.mxu1 %v829_v0  ;;  %s797_s20 = smul.u32 72, %s1107_s19  ;;  %v537_v24 = vcombine.high %v986_v23, %v986_v23  ;;  %vm538_vm2 = vcmask 719872   ;;  %v838_v28 = vmov 0   ;;  %vm349_vm3 = vcmask 900096   ;;  %v682_v36 = vld [vmem:[%s1102_s2] sm:$0x7] }
   0xd   : > { %817 = vset.pattern.permute.xlu0 %v838_v28  ;;  %818 = vset.pattern.permute.xlu1 %v838_v28  ;;  %v691_v39 = vld [vmem:[%s1103_s3] sm:$0x7]  ;;  %vm315_vm4 = vcmask 1031168   ;;  %vm281_vm5 = vcmask 1039360   ;;  %vm519_vm6 = vcmask 736256   ;;  %vm485_vm7 = vcmask 744448  }
   0xe   : > { %s234_s23 = scalar_lea.vmem %s1100_s0, %s797_s20  ;;  %793 = vmatprep.mubr.msk.f32.mxu0 %vm538_vm2, %v537_v24  ;;  %794 = vmatprep.mubr.msk.f32.mxu1 %vm538_vm2, %v537_v24  ;;  %vm451_vm8 = vcmask 752640   ;;  %s798_s13 = smul.u32 12, %s1107_s19  ;;  %vm716_vm9 = vcmask 256000  }
   0xf   : > { %v884_v1 = vld [vmem:[%s234_s23 + $0x8] sm:$0xff]  ;;  %v886_v2 = vld [vmem:[%s234_s23] sm:$0xff]  ;;  %v892_v3 = vld [vmem:[%s234_s23 + $0x10] sm:$0xff] }
  0x10   : > { %401 = vrot.lane.b32.xlu0 %v884_v1, %s830_s24  ;;  %399 = vrot.lane.b32.xlu1 %v886_v2, %s830_s24  ;;  %v894_v4 = vld [vmem:[%s234_s23 + $0x38] sm:$0xff]  ;;  %v899_v5 = vld [vmem:[%s234_s23 + $0x40] sm:$0xff]  ;;  %s239_s16 = scalar_lea.vmem %s1104_s4, %s798_s13  ;;  %s244_s20 = scalar_lea.vmem %s1105_s5, %s798_s13 }
  0x11   : > { %v901_v6 = vld [vmem:[%s234_s23 + $0x30] sm:$0xff]  ;;  %v905_v7 = vld [vmem:[%s234_s23 + $0x20] sm:$0xff]  ;;  %v907_v8 = vld [vmem:[%s234_s23 + $0x28] sm:$0xff] }
  0x12   : > { %v911_v9 = vld [vmem:[%s234_s23 + $0x18] sm:$0xff] }
  0x14   : > { %403 = vrot.lane.b32.xlu0 %v892_v3, %s830_s24  ;;  %379 = vrot.lane.b32.xlu1 %v894_v4, %s831_s25 }
  0x18   : > { %381 = vrot.lane.b32.xlu0 %v899_v5, %s831_s25  ;;  %377 = vrot.lane.b32.xlu1 %v901_v6, %s831_s25 }
  0x1c   : > { %373 = vrot.lane.b32.xlu0 %v905_v7, %s831_s25  ;;  %375 = vrot.lane.b32.xlu1 %v907_v8, %s831_s25 }
  0x20   : > { %371 = vrot.lane.b32.xlu0 %v911_v9, %s831_s25  ;;  %367 = vrot.lane.b32.xlu1 %v884_v1, %s831_s25 }
  0x24   : > { %369 = vrot.lane.b32.xlu0 %v892_v3, %s831_s25  ;;  %365 = vrot.lane.b32.xlu1 %v886_v2, %s831_s25 }
  0x28   : > { %345 = vrot.lane.b32.xlu0 %v894_v4, %s832_s26  ;;  %347 = vrot.lane.b32.xlu1 %v899_v5, %s832_s26 }
  0x2c   : > { %343 = vrot.lane.b32.xlu0 %v901_v6, %s832_s26  ;;  %339 = vrot.lane.b32.xlu1 %v905_v7, %s832_s26 }
  0x30   : > { %341 = vrot.lane.b32.xlu0 %v907_v8, %s832_s26  ;;  %337 = vrot.lane.b32.xlu1 %v911_v9, %s832_s26 }
  0x34   : > { %333 = vrot.lane.b32.xlu0 %v884_v1, %s832_s26  ;;  %335 = vrot.lane.b32.xlu1 %v892_v3, %s832_s26 }
  0x38   : > { %331 = vrot.lane.b32.xlu0 %v886_v2, %s832_s26  ;;  %311 = vrot.lane.b32.xlu1 %v894_v4, %s833_s27 }
  0x3c   : > { %313 = vrot.lane.b32.xlu0 %v899_v5, %s833_s27  ;;  %309 = vrot.lane.b32.xlu1 %v901_v6, %s833_s27 }
  0x40   : > { %305 = vrot.lane.b32.xlu0 %v905_v7, %s833_s27  ;;  %307 = vrot.lane.b32.xlu1 %v907_v8, %s833_s27 }
  0x44   : > { %303 = vrot.lane.b32.xlu0 %v911_v9, %s833_s27  ;;  %299 = vrot.lane.b32.xlu1 %v884_v1, %s833_s27 }
  0x48   : > { %301 = vrot.lane.b32.xlu0 %v892_v3, %s833_s27  ;;  %297 = vrot.lane.b32.xlu1 %v886_v2, %s833_s27 }
  0x4c   : > { %277 = vrot.lane.b32.xlu0 %v894_v4, %s834_s28  ;;  %279 = vrot.lane.b32.xlu1 %v899_v5, %s834_s28 }
  0x50   : > { %275 = vrot.lane.b32.xlu0 %v901_v6, %s834_s28  ;;  %271 = vrot.lane.b32.xlu1 %v905_v7, %s834_s28 }
  0x54   : > { %273 = vrot.lane.b32.xlu0 %v907_v8, %s834_s28  ;;  %269 = vrot.lane.b32.xlu1 %v911_v9, %s834_s28 }
  0x58   : > { %265 = vrot.lane.b32.xlu0 %v884_v1, %s834_s28  ;;  %267 = vrot.lane.b32.xlu1 %v892_v3, %s834_s28 }
  0x5c   : > { %263 = vrot.lane.b32.xlu0 %v886_v2, %s834_s28  ;;  %515 = vrot.lane.b32.xlu1 %v894_v4, %s835_s29 }
  0x60   : > { %517 = vrot.lane.b32.xlu0 %v899_v5, %s835_s29  ;;  %513 = vrot.lane.b32.xlu1 %v901_v6, %s835_s29 }
  0x64   : > { %509 = vrot.lane.b32.xlu0 %v905_v7, %s835_s29  ;;  %511 = vrot.lane.b32.xlu1 %v907_v8, %s835_s29 }
  0x68   : > { %507 = vrot.lane.b32.xlu0 %v911_v9, %s835_s29  ;;  %503 = vrot.lane.b32.xlu1 %v884_v1, %s835_s29 }
  0x6c   : > { %505 = vrot.lane.b32.xlu0 %v892_v3, %s835_s29  ;;  %501 = vrot.lane.b32.xlu1 %v886_v2, %s835_s29 }
  0x70   : > { %481 = vrot.lane.b32.xlu0 %v894_v4, %s836_s30  ;;  %483 = vrot.lane.b32.xlu1 %v899_v5, %s836_s30 }
  0x74   : > { %479 = vrot.lane.b32.xlu0 %v901_v6, %s836_s30  ;;  %475 = vrot.lane.b32.xlu1 %v905_v7, %s836_s30 }
  0x78   : > { %477 = vrot.lane.b32.xlu0 %v907_v8, %s836_s30  ;;  %473 = vrot.lane.b32.xlu1 %v911_v9, %s836_s30 }
  0x7c   : > { %469 = vrot.lane.b32.xlu0 %v884_v1, %s836_s30  ;;  %471 = vrot.lane.b32.xlu1 %v892_v3, %s836_s30 }
  0x80   : > { %467 = vrot.lane.b32.xlu0 %v886_v2, %s836_s30  ;;  %447 = vrot.lane.b32.xlu1 %v894_v4, %s837_s6 }
  0x82   : > { %v402_v10 = vpop.permute.xlu0 %401  ;;  %v400_v11 = vpop.permute.xlu1 %399 }
  0x83   : > { %v418_v15 = vsel %vm417_vm0, %v400_v11, %v402_v10 }
  0x84   : > { %449 = vrot.lane.b32.xlu0 %v899_v5, %s837_s6  ;;  %445 = vrot.lane.b32.xlu1 %v901_v6, %s837_s6 }
  0x86   : > { %v404_v12 = vpop.permute.xlu0 %403  ;;  %v380_v13 = vpop.permute.xlu1 %379 }
  0x87   : > { %613 = vmatpush1.msra.mxu1 %v404_v12  ;;  %v419_v14 = vsel %vm417_vm0, %v402_v10, %v404_v12 }
  0x88   : > { %541 = vmatprep.subr.mxu0 %v419_v14  ;;  %441 = vrot.lane.b32.xlu0 %v905_v7, %s837_s6 }
  0x89   : > { %443 = vrot.lane.b32.xlu1 %v907_v8, %s837_s6  ;;  %542 = vmatpush1.msra.mxu0 %v418_v15 }
  0x8a   : > { %614 = vmatprep.subr.mxu1 %v829_v0  ;;  %v382_v16 = vpop.permute.xlu0 %381  ;;  %v378_v17 = vpop.permute.xlu1 %377 }
  0x8b   : > { %615 = vmatpush1.msra.mxu1 %v382_v16  ;;  %v389_v18 = vsel %vm383_vm1, %v380_v13, %v382_v16  ;;  %v388_v19 = vsel %vm383_vm1, %v378_v17, %v380_v13 }
  0x8c   : > { %439 = vrot.lane.b32.xlu0 %v911_v9, %s837_s6  ;;  %543 = vmatprep.subr.mxu0 %v389_v18 }
  0x8d   : > { %435 = vrot.lane.b32.xlu1 %v884_v1, %s837_s6  ;;  %544 = vmatpush1.msra.mxu0 %v388_v19 }
  0x8e   : > { %v374_v20 = vpop.permute.xlu0 %373  ;;  %v376_v21 = vpop.permute.xlu1 %375  ;;  %616 = vmatprep.subr.mxu1 %v829_v0 }
  0x8f   : > { %v387_v22 = vsel %vm383_vm1, %v374_v20, %v376_v21  ;;  %617 = vmatpush1.msra.mxu1 %v376_v21 }
  0x90   : > { %437 = vrot.lane.b32.xlu0 %v892_v3, %s837_s6  ;;  %545 = vmatprep.subr.mxu0 %v387_v22 }
  0x91   : > { %433 = vrot.lane.b32.xlu1 %v886_v2, %s837_s6  ;;  %618 = vmatprep.subr.mxu1 %v829_v0 }
  0x92   : > { %v372_v25 = vpop.permute.xlu0 %371  ;;  %v368_v26 = vpop.permute.xlu1 %367 }
  0x93   : > { %v386_v27 = vsel %vm383_vm1, %v372_v25, %v374_v20 }
  0x94   : > { %413 = vrot.lane.b32.xlu0 %v894_v4, %s830_s24  ;;  %546 = vmatpush1.msra.mxu0 %v386_v27 }
  0x95   : > { %415 = vrot.lane.b32.xlu1 %v899_v5, %s830_s24 }
  0x96   : > { %v370_v29 = vpop.permute.xlu0 %369  ;;  %v366_v30 = vpop.permute.xlu1 %365 }
  0x97   : > { %619 = vmatpush1.msra.mxu1 %v370_v29  ;;  %v385_v31 = vsel %vm383_vm1, %v368_v26, %v370_v29  ;;  %v384_v32 = vsel %vm383_vm1, %v366_v30, %v368_v26 }
  0x98   : > { %411 = vrot.lane.b32.xlu0 %v901_v6, %s830_s24  ;;  %547 = vmatprep.subr.mxu0 %v385_v31 }
  0x99   : > { %407 = vrot.lane.b32.xlu1 %v905_v7, %s830_s24  ;;  %548 = vmatpush1.msra.mxu0 %v384_v32 }
  0x9a   : > { %v346_v33 = vpop.permute.xlu0 %345  ;;  %v348_v34 = vpop.permute.xlu1 %347  ;;  %620 = vmatprep.subr.mxu1 %v829_v0 }
  0x9b   : > { %v355_v35 = vsel %vm349_vm3, %v346_v33, %v348_v34  ;;  %621 = vmatpush1.msra.mxu1 %v348_v34 }
  0x9c   : > { %409 = vrot.lane.b32.xlu0 %v907_v8, %s830_s24  ;;  %549 = vmatprep.subr.mxu0 %v355_v35 }
  0x9d   : > { %405 = vrot.lane.b32.xlu1 %v911_v9, %s830_s24  ;;  %622 = vmatprep.subr.mxu1 %v829_v0 }
  0x9e   : > { %v344_v37 = vpop.permute.xlu0 %343  ;;  %v340_v38 = vpop.permute.xlu1 %339 }
  0x9f   : > { %v354_v40 = vsel %vm349_vm3, %v344_v37, %v346_v33 }
  0xa0   : > { %550 = vmatpush1.msra.mxu0 %v354_v40  ;;  %685 = vperm.xlu0 %817, %v682_v36  }
  0xa1   : > { %694 = vperm.xlu1 %818, %v691_v39  }
  0xa2   : > { %v342_v41 = vpop.permute.xlu0 %341  ;;  %v338_v42 = vpop.permute.xlu1 %337 }
  0xa3   : > { %623 = vmatpush1.msra.mxu1 %v342_v41  ;;  %v353_v43 = vsel %vm349_vm3, %v340_v38, %v342_v41  ;;  %v352_v44 = vsel %vm349_vm3, %v338_v42, %v340_v38 }
  0xa4   : > { %551 = vmatprep.subr.mxu0 %v353_v43  ;;  %624 = vmatprep.subr.mxu1 %v829_v0 }
  0xa5   : > { %552 = vmatpush1.msra.mxu0 %v352_v44 }
  0xa6   : > { %v334_v45 = vpop.permute.xlu0 %333  ;;  %v336_v46 = vpop.permute.xlu1 %335 }
  0xa7   : > { %v351_v47 = vsel %vm349_vm3, %v334_v45, %v336_v46  ;;  %625 = vmatpush1.msra.mxu1 %v336_v46 }
  0xa8   : > { %553 = vmatprep.subr.mxu0 %v351_v47  ;;  %626 = vmatprep.subr.mxu1 %v829_v0 }
  0xaa   : > { %v332_v48 = vpop.permute.xlu0 %331  ;;  %v312_v49 = vpop.permute.xlu1 %311 }
  0xab   : > { %v350_v50 = vsel %vm349_vm3, %v332_v48, %v334_v45 }
  0xac   : > { %554 = vmatpush1.msra.mxu0 %v350_v50 }
  0xae   : > { %v314_v51 = vpop.permute.xlu0 %313  ;;  %v310_v52 = vpop.permute.xlu1 %309 }
  0xaf   : > { %627 = vmatpush1.msra.mxu1 %v314_v51  ;;  %v321_v53 = vsel %vm315_vm4, %v312_v49, %v314_v51  ;;  %v320_v54 = vsel %vm315_vm4, %v310_v52, %v312_v49 }
  0xb0   : > { %555 = vmatprep.subr.mxu0 %v321_v53  ;;  %628 = vmatprep.subr.mxu1 %v829_v0 }
  0xb1   : > { %556 = vmatpush1.msra.mxu0 %v320_v54 }
  0xb2   : > { %v306_v55 = vpop.permute.xlu0 %305  ;;  %v308_v56 = vpop.permute.xlu1 %307 }
  0xb3   : > { %v319_v57 = vsel %vm315_vm4, %v306_v55, %v308_v56  ;;  %629 = vmatpush1.msra.mxu1 %v308_v56 }
  0xb4   : > { %557 = vmatprep.subr.mxu0 %v319_v57  ;;  %630 = vmatprep.subr.mxu1 %v829_v0 }
  0xb6   : > { %v304_v58 = vpop.permute.xlu0 %303  ;;  %v300_v59 = vpop.permute.xlu1 %299 }
  0xb7   : > { %v318_v60 = vsel %vm315_vm4, %v304_v58, %v306_v55 }
  0xb8   : > { %558 = vmatpush1.msra.mxu0 %v318_v60 }
  0xba   : > { %v302_v61 = vpop.permute.xlu0 %301  ;;  %v298_v62 = vpop.permute.xlu1 %297 }
  0xbb   : > { %631 = vmatpush1.msra.mxu1 %v302_v61  ;;  %v317_v63 = vsel %vm315_vm4, %v300_v59, %v302_v61  ;;  %v316_v10 = vsel %vm315_vm4, %v298_v62, %v300_v59 }
  0xbc   : > { %559 = vmatprep.subr.mxu0 %v317_v63  ;;  %632 = vmatprep.subr.mxu1 %v829_v0 }
  0xbd   : > { %560 = vmatpush1.msra.mxu0 %v316_v10 }
  0xbe   : > { %v278_v11 = vpop.permute.xlu0 %277  ;;  %v280_v12 = vpop.permute.xlu1 %279 }
  0xbf   : > { %v287_v13 = vsel %vm281_vm5, %v278_v11, %v280_v12  ;;  %633 = vmatpush1.msra.mxu1 %v280_v12 }
  0xc0   : > { %561 = vmatprep.subr.mxu0 %v287_v13  ;;  %634 = vmatprep.subr.mxu1 %v829_v0 }
  0xc2   : > { %v276_v14 = vpop.permute.xlu0 %275  ;;  %v272_v15 = vpop.permute.xlu1 %271 }
  0xc3   : > { %v286_v16 = vsel %vm281_vm5, %v276_v14, %v278_v11 }
  0xc4   : > { %562 = vmatpush1.msra.mxu0 %v286_v16 }
  0xc6   : > { %v274_v17 = vpop.permute.xlu0 %273  ;;  %v270_v18 = vpop.permute.xlu1 %269 }
  0xc7   : > { %635 = vmatpush1.msra.mxu1 %v274_v17  ;;  %v285_v19 = vsel %vm281_vm5, %v272_v15, %v274_v17  ;;  %v284_v20 = vsel %vm281_vm5, %v270_v18, %v272_v15 }
  0xc8   : > { %563 = vmatprep.subr.mxu0 %v285_v19  ;;  %636 = vmatprep.subr.mxu1 %v829_v0 }
  0xc9   : > { %564 = vmatpush1.msra.mxu0 %v284_v20 }
  0xca   : > { %v266_v21 = vpop.permute.xlu0 %265  ;;  %v268_v22 = vpop.permute.xlu1 %267 }
  0xcb   : > { %637 = vmatpush1.msra.mxu1 %v268_v22  ;;  %v283_v24 = vsel %vm281_vm5, %v266_v21, %v268_v22 }
  0xcc   : > { %565 = vmatprep.subr.mxu0 %v283_v24  ;;  %638 = vmatprep.subr.mxu1 %v829_v0 }
  0xcd   : > { %639 = vmatpush1.msra.mxu1 %v899_v5 }
  0xce   : > { %v264_v25 = vpop.permute.xlu0 %263  ;;  %640 = vmatprep.subr.mxu1 %v829_v0  ;;  %v516_v26 = vpop.permute.xlu1 %515 }
  0xcf   : > { %641 = vmatpush1.msra.mxu1 %v907_v8  ;;  %v282_v27 = vsel %vm281_vm5, %v264_v25, %v266_v21 }
  0xd0   : > { %566 = vmatpush1.msra.mxu0 %v282_v27  ;;  %642 = vmatprep.subr.mxu1 %v829_v0 }
  0xd1   : > { %567 = vmatprep.subr.mxu0 %v894_v4  ;;  %643 = vmatpush1.msra.mxu1 %v892_v3 }
  0xd2   : > { %v518_v28 = vpop.permute.xlu0 %517  ;;  %568 = vmatpush1.msra.mxu0 %v901_v6  ;;  %654 = vmatprep.subr.mxu1 %v829_v0  ;;  %v514_v5 = vpop.permute.xlu1 %513 }
  0xd3   : > { %569 = vmatprep.subr.mxu0 %v905_v7  ;;  %655 = vmatpush2.msra.mxu1 %v518_v28  ;;  %v525_v4 = vsel %vm519_vm6, %v516_v26, %v518_v28  ;;  %v524_v6 = vsel %vm519_vm6, %v514_v5, %v516_v26  ;;  %v703_v28 = vld [vmem:[%s239_s16] sm:$0x77]  ;;  %v704_v5 = vld [vmem:[%s239_s16 + $0x8] sm:$0x7] }
  0xd4   : > { %570 = vmatpush1.msra.mxu0 %v911_v9  ;;  %656 = vmatprep.subr.mxu1 %v829_v0 }
  0xd5   : > { %571 = vmatprep.subr.mxu0 %v884_v1 }
  0xd6   : > { %v510_v8 = vpop.permute.xlu0 %509  ;;  %572 = vmatpush1.msra.mxu0 %v886_v2  ;;  %v512_v3 = vpop.permute.xlu1 %511 }
  0xd7   : > { %583 = vmatprep.subr.mxu0 %v525_v4  ;;  %657 = vmatpush2.msra.mxu1 %v512_v3  ;;  %v523_v7 = vsel %vm519_vm6, %v510_v8, %v512_v3 }
  0xd8   : > { %584 = vmatpush2.msra.mxu0 %v524_v6  ;;  %658 = vmatprep.subr.mxu1 %v829_v0 }
  0xd9   : > { %585 = vmatprep.subr.mxu0 %v523_v7 }
  0xda   : > { %v508_v9 = vpop.permute.xlu0 %507  ;;  %v504_v29 = vpop.permute.xlu1 %503 }
  0xdb   : > { %v522_v1 = vsel %vm519_vm6, %v508_v9, %v510_v8 }
  0xdc   : > { %586 = vmatpush2.msra.mxu0 %v522_v1 }
  0xde   : > { %v506_v30 = vpop.permute.xlu0 %505  ;;  %v502_v2 = vpop.permute.xlu1 %501 }
  0xdf   : > { %659 = vmatpush2.msra.mxu1 %v506_v30  ;;  %v521_v31 = vsel %vm519_vm6, %v504_v29, %v506_v30  ;;  %v520_v32 = vsel %vm519_vm6, %v502_v2, %v504_v29 }
  0xe0   : > { %587 = vmatprep.subr.mxu0 %v521_v31  ;;  %660 = vmatprep.subr.mxu1 %v829_v0 }
  0xe1   : > { %588 = vmatpush2.msra.mxu0 %v520_v32 }
  0xe2   : > { %v482_v33 = vpop.permute.xlu0 %481  ;;  %v484_v34 = vpop.permute.xlu1 %483 }
  0xe3   : > { %v491_v35 = vsel %vm485_vm7, %v482_v33, %v484_v34  ;;  %661 = vmatpush2.msra.mxu1 %v484_v34 }
  0xe4   : > { %589 = vmatprep.subr.mxu0 %v491_v35  ;;  %662 = vmatprep.subr.mxu1 %v829_v0 }
  0xe6   : > { %v480_v36 = vpop.permute.xlu0 %479  ;;  %v476_v37 = vpop.permute.xlu1 %475 }
  0xe7   : > { %v490_v38 = vsel %vm485_vm7, %v480_v36, %v482_v33 }
  0xe8   : > { %590 = vmatpush2.msra.mxu0 %v490_v38 }
  0xea   : > { %v478_v39 = vpop.permute.xlu0 %477  ;;  %v474_v40 = vpop.permute.xlu1 %473 }
  0xeb   : > { %663 = vmatpush2.msra.mxu1 %v478_v39  ;;  %v489_v41 = vsel %vm485_vm7, %v476_v37, %v478_v39  ;;  %v488_v42 = vsel %vm485_vm7, %v474_v40, %v476_v37 }
  0xec   : > { %591 = vmatprep.subr.mxu0 %v489_v41  ;;  %664 = vmatprep.subr.mxu1 %v829_v0 }
  0xed   : > { %592 = vmatpush2.msra.mxu0 %v488_v42 }
  0xee   : > { %v470_v43 = vpop.permute.xlu0 %469  ;;  %v472_v44 = vpop.permute.xlu1 %471 }
  0xef   : > { %v487_v45 = vsel %vm485_vm7, %v470_v43, %v472_v44  ;;  %665 = vmatpush2.msra.mxu1 %v472_v44 }
  0xf0   : > { %593 = vmatprep.subr.mxu0 %v487_v45  ;;  %666 = vmatprep.subr.mxu1 %v829_v0 }
  0xf2   : > { %v468_v46 = vpop.permute.xlu0 %467  ;;  %v448_v47 = vpop.permute.xlu1 %447 }
  0xf3   : > { %v486_v48 = vsel %vm485_vm7, %v468_v46, %v470_v43 }
  0xf4   : > { %594 = vmatpush2.msra.mxu0 %v486_v48 }
  0xf6   : > { %v450_v49 = vpop.permute.xlu0 %449  ;;  %v446_v50 = vpop.permute.xlu1 %445 }
  0xf7   : > { %667 = vmatpush2.msra.mxu1 %v450_v49  ;;  %v457_v51 = vsel %vm451_vm8, %v448_v47, %v450_v49  ;;  %v456_v52 = vsel %vm451_vm8, %v446_v50, %v448_v47 }
  0xf8   : > { %595 = vmatprep.subr.mxu0 %v457_v51  ;;  %668 = vmatprep.subr.mxu1 %v829_v0 }
  0xf9   : > { %596 = vmatpush2.msra.mxu0 %v456_v52 }
  0xfa   : > { %v442_v53 = vpop.permute.xlu0 %441 }
  0xfb   : > { %v444_v54 = vpop.permute.xlu1 %443 }
  0xfc   : > { %v455_v55 = vsel %vm451_vm8, %v442_v53, %v444_v54  ;;  %669 = vmatpush2.msra.mxu1 %v444_v54 }
  0xfd   : > { %597 = vmatprep.subr.mxu0 %v455_v55  ;;  %670 = vmatprep.subr.mxu1 %v829_v0 }
  0xfe   : > { %v440_v56 = vpop.permute.xlu0 %439 }
  0xff   : > { %v436_v57 = vpop.permute.xlu1 %435  ;;  %v454_v58 = vsel %vm451_vm8, %v440_v56, %v442_v53 }
 0x100   : > { %598 = vmatpush2.msra.mxu0 %v454_v58 }
 0x102   : > { %v438_v59 = vpop.permute.xlu0 %437 }
 0x103   : > { %v434_v60 = vpop.permute.xlu1 %433  ;;  %671 = vmatpush2.msra.mxu1 %v438_v59  ;;  %v453_v61 = vsel %vm451_vm8, %v436_v57, %v438_v59 }
 0x104   : > { %599 = vmatprep.subr.mxu0 %v453_v61  ;;  %v452_v62 = vsel %vm451_vm8, %v434_v60, %v436_v57  ;;  %672 = vmatprep.subr.mxu1 %v829_v0 }
 0x105   : > { %600 = vmatpush2.msra.mxu0 %v452_v62 }
 0x106   : > { %v414_v63 = vpop.permute.xlu0 %413 }
 0x107   : > { %v416_v10 = vpop.permute.xlu1 %415 }
 0x108   : > { %v423_v11 = vsel %vm417_vm0, %v414_v63, %v416_v10  ;;  %673 = vmatpush2.msra.mxu1 %v416_v10 }
 0x109   : > { %601 = vmatprep.subr.mxu0 %v423_v11  ;;  %674 = vmatprep.subr.mxu1 %v829_v0 }
 0x10a   : > { %v412_v12 = vpop.permute.xlu0 %411 }
 0x10b   : > { %v408_v13 = vpop.permute.xlu1 %407  ;;  %v422_v14 = vsel %vm417_vm0, %v412_v12, %v414_v63 }
 0x10c   : > { %602 = vmatpush2.msra.mxu0 %v422_v14 }
 0x10e   : > { %v410_v15 = vpop.permute.xlu0 %409 }
 0x10f   : > { %v406_v16 = vpop.permute.xlu1 %405  ;;  %675 = vmatpush2.msra.mxu1 %v410_v15  ;;  %v421_v17 = vsel %vm417_vm0, %v408_v13, %v410_v15 }
 0x110   : > { %603 = vmatprep.subr.mxu0 %v421_v17  ;;  %v420_v18 = vsel %vm417_vm0, %v406_v16, %v408_v13  ;;  %677 = vmatmul.mubr.f32.vlgmr.msra.gmra.mxu1 %v986_v23 }
 0x111   : > { %604 = vmatpush2.msra.mxu0 %v420_v18 }
 0x112   : > { %606 = vmatmul.mubr.f32.vlgmr.msra.gmra.mxu0 %v986_v23  ;;  %v706_v23 = vcombine.high %v703_v28, %v703_v28 }
 0x11b   : > { %v686_v0 = vpop.permute.xlu0 %685 }
 0x11c   : > { %v695_v21 = vpop.permute.xlu1 %694 }
 0x1d0   : > { %v678_v19 = vpop.f32.mrf.mxu1 }
 0x1d1   : > { %v690_v20 = vmul.f32 %v686_v0, %v678_v19 }
 0x1d2   : > { %v607_v22 = vpop.f32.mrf.mxu0  ;;  %v680_v24 = vpop.f32.mrf.mxu1 }
 0x1d3   : > { %v688_v25 = vmul.f32 %v686_v0, %v607_v22  ;;  %v699_v26 = vadd.f32 %v695_v21, %v690_v20 }
 0x1d4   : > { %v609_v27 = vpop.f32.mrf.mxu0 }
 0x1d5   : > { %v689_v8 = vmul.f32 %v686_v0, %v609_v27  ;;  %v697_v3 = vadd.f32 %v695_v21, %v688_v25  ;;  %v702_v4 = vmax.f32 %v699_v26, 0.0 }
 0x1d7   : > { %v698_v6 = vadd.f32 %v695_v21, %v689_v8  ;;  %v700_v7 = vmax.f32 %v697_v3, 0.0  ;;  %v710_v9 = vadd.f32 %v704_v5, %v702_v4 }
 0x1d9   : > { %v701_v29 = vmax.f32 %v698_v6, 0.0  ;;  %717 = vst.msk [vmem:[%s244_s20 + $0x8] sm:$0x7] %vm716_vm9, %v710_v9  ;;  %v708_v1 = vadd.f32 %v703_v28, %v700_v7 }
 0x1db   : > { %v709_v30 = vadd.f32 %v706_v23, %v701_v29 }
 0x1dd   : > { %v713_v2 = vcombine.low %v708_v1, %v709_v30 }
 0x1df   : > { %715 = vst [vmem:[%s244_s20] sm:$0x77] %v713_v2 }
 0x1e0 PF: > { %s15_s18 = sadd.s32 1, %s827_s18  }
 0x1e1   : > { %p12_p4 = scmp.ge.s32.totalorder %s15_s18, 4  }
 0x1e3   :  { %14 = sbr.rel (!%p12_p4) target bundleno = 1 (0x1), region = 73 }

// kernel: rsu5_forward.30
= control target key start
LH: loop header
LB: loop body
LE: loop exit
PB: predicated region body
PF: predicated region fallthrough
CT: control target
= control target key end

     0   :  { %s2535_s12 = smov 0   ;;  %s2717_s0 = inlined_call_operand.vmem [shape: f32[16,8], index: 0, kind: input, shape index: {}]   ;;  %s2718_s1 = inlined_call_operand.vmem [shape: f32[8,16], index: 1, kind: input, shape index: {}]   ;;  %s2719_s2 = inlined_call_operand.vmem [shape: f32[2,12,8,8], index: 2, kind: input, shape index: {}]   ;;  %s2720_s3 = inlined_call_operand.vmem [shape: f32[2,12,16,16], index: 3, kind: output, shape index: {}]  }
   0x1 LB: > { %s2215_s13 = sadd.s32 4294967295, %s2513_s12   ;;  %p2219_p0 = scmp.ge.s32.totalorder %s2513_s12, 1  ;;  %s2513_s12 = sphi %s2535_s12, %s13_s12  }
   0x2   : > { %p137_p1 = scmp.lt.s32.totalorder %s2513_s12, 3 }
   0x4   : > { %p138_p2 = pnand %p2219_p0, %p137_p1 }
   0x5   : > { %p161_p3 = scmp.lt.s32.totalorder (!%p138_p2), %s2215_s13, 1 }
   0x6   : > { %141 = sbr.rel (%p138_p2) target bundleno = 458 (0x1ca), region = 32 }
   0xb   : > { %v2546_v0 = vld [vmem:[%s2717_s0] sm:$0xff]  ;;  %vm175_vm0 = vcmask 64512   ;;  %s2722_s13 = smov (!%p161_p3, %s2215_s13), 1  ;;  %v172_v2 = vld [vmem:[%s2717_s0 + $0x8] sm:$0xff]  ;;  %vm342_vm1 = vcmask 130048  }
   0xc   : > { %2379 = vmatprep.mubr.msk.f32.mxu0 %vm175_vm0, %v2546_v0  ;;  %s2497_s16 = smul.u32 96, %s2722_s13  ;;  %v2610_v14 = vld [vmem:[%s2718_s1] sm:$0xff] }
   0xd   : > { %2382 = vmatprep.subr.mxu1 %v2610_v14  ;;  %s2498_s24 = smul.u32 192, %s2722_s13 }
   0xe   : > { %s2556_s19 = scalar_lea.vmem %s2719_s2, %s2497_s16  ;;  %2383 = vmatpush3.msra.mxu1 %v2610_v14 }
   0xf   : > { %v174_v1 = vld [vmem:[%s2556_s19] sm:$0xff]  ;;  %v2226_v3 = vld [vmem:[%s2556_s19 + $0x8] sm:$0xff]  ;;  %v2233_v4 = vld [vmem:[%s2556_s19 + $0x10] sm:$0xff]  ;;  %2392 = vmatprep.subr.mxu1 %v2610_v14  ;;  %s2664_s27 = scalar_lea.vmem %s2720_s3, %s2498_s24 }
  0x10   : > { %2377 = vmatprep.subr.mxu0 %v174_v1  ;;  %v2240_v5 = vld [vmem:[%s2556_s19 + $0x18] sm:$0xff]  ;;  %v2247_v6 = vld [vmem:[%s2556_s19 + $0x20] sm:$0xff]  ;;  %v2254_v7 = vld [vmem:[%s2556_s19 + $0x28] sm:$0xff] }
  0x11   : > { %2378 = vmatpush3.msra.mxu0 %v174_v1  ;;  %v2261_v8 = vld [vmem:[%s2556_s19 + $0x30] sm:$0xff]  ;;  %v2268_v9 = vld [vmem:[%s2556_s19 + $0x38] sm:$0xff]  ;;  %v2275_v10 = vld [vmem:[%s2556_s19 + $0x40] sm:$0xff] }
  0x12   : > { %2380 = vmatmul.mubr.msk.f32.vlgmr.msra.gmra.mxu0 %vm175_vm0, %v172_v2  ;;  %2387 = vmatprep.subr.mxu0 %v2226_v3  ;;  %v2282_v11 = vld [vmem:[%s2556_s19 + $0x48] sm:$0xff]  ;;  %v2289_v12 = vld [vmem:[%s2556_s19 + $0x50] sm:$0xff]  ;;  %v2296_v13 = vld [vmem:[%s2556_s19 + $0x58] sm:$0xff] }
  0x13   : > { %2388 = vmatpush3.msra.mxu0 %v2226_v3  ;;  %2389 = vmatprep.mubr.msk.f32.mxu0 %vm175_vm0, %v2546_v0 }
  0x14   : > { %2397 = vmatprep.subr.mxu0 %v2233_v4 }
  0x16   : > { %2390 = vmatmul.mubr.msk.f32.vlgmr.msra.gmra.mxu0 %vm175_vm0, %v172_v2 }
  0x17   : > { %2398 = vmatpush3.msra.mxu0 %v2233_v4  ;;  %2399 = vmatprep.mubr.msk.f32.mxu0 %vm175_vm0, %v2546_v0 }
  0x18   : > { %2407 = vmatprep.subr.mxu0 %v2240_v5 }
  0x1a   : > { %2400 = vmatmul.mubr.msk.f32.vlgmr.msra.gmra.mxu0 %vm175_vm0, %v172_v2 }
  0x1b   : > { %2408 = vmatpush3.msra.mxu0 %v2240_v5  ;;  %2409 = vmatprep.mubr.msk.f32.mxu0 %vm175_vm0, %v2546_v0 }
  0x1c   : > { %2417 = vmatprep.subr.mxu0 %v2247_v6 }
  0x1e   : > { %2410 = vmatmul.mubr.msk.f32.vlgmr.msra.gmra.mxu0 %vm175_vm0, %v172_v2 }
  0x1f   : > { %2418 = vmatpush3.msra.mxu0 %v2247_v6  ;;  %2419 = vmatprep.mubr.msk.f32.mxu0 %vm175_vm0, %v2546_v0 }
  0x20   : > { %2427 = vmatprep.subr.mxu0 %v2254_v7 }
  0x22   : > { %2420 = vmatmul.mubr.msk.f32.vlgmr.msra.gmra.mxu0 %vm175_vm0, %v172_v2 }
  0x23   : > { %2428 = vmatpush3.msra.mxu0 %v2254_v7  ;;  %2429 = vmatprep.mubr.msk.f32.mxu0 %vm175_vm0, %v2546_v0 }
  0x24   : > { %2437 = vmatprep.subr.mxu0 %v2261_v8 }
  0x26   : > { %2430 = vmatmul.mubr.msk.f32.vlgmr.msra.gmra.mxu0 %vm175_vm0, %v172_v2 }
  0x27   : > { %2438 = vmatpush3.msra.mxu0 %v2261_v8  ;;  %2439 = vmatprep.mubr.msk.f32.mxu0 %vm175_vm0, %v2546_v0 }
  0x28   : > { %2447 = vmatprep.subr.mxu0 %v2268_v9 }
  0x2a   : > { %2440 = vmatmul.mubr.msk.f32.vlgmr.msra.gmra.mxu0 %vm175_vm0, %v172_v2 }
  0x2b   : > { %2448 = vmatpush3.msra.mxu0 %v2268_v9  ;;  %2449 = vmatprep.mubr.msk.f32.mxu0 %vm175_vm0, %v2546_v0 }
  0x2c   : > { %2457 = vmatprep.subr.mxu0 %v2275_v10 }
  0x2e   : > { %2450 = vmatmul.mubr.msk.f32.vlgmr.msra.gmra.mxu0 %vm175_vm0, %v172_v2 }
  0x2f   : > { %2458 = vmatpush3.msra.mxu0 %v2275_v10  ;;  %2459 = vmatprep.mubr.msk.f32.mxu0 %vm175_vm0, %v2546_v0 }
  0x30   : > { %2467 = vmatprep.subr.mxu0 %v2282_v11 }
  0x32   : > { %2460 = vmatmul.mubr.msk.f32.vlgmr.msra.gmra.mxu0 %vm175_vm0, %v172_v2 }
  0x33   : > { %2468 = vmatpush3.msra.mxu0 %v2282_v11  ;;  %2469 = vmatprep.mubr.msk.f32.mxu0 %vm175_vm0, %v2546_v0 }
  0x34   : > { %2477 = vmatprep.subr.mxu0 %v2289_v12 }
  0x36   : > { %2470 = vmatmul.mubr.msk.f32.vlgmr.msra.gmra.mxu0 %vm175_vm0, %v172_v2 }
  0x37   : > { %2478 = vmatpush3.msra.mxu0 %v2289_v12  ;;  %2479 = vmatprep.mubr.msk.f32.mxu0 %vm175_vm0, %v2546_v0 }
  0x38   : > { %2487 = vmatprep.subr.mxu0 %v2296_v13 }
  0x3a   : > { %2480 = vmatmul.mubr.msk.f32.vlgmr.msra.gmra.mxu0 %vm175_vm0, %v172_v2 }
  0x3b   : > { %2488 = vmatpush3.msra.mxu0 %v2296_v13  ;;  %2489 = vmatprep.mubr.msk.f32.mxu0 %vm175_vm0, %v2546_v0 }
  0x3e   : > { %2490 = vmatmul.mubr.msk.f32.vlgmr.msra.gmra.mxu0 %vm175_vm0, %v172_v2 }
  0xd2   : > { %v2381_v15 = vpop.f32.mrf.mxu0 }
  0xd4   : > { %v248_v16 = vpop.f32.mrf.mxu0 }
  0xd5   : > { %2384 = vmatprep.mubr.msk.f32.mxu1 %vm175_vm0, %v248_v16 }
  0xd6   : > { %2385 = vmatmul.mubr.msk.f32.vlgmr.msra.gmra.mxu1 %vm175_vm0, %v2381_v15  ;;  %v2391_v17 = vpop.f32.mrf.mxu0 }
  0xd7   : > { %2393 = vmatpush3.msra.mxu1 %v2610_v14 }
  0xd8   : > { %v413_v18 = vpop.f32.mrf.mxu0  ;;  %2402 = vmatprep.subr.mxu1 %v2610_v14 }
  0xd9   : > { %2394 = vmatprep.mubr.msk.f32.mxu1 %vm175_vm0, %v413_v18 }
  0xda   : > { %2395 = vmatmul.mubr.msk.f32.vlgmr.msra.gmra.mxu1 %vm175_vm0, %v2391_v17  ;;  %v2401_v19 = vpop.f32.mrf.mxu0 }
  0xdb   : > { %2403 = vmatpush3.msra.mxu1 %v2610_v14 }
  0xdc   : > { %v578_v20 = vpop.f32.mrf.mxu0  ;;  %2412 = vmatprep.subr.mxu1 %v2610_v14 }
  0xdd   : > { %2404 = vmatprep.mubr.msk.f32.mxu1 %vm175_vm0, %v578_v20 }
  0xde   : > { %2405 = vmatmul.mubr.msk.f32.vlgmr.msra.gmra.mxu1 %vm175_vm0, %v2401_v19  ;;  %v2411_v21 = vpop.f32.mrf.mxu0 }
  0xdf   : > { %2413 = vmatpush3.msra.mxu1 %v2610_v14 }
  0xe0   : > { %v743_v22 = vpop.f32.mrf.mxu0  ;;  %2422 = vmatprep.subr.mxu1 %v2610_v14 }
  0xe1   : > { %2414 = vmatprep.mubr.msk.f32.mxu1 %vm175_vm0, %v743_v22 }
  0xe2   : > { %2415 = vmatmul.mubr.msk.f32.vlgmr.msra.gmra.mxu1 %vm175_vm0, %v2411_v21  ;;  %v2421_v23 = vpop.f32.mrf.mxu0 }
  0xe3   : > { %2423 = vmatpush3.msra.mxu1 %v2610_v14 }
  0xe4   : > { %v908_v24 = vpop.f32.mrf.mxu0  ;;  %2432 = vmatprep.subr.mxu1 %v2610_v14 }
  0xe5   : > { %2424 = vmatprep.mubr.msk.f32.mxu1 %vm175_vm0, %v908_v24 }
  0xe6   : > { %2425 = vmatmul.mubr.msk.f32.vlgmr.msra.gmra.mxu1 %vm175_vm0, %v2421_v23  ;;  %v2431_v25 = vpop.f32.mrf.mxu0 }
  0xe7   : > { %2433 = vmatpush3.msra.mxu1 %v2610_v14 }
  0xe8   : > { %v1073_v26 = vpop.f32.mrf.mxu0  ;;  %2442 = vmatprep.subr.mxu1 %v2610_v14 }
  0xe9   : > { %2434 = vmatprep.mubr.msk.f32.mxu1 %vm175_vm0, %v1073_v26 }
  0xea   : > { %2435 = vmatmul.mubr.msk.f32.vlgmr.msra.gmra.mxu1 %vm175_vm0, %v2431_v25  ;;  %v2441_v27 = vpop.f32.mrf.mxu0 }
  0xeb   : > { %2443 = vmatpush3.msra.mxu1 %v2610_v14 }
  0xec   : > { %v1238_v28 = vpop.f32.mrf.mxu0  ;;  %2452 = vmatprep.subr.mxu1 %v2610_v14 }
  0xed   : > { %2444 = vmatprep.mubr.msk.f32.mxu1 %vm175_vm0, %v1238_v28 }
  0xee   : > { %2445 = vmatmul.mubr.msk.f32.vlgmr.msra.gmra.mxu1 %vm175_vm0, %v2441_v27  ;;  %v2451_v29 = vpop.f32.mrf.mxu0 }
  0xef   : > { %2453 = vmatpush3.msra.mxu1 %v2610_v14 }
  0xf0   : > { %v1403_v30 = vpop.f32.mrf.mxu0  ;;  %2462 = vmatprep.subr.mxu1 %v2610_v14 }
  0xf1   : > { %2454 = vmatprep.mubr.msk.f32.mxu1 %vm175_vm0, %v1403_v30 }
  0xf2   : > { %2455 = vmatmul.mubr.msk.f32.vlgmr.msra.gmra.mxu1 %vm175_vm0, %v2451_v29  ;;  %v2461_v31 = vpop.f32.mrf.mxu0 }
  0xf3   : > { %2463 = vmatpush3.msra.mxu1 %v2610_v14 }
  0xf4   : > { %v1568_v32 = vpop.f32.mrf.mxu0  ;;  %2472 = vmatprep.subr.mxu1 %v2610_v14 }
  0xf5   : > { %2464 = vmatprep.mubr.msk.f32.mxu1 %vm175_vm0, %v1568_v32 }
  0xf6   : > { %2465 = vmatmul.mubr.msk.f32.vlgmr.msra.gmra.mxu1 %vm175_vm0, %v2461_v31  ;;  %v2471_v33 = vpop.f32.mrf.mxu0 }
  0xf7   : > { %2473 = vmatpush3.msra.mxu1 %v2610_v14 }
  0xf8   : > { %v1733_v34 = vpop.f32.mrf.mxu0  ;;  %2482 = vmatprep.subr.mxu1 %v2610_v14 }
  0xf9   : > { %2474 = vmatprep.mubr.msk.f32.mxu1 %vm175_vm0, %v1733_v34 }
  0xfa   : > { %2475 = vmatmul.mubr.msk.f32.vlgmr.msra.gmra.mxu1 %vm175_vm0, %v2471_v33  ;;  %v2481_v35 = vpop.f32.mrf.mxu0 }
  0xfb   : > { %2483 = vmatpush3.msra.mxu1 %v2610_v14 }
  0xfc   : > { %v1898_v36 = vpop.f32.mrf.mxu0  ;;  %2492 = vmatprep.subr.mxu1 %v2610_v14 }
  0xfd   : > { %2484 = vmatprep.mubr.msk.f32.mxu1 %vm175_vm0, %v1898_v36 }
  0xfe   : > { %2485 = vmatmul.mubr.msk.f32.vlgmr.msra.gmra.mxu1 %vm175_vm0, %v2481_v35  ;;  %v2491_v37 = vpop.f32.mrf.mxu0 }
  0xff   : > { %2493 = vmatpush3.msra.mxu1 %v2610_v14 }
 0x100   : > { %v2063_v38 = vpop.f32.mrf.mxu0 }
 0x101   : > { %2494 = vmatprep.mubr.msk.f32.mxu1 %vm175_vm0, %v2063_v38 }
 0x102   : > { %2495 = vmatmul.mubr.msk.f32.vlgmr.msra.gmra.mxu1 %vm175_vm0, %v2491_v37 }
 0x196   : > { %v2386_v39 = vpop.f32.mrf.mxu1 }
 0x197   : > { %v339_v40 = vmax.f32 %v2386_v39, 0.0 }
 0x198   : > { %v329_v41 = vpop.f32.mrf.mxu1 }
 0x199   : > { %v341_v42 = vmin.f32 %v339_v40, 255.0  ;;  %v338_v43 = vmax.f32 %v329_v41, 0.0 }
 0x19a   : > { %v2396_v44 = vpop.f32.mrf.mxu1 }
 0x19b   : > { %344 = vst.msk [vmem:[%s2664_s27 + $0x8] sm:$0xff] %vm342_vm1, %v341_v42  ;;  %v340_v45 = vmin.f32 %v338_v43, 255.0  ;;  %v504_v46 = vmax.f32 %v2396_v44, 0.0 }
 0x19c   : > { %v494_v47 = vpop.f32.mrf.mxu1 }
 0x19d   : > { %343 = vst.msk [vmem:[%s2664_s27] sm:$0xff] %vm342_vm1, %v340_v45  ;;  %v506_v48 = vmin.f32 %v504_v46, 255.0  ;;  %v503_v49 = vmax.f32 %v494_v47, 0.0 }
 0x19e   : > { %v2406_v50 = vpop.f32.mrf.mxu1 }
 0x19f   : > { %2232 = vst.msk [vmem:[%s2664_s27 + $0x18] sm:$0xff] %vm342_vm1, %v506_v48  ;;  %v505_v51 = vmin.f32 %v503_v49, 255.0  ;;  %v669_v52 = vmax.f32 %v2406_v50, 0.0 }
 0x1a0   : > { %v659_v53 = vpop.f32.mrf.mxu1 }
 0x1a1   : > { %2231 = vst.msk [vmem:[%s2664_s27 + $0x10] sm:$0xff] %vm342_vm1, %v505_v51  ;;  %v671_v54 = vmin.f32 %v669_v52, 255.0  ;;  %v668_v55 = vmax.f32 %v659_v53, 0.0 }
 0x1a2   : > { %v2416_v56 = vpop.f32.mrf.mxu1 }
 0x1a3   : > { %2239 = vst.msk [vmem:[%s2664_s27 + $0x28] sm:$0xff] %vm342_vm1, %v671_v54  ;;  %v670_v57 = vmin.f32 %v668_v55, 255.0  ;;  %v834_v58 = vmax.f32 %v2416_v56, 0.0 }
 0x1a4   : > { %v824_v59 = vpop.f32.mrf.mxu1 }
 0x1a5   : > { %2238 = vst.msk [vmem:[%s2664_s27 + $0x20] sm:$0xff] %vm342_vm1, %v670_v57  ;;  %v836_v60 = vmin.f32 %v834_v58, 255.0  ;;  %v833_v61 = vmax.f32 %v824_v59, 0.0 }
 0x1a6   : > { %v2426_v62 = vpop.f32.mrf.mxu1 }
 0x1a7   : > { %2246 = vst.msk [vmem:[%s2664_s27 + $0x38] sm:$0xff] %vm342_vm1, %v836_v60  ;;  %v835_v63 = vmin.f32 %v833_v61, 255.0  ;;  %v999_v0 = vmax.f32 %v2426_v62, 0.0 }
 0x1a8   : > { %v989_v1 = vpop.f32.mrf.mxu1 }
 0x1a9   : > { %2245 = vst.msk [vmem:[%s2664_s27 + $0x30] sm:$0xff] %vm342_vm1, %v835_v63  ;;  %v1001_v2 = vmin.f32 %v999_v0, 255.0  ;;  %v998_v3 = vmax.f32 %v989_v1, 0.0 }
 0x1aa   : > { %v2436_v4 = vpop.f32.mrf.mxu1 }
 0x1ab   : > { %2253 = vst.msk [vmem:[%s2664_s27 + $0x48] sm:$0xff] %vm342_vm1, %v1001_v2  ;;  %v1000_v5 = vmin.f32 %v998_v3, 255.0  ;;  %v1164_v6 = vmax.f32 %v2436_v4, 0.0 }
 0x1ac   : > { %v1154_v7 = vpop.f32.mrf.mxu1 }
 0x1ad   : > { %2252 = vst.msk [vmem:[%s2664_s27 + $0x40] sm:$0xff] %vm342_vm1, %v1000_v5  ;;  %v1166_v8 = vmin.f32 %v1164_v6, 255.0  ;;  %v1163_v9 = vmax.f32 %v1154_v7, 0.0 }
 0x1ae   : > { %v2446_v10 = vpop.f32.mrf.mxu1 }
 0x1af   : > { %2260 = vst.msk [vmem:[%s2664_s27 + $0x58] sm:$0xff] %vm342_vm1, %v1166_v8  ;;  %v1165_v11 = vmin.f32 %v1163_v9, 255.0  ;;  %v1329_v12 = vmax.f32 %v2446_v10, 0.0 }
 0x1b0   : > { %v1319_v13 = vpop.f32.mrf.mxu1 }
 0x1b1   : > { %2259 = vst.msk [vmem:[%s2664_s27 + $0x50] sm:$0xff] %vm342_vm1, %v1165_v11  ;;  %v1331_v14 = vmin.f32 %v1329_v12, 255.0  ;;  %v1328_v15 = vmax.f32 %v1319_v13, 0.0 }
 0x1b2   : > { %v2456_v16 = vpop.f32.mrf.mxu1 }
 0x1b3   : > { %2267 = vst.msk [vmem:[%s2664_s27 + $0x68] sm:$0xff] %vm342_vm1, %v1331_v14  ;;  %v1330_v17 = vmin.f32 %v1328_v15, 255.0  ;;  %v1494_v18 = vmax.f32 %v2456_v16, 0.0 }
 0x1b4   : > { %v1484_v19 = vpop.f32.mrf.mxu1 }
 0x1b5   : > { %2266 = vst.msk [vmem:[%s2664_s27 + $0x60] sm:$0xff] %vm342_vm1, %v1330_v17  ;;  %v1496_v20 = vmin.f32 %v1494_v18, 255.0  ;;  %v1493_v21 = vmax.f32 %v1484_v19, 0.0 }
 0x1b6   : > { %v2466_v22 = vpop.f32.mrf.mxu1 }
 0x1b7   : > { %2274 = vst.msk [vmem:[%s2664_s27 + $0x78] sm:$0xff] %vm342_vm1, %v1496_v20  ;;  %v1495_v23 = vmin.f32 %v1493_v21, 255.0  ;;  %v1659_v24 = vmax.f32 %v2466_v22, 0.0 }
 0x1b8   : > { %v1649_v25 = vpop.f32.mrf.mxu1 }
 0x1b9   : > { %2273 = vst.msk [vmem:[%s2664_s27 + $0x70] sm:$0xff] %vm342_vm1, %v1495_v23  ;;  %v1661_v26 = vmin.f32 %v1659_v24, 255.0  ;;  %v1658_v27 = vmax.f32 %v1649_v25, 0.0 }
 0x1ba   : > { %v2476_v28 = vpop.f32.mrf.mxu1 }
 0x1bb   : > { %2281 = vst.msk [vmem:[%s2664_s27 + $0x88] sm:$0xff] %vm342_vm1, %v1661_v26  ;;  %v1660_v29 = vmin.f32 %v1658_v27, 255.0  ;;  %v1824_v30 = vmax.f32 %v2476_v28, 0.0 }
 0x1bc   : > { %v1814_v31 = vpop.f32.mrf.mxu1 }
 0x1bd   : > { %2280 = vst.msk [vmem:[%s2664_s27 + $0x80] sm:$0xff] %vm342_vm1, %v1660_v29  ;;  %v1826_v32 = vmin.f32 %v1824_v30, 255.0  ;;  %v1823_v33 = vmax.f32 %v1814_v31, 0.0 }
 0x1be   : > { %v2486_v34 = vpop.f32.mrf.mxu1 }
 0x1bf   : > { %2288 = vst.msk [vmem:[%s2664_s27 + $0x98] sm:$0xff] %vm342_vm1, %v1826_v32  ;;  %v1825_v35 = vmin.f32 %v1823_v33, 255.0  ;;  %v1989_v36 = vmax.f32 %v2486_v34, 0.0 }
 0x1c0   : > { %v1979_v37 = vpop.f32.mrf.mxu1 }
 0x1c1   : > { %2287 = vst.msk [vmem:[%s2664_s27 + $0x90] sm:$0xff] %vm342_vm1, %v1825_v35  ;;  %v1991_v38 = vmin.f32 %v1989_v36, 255.0  ;;  %v1988_v39 = vmax.f32 %v1979_v37, 0.0 }
 0x1c2   : > { %v2496_v40 = vpop.f32.mrf.mxu1 }
 0x1c3   : > { %2295 = vst.msk [vmem:[%s2664_s27 + $0xa8] sm:$0xff] %vm342_vm1, %v1991_v38  ;;  %v1990_v41 = vmin.f32 %v1988_v39, 255.0  ;;  %v2154_v42 = vmax.f32 %v2496_v40, 0.0 }
 0x1c4   : > { %v2144_v43 = vpop.f32.mrf.mxu1 }
 0x1c5   : > { %2294 = vst.msk [vmem:[%s2664_s27 + $0xa0] sm:$0xff] %vm342_vm1, %v1990_v41  ;;  %v2156_v44 = vmin.f32 %v2154_v42, 255.0  ;;  %v2153_v45 = vmax.f32 %v2144_v43, 0.0 }
 0x1c7   : > { %2302 = vst.msk [vmem:[%s2664_s27 + $0xb8] sm:$0xff] %vm342_vm1, %v2156_v44  ;;  %v2155_v46 = vmin.f32 %v2153_v45, 255.0 }
 0x1c9   : > { %2301 = vst.msk [vmem:[%s2664_s27 + $0xb0] sm:$0xff] %vm342_vm1, %v2155_v46 }
 0x1ca PF: > { %s13_s12 = sadd.s32 1, %s2513_s12  }
 0x1cb   : > { %p10_p4 = scmp.ge.s32.totalorder %s13_s12, 4  }
 0x1cd   :  { %12 = sbr.rel (!%p10_p4) target bundleno = 1 (0x1), region = 84 }

</bundles_post_ra>
